<compile_context>
chip_gen: v7x
topology: tpu7x:2x2x1
jax: 0.10.0
libtpu: 0.0.40
codegen_flags: <defaults>
</compile_context>

<pallas_src>
import functools

import jax
import jax.numpy as jnp
import numpy as np
from jax import lax
from jax.experimental import pallas as pl
from jax.experimental.pallas import tpu as pltpu

TAU = 2.0    # LIF tau
V_TH = 1.0   # LIF threshold (v_reset = 0, hard reset)


def _lif_step(v, x):
    """One LIF timestep: charge (decay_input, v_reset=0), fire, hard reset."""
    v = v + (x - v) / TAU
    spike = (v >= V_TH).astype(jnp.float32)
    v = v * (1.0 - spike)
    return v, spike


def _fold_bn(gamma, beta, mean, var, eps=1e-5):
    s = gamma / jnp.sqrt(var + eps)
    return s, beta - mean * s


def _round_up(x, m):
    return (x + m - 1) // m * m


def _vmem_limit_bytes():
    """Per-generation scoped-VMEM cap: ~96 MiB on 128 MiB parts (v5e/v6e),
    ~48 MiB on 64 MiB parts (v7x)."""
    cap = 64 * 1024 * 1024
    try:
        cap = int(pltpu.get_tpu_info().vmem_capacity_bytes)
    except Exception:
        pass
    return min(cap * 3 // 4, 96 * 1024 * 1024)


def _largest_div_tile(N, upper, lower):
    upper = min(upper, N, 8192)
    upper -= upper % 8
    lower = max(8, min(lower, N))
    for tile in range(upper, lower - 1, -8):
        if N % tile == 0:
            return tile
    return None


def _pick_tile_n(N, row_bytes, budget):
    """Rows-per-block for the 1x1 stages.  Prefers exact divisors of N (no pad
    copies), multiples of 8 (sublane), and >= 4 (at least 2) grid steps so the
    Pallas pipeline can overlap DMA with compute; capped by the modelled VMEM
    working set (2x in + 2x out + residual blocks + in-kernel temporaries)."""
    cap = max(8, budget // max(row_bytes, 1))
    for min_steps in (4, 2, 1):
        t = _largest_div_tile(N, min(cap, max(N // min_steps, 8)), min(128, N))
        if t is not None:
            return t, N
    # TODO(synk): mask the ragged tail in-kernel instead of this pad fallback.
    tile = max(128, min(cap, 1024, _round_up(N, 128)) // 128 * 128)
    return tile, _round_up(N, tile)


def _pick_pack(c_blk, GS):
    """Lane width of one block-diagonal grouped matmul: the largest multiple of
    the group size <= 256 (MXU N width) that divides the channel block."""
    best = GS
    p = GS
    while p <= min(c_blk, 256):
        if c_blk % p == 0:
            best = p
        p += GS
    return best


def _pick_cblock(C, GS, T, H, W, budget):
    """Largest channel block whose grouped-conv working set (double-buffered
    in / out / residual blocks + f32 halo scratch + matmul temporaries +
    block-diagonal weights) fits the scoped-VMEM budget."""
    def ws(cb):
        blk = T * H * W * cb * 4
        pad = T * (H + 2) * (W + 2) * cb * 4
        pk = _pick_pack(cb, GS)
        tmp = T * H * W * pk * (2 + 4 + 4)          # bf16 window + f32 acc + f32 y
        wgt = 2 * (cb // pk) * 9 * pk * pk * 2
        return 6 * blk + pad + tmp + wgt
    for cand in (512, 256, 128):
        if cand < C and C % cand == 0 and cand % GS == 0 and ws(cand) <= budget:
            return cand
    # full-extent fallback (also the path for C < 128).
    return C


# --------------------- up: LIF -> Conv1x1 -> BN --------------------------------
def up_kernel(x_ref, w_ref, s_ref, b_ref, o_ref):
    # x_ref: [T, TN, Cin] f32   w_ref: [Cin, Cout] bf16   s/b: [1, Cout] f32
    T = x_ref.shape[0]
    v = jnp.zeros(x_ref.shape[1:], jnp.float32)
    w = w_ref[...]
    sv = s_ref[...]
    bv = b_ref[...]
    # One matmul per timestep (M = tile_n already saturates the MXU M dim);
    # keeps only a single spike tile live instead of a T-way stack.
    for t in range(T):
        v, spk = _lif_step(v, x_ref[t])
        y = jnp.dot(spk.astype(jnp.bfloat16), w, preferred_element_type=jnp.float32)
        o_ref[t] = (y * sv + bv).astype(o_ref.dtype)


# --------- conv stage: LIF -> grouped Conv3x3 (pad=1) -> BN (+res) -------------
def gconv_kernel(*refs, add_residual):
    # x_ref/res_ref/o_ref: [T, H, W, Cb]  (batch dim squeezed by the BlockSpec)
    # w_ref: [ppb*9, pack, pack]  block-diagonal weights, row = pack_idx*9 + tap
    # s/b: [1, Cb] ; spad_ref: VMEM scratch [T, H+2, W+2, Cb] with a zero halo.
    if add_residual:
        x_ref, res_ref, w_ref, s_ref, b_ref, o_ref, spad_ref = refs
    else:
        x_ref, w_ref, s_ref, b_ref, o_ref, spad_ref = refs
        res_ref = None
    T, H, W, Cb = x_ref.shape
    ppb = w_ref.shape[0] // 9
    pack = w_ref.shape[1]
    Npix = T * H * W

    # Zero only the 1-pixel halo; the interior is fully overwritten below.
    zrow = jnp.zeros((T, 1, W + 2, Cb), jnp.float32)
    zcol = jnp.zeros((T, H + 2, 1, Cb), jnp.float32)
    spad_ref[:, pl.ds(0, 1), :, :] = zrow
    spad_ref[:, pl.ds(H + 1, 1), :, :] = zrow
    spad_ref[:, :, pl.ds(0, 1), :] = zcol
    spad_ref[:, :, pl.ds(W + 1, 1), :] = zcol

    # LIF recurrence over T; write spikes into the padded scratch.
    v = jnp.zeros((H, W, Cb), jnp.float32)
    for t in range(T):
        v, spk = _lif_step(v, x_ref[t])
        spad_ref[pl.ds(t, 1), pl.ds(1, H), pl.ds(1, W), :] = spk.reshape(1, H, W, Cb)

    sv = s_ref[...]   # (1, Cb)
    bv = b_ref[...]

    # Grouped 3x3 conv: per pack (>=128 lanes where possible) accumulate nine
    # (Npix, pack) @ (pack, pack) bf16 matmuls (block-diagonal weights cover
    # pack/GS groups at once).  No lane concat, one lane-dense store per pack.
    for p in range(ppb):
        lo = p * pack
        acc = jnp.zeros((Npix, pack), jnp.float32)
        for ky in range(3):
            for kx in range(3):
                win = spad_ref[:, pl.ds(ky, H), pl.ds(kx, W), pl.ds(lo, pack)]
                acc = acc + jnp.dot(win.reshape(Npix, pack).astype(jnp.bfloat16),
                                    w_ref[p * 9 + ky * 3 + kx],
                                    preferred_element_type=jnp.float32)
        y = acc * sv[:, lo:lo + pack] + bv[:, lo:lo + pack]
        y = y.reshape(T, H, W, pack)
        if add_residual:   # fused "+ x_feat_in" on the last conv stage
            y = y + res_ref[:, :, :, pl.ds(lo, pack)]
        if ppb == 1:
            o_ref[...] = y.astype(o_ref.dtype)
        else:
            o_ref[:, :, :, pl.ds(lo, pack)] = y.astype(o_ref.dtype)


# ------------- down: LIF -> Conv1x1 -> BN -> + x_feat_out -----------------------
def down_kernel(xc_ref, xres_ref, w_ref, s_ref, b_ref, o_ref):
    # xc: conv-stack output (x_feat_in residual already folded in)
    # xres: the original GWFFN input (x_feat_out)
    T = xc_ref.shape[0]
    v = jnp.zeros(xc_ref.shape[1:], jnp.float32)
    w = w_ref[...]
    sv = s_ref[...]
    bv = b_ref[...]
    for t in range(T):
        v, spk = _lif_step(v, xc_ref[t])
        y = jnp.dot(spk.astype(jnp.bfloat16), w, preferred_element_type=jnp.float32)
        o_ref[t] = (y * sv + bv + xres_ref[t]).astype(o_ref.dtype)


# ------------------------------ wrapper ----------------------------------------
def gwffn_forward(x, params, *, group_size):
    T, B, C_in, H, W = x.shape
    w_up, bn_u = params["up"]
    w_dn, bn_d = params["down"]
    C_inner = w_up.shape[1]
    GS = group_size
    N = B * H * W

    limit = _vmem_limit_bytes()

    s_u, sh_u = _fold_bn(*bn_u)
    s_d, sh_d = _fold_bn(*bn_d)

    # -------- 1x1-stage row tiling over N = B*H*W (working-set budgeted) -------
    row_bytes = 8 * T * (C_inner + 2 * C_in) + 6 * C_inner + 8 * C_in
    tile_n, n_pad = _pick_tile_n(N, row_bytes, int(limit * 0.7))

    def pad_rows(a):
        if n_pad == N:
            return a
        return jnp.pad(a, ((0, 0), (0, n_pad - N), (0, 0)))

    # [T, B, C, H, W] -> channels-last flat [T, B*H*W, C]  (single boundary transpose)
    # TODO(synk): fuse this NCHW<->NHWC boundary reorg into up/down kernels.
    x_flat = jnp.transpose(x, (0, 1, 3, 4, 2)).reshape(T, N, C_in)

    up_call = pl.pallas_call(
        up_kernel,
        out_shape=jax.ShapeDtypeStruct((T, n_pad, C_inner), jnp.float32),
        grid_spec=pltpu.PrefetchScalarGridSpec(
            num_scalar_prefetch=0,
            grid=(n_pad // tile_n,),
            in_specs=[
                pl.BlockSpec((T, tile_n, C_in), lambda i: (0, i, 0)),
                pl.BlockSpec((C_in, C_inner), lambda i: (0, 0)),
                pl.BlockSpec((1, C_inner), lambda i: (0, 0)),
                pl.BlockSpec((1, C_inner), lambda i: (0, 0)),
            ],
            out_specs=pl.BlockSpec((T, tile_n, C_inner), lambda i: (0, i, 0)),
        ),
        compiler_params=pltpu.CompilerParams(
            dimension_semantics=("parallel",), vmem_limit_bytes=limit),
    )
    x_up_flat = up_call(pad_rows(x_flat), w_up.astype(jnp.bfloat16),
                        s_u.reshape(1, -1), sh_u.reshape(1, -1))
    if n_pad != N:
        x_up_flat = x_up_flat[:, :N]

    # conv stages stay in [T, B, H, W, C]: a pure reshape, no transpose / HBM pass.
    x_up = x_up_flat.reshape(T, B, H, W, C_inner)

    c_blk = _pick_cblock(C_inner, GS, T, H, W, int(limit * 0.85))
    pack = _pick_pack(c_blk, GS)
    ppb = c_blk // pack
    n_cblk = C_inner // c_blk
    n_pack_tot = C_inner // pack
    P = pack // GS

    h = x_up
    num_conv = len(params["conv"])
    for idx, (w3, bnp) in enumerate(params["conv"]):
        s_c, sh_c = _fold_bn(*bnp)
        # Block-diagonal per-pack weights: (3,3,G,GS,GS)[ky,kx,g,ci,co] ->
        # (n_pack*9, pack, pack) with row = pack_idx*9 + (ky*3+kx).  Off-diagonal
        # zero blocks ride on otherwise-idle MXU N lanes and buy lane-dense output.
        w_g = jnp.transpose(w3, (2, 0, 1, 3, 4)).reshape(n_pack_tot, P, 3, 3, GS, GS)
        w_bd = jnp.zeros((n_pack_tot, 3, 3, pack, pack), jnp.float32)
        for gp in range(P):
            w_bd = w_bd.at[:, :, :, gp * GS:(gp + 1) * GS,
                           gp * GS:(gp + 1) * GS].set(w_g[:, gp])
        w_bd = w_bd.reshape(n_pack_tot * 9, pack, pack).astype(jnp.bfloat16)

        fuse_res = idx == num_conv - 1   # fold "+ x_feat_in" into the last stage

        act_spec = pl.BlockSpec((T, None, H, W, c_blk),
                                lambda b, c: (0, b, 0, 0, c))
        in_specs = [act_spec]
        inputs = [h]
        if fuse_res:
            in_specs.append(act_spec)
            inputs.append(x_up)
        in_specs += [
            pl.BlockSpec((ppb * 9, pack, pack), lambda b, c: (c, 0, 0)),
            pl.BlockSpec((1, c_blk), lambda b, c: (0, c)),
            pl.BlockSpec((1, c_blk), lambda b, c: (0, c)),
        ]
        inputs += [w_bd, s_c.reshape(1, -1), sh_c.reshape(1, -1)]

        conv_call = pl.pallas_call(
            functools.partial(gconv_kernel, add_residual=fuse_res),
            out_shape=jax.ShapeDtypeStruct((T, B, H, W, C_inner), jnp.float32),
            grid_spec=pltpu.PrefetchScalarGridSpec(
                num_scalar_prefetch=0,
                grid=(B, n_cblk),
                in_specs=in_specs,
                out_specs=act_spec,
                scratch_shapes=[pltpu.VMEM((T, H + 2, W + 2, c_blk), jnp.float32)],
            ),
            compiler_params=pltpu.CompilerParams(
                dimension_semantics=("parallel", "parallel"),
                vmem_limit_bytes=limit),
        )
        h = conv_call(*inputs)

    conv_flat = h.reshape(T, N, C_inner)   # pure reshape, no transpose

    down_call = pl.pallas_call(
        down_kernel,
        out_shape=jax.ShapeDtypeStruct((T, n_pad, C_in), jnp.float32),
        grid_spec=pltpu.PrefetchScalarGridSpec(
            num_scalar_prefetch=0,
            grid=(n_pad // tile_n,),
            in_specs=[
                pl.BlockSpec((T, tile_n, C_inner), lambda i: (0, i, 0)),
                pl.BlockSpec((T, tile_n, C_in), lambda i: (0, i, 0)),
                pl.BlockSpec((C_inner, C_in), lambda i: (0, 0)),
                pl.BlockSpec((1, C_in), lambda i: (0, 0)),
                pl.BlockSpec((1, C_in), lambda i: (0, 0)),
            ],
            out_specs=pl.BlockSpec((T, tile_n, C_in), lambda i: (0, i, 0)),
        ),
        compiler_params=pltpu.CompilerParams(
            dimension_semantics=("parallel",), vmem_limit_bytes=limit),
    )
    out_flat = down_call(pad_rows(conv_flat), pad_rows(x_flat),
                         w_dn.astype(jnp.bfloat16),
                         s_d.reshape(1, -1), sh_d.reshape(1, -1))
    if n_pad != N:
        out_flat = out_flat[:, :N]
    return jnp.transpose(out_flat.reshape(T, B, H, W, C_in), (0, 1, 4, 2, 3))


# --------------------------- deterministic params -------------------------------
def init_params(key, in_channels, num_conv, ratio, group_size):
    inner = in_channels * ratio
    G = inner // group_size
    keys = iter(jax.random.split(key, 32))

    def q(w):
        # bf16-representable values: the kernels feed weights to the MXU in bf16,
        # so this keeps kernel vs. f32-reference products bit-identical and the
        # downstream LIF threshold compares spike-exact.
        return w.astype(jnp.bfloat16).astype(jnp.float32)

    def bn_params(c):
        gamma = 1.0 + 0.1 * jax.random.normal(next(keys), (c,), jnp.float32)
        beta = 0.1 * jax.random.normal(next(keys), (c,), jnp.float32)
        mean = 0.05 * jax.random.normal(next(keys), (c,), jnp.float32)
        var = 1.0 + 0.1 * jax.random.uniform(next(keys), (c,), jnp.float32)
        return gamma, beta, mean, var

    w_up = q(0.2 * jax.random.normal(next(keys), (in_channels, inner), jnp.float32))
    bn_u = bn_params(inner)
    convs = []
    for _ in range(num_conv):
        w3 = q(0.1 * jax.random.normal(
            next(keys), (3, 3, G, group_size, group_size), jnp.float32))
        convs.append((w3, bn_params(inner)))
    w_dn = q(0.2 * jax.random.normal(next(keys), (inner, in_channels), jnp.float32))
    bn_d = bn_params(in_channels)
    return {"up": (w_up, bn_u), "conv": convs, "down": (w_dn, bn_d)}


# ------------------------------- pure-JAX reference ------------------------------
def ref_forward(x, params, *, group_size):
    T, B, C_in, H, W = x.shape
    w_up, bn_u = params["up"]
    w_dn, bn_d = params["down"]
    inner = w_up.shape[1]
    G = inner // group_size

    def lif(seq):
        v = jnp.zeros_like(seq[0])
        outs = []
        for t in range(seq.shape[0]):
            v = v + (seq[t] - v) / TAU
            s = (v >= V_TH).astype(seq.dtype)
            v = v * (1.0 - s)
            outs.append(s)
        return jnp.stack(outs)

    def bn(y, p):
        s, sh = _fold_bn(*p)
        return y * s[None, None, :, None, None] + sh[None, None, :, None, None]

    x_feat_out = x
    y = bn(jnp.einsum("tbchw,cd->tbdhw", lif(x), w_up), bn_u)
    x_feat_in = y
    h = y
    for w3, bnp in params["conv"]:
        spk = lif(h)
        w_oihw = jnp.transpose(w3, (2, 4, 3, 0, 1)).reshape(inner, group_size, 3, 3)
        conv = lax.conv_general_dilated(
            spk.reshape(T * B, inner, H, W), w_oihw, (1, 1), ((1, 1), (1, 1)),
            dimension_numbers=("NCHW", "OIHW", "NCHW"), feature_group_count=G)
        h = bn(conv.reshape(T, B, inner, H, W), bnp)
    h = h + x_feat_in
    y = bn(jnp.einsum("tbchw,cd->tbdhw", lif(h), w_dn), bn_d)
    return y + x_feat_out


if __name__ == "__main__":
    T, B, C_in, H, W = 2, 2, 16, 16, 16
    ratio, num_conv, group_size = 4, 2, 32   # inner=64, groups=2, N=512

    key = jax.random.PRNGKey(0)
    kx, kp = jax.random.split(key)
    x = 1.5 * jax.random.normal(kx, (T, B, C_in, H, W), jnp.float32)
    params = init_params(kp, C_in, num_conv, ratio, group_size)

    fwd = jax.jit(functools.partial(gwffn_forward, group_size=group_size))
    out = jax.block_until_ready(fwd(x, params))

    ref = ref_forward(x, params, group_size=group_size)
    assert out.shape == x.shape
    np.testing.assert_allclose(np.asarray(out), np.asarray(ref), rtol=2e-3, atol=2e-3)
    print("KERNEL_OK")
</pallas_src>

<mosaic_0001>
module attributes {stable_mosaic.version = 11 : i64} {
  func.func @up_kernel(%arg0: i32, %arg1: memref<2x128x16xf32, #tpu.memory_space<vmem>>, %arg2: memref<16x64xbf16, #tpu.memory_space<vmem>>, %arg3: memref<1x64xf32, #tpu.memory_space<vmem>>, %arg4: memref<1x64xf32, #tpu.memory_space<vmem>>, %arg5: memref<2x128x64xf32, #tpu.memory_space<vmem>>) attributes {dimension_semantics = [#tpu.dimension_semantics<parallel>], iteration_bounds = array<i64: 4>, scalar_prefetch = 0 : i64, scratch_operands = 0 : i64, tpu.core_type = #tpu.core_type<tc>, window_params = [{transform_indices = @transform_0, window_bounds = array<i64: 2, 128, 16>}, {pipeline_mode = #tpu.pipeline_mode<synchronous>, transform_indices = @transform_1, window_bounds = array<i64: 16, 64>}, {pipeline_mode = #tpu.pipeline_mode<synchronous>, transform_indices = @transform_2, window_bounds = array<i64: 1, 64>}, {pipeline_mode = #tpu.pipeline_mode<synchronous>, transform_indices = @transform_3, window_bounds = array<i64: 1, 64>}, {transform_indices = @transform_4, window_bounds = array<i64: 2, 128, 64>}]} {
    %cst = arith.constant 0.000000e+00 : f32
    %0 = vector.broadcast %cst : f32 to vector<128x16xf32>
    %c0 = arith.constant 0 : index
    %c0_0 = arith.constant 0 : index
    %1 = vector.load %arg2[%c0, %c0_0] : memref<16x64xbf16, #tpu.memory_space<vmem>>, vector<16x64xbf16>
    %c0_1 = arith.constant 0 : index
    %c0_2 = arith.constant 0 : index
    %2 = vector.load %arg3[%c0_1, %c0_2] : memref<1x64xf32, #tpu.memory_space<vmem>>, vector<1x64xf32>
    %c0_3 = arith.constant 0 : index
    %c0_4 = arith.constant 0 : index
    %3 = vector.load %arg4[%c0_3, %c0_4] : memref<1x64xf32, #tpu.memory_space<vmem>>, vector<1x64xf32>
    %c0_5 = arith.constant 0 : index
    %c0_6 = arith.constant 0 : index
    %c0_7 = arith.constant 0 : index
    %4 = vector.load %arg1[%c0_5, %c0_6, %c0_7] : memref<2x128x16xf32, #tpu.memory_space<vmem>>, vector<1x128x16xf32>
    %5 = vector.shape_cast %4 : vector<1x128x16xf32> to vector<128x16xf32>
    %6 = arith.subf %5, %0 : vector<128x16xf32>
    %cst_8 = arith.constant 2.000000e+00 : f32
    %7 = vector.broadcast %cst_8 : f32 to vector<128x16xf32>
    %8 = arith.divf %6, %7 : vector<128x16xf32>
    %9 = arith.addf %0, %8 : vector<128x16xf32>
    %cst_9 = arith.constant 1.000000e+00 : f32
    %10 = vector.broadcast %cst_9 : f32 to vector<128x16xf32>
    %11 = arith.cmpf oge, %9, %10 : vector<128x16xf32>
    %12 = arith.extui %11 : vector<128x16xi1> to vector<128x16xi32>
    %13 = arith.sitofp %12 : vector<128x16xi32> to vector<128x16xf32>
    %cst_10 = arith.constant 1.000000e+00 : f32
    %14 = vector.broadcast %cst_10 : f32 to vector<128x16xf32>
    %15 = arith.subf %14, %13 : vector<128x16xf32>
    %16 = arith.mulf %9, %15 : vector<128x16xf32>
    %17 = arith.truncf %13 : vector<128x16xf32> to vector<128x16xbf16>
    %cst_11 = arith.constant dense<0.000000e+00> : vector<128x64xf32>
    %18 = tpu.matmul %17, %1, %cst_11 {dimension_numbers = #tpu.dot_dimension_numbers<[1], [0], [0], [1], [0, 0, 1, 1], [], []>} : vector<128x16xbf16>, vector<16x64xbf16>, vector<128x64xf32> -> vector<128x64xf32>
    %19 = vector.broadcast %2 : vector<1x64xf32> to vector<128x64xf32>
    %20 = arith.mulf %18, %19 : vector<128x64xf32>
    %21 = vector.broadcast %3 : vector<1x64xf32> to vector<128x64xf32>
    %22 = arith.addf %20, %21 : vector<128x64xf32>
    %c0_12 = arith.constant 0 : index
    %c0_13 = arith.constant 0 : index
    %c0_14 = arith.constant 0 : index
    %23 = vector.load %arg5[%c0_12, %c0_13, %c0_14] : memref<2x128x64xf32, #tpu.memory_space<vmem>>, vector<1x128x64xf32>
    %24 = vector.shape_cast %23 : vector<1x128x64xf32> to vector<128x64xf32>
    %25 = vector.shape_cast %22 : vector<128x64xf32> to vector<1x128x64xf32>
    tpu.vector_store %arg5[%c0_12, %c0_13, %c0_14], %25 {strides = array<i32>} : memref<2x128x64xf32, #tpu.memory_space<vmem>>, vector<1x128x64xf32>,
    %c1 = arith.constant 1 : index
    %c0_15 = arith.constant 0 : index
    %c0_16 = arith.constant 0 : index
    %26 = vector.load %arg1[%c1, %c0_15, %c0_16] : memref<2x128x16xf32, #tpu.memory_space<vmem>>, vector<1x128x16xf32>
    %27 = vector.shape_cast %26 : vector<1x128x16xf32> to vector<128x16xf32>
    %28 = arith.subf %27, %16 : vector<128x16xf32>
    %cst_17 = arith.constant 2.000000e+00 : f32
    %29 = vector.broadcast %cst_17 : f32 to vector<128x16xf32>
    %30 = arith.divf %28, %29 : vector<128x16xf32>
    %31 = arith.addf %16, %30 : vector<128x16xf32>
    %cst_18 = arith.constant 1.000000e+00 : f32
    %32 = vector.broadcast %cst_18 : f32 to vector<128x16xf32>
    %33 = arith.cmpf oge, %31, %32 : vector<128x16xf32>
    %34 = arith.extui %33 : vector<128x16xi1> to vector<128x16xi32>
    %35 = arith.sitofp %34 : vector<128x16xi32> to vector<128x16xf32>
    %36 = arith.truncf %35 : vector<128x16xf32> to vector<128x16xbf16>
    %cst_19 = arith.constant dense<0.000000e+00> : vector<128x64xf32>
    %37 = tpu.matmul %36, %1, %cst_19 {dimension_numbers = #tpu.dot_dimension_numbers<[1], [0], [0], [1], [0, 0, 1, 1], [], []>} : vector<128x16xbf16>, vector<16x64xbf16>, vector<128x64xf32> -> vector<128x64xf32>
    %38 = vector.broadcast %2 : vector<1x64xf32> to vector<128x64xf32>
    %39 = arith.mulf %37, %38 : vector<128x64xf32>
    %40 = vector.broadcast %3 : vector<1x64xf32> to vector<128x64xf32>
    %41 = arith.addf %39, %40 : vector<128x64xf32>
    %c1_20 = arith.constant 1 : index
    %c0_21 = arith.constant 0 : index
    %c0_22 = arith.constant 0 : index
    %42 = vector.load %arg5[%c1_20, %c0_21, %c0_22] : memref<2x128x64xf32, #tpu.memory_space<vmem>>, vector<1x128x64xf32>
    %43 = vector.shape_cast %42 : vector<1x128x64xf32> to vector<128x64xf32>
    %44 = vector.shape_cast %41 : vector<128x64xf32> to vector<1x128x64xf32>
    tpu.vector_store %arg5[%c1_20, %c0_21, %c0_22], %44 {strides = array<i32>} : memref<2x128x64xf32, #tpu.memory_space<vmem>>, vector<1x128x64xf32>,
    return
  }
  func.func @transform_0(%arg0: i32) -> (i32, i32, i32) {
    %c0_i32 = arith.constant 0 : i32
    %c0_i32_0 = arith.constant 0 : i32
    %c0_i32_1 = arith.constant 0 : i32
    return %c0_i32, %arg0, %c0_i32_0 : i32, i32, i32
  }
  func.func @transform_1(%arg0: i32) -> (i32, i32) {
    %c0_i32 = arith.constant 0 : i32
    %c0_i32_0 = arith.constant 0 : i32
    %c0_i32_1 = arith.constant 0 : i32
    return %c0_i32, %c0_i32_0 : i32, i32
  }
  func.func @transform_2(%arg0: i32) -> (i32, i32) {
    %c0_i32 = arith.constant 0 : i32
    %c0_i32_0 = arith.constant 0 : i32
    %c0_i32_1 = arith.constant 0 : i32
    return %c0_i32, %c0_i32_0 : i32, i32
  }
  func.func @transform_3(%arg0: i32) -> (i32, i32) {
    %c0_i32 = arith.constant 0 : i32
    %c0_i32_0 = arith.constant 0 : i32
    %c0_i32_1 = arith.constant 0 : i32
    return %c0_i32, %c0_i32_0 : i32, i32
  }
  func.func @transform_4(%arg0: i32) -> (i32, i32, i32) {
    %c0_i32 = arith.constant 0 : i32
    %c0_i32_0 = arith.constant 0 : i32
    %c0_i32_1 = arith.constant 0 : i32
    return %c0_i32, %arg0, %c0_i32_0 : i32, i32, i32
  }
}

module attributes {stable_mosaic.version = 11 : i64} {
  func.func @gconv_kernel(%arg0: i32, %arg1: i32, %arg2: memref<2x1x16x16x64xf32, #tpu.memory_space<vmem>>, %arg3: memref<9x64x64xbf16, #tpu.memory_space<vmem>>, %arg4: memref<1x64xf32, #tpu.memory_space<vmem>>, %arg5: memref<1x64xf32, #tpu.memory_space<vmem>>, %arg6: memref<2x1x16x16x64xf32, #tpu.memory_space<vmem>>, %arg7: memref<2x18x18x64xf32, #tpu.memory_space<vmem>>) attributes {dimension_semantics = [#tpu.dimension_semantics<parallel>, #tpu.dimension_semantics<parallel>], iteration_bounds = array<i64: 2, 1>, scalar_prefetch = 0 : i64, scratch_operands = 1 : i64, tpu.core_type = #tpu.core_type<tc>, window_params = [{transform_indices = @transform_0, window_bounds = array<i64: 2, 1, 16, 16, 64>}, {transform_indices = @transform_1, window_bounds = array<i64: 9, 64, 64>}, {transform_indices = @transform_2, window_bounds = array<i64: 1, 64>}, {transform_indices = @transform_3, window_bounds = array<i64: 1, 64>}, {transform_indices = @transform_4, window_bounds = array<i64: 2, 1, 16, 16, 64>}]} {
    %cst = arith.constant 0.000000e+00 : f32
    %0 = vector.broadcast %cst : f32 to vector<2x1x18x64xf32>
    %cst_0 = arith.constant 0.000000e+00 : f32
    %1 = vector.broadcast %cst_0 : f32 to vector<2x18x1x64xf32>
    %c0 = arith.constant 0 : index
    %c0_1 = arith.constant 0 : index
    %c0_2 = arith.constant 0 : index
    %c0_3 = arith.constant 0 : index
    %2 = vector.load %arg7[%c0, %c0_1, %c0_2, %c0_3] : memref<2x18x18x64xf32, #tpu.memory_space<vmem>>, vector<2x1x18x64xf32>
    tpu.vector_store %arg7[%c0, %c0_1, %c0_2, %c0_3], %0 {strides = array<i32>} : memref<2x18x18x64xf32, #tpu.memory_space<vmem>>, vector<2x1x18x64xf32>,
    %c0_4 = arith.constant 0 : index
    %c17 = arith.constant 17 : index
    %c0_5 = arith.constant 0 : index
    %c0_6 = arith.constant 0 : index
    %3 = vector.load %arg7[%c0_4, %c17, %c0_5, %c0_6] : memref<2x18x18x64xf32, #tpu.memory_space<vmem>>, vector<2x1x18x64xf32>
    tpu.vector_store %arg7[%c0_4, %c17, %c0_5, %c0_6], %0 {strides = array<i32>} : memref<2x18x18x64xf32, #tpu.memory_space<vmem>>, vector<2x1x18x64xf32>,
    %c0_7 = arith.constant 0 : index
    %c0_8 = arith.constant 0 : index
    %c0_9 = arith.constant 0 : index
    %c0_10 = arith.constant 0 : index
    %4 = vector.load %arg7[%c0_7, %c0_8, %c0_9, %c0_10] : memref<2x18x18x64xf32, #tpu.memory_space<vmem>>, vector<2x18x1x64xf32>
    tpu.vector_store %arg7[%c0_7, %c0_8, %c0_9, %c0_10], %1 {strides = array<i32>} : memref<2x18x18x64xf32, #tpu.memory_space<vmem>>, vector<2x18x1x64xf32>,
    %c0_11 = arith.constant 0 : index
    %c0_12 = arith.constant 0 : index
    %c17_13 = arith.constant 17 : index
    %c0_14 = arith.constant 0 : index
    %5 = vector.load %arg7[%c0_11, %c0_12, %c17_13, %c0_14] : memref<2x18x18x64xf32, #tpu.memory_space<vmem>>, vector<2x18x1x64xf32>
    tpu.vector_store %arg7[%c0_11, %c0_12, %c17_13, %c0_14], %1 {strides = array<i32>} : memref<2x18x18x64xf32, #tpu.memory_space<vmem>>, vector<2x18x1x64xf32>,
    %cst_15 = arith.constant 0.000000e+00 : f32
    %6 = vector.broadcast %cst_15 : f32 to vector<16x16x64xf32>
    %c0_16 = arith.constant 0 : index
    %c0_17 = arith.constant 0 : index
    %c0_18 = arith.constant 0 : index
    %c0_19 = arith.constant 0 : index
    %c0_20 = arith.constant 0 : index
    %7 = vector.load %arg2[%c0_16, %c0_17, %c0_18, %c0_19, %c0_20] : memref<2x1x16x16x64xf32, #tpu.memory_space<vmem>>, vector<1x1x16x16x64xf32>
    %8 = vector.shape_cast %7 : vector<1x1x16x16x64xf32> to vector<16x16x64xf32>
    %9 = arith.subf %8, %6 : vector<16x16x64xf32>
    %cst_21 = arith.constant 2.000000e+00 : f32
    %10 = vector.broadcast %cst_21 : f32 to vector<16x16x64xf32>
    %11 = arith.divf %9, %10 : vector<16x16x64xf32>
    %12 = arith.addf %6, %11 : vector<16x16x64xf32>
    %cst_22 = arith.constant 1.000000e+00 : f32
    %13 = vector.broadcast %cst_22 : f32 to vector<16x16x64xf32>
    %14 = arith.cmpf oge, %12, %13 : vector<16x16x64xf32>
    %15 = arith.extui %14 : vector<16x16x64xi1> to vector<16x16x64xi32>
    %16 = arith.sitofp %15 : vector<16x16x64xi32> to vector<16x16x64xf32>
    %cst_23 = arith.constant 1.000000e+00 : f32
    %17 = vector.broadcast %cst_23 : f32 to vector<16x16x64xf32>
    %18 = arith.subf %17, %16 : vector<16x16x64xf32>
    %19 = arith.mulf %12, %18 : vector<16x16x64xf32>
    %20 = vector.shape_cast %16 : vector<16x16x64xf32> to vector<1x16x16x64xf32>
    %c0_24 = arith.constant 0 : index
    %c1 = arith.constant 1 : index
    %c1_25 = arith.constant 1 : index
    %c0_26 = arith.constant 0 : index
    %21 = vector.load %arg7[%c0_24, %c1, %c1_25, %c0_26] : memref<2x18x18x64xf32, #tpu.memory_space<vmem>>, vector<1x16x16x64xf32>
    tpu.vector_store %arg7[%c0_24, %c1, %c1_25, %c0_26], %20 {strides = array<i32>} : memref<2x18x18x64xf32, #tpu.memory_space<vmem>>, vector<1x16x16x64xf32>,
    %c1_27 = arith.constant 1 : index
    %c0_28 = arith.constant 0 : index
    %c0_29 = arith.constant 0 : index
    %c0_30 = arith.constant 0 : index
    %c0_31 = arith.constant 0 : index
    %22 = vector.load %arg2[%c1_27, %c0_28, %c0_29, %c0_30, %c0_31] : memref<2x1x16x16x64xf32, #tpu.memory_space<vmem>>, vector<1x1x16x16x64xf32>
    %23 = vector.shape_cast %22 : vector<1x1x16x16x64xf32> to vector<16x16x64xf32>
    %24 = arith.subf %23, %19 : vector<16x16x64xf32>
    %cst_32 = arith.constant 2.000000e+00 : f32
    %25 = vector.broadcast %cst_32 : f32 to vector<16x16x64xf32>
    %26 = arith.divf %24, %25 : vector<16x16x64xf32>
    %27 = arith.addf %19, %26 : vector<16x16x64xf32>
    %cst_33 = arith.constant 1.000000e+00 : f32
    %28 = vector.broadcast %cst_33 : f32 to vector<16x16x64xf32>
    %29 = arith.cmpf oge, %27, %28 : vector<16x16x64xf32>
    %30 = arith.extui %29 : vector<16x16x64xi1> to vector<16x16x64xi32>
    %31 = arith.sitofp %30 : vector<16x16x64xi32> to vector<16x16x64xf32>
    %32 = vector.shape_cast %31 : vector<16x16x64xf32> to vector<1x16x16x64xf32>
    %c1_34 = arith.constant 1 : index
    %c1_35 = arith.constant 1 : index
    %c1_36 = arith.constant 1 : index
    %c0_37 = arith.constant 0 : index
    %33 = vector.load %arg7[%c1_34, %c1_35, %c1_36, %c0_37] : memref<2x18x18x64xf32, #tpu.memory_space<vmem>>, vector<1x16x16x64xf32>
    tpu.vector_store %arg7[%c1_34, %c1_35, %c1_36, %c0_37], %32 {strides = array<i32>} : memref<2x18x18x64xf32, #tpu.memory_space<vmem>>, vector<1x16x16x64xf32>,
    %c0_38 = arith.constant 0 : index
    %c0_39 = arith.constant 0 : index
    %34 = vector.load %arg4[%c0_38, %c0_39] : memref<1x64xf32, #tpu.memory_space<vmem>>, vector<1x64xf32>
    %c0_40 = arith.constant 0 : index
    %c0_41 = arith.constant 0 : index
    %35 = vector.load %arg5[%c0_40, %c0_41] : memref<1x64xf32, #tpu.memory_space<vmem>>, vector<1x64xf32>
    %cst_42 = arith.constant 0.000000e+00 : f32
    %36 = vector.broadcast %cst_42 : f32 to vector<512x64xf32>
    %c0_43 = arith.constant 0 : index
    %c0_44 = arith.constant 0 : index
    %c0_45 = arith.constant 0 : index
    %c0_46 = arith.constant 0 : index
    %37 = vector.load %arg7[%c0_43, %c0_44, %c0_45, %c0_46] : memref<2x18x18x64xf32, #tpu.memory_space<vmem>>, vector<2x16x16x64xf32>
    %38 = vector.shape_cast %37 : vector<2x16x16x64xf32> to vector<512x64xf32>
    %39 = arith.truncf %38 : vector<512x64xf32> to vector<512x64xbf16>
    %c0_47 = arith.constant 0 : index
    %c0_48 = arith.constant 0 : index
    %c0_49 = arith.constant 0 : index
    %40 = vector.load %arg3[%c0_47, %c0_48, %c0_49] : memref<9x64x64xbf16, #tpu.memory_space<vmem>>, vector<1x64x64xbf16>
    %41 = vector.shape_cast %40 : vector<1x64x64xbf16> to vector<64x64xbf16>
    %cst_50 = arith.constant dense<0.000000e+00> : vector<512x64xf32>
    %42 = tpu.matmul %39, %41, %cst_50 {dimension_numbers = #tpu.dot_dimension_numbers<[1], [0], [0], [1], [0, 0, 1, 1], [], []>} : vector<512x64xbf16>, vector<64x64xbf16>, vector<512x64xf32> -> vector<512x64xf32>
    %43 = arith.addf %36, %42 : vector<512x64xf32>
    %c0_51 = arith.constant 0 : index
    %c0_52 = arith.constant 0 : index
    %c1_53 = arith.constant 1 : index
    %c0_54 = arith.constant 0 : index
    %44 = vector.load %arg7[%c0_51, %c0_52, %c1_53, %c0_54] : memref<2x18x18x64xf32, #tpu.memory_space<vmem>>, vector<2x16x16x64xf32>
    %45 = vector.shape_cast %44 : vector<2x16x16x64xf32> to vector<512x64xf32>
    %46 = arith.truncf %45 : vector<512x64xf32> to vector<512x64xbf16>
    %c1_55 = arith.constant 1 : index
    %c0_56 = arith.constant 0 : index
    %c0_57 = arith.constant 0 : index
    %47 = vector.load %arg3[%c1_55, %c0_56, %c0_57] : memref<9x64x64xbf16, #tpu.memory_space<vmem>>, vector<1x64x64xbf16>
    %48 = vector.shape_cast %47 : vector<1x64x64xbf16> to vector<64x64xbf16>
    %cst_58 = arith.constant dense<0.000000e+00> : vector<512x64xf32>
    %49 = tpu.matmul %46, %48, %cst_58 {dimension_numbers = #tpu.dot_dimension_numbers<[1], [0], [0], [1], [0, 0, 1, 1], [], []>} : vector<512x64xbf16>, vector<64x64xbf16>, vector<512x64xf32> -> vector<512x64xf32>
    %50 = arith.addf %43, %49 : vector<512x64xf32>
    %c0_59 = arith.constant 0 : index
    %c0_60 = arith.constant 0 : index
    %c2 = arith.constant 2 : index
    %c0_61 = arith.constant 0 : index
    %51 = vector.load %arg7[%c0_59, %c0_60, %c2, %c0_61] : memref<2x18x18x64xf32, #tpu.memory_space<vmem>>, vector<2x16x16x64xf32>
    %52 = vector.shape_cast %51 : vector<2x16x16x64xf32> to vector<512x64xf32>
    %53 = arith.truncf %52 : vector<512x64xf32> to vector<512x64xbf16>
    %c2_62 = arith.constant 2 : index
    %c0_63 = arith.constant 0 : index
    %c0_64 = arith.constant 0 : index
    %54 = vector.load %arg3[%c2_62, %c0_63, %c0_64] : memref<9x64x64xbf16, #tpu.memory_space<vmem>>, vector<1x64x64xbf16>
    %55 = vector.shape_cast %54 : vector<1x64x64xbf16> to vector<64x64xbf16>
    %cst_65 = arith.constant dense<0.000000e+00> : vector<512x64xf32>
    %56 = tpu.matmul %53, %55, %cst_65 {dimension_numbers = #tpu.dot_dimension_numbers<[1], [0], [0], [1], [0, 0, 1, 1], [], []>} : vector<512x64xbf16>, vector<64x64xbf16>, vector<512x64xf32> -> vector<512x64xf32>
    %57 = arith.addf %50, %56 : vector<512x64xf32>
    %c0_66 = arith.constant 0 : index
    %c1_67 = arith.constant 1 : index
    %c0_68 = arith.constant 0 : index
    %c0_69 = arith.constant 0 : index
    %58 = vector.load %arg7[%c0_66, %c1_67, %c0_68, %c0_69] : memref<2x18x18x64xf32, #tpu.memory_space<vmem>>, vector<2x16x16x64xf32>
    %59 = vector.shape_cast %58 : vector<2x16x16x64xf32> to vector<512x64xf32>
    %60 = arith.truncf %59 : vector<512x64xf32> to vector<512x64xbf16>
    %c3 = arith.constant 3 : index
    %c0_70 = arith.constant 0 : index
    %c0_71 = arith.constant 0 : index
    %61 = vector.load %arg3[%c3, %c0_70, %c0_71] : memref<9x64x64xbf16, #tpu.memory_space<vmem>>, vector<1x64x64xbf16>
    %62 = vector.shape_cast %61 : vector<1x64x64xbf16> to vector<64x64xbf16>
    %cst_72 = arith.constant dense<0.000000e+00> : vector<512x64xf32>
    %63 = tpu.matmul %60, %62, %cst_72 {dimension_numbers = #tpu.dot_dimension_numbers<[1], [0], [0], [1], [0, 0, 1, 1], [], []>} : vector<512x64xbf16>, vector<64x64xbf16>, vector<512x64xf32> -> vector<512x64xf32>
    %64 = arith.addf %57, %63 : vector<512x64xf32>
    %c0_73 = arith.constant 0 : index
    %c1_74 = arith.constant 1 : index
    %c1_75 = arith.constant 1 : index
    %c0_76 = arith.constant 0 : index
    %65 = vector.load %arg7[%c0_73, %c1_74, %c1_75, %c0_76] : memref<2x18x18x64xf32, #tpu.memory_space<vmem>>, vector<2x16x16x64xf32>
    %66 = vector.shape_cast %65 : vector<2x16x16x64xf32> to vector<512x64xf32>
    %67 = arith.truncf %66 : vector<512x64xf32> to vector<512x64xbf16>
    %c4 = arith.constant 4 : index
    %c0_77 = arith.constant 0 : index
    %c0_78 = arith.constant 0 : index
    %68 = vector.load %arg3[%c4, %c0_77, %c0_78] : memref<9x64x64xbf16, #tpu.memory_space<vmem>>, vector<1x64x64xbf16>
    %69 = vector.shape_cast %68 : vector<1x64x64xbf16> to vector<64x64xbf16>
    %cst_79 = arith.constant dense<0.000000e+00> : vector<512x64xf32>
    %70 = tpu.matmul %67, %69, %cst_79 {dimension_numbers = #tpu.dot_dimension_numbers<[1], [0], [0], [1], [0, 0, 1, 1], [], []>} : vector<512x64xbf16>, vector<64x64xbf16>, vector<512x64xf32> -> vector<512x64xf32>
    %71 = arith.addf %64, %70 : vector<512x64xf32>
    %c0_80 = arith.constant 0 : index
    %c1_81 = arith.constant 1 : index
    %c2_82 = arith.constant 2 : index
    %c0_83 = arith.constant 0 : index
    %72 = vector.load %arg7[%c0_80, %c1_81, %c2_82, %c0_83] : memref<2x18x18x64xf32, #tpu.memory_space<vmem>>, vector<2x16x16x64xf32>
    %73 = vector.shape_cast %72 : vector<2x16x16x64xf32> to vector<512x64xf32>
    %74 = arith.truncf %73 : vector<512x64xf32> to vector<512x64xbf16>
    %c5 = arith.constant 5 : index
    %c0_84 = arith.constant 0 : index
    %c0_85 = arith.constant 0 : index
    %75 = vector.load %arg3[%c5, %c0_84, %c0_85] : memref<9x64x64xbf16, #tpu.memory_space<vmem>>, vector<1x64x64xbf16>
    %76 = vector.shape_cast %75 : vector<1x64x64xbf16> to vector<64x64xbf16>
    %cst_86 = arith.constant dense<0.000000e+00> : vector<512x64xf32>
    %77 = tpu.matmul %74, %76, %cst_86 {dimension_numbers = #tpu.dot_dimension_numbers<[1], [0], [0], [1], [0, 0, 1, 1], [], []>} : vector<512x64xbf16>, vector<64x64xbf16>, vector<512x64xf32> -> vector<512x64xf32>
    %78 = arith.addf %71, %77 : vector<512x64xf32>
    %c0_87 = arith.constant 0 : index
    %c2_88 = arith.constant 2 : index
    %c0_89 = arith.constant 0 : index
    %c0_90 = arith.constant 0 : index
    %79 = vector.load %arg7[%c0_87, %c2_88, %c0_89, %c0_90] : memref<2x18x18x64xf32, #tpu.memory_space<vmem>>, vector<2x16x16x64xf32>
    %80 = vector.shape_cast %79 : vector<2x16x16x64xf32> to vector<512x64xf32>
    %81 = arith.truncf %80 : vector<512x64xf32> to vector<512x64xbf16>
    %c6 = arith.constant 6 : index
    %c0_91 = arith.constant 0 : index
    %c0_92 = arith.constant 0 : index
    %82 = vector.load %arg3[%c6, %c0_91, %c0_92] : memref<9x64x64xbf16, #tpu.memory_space<vmem>>, vector<1x64x64xbf16>
    %83 = vector.shape_cast %82 : vector<1x64x64xbf16> to vector<64x64xbf16>
    %cst_93 = arith.constant dense<0.000000e+00> : vector<512x64xf32>
    %84 = tpu.matmul %81, %83, %cst_93 {dimension_numbers = #tpu.dot_dimension_numbers<[1], [0], [0], [1], [0, 0, 1, 1], [], []>} : vector<512x64xbf16>, vector<64x64xbf16>, vector<512x64xf32> -> vector<512x64xf32>
    %85 = arith.addf %78, %84 : vector<512x64xf32>
    %c0_94 = arith.constant 0 : index
    %c2_95 = arith.constant 2 : index
    %c1_96 = arith.constant 1 : index
    %c0_97 = arith.constant 0 : index
    %86 = vector.load %arg7[%c0_94, %c2_95, %c1_96, %c0_97] : memref<2x18x18x64xf32, #tpu.memory_space<vmem>>, vector<2x16x16x64xf32>
    %87 = vector.shape_cast %86 : vector<2x16x16x64xf32> to vector<512x64xf32>
    %88 = arith.truncf %87 : vector<512x64xf32> to vector<512x64xbf16>
    %c7 = arith.constant 7 : index
    %c0_98 = arith.constant 0 : index
    %c0_99 = arith.constant 0 : index
    %89 = vector.load %arg3[%c7, %c0_98, %c0_99] : memref<9x64x64xbf16, #tpu.memory_space<vmem>>, vector<1x64x64xbf16>
    %90 = vector.shape_cast %89 : vector<1x64x64xbf16> to vector<64x64xbf16>
    %cst_100 = arith.constant dense<0.000000e+00> : vector<512x64xf32>
    %91 = tpu.matmul %88, %90, %cst_100 {dimension_numbers = #tpu.dot_dimension_numbers<[1], [0], [0], [1], [0, 0, 1, 1], [], []>} : vector<512x64xbf16>, vector<64x64xbf16>, vector<512x64xf32> -> vector<512x64xf32>
    %92 = arith.addf %85, %91 : vector<512x64xf32>
    %c0_101 = arith.constant 0 : index
    %c2_102 = arith.constant 2 : index
    %c2_103 = arith.constant 2 : index
    %c0_104 = arith.constant 0 : index
    %93 = vector.load %arg7[%c0_101, %c2_102, %c2_103, %c0_104] : memref<2x18x18x64xf32, #tpu.memory_space<vmem>>, vector<2x16x16x64xf32>
    %94 = vector.shape_cast %93 : vector<2x16x16x64xf32> to vector<512x64xf32>
    %95 = arith.truncf %94 : vector<512x64xf32> to vector<512x64xbf16>
    %c8 = arith.constant 8 : index
    %c0_105 = arith.constant 0 : index
    %c0_106 = arith.constant 0 : index
    %96 = vector.load %arg3[%c8, %c0_105, %c0_106] : memref<9x64x64xbf16, #tpu.memory_space<vmem>>, vector<1x64x64xbf16>
    %97 = vector.shape_cast %96 : vector<1x64x64xbf16> to vector<64x64xbf16>
    %cst_107 = arith.constant dense<0.000000e+00> : vector<512x64xf32>
    %98 = tpu.matmul %95, %97, %cst_107 {dimension_numbers = #tpu.dot_dimension_numbers<[1], [0], [0], [1], [0, 0, 1, 1], [], []>} : vector<512x64xbf16>, vector<64x64xbf16>, vector<512x64xf32> -> vector<512x64xf32>
    %99 = arith.addf %92, %98 : vector<512x64xf32>
    %100 = vector.broadcast %34 : vector<1x64xf32> to vector<512x64xf32>
    %101 = arith.mulf %99, %100 : vector<512x64xf32>
    %102 = vector.broadcast %35 : vector<1x64xf32> to vector<512x64xf32>
    %103 = arith.addf %101, %102 : vector<512x64xf32>
    %104 = vector.shape_cast %103 : vector<512x64xf32> to vector<2x16x16x64xf32>
    %c0_108 = arith.constant 0 : index
    %c0_109 = arith.constant 0 : index
    %c0_110 = arith.constant 0 : index
    %c0_111 = arith.constant 0 : index
    %c0_112 = arith.constant 0 : index
    %105 = vector.load %arg6[%c0_108, %c0_109, %c0_110, %c0_111, %c0_112] : memref<2x1x16x16x64xf32, #tpu.memory_space<vmem>>, vector<2x1x16x16x64xf32>
    %106 = vector.shape_cast %105 : vector<2x1x16x16x64xf32> to vector<2x16x16x64xf32>
    %107 = vector.shape_cast %104 : vector<2x16x16x64xf32> to vector<2x1x16x16x64xf32>
    tpu.vector_store %arg6[%c0_108, %c0_109, %c0_110, %c0_111, %c0_112], %107 {strides = array<i32>} : memref<2x1x16x16x64xf32, #tpu.memory_space<vmem>>, vector<2x1x16x16x64xf32>,
    return
  }
  func.func @transform_0(%arg0: i32, %arg1: i32) -> (i32, i32, i32, i32, i32) {
    %c0_i32 = arith.constant 0 : i32
    %c0_i32_0 = arith.constant 0 : i32
    %c0_i32_1 = arith.constant 0 : i32
    %c0_i32_2 = arith.constant 0 : i32
    return %c0_i32, %arg0, %c0_i32_0, %c0_i32_1, %arg1 : i32, i32, i32, i32, i32
  }
  func.func @transform_1(%arg0: i32, %arg1: i32) -> (i32, i32, i32) {
    %c0_i32 = arith.constant 0 : i32
    %c0_i32_0 = arith.constant 0 : i32
    %c0_i32_1 = arith.constant 0 : i32
    return %arg1, %c0_i32, %c0_i32_0 : i32, i32, i32
  }
  func.func @transform_2(%arg0: i32, %arg1: i32) -> (i32, i32) {
    %c0_i32 = arith.constant 0 : i32
    %c0_i32_0 = arith.constant 0 : i32
    return %c0_i32, %arg1 : i32, i32
  }
  func.func @transform_3(%arg0: i32, %arg1: i32) -> (i32, i32) {
    %c0_i32 = arith.constant 0 : i32
    %c0_i32_0 = arith.constant 0 : i32
    return %c0_i32, %arg1 : i32, i32
  }
  func.func @transform_4(%arg0: i32, %arg1: i32) -> (i32, i32, i32, i32, i32) {
    %c0_i32 = arith.constant 0 : i32
    %c0_i32_0 = arith.constant 0 : i32
    %c0_i32_1 = arith.constant 0 : i32
    %c0_i32_2 = arith.constant 0 : i32
    return %c0_i32, %arg0, %c0_i32_0, %c0_i32_1, %arg1 : i32, i32, i32, i32, i32
  }
}

module attributes {stable_mosaic.version = 11 : i64} {
  func.func @gconv_kernel(%arg0: i32, %arg1: i32, %arg2: memref<2x1x16x16x64xf32, #tpu.memory_space<vmem>>, %arg3: memref<2x1x16x16x64xf32, #tpu.memory_space<vmem>>, %arg4: memref<9x64x64xbf16, #tpu.memory_space<vmem>>, %arg5: memref<1x64xf32, #tpu.memory_space<vmem>>, %arg6: memref<1x64xf32, #tpu.memory_space<vmem>>, %arg7: memref<2x1x16x16x64xf32, #tpu.memory_space<vmem>>, %arg8: memref<2x18x18x64xf32, #tpu.memory_space<vmem>>) attributes {dimension_semantics = [#tpu.dimension_semantics<parallel>, #tpu.dimension_semantics<parallel>], iteration_bounds = array<i64: 2, 1>, scalar_prefetch = 0 : i64, scratch_operands = 1 : i64, tpu.core_type = #tpu.core_type<tc>, window_params = [{transform_indices = @transform_0, window_bounds = array<i64: 2, 1, 16, 16, 64>}, {transform_indices = @transform_1, window_bounds = array<i64: 2, 1, 16, 16, 64>}, {transform_indices = @transform_2, window_bounds = array<i64: 9, 64, 64>}, {transform_indices = @transform_3, window_bounds = array<i64: 1, 64>}, {transform_indices = @transform_4, window_bounds = array<i64: 1, 64>}, {transform_indices = @transform_5, window_bounds = array<i64: 2, 1, 16, 16, 64>}]} {
    %cst = arith.constant 0.000000e+00 : f32
    %0 = vector.broadcast %cst : f32 to vector<2x1x18x64xf32>
    %cst_0 = arith.constant 0.000000e+00 : f32
    %1 = vector.broadcast %cst_0 : f32 to vector<2x18x1x64xf32>
    %c0 = arith.constant 0 : index
    %c0_1 = arith.constant 0 : index
    %c0_2 = arith.constant 0 : index
    %c0_3 = arith.constant 0 : index
    %2 = vector.load %arg8[%c0, %c0_1, %c0_2, %c0_3] : memref<2x18x18x64xf32, #tpu.memory_space<vmem>>, vector<2x1x18x64xf32>
    tpu.vector_store %arg8[%c0, %c0_1, %c0_2, %c0_3], %0 {strides = array<i32>} : memref<2x18x18x64xf32, #tpu.memory_space<vmem>>, vector<2x1x18x64xf32>,
    %c0_4 = arith.constant 0 : index
    %c17 = arith.constant 17 : index
    %c0_5 = arith.constant 0 : index
    %c0_6 = arith.constant 0 : index
    %3 = vector.load %arg8[%c0_4, %c17, %c0_5, %c0_6] : memref<2x18x18x64xf32, #tpu.memory_space<vmem>>, vector<2x1x18x64xf32>
    tpu.vector_store %arg8[%c0_4, %c17, %c0_5, %c0_6], %0 {strides = array<i32>} : memref<2x18x18x64xf32, #tpu.memory_space<vmem>>, vector<2x1x18x64xf32>,
    %c0_7 = arith.constant 0 : index
    %c0_8 = arith.constant 0 : index
    %c0_9 = arith.constant 0 : index
    %c0_10 = arith.constant 0 : index
    %4 = vector.load %arg8[%c0_7, %c0_8, %c0_9, %c0_10] : memref<2x18x18x64xf32, #tpu.memory_space<vmem>>, vector<2x18x1x64xf32>
    tpu.vector_store %arg8[%c0_7, %c0_8, %c0_9, %c0_10], %1 {strides = array<i32>} : memref<2x18x18x64xf32, #tpu.memory_space<vmem>>, vector<2x18x1x64xf32>,
    %c0_11 = arith.constant 0 : index
    %c0_12 = arith.constant 0 : index
    %c17_13 = arith.constant 17 : index
    %c0_14 = arith.constant 0 : index
    %5 = vector.load %arg8[%c0_11, %c0_12, %c17_13, %c0_14] : memref<2x18x18x64xf32, #tpu.memory_space<vmem>>, vector<2x18x1x64xf32>
    tpu.vector_store %arg8[%c0_11, %c0_12, %c17_13, %c0_14], %1 {strides = array<i32>} : memref<2x18x18x64xf32, #tpu.memory_space<vmem>>, vector<2x18x1x64xf32>,
    %cst_15 = arith.constant 0.000000e+00 : f32
    %6 = vector.broadcast %cst_15 : f32 to vector<16x16x64xf32>
    %c0_16 = arith.constant 0 : index
    %c0_17 = arith.constant 0 : index
    %c0_18 = arith.constant 0 : index
    %c0_19 = arith.constant 0 : index
    %c0_20 = arith.constant 0 : index
    %7 = vector.load %arg2[%c0_16, %c0_17, %c0_18, %c0_19, %c0_20] : memref<2x1x16x16x64xf32, #tpu.memory_space<vmem>>, vector<1x1x16x16x64xf32>
    %8 = vector.shape_cast %7 : vector<1x1x16x16x64xf32> to vector<16x16x64xf32>
    %9 = arith.subf %8, %6 : vector<16x16x64xf32>
    %cst_21 = arith.constant 2.000000e+00 : f32
    %10 = vector.broadcast %cst_21 : f32 to vector<16x16x64xf32>
    %11 = arith.divf %9, %10 : vector<16x16x64xf32>
    %12 = arith.addf %6, %11 : vector<16x16x64xf32>
    %cst_22 = arith.constant 1.000000e+00 : f32
    %13 = vector.broadcast %cst_22 : f32 to vector<16x16x64xf32>
    %14 = arith.cmpf oge, %12, %13 : vector<16x16x64xf32>
    %15 = arith.extui %14 : vector<16x16x64xi1> to vector<16x16x64xi32>
    %16 = arith.sitofp %15 : vector<16x16x64xi32> to vector<16x16x64xf32>
    %cst_23 = arith.constant 1.000000e+00 : f32
    %17 = vector.broadcast %cst_23 : f32 to vector<16x16x64xf32>
    %18 = arith.subf %17, %16 : vector<16x16x64xf32>
    %19 = arith.mulf %12, %18 : vector<16x16x64xf32>
    %20 = vector.shape_cast %16 : vector<16x16x64xf32> to vector<1x16x16x64xf32>
    %c0_24 = arith.constant 0 : index
    %c1 = arith.constant 1 : index
    %c1_25 = arith.constant 1 : index
    %c0_26 = arith.constant 0 : index
    %21 = vector.load %arg8[%c0_24, %c1, %c1_25, %c0_26] : memref<2x18x18x64xf32, #tpu.memory_space<vmem>>, vector<1x16x16x64xf32>
    tpu.vector_store %arg8[%c0_24, %c1, %c1_25, %c0_26], %20 {strides = array<i32>} : memref<2x18x18x64xf32, #tpu.memory_space<vmem>>, vector<1x16x16x64xf32>,
    %c1_27 = arith.constant 1 : index
    %c0_28 = arith.constant 0 : index
    %c0_29 = arith.constant 0 : index
    %c0_30 = arith.constant 0 : index
    %c0_31 = arith.constant 0 : index
    %22 = vector.load %arg2[%c1_27, %c0_28, %c0_29, %c0_30, %c0_31] : memref<2x1x16x16x64xf32, #tpu.memory_space<vmem>>, vector<1x1x16x16x64xf32>
    %23 = vector.shape_cast %22 : vector<1x1x16x16x64xf32> to vector<16x16x64xf32>
    %24 = arith.subf %23, %19 : vector<16x16x64xf32>
    %cst_32 = arith.constant 2.000000e+00 : f32
    %25 = vector.broadcast %cst_32 : f32 to vector<16x16x64xf32>
    %26 = arith.divf %24, %25 : vector<16x16x64xf32>
    %27 = arith.addf %19, %26 : vector<16x16x64xf32>
    %cst_33 = arith.constant 1.000000e+00 : f32
    %28 = vector.broadcast %cst_33 : f32 to vector<16x16x64xf32>
    %29 = arith.cmpf oge, %27, %28 : vector<16x16x64xf32>
    %30 = arith.extui %29 : vector<16x16x64xi1> to vector<16x16x64xi32>
    %31 = arith.sitofp %30 : vector<16x16x64xi32> to vector<16x16x64xf32>
    %32 = vector.shape_cast %31 : vector<16x16x64xf32> to vector<1x16x16x64xf32>
    %c1_34 = arith.constant 1 : index
    %c1_35 = arith.constant 1 : index
    %c1_36 = arith.constant 1 : index
    %c0_37 = arith.constant 0 : index
    %33 = vector.load %arg8[%c1_34, %c1_35, %c1_36, %c0_37] : memref<2x18x18x64xf32, #tpu.memory_space<vmem>>, vector<1x16x16x64xf32>
    tpu.vector_store %arg8[%c1_34, %c1_35, %c1_36, %c0_37], %32 {strides = array<i32>} : memref<2x18x18x64xf32, #tpu.memory_space<vmem>>, vector<1x16x16x64xf32>,
    %c0_38 = arith.constant 0 : index
    %c0_39 = arith.constant 0 : index
    %34 = vector.load %arg5[%c0_38, %c0_39] : memref<1x64xf32, #tpu.memory_space<vmem>>, vector<1x64xf32>
    %c0_40 = arith.constant 0 : index
    %c0_41 = arith.constant 0 : index
    %35 = vector.load %arg6[%c0_40, %c0_41] : memref<1x64xf32, #tpu.memory_space<vmem>>, vector<1x64xf32>
    %cst_42 = arith.constant 0.000000e+00 : f32
    %36 = vector.broadcast %cst_42 : f32 to vector<512x64xf32>
    %c0_43 = arith.constant 0 : index
    %c0_44 = arith.constant 0 : index
    %c0_45 = arith.constant 0 : index
    %c0_46 = arith.constant 0 : index
    %37 = vector.load %arg8[%c0_43, %c0_44, %c0_45, %c0_46] : memref<2x18x18x64xf32, #tpu.memory_space<vmem>>, vector<2x16x16x64xf32>
    %38 = vector.shape_cast %37 : vector<2x16x16x64xf32> to vector<512x64xf32>
    %39 = arith.truncf %38 : vector<512x64xf32> to vector<512x64xbf16>
    %c0_47 = arith.constant 0 : index
    %c0_48 = arith.constant 0 : index
    %c0_49 = arith.constant 0 : index
    %40 = vector.load %arg4[%c0_47, %c0_48, %c0_49] : memref<9x64x64xbf16, #tpu.memory_space<vmem>>, vector<1x64x64xbf16>
    %41 = vector.shape_cast %40 : vector<1x64x64xbf16> to vector<64x64xbf16>
    %cst_50 = arith.constant dense<0.000000e+00> : vector<512x64xf32>
    %42 = tpu.matmul %39, %41, %cst_50 {dimension_numbers = #tpu.dot_dimension_numbers<[1], [0], [0], [1], [0, 0, 1, 1], [], []>} : vector<512x64xbf16>, vector<64x64xbf16>, vector<512x64xf32> -> vector<512x64xf32>
    %43 = arith.addf %36, %42 : vector<512x64xf32>
    %c0_51 = arith.constant 0 : index
    %c0_52 = arith.constant 0 : index
    %c1_53 = arith.constant 1 : index
    %c0_54 = arith.constant 0 : index
    %44 = vector.load %arg8[%c0_51, %c0_52, %c1_53, %c0_54] : memref<2x18x18x64xf32, #tpu.memory_space<vmem>>, vector<2x16x16x64xf32>
    %45 = vector.shape_cast %44 : vector<2x16x16x64xf32> to vector<512x64xf32>
    %46 = arith.truncf %45 : vector<512x64xf32> to vector<512x64xbf16>
    %c1_55 = arith.constant 1 : index
    %c0_56 = arith.constant 0 : index
    %c0_57 = arith.constant 0 : index
    %47 = vector.load %arg4[%c1_55, %c0_56, %c0_57] : memref<9x64x64xbf16, #tpu.memory_space<vmem>>, vector<1x64x64xbf16>
    %48 = vector.shape_cast %47 : vector<1x64x64xbf16> to vector<64x64xbf16>
    %cst_58 = arith.constant dense<0.000000e+00> : vector<512x64xf32>
    %49 = tpu.matmul %46, %48, %cst_58 {dimension_numbers = #tpu.dot_dimension_numbers<[1], [0], [0], [1], [0, 0, 1, 1], [], []>} : vector<512x64xbf16>, vector<64x64xbf16>, vector<512x64xf32> -> vector<512x64xf32>
    %50 = arith.addf %43, %49 : vector<512x64xf32>
    %c0_59 = arith.constant 0 : index
    %c0_60 = arith.constant 0 : index
    %c2 = arith.constant 2 : index
    %c0_61 = arith.constant 0 : index
    %51 = vector.load %arg8[%c0_59, %c0_60, %c2, %c0_61] : memref<2x18x18x64xf32, #tpu.memory_space<vmem>>, vector<2x16x16x64xf32>
    %52 = vector.shape_cast %51 : vector<2x16x16x64xf32> to vector<512x64xf32>
    %53 = arith.truncf %52 : vector<512x64xf32> to vector<512x64xbf16>
    %c2_62 = arith.constant 2 : index
    %c0_63 = arith.constant 0 : index
    %c0_64 = arith.constant 0 : index
    %54 = vector.load %arg4[%c2_62, %c0_63, %c0_64] : memref<9x64x64xbf16, #tpu.memory_space<vmem>>, vector<1x64x64xbf16>
    %55 = vector.shape_cast %54 : vector<1x64x64xbf16> to vector<64x64xbf16>
    %cst_65 = arith.constant dense<0.000000e+00> : vector<512x64xf32>
    %56 = tpu.matmul %53, %55, %cst_65 {dimension_numbers = #tpu.dot_dimension_numbers<[1], [0], [0], [1], [0, 0, 1, 1], [], []>} : vector<512x64xbf16>, vector<64x64xbf16>, vector<512x64xf32> -> vector<512x64xf32>
    %57 = arith.addf %50, %56 : vector<512x64xf32>
    %c0_66 = arith.constant 0 : index
    %c1_67 = arith.constant 1 : index
    %c0_68 = arith.constant 0 : index
    %c0_69 = arith.constant 0 : index
    %58 = vector.load %arg8[%c0_66, %c1_67, %c0_68, %c0_69] : memref<2x18x18x64xf32, #tpu.memory_space<vmem>>, vector<2x16x16x64xf32>
    %59 = vector.shape_cast %58 : vector<2x16x16x64xf32> to vector<512x64xf32>
    %60 = arith.truncf %59 : vector<512x64xf32> to vector<512x64xbf16>
    %c3 = arith.constant 3 : index
    %c0_70 = arith.constant 0 : index
    %c0_71 = arith.constant 0 : index
    %61 = vector.load %arg4[%c3, %c0_70, %c0_71] : memref<9x64x64xbf16, #tpu.memory_space<vmem>>, vector<1x64x64xbf16>
    %62 = vector.shape_cast %61 : vector<1x64x64xbf16> to vector<64x64xbf16>
    %cst_72 = arith.constant dense<0.000000e+00> : vector<512x64xf32>
    %63 = tpu.matmul %60, %62, %cst_72 {dimension_numbers = #tpu.dot_dimension_numbers<[1], [0], [0], [1], [0, 0, 1, 1], [], []>} : vector<512x64xbf16>, vector<64x64xbf16>, vector<512x64xf32> -> vector<512x64xf32>
    %64 = arith.addf %57, %63 : vector<512x64xf32>
    %c0_73 = arith.constant 0 : index
    %c1_74 = arith.constant 1 : index
    %c1_75 = arith.constant 1 : index
    %c0_76 = arith.constant 0 : index
    %65 = vector.load %arg8[%c0_73, %c1_74, %c1_75, %c0_76] : memref<2x18x18x64xf32, #tpu.memory_space<vmem>>, vector<2x16x16x64xf32>
    %66 = vector.shape_cast %65 : vector<2x16x16x64xf32> to vector<512x64xf32>
    %67 = arith.truncf %66 : vector<512x64xf32> to vector<512x64xbf16>
    %c4 = arith.constant 4 : index
    %c0_77 = arith.constant 0 : index
    %c0_78 = arith.constant 0 : index
    %68 = vector.load %arg4[%c4, %c0_77, %c0_78] : memref<9x64x64xbf16, #tpu.memory_space<vmem>>, vector<1x64x64xbf16>
    %69 = vector.shape_cast %68 : vector<1x64x64xbf16> to vector<64x64xbf16>
    %cst_79 = arith.constant dense<0.000000e+00> : vector<512x64xf32>
    %70 = tpu.matmul %67, %69, %cst_79 {dimension_numbers = #tpu.dot_dimension_numbers<[1], [0], [0], [1], [0, 0, 1, 1], [], []>} : vector<512x64xbf16>, vector<64x64xbf16>, vector<512x64xf32> -> vector<512x64xf32>
    %71 = arith.addf %64, %70 : vector<512x64xf32>
    %c0_80 = arith.constant 0 : index
    %c1_81 = arith.constant 1 : index
    %c2_82 = arith.constant 2 : index
    %c0_83 = arith.constant 0 : index
    %72 = vector.load %arg8[%c0_80, %c1_81, %c2_82, %c0_83] : memref<2x18x18x64xf32, #tpu.memory_space<vmem>>, vector<2x16x16x64xf32>
    %73 = vector.shape_cast %72 : vector<2x16x16x64xf32> to vector<512x64xf32>
    %74 = arith.truncf %73 : vector<512x64xf32> to vector<512x64xbf16>
    %c5 = arith.constant 5 : index
    %c0_84 = arith.constant 0 : index
    %c0_85 = arith.constant 0 : index
    %75 = vector.load %arg4[%c5, %c0_84, %c0_85] : memref<9x64x64xbf16, #tpu.memory_space<vmem>>, vector<1x64x64xbf16>
    %76 = vector.shape_cast %75 : vector<1x64x64xbf16> to vector<64x64xbf16>
    %cst_86 = arith.constant dense<0.000000e+00> : vector<512x64xf32>
    %77 = tpu.matmul %74, %76, %cst_86 {dimension_numbers = #tpu.dot_dimension_numbers<[1], [0], [0], [1], [0, 0, 1, 1], [], []>} : vector<512x64xbf16>, vector<64x64xbf16>, vector<512x64xf32> -> vector<512x64xf32>
    %78 = arith.addf %71, %77 : vector<512x64xf32>
    %c0_87 = arith.constant 0 : index
    %c2_88 = arith.constant 2 : index
    %c0_89 = arith.constant 0 : index
    %c0_90 = arith.constant 0 : index
    %79 = vector.load %arg8[%c0_87, %c2_88, %c0_89, %c0_90] : memref<2x18x18x64xf32, #tpu.memory_space<vmem>>, vector<2x16x16x64xf32>
    %80 = vector.shape_cast %79 : vector<2x16x16x64xf32> to vector<512x64xf32>
    %81 = arith.truncf %80 : vector<512x64xf32> to vector<512x64xbf16>
    %c6 = arith.constant 6 : index
    %c0_91 = arith.constant 0 : index
    %c0_92 = arith.constant 0 : index
    %82 = vector.load %arg4[%c6, %c0_91, %c0_92] : memref<9x64x64xbf16, #tpu.memory_space<vmem>>, vector<1x64x64xbf16>
    %83 = vector.shape_cast %82 : vector<1x64x64xbf16> to vector<64x64xbf16>
    %cst_93 = arith.constant dense<0.000000e+00> : vector<512x64xf32>
    %84 = tpu.matmul %81, %83, %cst_93 {dimension_numbers = #tpu.dot_dimension_numbers<[1], [0], [0], [1], [0, 0, 1, 1], [], []>} : vector<512x64xbf16>, vector<64x64xbf16>, vector<512x64xf32> -> vector<512x64xf32>
    %85 = arith.addf %78, %84 : vector<512x64xf32>
    %c0_94 = arith.constant 0 : index
    %c2_95 = arith.constant 2 : index
    %c1_96 = arith.constant 1 : index
    %c0_97 = arith.constant 0 : index
    %86 = vector.load %arg8[%c0_94, %c2_95, %c1_96, %c0_97] : memref<2x18x18x64xf32, #tpu.memory_space<vmem>>, vector<2x16x16x64xf32>
    %87 = vector.shape_cast %86 : vector<2x16x16x64xf32> to vector<512x64xf32>
    %88 = arith.truncf %87 : vector<512x64xf32> to vector<512x64xbf16>
    %c7 = arith.constant 7 : index
    %c0_98 = arith.constant 0 : index
    %c0_99 = arith.constant 0 : index
    %89 = vector.load %arg4[%c7, %c0_98, %c0_99] : memref<9x64x64xbf16, #tpu.memory_space<vmem>>, vector<1x64x64xbf16>
    %90 = vector.shape_cast %89 : vector<1x64x64xbf16> to vector<64x64xbf16>
    %cst_100 = arith.constant dense<0.000000e+00> : vector<512x64xf32>
    %91 = tpu.matmul %88, %90, %cst_100 {dimension_numbers = #tpu.dot_dimension_numbers<[1], [0], [0], [1], [0, 0, 1, 1], [], []>} : vector<512x64xbf16>, vector<64x64xbf16>, vector<512x64xf32> -> vector<512x64xf32>
    %92 = arith.addf %85, %91 : vector<512x64xf32>
    %c0_101 = arith.constant 0 : index
    %c2_102 = arith.constant 2 : index
    %c2_103 = arith.constant 2 : index
    %c0_104 = arith.constant 0 : index
    %93 = vector.load %arg8[%c0_101, %c2_102, %c2_103, %c0_104] : memref<2x18x18x64xf32, #tpu.memory_space<vmem>>, vector<2x16x16x64xf32>
    %94 = vector.shape_cast %93 : vector<2x16x16x64xf32> to vector<512x64xf32>
    %95 = arith.truncf %94 : vector<512x64xf32> to vector<512x64xbf16>
    %c8 = arith.constant 8 : index
    %c0_105 = arith.constant 0 : index
    %c0_106 = arith.constant 0 : index
    %96 = vector.load %arg4[%c8, %c0_105, %c0_106] : memref<9x64x64xbf16, #tpu.memory_space<vmem>>, vector<1x64x64xbf16>
    %97 = vector.shape_cast %96 : vector<1x64x64xbf16> to vector<64x64xbf16>
    %cst_107 = arith.constant dense<0.000000e+00> : vector<512x64xf32>
    %98 = tpu.matmul %95, %97, %cst_107 {dimension_numbers = #tpu.dot_dimension_numbers<[1], [0], [0], [1], [0, 0, 1, 1], [], []>} : vector<512x64xbf16>, vector<64x64xbf16>, vector<512x64xf32> -> vector<512x64xf32>
    %99 = arith.addf %92, %98 : vector<512x64xf32>
    %100 = vector.broadcast %34 : vector<1x64xf32> to vector<512x64xf32>
    %101 = arith.mulf %99, %100 : vector<512x64xf32>
    %102 = vector.broadcast %35 : vector<1x64xf32> to vector<512x64xf32>
    %103 = arith.addf %101, %102 : vector<512x64xf32>
    %104 = vector.shape_cast %103 : vector<512x64xf32> to vector<2x16x16x64xf32>
    %c0_108 = arith.constant 0 : index
    %c0_109 = arith.constant 0 : index
    %c0_110 = arith.constant 0 : index
    %c0_111 = arith.constant 0 : index
    %c0_112 = arith.constant 0 : index
    %105 = vector.load %arg3[%c0_108, %c0_109, %c0_110, %c0_111, %c0_112] : memref<2x1x16x16x64xf32, #tpu.memory_space<vmem>>, vector<2x1x16x16x64xf32>
    %106 = vector.shape_cast %105 : vector<2x1x16x16x64xf32> to vector<2x16x16x64xf32>
    %107 = arith.addf %104, %106 : vector<2x16x16x64xf32>
    %c0_113 = arith.constant 0 : index
    %c0_114 = arith.constant 0 : index
    %c0_115 = arith.constant 0 : index
    %c0_116 = arith.constant 0 : index
    %c0_117 = arith.constant 0 : index
    %108 = vector.load %arg7[%c0_113, %c0_114, %c0_115, %c0_116, %c0_117] : memref<2x1x16x16x64xf32, #tpu.memory_space<vmem>>, vector<2x1x16x16x64xf32>
    %109 = vector.shape_cast %108 : vector<2x1x16x16x64xf32> to vector<2x16x16x64xf32>
    %110 = vector.shape_cast %107 : vector<2x16x16x64xf32> to vector<2x1x16x16x64xf32>
    tpu.vector_store %arg7[%c0_113, %c0_114, %c0_115, %c0_116, %c0_117], %110 {strides = array<i32>} : memref<2x1x16x16x64xf32, #tpu.memory_space<vmem>>, vector<2x1x16x16x64xf32>,
    return
  }
  func.func @transform_0(%arg0: i32, %arg1: i32) -> (i32, i32, i32, i32, i32) {
    %c0_i32 = arith.constant 0 : i32
    %c0_i32_0 = arith.constant 0 : i32
    %c0_i32_1 = arith.constant 0 : i32
    %c0_i32_2 = arith.constant 0 : i32
    return %c0_i32, %arg0, %c0_i32_0, %c0_i32_1, %arg1 : i32, i32, i32, i32, i32
  }
  func.func @transform_1(%arg0: i32, %arg1: i32) -> (i32, i32, i32, i32, i32) {
    %c0_i32 = arith.constant 0 : i32
    %c0_i32_0 = arith.constant 0 : i32
    %c0_i32_1 = arith.constant 0 : i32
    %c0_i32_2 = arith.constant 0 : i32
    return %c0_i32, %arg0, %c0_i32_0, %c0_i32_1, %arg1 : i32, i32, i32, i32, i32
  }
  func.func @transform_2(%arg0: i32, %arg1: i32) -> (i32, i32, i32) {
    %c0_i32 = arith.constant 0 : i32
    %c0_i32_0 = arith.constant 0 : i32
    %c0_i32_1 = arith.constant 0 : i32
    return %arg1, %c0_i32, %c0_i32_0 : i32, i32, i32
  }
  func.func @transform_3(%arg0: i32, %arg1: i32) -> (i32, i32) {
    %c0_i32 = arith.constant 0 : i32
    %c0_i32_0 = arith.constant 0 : i32
    return %c0_i32, %arg1 : i32, i32
  }
  func.func @transform_4(%arg0: i32, %arg1: i32) -> (i32, i32) {
    %c0_i32 = arith.constant 0 : i32
    %c0_i32_0 = arith.constant 0 : i32
    return %c0_i32, %arg1 : i32, i32
  }
  func.func @transform_5(%arg0: i32, %arg1: i32) -> (i32, i32, i32, i32, i32) {
    %c0_i32 = arith.constant 0 : i32
    %c0_i32_0 = arith.constant 0 : i32
    %c0_i32_1 = arith.constant 0 : i32
    %c0_i32_2 = arith.constant 0 : i32
    return %c0_i32, %arg0, %c0_i32_0, %c0_i32_1, %arg1 : i32, i32, i32, i32, i32
  }
}

module attributes {stable_mosaic.version = 11 : i64} {
  func.func @down_kernel(%arg0: i32, %arg1: memref<2x128x64xf32, #tpu.memory_space<vmem>>, %arg2: memref<2x128x16xf32, #tpu.memory_space<vmem>>, %arg3: memref<64x16xbf16, #tpu.memory_space<vmem>>, %arg4: memref<1x16xf32, #tpu.memory_space<vmem>>, %arg5: memref<1x16xf32, #tpu.memory_space<vmem>>, %arg6: memref<2x128x16xf32, #tpu.memory_space<vmem>>) attributes {dimension_semantics = [#tpu.dimension_semantics<parallel>], iteration_bounds = array<i64: 4>, scalar_prefetch = 0 : i64, scratch_operands = 0 : i64, tpu.core_type = #tpu.core_type<tc>, window_params = [{transform_indices = @transform_0, window_bounds = array<i64: 2, 128, 64>}, {transform_indices = @transform_1, window_bounds = array<i64: 2, 128, 16>}, {pipeline_mode = #tpu.pipeline_mode<synchronous>, transform_indices = @transform_2, window_bounds = array<i64: 64, 16>}, {pipeline_mode = #tpu.pipeline_mode<synchronous>, transform_indices = @transform_3, window_bounds = array<i64: 1, 16>}, {pipeline_mode = #tpu.pipeline_mode<synchronous>, transform_indices = @transform_4, window_bounds = array<i64: 1, 16>}, {transform_indices = @transform_5, window_bounds = array<i64: 2, 128, 16>}]} {
    %cst = arith.constant 0.000000e+00 : f32
    %0 = vector.broadcast %cst : f32 to vector<128x64xf32>
    %c0 = arith.constant 0 : index
    %c0_0 = arith.constant 0 : index
    %1 = vector.load %arg3[%c0, %c0_0] : memref<64x16xbf16, #tpu.memory_space<vmem>>, vector<64x16xbf16>
    %c0_1 = arith.constant 0 : index
    %c0_2 = arith.constant 0 : index
    %2 = vector.load %arg4[%c0_1, %c0_2] : memref<1x16xf32, #tpu.memory_space<vmem>>, vector<1x16xf32>
    %c0_3 = arith.constant 0 : index
    %c0_4 = arith.constant 0 : index
    %3 = vector.load %arg5[%c0_3, %c0_4] : memref<1x16xf32, #tpu.memory_space<vmem>>, vector<1x16xf32>
    %c0_5 = arith.constant 0 : index
    %c0_6 = arith.constant 0 : index
    %c0_7 = arith.constant 0 : index
    %4 = vector.load %arg1[%c0_5, %c0_6, %c0_7] : memref<2x128x64xf32, #tpu.memory_space<vmem>>, vector<1x128x64xf32>
    %5 = vector.shape_cast %4 : vector<1x128x64xf32> to vector<128x64xf32>
    %6 = arith.subf %5, %0 : vector<128x64xf32>
    %cst_8 = arith.constant 2.000000e+00 : f32
    %7 = vector.broadcast %cst_8 : f32 to vector<128x64xf32>
    %8 = arith.divf %6, %7 : vector<128x64xf32>
    %9 = arith.addf %0, %8 : vector<128x64xf32>
    %cst_9 = arith.constant 1.000000e+00 : f32
    %10 = vector.broadcast %cst_9 : f32 to vector<128x64xf32>
    %11 = arith.cmpf oge, %9, %10 : vector<128x64xf32>
    %12 = arith.extui %11 : vector<128x64xi1> to vector<128x64xi32>
    %13 = arith.sitofp %12 : vector<128x64xi32> to vector<128x64xf32>
    %cst_10 = arith.constant 1.000000e+00 : f32
    %14 = vector.broadcast %cst_10 : f32 to vector<128x64xf32>
    %15 = arith.subf %14, %13 : vector<128x64xf32>
    %16 = arith.mulf %9, %15 : vector<128x64xf32>
    %17 = arith.truncf %13 : vector<128x64xf32> to vector<128x64xbf16>
    %cst_11 = arith.constant dense<0.000000e+00> : vector<128x16xf32>
    %18 = tpu.matmul %17, %1, %cst_11 {dimension_numbers = #tpu.dot_dimension_numbers<[1], [0], [0], [1], [0, 0, 1, 1], [], []>} : vector<128x64xbf16>, vector<64x16xbf16>, vector<128x16xf32> -> vector<128x16xf32>
    %19 = vector.broadcast %2 : vector<1x16xf32> to vector<128x16xf32>
    %20 = arith.mulf %18, %19 : vector<128x16xf32>
    %21 = vector.broadcast %3 : vector<1x16xf32> to vector<128x16xf32>
    %22 = arith.addf %20, %21 : vector<128x16xf32>
    %c0_12 = arith.constant 0 : index
    %c0_13 = arith.constant 0 : index
    %c0_14 = arith.constant 0 : index
    %23 = vector.load %arg2[%c0_12, %c0_13, %c0_14] : memref<2x128x16xf32, #tpu.memory_space<vmem>>, vector<1x128x16xf32>
    %24 = vector.shape_cast %23 : vector<1x128x16xf32> to vector<128x16xf32>
    %25 = arith.addf %22, %24 : vector<128x16xf32>
    %c0_15 = arith.constant 0 : index
    %c0_16 = arith.constant 0 : index
    %c0_17 = arith.constant 0 : index
    %26 = vector.load %arg6[%c0_15, %c0_16, %c0_17] : memref<2x128x16xf32, #tpu.memory_space<vmem>>, vector<1x128x16xf32>
    %27 = vector.shape_cast %26 : vector<1x128x16xf32> to vector<128x16xf32>
    %28 = vector.shape_cast %25 : vector<128x16xf32> to vector<1x128x16xf32>
    tpu.vector_store %arg6[%c0_15, %c0_16, %c0_17], %28 {strides = array<i32>} : memref<2x128x16xf32, #tpu.memory_space<vmem>>, vector<1x128x16xf32>,
    %c1 = arith.constant 1 : index
    %c0_18 = arith.constant 0 : index
    %c0_19 = arith.constant 0 : index
    %29 = vector.load %arg1[%c1, %c0_18, %c0_19] : memref<2x128x64xf32, #tpu.memory_space<vmem>>, vector<1x128x64xf32>
    %30 = vector.shape_cast %29 : vector<1x128x64xf32> to vector<128x64xf32>
    %31 = arith.subf %30, %16 : vector<128x64xf32>
    %cst_20 = arith.constant 2.000000e+00 : f32
    %32 = vector.broadcast %cst_20 : f32 to vector<128x64xf32>
    %33 = arith.divf %31, %32 : vector<128x64xf32>
    %34 = arith.addf %16, %33 : vector<128x64xf32>
    %cst_21 = arith.constant 1.000000e+00 : f32
    %35 = vector.broadcast %cst_21 : f32 to vector<128x64xf32>
    %36 = arith.cmpf oge, %34, %35 : vector<128x64xf32>
    %37 = arith.extui %36 : vector<128x64xi1> to vector<128x64xi32>
    %38 = arith.sitofp %37 : vector<128x64xi32> to vector<128x64xf32>
    %39 = arith.truncf %38 : vector<128x64xf32> to vector<128x64xbf16>
    %cst_22 = arith.constant dense<0.000000e+00> : vector<128x16xf32>
    %40 = tpu.matmul %39, %1, %cst_22 {dimension_numbers = #tpu.dot_dimension_numbers<[1], [0], [0], [1], [0, 0, 1, 1], [], []>} : vector<128x64xbf16>, vector<64x16xbf16>, vector<128x16xf32> -> vector<128x16xf32>
    %41 = vector.broadcast %2 : vector<1x16xf32> to vector<128x16xf32>
    %42 = arith.mulf %40, %41 : vector<128x16xf32>
    %43 = vector.broadcast %3 : vector<1x16xf32> to vector<128x16xf32>
    %44 = arith.addf %42, %43 : vector<128x16xf32>
    %c1_23 = arith.constant 1 : index
    %c0_24 = arith.constant 0 : index
    %c0_25 = arith.constant 0 : index
    %45 = vector.load %arg2[%c1_23, %c0_24, %c0_25] : memref<2x128x16xf32, #tpu.memory_space<vmem>>, vector<1x128x16xf32>
    %46 = vector.shape_cast %45 : vector<1x128x16xf32> to vector<128x16xf32>
    %47 = arith.addf %44, %46 : vector<128x16xf32>
    %c1_26 = arith.constant 1 : index
    %c0_27 = arith.constant 0 : index
    %c0_28 = arith.constant 0 : index
    %48 = vector.load %arg6[%c1_26, %c0_27, %c0_28] : memref<2x128x16xf32, #tpu.memory_space<vmem>>, vector<1x128x16xf32>
    %49 = vector.shape_cast %48 : vector<1x128x16xf32> to vector<128x16xf32>
    %50 = vector.shape_cast %47 : vector<128x16xf32> to vector<1x128x16xf32>
    tpu.vector_store %arg6[%c1_26, %c0_27, %c0_28], %50 {strides = array<i32>} : memref<2x128x16xf32, #tpu.memory_space<vmem>>, vector<1x128x16xf32>,
    return
  }
  func.func @transform_0(%arg0: i32) -> (i32, i32, i32) {
    %c0_i32 = arith.constant 0 : i32
    %c0_i32_0 = arith.constant 0 : i32
    %c0_i32_1 = arith.constant 0 : i32
    return %c0_i32, %arg0, %c0_i32_0 : i32, i32, i32
  }
  func.func @transform_1(%arg0: i32) -> (i32, i32, i32) {
    %c0_i32 = arith.constant 0 : i32
    %c0_i32_0 = arith.constant 0 : i32
    %c0_i32_1 = arith.constant 0 : i32
    return %c0_i32, %arg0, %c0_i32_0 : i32, i32, i32
  }
  func.func @transform_2(%arg0: i32) -> (i32, i32) {
    %c0_i32 = arith.constant 0 : i32
    %c0_i32_0 = arith.constant 0 : i32
    %c0_i32_1 = arith.constant 0 : i32
    return %c0_i32, %c0_i32_0 : i32, i32
  }
  func.func @transform_3(%arg0: i32) -> (i32, i32) {
    %c0_i32 = arith.constant 0 : i32
    %c0_i32_0 = arith.constant 0 : i32
    %c0_i32_1 = arith.constant 0 : i32
    return %c0_i32, %c0_i32_0 : i32, i32
  }
  func.func @transform_4(%arg0: i32) -> (i32, i32) {
    %c0_i32 = arith.constant 0 : i32
    %c0_i32_0 = arith.constant 0 : i32
    %c0_i32_1 = arith.constant 0 : i32
    return %c0_i32, %c0_i32_0 : i32, i32
  }
  func.func @transform_5(%arg0: i32) -> (i32, i32, i32) {
    %c0_i32 = arith.constant 0 : i32
    %c0_i32_0 = arith.constant 0 : i32
    %c0_i32_1 = arith.constant 0 : i32
    return %c0_i32, %arg0, %c0_i32_0 : i32, i32, i32
  }
}

</mosaic_0001>

<bundles_post_ra>
// kernel: gwffn_forward.4
= control target key start
LH: loop header
LB: loop body
LE: loop exit
PB: predicated region body
PF: predicated region fallthrough
CT: control target
= control target key end

     0   :  { %s1427_s15 = smov 0   ;;  %s1429_s16 = smov 0   ;;  %s1852_s0 = inlined_call_operand.vmem [shape: f32[2,512,16], index: 0, kind: input, shape index: {}]   ;;  %s1853_s1 = inlined_call_operand.vmem [shape: bf16[16,64], index: 1, kind: input, shape index: {}]   ;;  %s1854_s2 = inlined_call_operand.vmem [shape: f32[1,64], index: 2, kind: input, shape index: {}]   ;;  %s1855_s3 = inlined_call_operand.vmem [shape: f32[1,64], index: 3, kind: input, shape index: {}]   ;;  %s1856_s4 = inlined_call_operand.vmem [shape: f32[2,512,64], index: 4, kind: output, shape index: {}]  }
   0x1   :  { %s1431_s17 = smov 0  }
   0x2 LB: > { %s1197_s18 = sadd.s32 4294967295, %s1399_s17   ;;  %s1444_s19 = sadd.s32 1, %s1399_s17   ;;  %s1399_s17 = sphi %s1431_s17, %s1860_s17   ;;  %s1395_s16 = sphi %s1429_s16, %s1859_s16   ;;  %s1391_s15 = sphi %s1427_s15, %s1858_s15  }
   0x3   : > { %s18_s20 = ssub.s32 %s1399_s17, %s1444_s19  ;;  %s21_s21 = sadd.s32 1, %s1395_s16 }
   0x4   : > { %p19_p0 = scmp.eq.s32.totalorder %s18_s20, 0  ;;  %p28_p1 = scmp.ne.s32.totalorder %s1395_s16, %s1391_s15 }
   0x5   : > { %p29_p2 = scmp.eq.s32.totalorder %s1399_s17, 0  ;;  %p121_p3 = scmp.eq.s32.totalorder %s1197_s18, 3 }
   0x6   : > { %s1455_s22 = scalar_select %p19_p0, %s1395_s16, %s21_s21  }
   0x7   : > { %p30_p4 = por %p29_p2, %p28_p1  ;;  %p1457_p5 = por %p121_p3, %p28_p1 }
   0x8   : > { %p1200_p6 = scmp.ge.s32.totalorder %s1399_s17, 4 }
   0xa   : > { %152 = sbr.rel (%p1200_p6) target bundleno = 37 (0x25), region = 28 }
  0x11   : > { %155 = sbr.rel (!%p30_p4) target bundleno = 37 (0x25), region = 32  ;;  %s157_s24 = sand.u32 (%p30_p4), 1, %s1395_s16  }
  0x12   : > { %s1295_s25 = sshll.u32 (%p30_p4), %s1399_s17, 7  ;;  %s1201_s26 = sshll.u32 (%p30_p4), %s157_s24, 8 }
  0x13   : > { %s1467_s29 = scalar_lea.vmem (%p30_p4), %s1852_s0, %s1295_s25  ;;  %s1472_s30 = scalar_lea.vmem (%p30_p4), [#allocation2], %s1201_s26 }
  0x14   : > { %v252_v0 = vld [vmem:[%s1467_s29] sm:$0xff] (%p30_p4)  ;;  %v254_v1 = vld [vmem:[%s1467_s29 + $0x8] sm:$0xff] (%p30_p4)  ;;  %v256_v2 = vld [vmem:[%s1467_s29 + $0x10] sm:$0xff] (%p30_p4) }
  0x15   : > { %253 = vst [vmem:[%s1472_s30] sm:$0xff] (%p30_p4), %v252_v0  ;;  %255 = vst [vmem:[%s1472_s30 + $0x8] sm:$0xff] (%p30_p4), %v254_v1  ;;  %v258_v3 = vld [vmem:[%s1467_s29 + $0x18] sm:$0xff] (%p30_p4)  ;;  %v260_v4 = vld [vmem:[%s1467_s29 + $0x20] sm:$0xff] (%p30_p4) }
  0x16   : > { %257 = vst [vmem:[%s1472_s30 + $0x10] sm:$0xff] (%p30_p4), %v256_v2  ;;  %v262_v5 = vld [vmem:[%s1467_s29 + $0x28] sm:$0xff] (%p30_p4)  ;;  %259 = vst [vmem:[%s1472_s30 + $0x18] sm:$0xff] (%p30_p4), %v258_v3  ;;  %v264_v6 = vld [vmem:[%s1467_s29 + $0x30] sm:$0xff] (%p30_p4) }
  0x17   : > { %261 = vst [vmem:[%s1472_s30 + $0x20] sm:$0xff] (%p30_p4), %v260_v4  ;;  %263 = vst [vmem:[%s1472_s30 + $0x28] sm:$0xff] (%p30_p4), %v262_v5  ;;  %v266_v7 = vld [vmem:[%s1467_s29 + $0x38] sm:$0xff] (%p30_p4)  ;;  %v268_v8 = vld [vmem:[%s1467_s29 + $0x40] sm:$0xff] (%p30_p4) }
  0x18   : > { %265 = vst [vmem:[%s1472_s30 + $0x30] sm:$0xff] %v264_v6  ;;  %267 = vst [vmem:[%s1472_s30 + $0x38] sm:$0xff] %v266_v7  ;;  %v270_v9 = vld [vmem:[%s1467_s29 + $0x48] sm:$0xff]  ;;  %v272_v10 = vld [vmem:[%s1467_s29 + $0x50] sm:$0xff] }
  0x19   : > { %269 = vst [vmem:[%s1472_s30 + $0x40] sm:$0xff] %v268_v8  ;;  %v274_v11 = vld [vmem:[%s1467_s29 + $0x58] sm:$0xff]  ;;  %271 = vst [vmem:[%s1472_s30 + $0x48] sm:$0xff] %v270_v9  ;;  %v276_v12 = vld [vmem:[%s1467_s29 + $0x60] sm:$0xff] }
  0x1a   : > { %273 = vst [vmem:[%s1472_s30 + $0x50] sm:$0xff] %v272_v10  ;;  %275 = vst [vmem:[%s1472_s30 + $0x58] sm:$0xff] %v274_v11  ;;  %v278_v13 = vld [vmem:[%s1467_s29 + $0x68] sm:$0xff]  ;;  %v280_v14 = vld [vmem:[%s1467_s29 + $0x70] sm:$0xff] }
  0x1b   : > { %277 = vst [vmem:[%s1472_s30 + $0x60] sm:$0xff] %v276_v12  ;;  %279 = vst [vmem:[%s1472_s30 + $0x68] sm:$0xff] %v278_v13  ;;  %v282_v15 = vld [vmem:[%s1467_s29 + $0x78] sm:$0xff]  ;;  %v284_v16 = vld [vmem:[%s1467_s29 + $0x200] sm:$0xff] }
  0x1c   : > { %281 = vst [vmem:[%s1472_s30 + $0x70] sm:$0xff] %v280_v14  ;;  %v286_v17 = vld [vmem:[%s1467_s29 + $0x208] sm:$0xff]  ;;  %283 = vst [vmem:[%s1472_s30 + $0x78] sm:$0xff] %v282_v15  ;;  %v288_v18 = vld [vmem:[%s1467_s29 + $0x210] sm:$0xff] }
  0x1d   : > { %285 = vst [vmem:[%s1472_s30 + $0x80] sm:$0xff] %v284_v16  ;;  %287 = vst [vmem:[%s1472_s30 + $0x88] sm:$0xff] %v286_v17  ;;  %v290_v19 = vld [vmem:[%s1467_s29 + $0x218] sm:$0xff]  ;;  %v292_v20 = vld [vmem:[%s1467_s29 + $0x220] sm:$0xff] }
  0x1e   : > { %289 = vst [vmem:[%s1472_s30 + $0x90] sm:$0xff] %v288_v18  ;;  %291 = vst [vmem:[%s1472_s30 + $0x98] sm:$0xff] %v290_v19  ;;  %v294_v21 = vld [vmem:[%s1467_s29 + $0x228] sm:$0xff]  ;;  %v296_v22 = vld [vmem:[%s1467_s29 + $0x230] sm:$0xff] }
  0x1f   : > { %293 = vst [vmem:[%s1472_s30 + $0xa0] sm:$0xff] %v292_v20  ;;  %v298_v23 = vld [vmem:[%s1467_s29 + $0x238] sm:$0xff]  ;;  %295 = vst [vmem:[%s1472_s30 + $0xa8] sm:$0xff] %v294_v21  ;;  %v300_v24 = vld [vmem:[%s1467_s29 + $0x240] sm:$0xff] }
  0x20   : > { %297 = vst [vmem:[%s1472_s30 + $0xb0] sm:$0xff] %v296_v22  ;;  %299 = vst [vmem:[%s1472_s30 + $0xb8] sm:$0xff] %v298_v23  ;;  %v302_v25 = vld [vmem:[%s1467_s29 + $0x248] sm:$0xff]  ;;  %v304_v26 = vld [vmem:[%s1467_s29 + $0x250] sm:$0xff] }
  0x21   : > { %301 = vst [vmem:[%s1472_s30 + $0xc0] sm:$0xff] %v300_v24  ;;  %303 = vst [vmem:[%s1472_s30 + $0xc8] sm:$0xff] %v302_v25  ;;  %v306_v27 = vld [vmem:[%s1467_s29 + $0x258] sm:$0xff]  ;;  %v308_v28 = vld [vmem:[%s1467_s29 + $0x260] sm:$0xff] }
  0x22   : > { %305 = vst [vmem:[%s1472_s30 + $0xd0] sm:$0xff] %v304_v26  ;;  %v310_v29 = vld [vmem:[%s1467_s29 + $0x268] sm:$0xff]  ;;  %307 = vst [vmem:[%s1472_s30 + $0xd8] sm:$0xff] %v306_v27  ;;  %v312_v30 = vld [vmem:[%s1467_s29 + $0x270] sm:$0xff] }
  0x23   : > { %309 = vst [vmem:[%s1472_s30 + $0xe0] sm:$0xff] %v308_v28  ;;  %311 = vst [vmem:[%s1472_s30 + $0xe8] sm:$0xff] %v310_v29  ;;  %v314_v31 = vld [vmem:[%s1467_s29 + $0x278] sm:$0xff] }
  0x24   : > { %313 = vst [vmem:[%s1472_s30 + $0xf0] sm:$0xff] %v312_v30  ;;  %315 = vst [vmem:[%s1472_s30 + $0xf8] sm:$0xff] %v314_v31 }
  0x25 PF: > { %p1204_p7 = scmp.ge.s32.totalorder %s1399_s17, 1  ;;  %p320_p8 = scmp.lt.s32.totalorder %s1399_s17, 5 }
  0x27   : > { %p321_p9 = pnand %p1204_p7, %p320_p8 }
  0x28   : > { %v1376_v32 = vld [vmem:[%s1853_s1] sm:$0xff] (!%p321_p9)   ;;  %s327_s7 = sand.u32 (!%p321_p9), 1, %s1391_s15   ;;  %vm501_vm0 = vcmask (!%p321_p9), 130048   ;;  %v1401_v44 = vmov (!%p321_p9), 0.0  }
  0x29   : > { %324 = sbr.rel (%p321_p9) target bundleno = 323 (0x143), region = 70  ;;  %s1541_s8 = sshll.u32 (!%p321_p9), %s327_s7, 8  ;;  %1315 = vmatprep.subr.bf16.mxu0 (!%p321_p9), %v1376_v32  ;;  %1333 = vmatprep.subr.bf16.mxu1 (!%p321_p9), %v1376_v32 }
  0x2a   : > { %1316 = vmatpush3.bf16.msra.mxu0 (!%p321_p9), %v1376_v32  ;;  %s1544_s9 = scalar_lea.vmem (!%p321_p9), [#allocation2], %s1541_s8  ;;  %1334 = vmatpush3.bf16.msra.mxu1 (!%p321_p9), %v1376_v32  ;;  %s1645_s14 = scalar_lea.vmem (!%p321_p9), [#allocation3], %s1541_s8 }
  0x2b   : > { %v358_v33 = vld [vmem:[%s1544_s9] sm:$0xff] (!%p321_p9)  ;;  %v359_v34 = vld [vmem:[%s1544_s9 + $0x8] sm:$0xff] (!%p321_p9)  ;;  %v360_v35 = vld [vmem:[%s1544_s9 + $0x10] sm:$0xff] (!%p321_p9) }
  0x2c   : > { %v375_v36 = vmul.f32 (!%p321_p9), 0.5, %v358_v33  ;;  %v376_v37 = vmul.f32 (!%p321_p9), 0.5, %v359_v34  ;;  %v361_v38 = vld [vmem:[%s1544_s9 + $0x18] sm:$0xff] (!%p321_p9)  ;;  %v377_v39 = vmul.f32 (!%p321_p9), 0.5, %v360_v35  ;;  %v362_v41 = vld [vmem:[%s1544_s9 + $0x20] sm:$0xff] (!%p321_p9)  ;;  %v363_v42 = vld [vmem:[%s1544_s9 + $0x28] sm:$0xff] (!%p321_p9) }
  0x2d   : > { %v378_v40 = vmul.f32 (!%p321_p9), 0.5, %v361_v38  ;;  %v379_v43 = vmul.f32 (!%p321_p9), 0.5, %v362_v41  ;;  %v364_v48 = vld [vmem:[%s1544_s9 + $0x30] sm:$0xff] (!%p321_p9)  ;;  %v1234_v56 = vld [vmem:[%s1544_s9 + $0x80] sm:$0xff] (!%p321_p9)  ;;  %v1235_v57 = vld [vmem:[%s1544_s9 + $0x88] sm:$0xff] (!%p321_p9)  ;;  %v380_v58 = vmul.f32 (!%p321_p9), 0.5, %v363_v42 }
  0x2e   : > { %vm407_vm1 = vcmp.ge.f32.partialorder (!%p321_p9), %v375_v36, 1.0  ;;  %vm408_vm2 = vcmp.ge.f32.partialorder (!%p321_p9), %v376_v37, 1.0  ;;  %vm409_vm3 = vcmp.ge.f32.partialorder (!%p321_p9), %v377_v39, 1.0  ;;  %v1236_v61 = vld [vmem:[%s1544_s9 + $0x90] sm:$0xff] (!%p321_p9)  ;;  %v1237_v62 = vld [vmem:[%s1544_s9 + $0x98] sm:$0xff] (!%p321_p9)  ;;  %v381_v63 = vmul.f32 (!%p321_p9), 0.5, %v364_v48 }
  0x2f   : > { %v1207_v45 = vsel (!%p321_p9), %vm407_vm1, 1.0, %v1401_v44  ;;  %v1208_v46 = vsel (!%p321_p9), %vm408_vm2, 1.0, %v1401_v44  ;;  %vm410_vm4 = vcmp.ge.f32.partialorder (!%p321_p9), %v378_v40, 1.0  ;;  %v1209_v47 = vsel (!%p321_p9), %vm409_vm3, 1.0, %v1401_v44  ;;  %v365_v3 = vld [vmem:[%s1544_s9 + $0x38] sm:$0xff] (!%p321_p9)  ;;  %v1238_v26 = vld [vmem:[%s1544_s9 + $0xa0] sm:$0xff] (!%p321_p9) }
  0x30   : > { %v455_v49 = vsub.f32 1.0, %v1207_v45  ;;  %v456_v50 = vsub.f32 1.0, %v1208_v46  ;;  %v487_v51 = vpack.c.bf16 %v1208_v46, %v1207_v45  ;;  %v1210_v52 = vsel %vm410_vm4, 1.0, %v1401_v44  ;;  %v1239_v29 = vld [vmem:[%s1544_s9 + $0xa8] sm:$0xff]  ;;  %v1240_v30 = vld [vmem:[%s1544_s9 + $0xb0] sm:$0xff]  ;;  %v366_v31 = vld [vmem:[%s1544_s9 + $0x40] sm:$0xff] }
  0x31   : > { %v457_v53 = vsub.f32 1.0, %v1209_v47  ;;  %v458_v54 = vsub.f32 1.0, %v1210_v52  ;;  %v488_v55 = vpack.c.bf16 %v1210_v52, %v1209_v47  ;;  %vm411_vm5 = vcmp.ge.f32.partialorder %v379_v43, 1.0  ;;  %v367_v34 = vld [vmem:[%s1544_s9 + $0x48] sm:$0xff]  ;;  %v368_v35 = vld [vmem:[%s1544_s9 + $0x50] sm:$0xff]  ;;  %v369_v41 = vld [vmem:[%s1544_s9 + $0x58] sm:$0xff] }
  0x32   : > { %v471_v59 = vmul.f32 %v455_v49, %v375_v36  ;;  %v472_v60 = vmul.f32 %v456_v50, %v376_v37  ;;  %1317 = vmatprep.mubr.msk.bf16.mxu0 %vm501_vm0, %v487_v51  ;;  %vm412_vm6 = vcmp.ge.f32.partialorder %v380_v58, 1.0  ;;  %v1211_v2 = vsel %vm411_vm5, 1.0, %v1401_v44  ;;  %s1296_s15 = sshll.u32 (%p1457_p5), %s1197_s18, 7 }
  0x33   : > { %v473_v0 = vmul.f32 %v457_v53, %v377_v39  ;;  %v474_v1 = vmul.f32 %v458_v54, %v378_v40  ;;  %1318 = vmatmul.mubr.msk.bf16.vlgmr.msra.gmra.mrb[0].mxu0 %vm501_vm0, %v488_v55  ;;  %v1212_v6 = vsel %vm412_vm6, 1.0, %v1401_v44  ;;  %v459_v7 = vsub.f32 1.0, %v1211_v2  ;;  %v1241_v40 = vld [vmem:[%s1544_s9 + $0xb8] sm:$0xff]  ;;  %s1779_s23 = scalar_lea.vmem (%p1457_p5), %s1856_s4, %s1296_s15 }
  0x34   : > { %v701_v4 = vsub.f32 %v1234_v56, %v471_v59  ;;  %v702_v5 = vsub.f32 %v1235_v57, %v472_v60  ;;  %v460_v10 = vsub.f32 1.0, %v1212_v6  ;;  %v489_v11 = vpack.c.bf16 %v1212_v6, %v1211_v2 }
  0x35   : > { %v703_v8 = vsub.f32 %v1236_v61, %v473_v0  ;;  %v704_v9 = vsub.f32 %v1237_v62, %v474_v1  ;;  %v475_v14 = vmul.f32 %v459_v7, %v379_v43  ;;  %v382_v15 = vmul.f32 0.5, %v365_v3 }
  0x36   : > { %v717_v12 = vmul.f32 0.5, %v701_v4  ;;  %v718_v13 = vmul.f32 0.5, %v702_v5  ;;  %v476_v18 = vmul.f32 %v460_v10, %v380_v58  ;;  %1321 = vmatprep.mubr.msk.bf16.mxu0 %vm501_vm0, %v489_v11  ;;  %vm413_vm7 = vcmp.ge.f32.partialorder %v381_v63, 1.0  ;;  %v1242_v4 = vld [vmem:[%s1544_s9 + $0xc0] sm:$0xff]  ;;  %v371_v10 = vld [vmem:[%s1544_s9 + $0x68] sm:$0xff] }
  0x37   : > { %v719_v16 = vmul.f32 0.5, %v703_v8  ;;  %v720_v17 = vmul.f32 0.5, %v704_v9  ;;  %vm414_vm8 = vcmp.ge.f32.partialorder %v382_v15, 1.0  ;;  %v1213_v21 = vsel %vm413_vm7, 1.0, %v1401_v44  ;;  %v1243_v8 = vld [vmem:[%s1544_s9 + $0xc8] sm:$0xff]  ;;  %v370_v9 = vld [vmem:[%s1544_s9 + $0x60] sm:$0xff] }
  0x38   : > { %v733_v19 = vadd.f32 %v717_v12, %v471_v59  ;;  %v734_v20 = vadd.f32 %v718_v13, %v472_v60  ;;  %v1214_v24 = vsel %vm414_vm8, 1.0, %v1401_v44  ;;  %v461_v25 = vsub.f32 1.0, %v1213_v21 }
  0x39   : > { %v735_v22 = vadd.f32 %v719_v16, %v473_v0  ;;  %v736_v23 = vadd.f32 %v720_v17, %v474_v1  ;;  %v462_v27 = vsub.f32 1.0, %v1214_v24  ;;  %v490_v28 = vpack.c.bf16 %v1214_v24, %v1213_v21  ;;  %v373_v16 = vld [vmem:[%s1544_s9 + $0x78] sm:$0xff] }
  0x3a   : > { %vm749_vm9 = vcmp.ge.f32.partialorder %v733_v19, 1.0  ;;  %vm750_vm10 = vcmp.ge.f32.partialorder %v734_v20, 1.0  ;;  %v477_v39 = vmul.f32 %v461_v25, %v381_v63  ;;  %v705_v45 = vsub.f32 %v1238_v26, %v475_v14  ;;  %v1245_v24 = vld [vmem:[%s1544_s9 + $0xd8] sm:$0xff] }
  0x3b   : > { %v1250_v32 = vsel %vm749_vm9, 1.0, %v1401_v44  ;;  %v1251_v33 = vsel %vm750_vm10, 1.0, %v1401_v44  ;;  %vm751_vm11 = vcmp.ge.f32.partialorder %v735_v22, 1.0  ;;  %vm752_vm12 = vcmp.ge.f32.partialorder %v736_v23, 1.0  ;;  %1322 = vmatmul.mubr.msk.bf16.gmra.mrb[4].mxu0 %vm501_vm0, %v490_v28  ;;  %v1244_v23 = vld [vmem:[%s1544_s9 + $0xd0] sm:$0xff] }
  0x3c   : > { %v797_v36 = vpack.c.bf16 %v1251_v33, %v1250_v32  ;;  %v1252_v37 = vsel %vm751_vm11, 1.0, %v1401_v44  ;;  %v1253_v38 = vsel %vm752_vm12, 1.0, %v1401_v44  ;;  %v478_v43 = vmul.f32 %v462_v27, %v382_v15  ;;  %v372_v15 = vld [vmem:[%s1544_s9 + $0x70] sm:$0xff] }
  0x3d   : > { %v798_v42 = vpack.c.bf16 %v1253_v38, %v1252_v37  ;;  %v706_v46 = vsub.f32 %v1239_v29, %v476_v18  ;;  %v707_v47 = vsub.f32 %v1240_v30, %v477_v39  ;;  %v383_v48 = vmul.f32 0.5, %v366_v31 }
  0x3e   : > { %1335 = vmatprep.mubr.msk.bf16.mxu1 %vm501_vm0, %v797_v36  ;;  %v384_v49 = vmul.f32 0.5, %v367_v34  ;;  %v385_v50 = vmul.f32 0.5, %v368_v35  ;;  %v721_v51 = vmul.f32 0.5, %v705_v45  ;;  %v708_v53 = vsub.f32 %v1241_v40, %v478_v43  ;;  %v1246_v45 = vld [vmem:[%s1544_s9 + $0xe0] sm:$0xff] }
  0x3f   : > { %1336 = vmatmul.mubr.msk.bf16.vlgmr.msra.gmra.mrb[0].mxu1 %vm501_vm0, %v798_v42  ;;  %v722_v52 = vmul.f32 0.5, %v706_v46  ;;  %v386_v54 = vmul.f32 0.5, %v369_v41  ;;  %v723_v55 = vmul.f32 0.5, %v707_v47  ;;  %vm415_vm13 = vcmp.ge.f32.partialorder %v383_v48, 1.0 }
  0x40   : > { %vm416_vm14 = vcmp.ge.f32.partialorder %v384_v49, 1.0  ;;  %vm417_vm15 = vcmp.ge.f32.partialorder %v385_v50, 1.0  ;;  %v737_v56 = vadd.f32 %v721_v51, %v475_v14  ;;  %v724_v58 = vmul.f32 0.5, %v708_v53 }
  0x41   : > { %v738_v57 = vadd.f32 %v722_v52, %v476_v18  ;;  %v1215_v59 = vsel %vm415_vm13, 1.0, %v1401_v44  ;;  %v739_v60 = vadd.f32 %v723_v55, %v477_v39  ;;  %v1216_v61 = vsel %vm416_vm14, 1.0, %v1401_v44 }
  0x42   : > { %v463_v62 = vsub.f32 1.0, %v1215_v59  ;;  %vm418_vm1 = vcmp.ge.f32.partialorder %v386_v54, 1.0  ;;  %vm753_vm2 = vcmp.ge.f32.partialorder %v737_v56, 1.0  ;;  %v740_v63 = vadd.f32 %v724_v58, %v478_v43 }
  0x43   : > { %vm754_vm3 = vcmp.ge.f32.partialorder %v738_v57, 1.0  ;;  %v464_v0 = vsub.f32 1.0, %v1216_v61  ;;  %v1254_v1 = vsel %vm753_vm2, 1.0, %v1401_v44  ;;  %vm755_vm4 = vcmp.ge.f32.partialorder %v739_v60, 1.0 }
  0x44   : > { %v1255_v2 = vsel %vm754_vm3, 1.0, %v1401_v44  ;;  %v479_v3 = vmul.f32 %v463_v62, %v383_v48  ;;  %vm756_vm5 = vcmp.ge.f32.partialorder %v740_v63, 1.0  ;;  %v1256_v6 = vsel %vm755_vm4, 1.0, %v1401_v44  ;;  %v1248_v62 = vld [vmem:[%s1544_s9 + $0xf0] sm:$0xff] }
  0x45   : > { %v799_v5 = vpack.c.bf16 %v1255_v2, %v1254_v1  ;;  %v480_v7 = vmul.f32 %v464_v0, %v384_v49  ;;  %v1257_v11 = vsel %vm756_vm5, 1.0, %v1401_v44  ;;  %v491_v12 = vpack.c.bf16 %v1216_v61, %v1215_v59 }
  0x46   : > { %v1217_v13 = vsel %vm417_vm15, 1.0, %v1401_v44  ;;  %v1218_v14 = vsel %vm418_vm1, 1.0, %v1401_v44  ;;  %v800_v17 = vpack.c.bf16 %v1257_v11, %v1256_v6  ;;  %v709_v21 = vsub.f32 %v1242_v4, %v479_v3 }
  0x47   : > { %1339 = vmatprep.mubr.msk.bf16.mxu1 %vm501_vm0, %v799_v5  ;;  %v465_v18 = vsub.f32 1.0, %v1217_v13  ;;  %v466_v19 = vsub.f32 1.0, %v1218_v14  ;;  %v492_v20 = vpack.c.bf16 %v1218_v14, %v1217_v13  ;;  %1325 = vmatprep.mubr.msk.bf16.mxu0 %vm501_vm0, %v491_v12  ;;  %v710_v22 = vsub.f32 %v1243_v8, %v480_v7 }
  0x48   : > { %v387_v25 = vmul.f32 0.5, %v370_v9  ;;  %v388_v26 = vmul.f32 0.5, %v371_v10  ;;  %1340 = vmatmul.mubr.msk.bf16.gmra.mrb[4].mxu1 %vm501_vm0, %v800_v17  ;;  %v389_v29 = vmul.f32 0.5, %v372_v15  ;;  %v390_v30 = vmul.f32 0.5, %v373_v16 }
  0x49   : > { %v481_v27 = vmul.f32 %v465_v18, %v385_v50  ;;  %v482_v28 = vmul.f32 %v466_v19, %v386_v54  ;;  %1326 = vmatmul.mubr.msk.bf16.gmra.mrb[8].mxu0 %vm501_vm0, %v492_v20  ;;  %v725_v31 = vmul.f32 0.5, %v709_v21  ;;  %v726_v32 = vmul.f32 0.5, %v710_v22  ;;  %v1247_v54 = vld [vmem:[%s1544_s9 + $0xe8] sm:$0xff]  ;;  %v1631_v20 = vld [vmem:[%s1854_s2] ss:$0 sm:$0xff] }
  0x4a   : > { %vm419_vm6 = vcmp.ge.f32.partialorder %v387_v25, 1.0  ;;  %vm420_vm7 = vcmp.ge.f32.partialorder %v388_v26, 1.0  ;;  %vm421_vm8 = vcmp.ge.f32.partialorder %v389_v29, 1.0  ;;  %vm422_vm11 = vcmp.ge.f32.partialorder %v390_v30, 1.0  ;;  %v1636_v21 = vld [vmem:[%s1855_s3] ss:$0 sm:$0xff] }
  0x4b   : > { %v711_v33 = vsub.f32 %v1244_v23, %v481_v27  ;;  %v712_v34 = vsub.f32 %v1245_v24, %v482_v28  ;;  %v1219_v35 = vsel %vm419_vm6, 1.0, %v1401_v44  ;;  %v1220_v36 = vsel %vm420_vm7, 1.0, %v1401_v44 }
  0x4c   : > { %v741_v37 = vadd.f32 %v725_v31, %v479_v3  ;;  %v742_v38 = vadd.f32 %v726_v32, %v480_v7  ;;  %v467_v39 = vsub.f32 1.0, %v1219_v35  ;;  %v468_v40 = vsub.f32 1.0, %v1220_v36  ;;  %v1249_v3 = vld [vmem:[%s1544_s9 + $0xf8] sm:$0xff] }
  0x4d   : > { %v727_v41 = vmul.f32 0.5, %v711_v33  ;;  %v728_v42 = vmul.f32 0.5, %v712_v34  ;;  %v493_v43 = vpack.c.bf16 %v1220_v36, %v1219_v35  ;;  %v1221_v53 = vsel %vm421_vm8, 1.0, %v1401_v44 }
  0x4e   : > { %vm757_vm9 = vcmp.ge.f32.partialorder %v741_v37, 1.0  ;;  %vm758_vm10 = vcmp.ge.f32.partialorder %v742_v38, 1.0  ;;  %v483_v46 = vmul.f32 %v467_v39, %v387_v25  ;;  %v484_v47 = vmul.f32 %v468_v40, %v388_v26 }
  0x4f   : > { %v1258_v48 = vsel %vm757_vm9, 1.0, %v1401_v44  ;;  %v1259_v49 = vsel %vm758_vm10, 1.0, %v1401_v44  ;;  %v743_v50 = vadd.f32 %v727_v41, %v481_v27  ;;  %v744_v51 = vadd.f32 %v728_v42, %v482_v28  ;;  %1329 = vmatprep.mubr.msk.bf16.mxu0 %vm501_vm0, %v493_v43 }
  0x50   : > { %v801_v52 = vpack.c.bf16 %v1259_v49, %v1258_v48  ;;  %v713_v55 = vsub.f32 %v1246_v45, %v483_v46  ;;  %v1222_v56 = vsel %vm422_vm11, 1.0, %v1401_v44  ;;  %v469_v57 = vsub.f32 1.0, %v1221_v53 }
  0x51   : > { %vm759_vm12 = vcmp.ge.f32.partialorder %v743_v50, 1.0  ;;  %vm760_vm13 = vcmp.ge.f32.partialorder %v744_v51, 1.0  ;;  %v470_v60 = vsub.f32 1.0, %v1222_v56  ;;  %v494_v61 = vpack.c.bf16 %v1222_v56, %v1221_v53 }
  0x52   : > { %1343 = vmatprep.mubr.msk.bf16.mxu1 %vm501_vm0, %v801_v52  ;;  %v1260_v58 = vsel %vm759_vm12, 1.0, %v1401_v44  ;;  %v1261_v59 = vsel %vm760_vm13, 1.0, %v1401_v44  ;;  %v485_v0 = vmul.f32 %v469_v57, %v389_v29  ;;  %v714_v1 = vsub.f32 %v1247_v54, %v484_v47 }
  0x53   : > { %v802_v63 = vpack.c.bf16 %v1261_v59, %v1260_v58  ;;  %v729_v2 = vmul.f32 0.5, %v713_v55  ;;  %v486_v4 = vmul.f32 %v470_v60, %v390_v30  ;;  %1330 = vmatmul.mubr.msk.bf16.gmra.mrb[12].mxu0 %vm501_vm0, %v494_v61  ;;  %vm667_vm3 = vcmask 523264  }
  0x54   : > { %v730_v5 = vmul.f32 0.5, %v714_v1  ;;  %v715_v7 = vsub.f32 %v1248_v62, %v485_v0 }
  0x55   : > { %1344 = vmatmul.mubr.msk.bf16.gmra.mrb[8].mxu1 %vm501_vm0, %v802_v63  ;;  %v745_v6 = vadd.f32 %v729_v2, %v483_v46  ;;  %v716_v8 = vsub.f32 %v1249_v3, %v486_v4 }
  0x56   : > { %v746_v9 = vadd.f32 %v730_v5, %v484_v47  ;;  %v731_v10 = vmul.f32 0.5, %v715_v7 }
  0x57   : > { %vm761_vm14 = vcmp.ge.f32.partialorder %v745_v6, 1.0  ;;  %v732_v12 = vmul.f32 0.5, %v716_v8 }
  0x58   : > { %v1262_v11 = vsel %vm761_vm14, 1.0, %v1401_v44  ;;  %vm762_vm15 = vcmp.ge.f32.partialorder %v746_v9, 1.0  ;;  %v747_v13 = vadd.f32 %v731_v10, %v485_v0 }
  0x59   : > { %v1263_v14 = vsel %vm762_vm15, 1.0, %v1401_v44  ;;  %v748_v15 = vadd.f32 %v732_v12, %v486_v4 }
  0x5a   : > { %v803_v16 = vpack.c.bf16 %v1263_v14, %v1262_v11  ;;  %vm763_vm1 = vcmp.ge.f32.partialorder %v747_v13, 1.0 }
  0x5b   : > { %vm764_vm2 = vcmp.ge.f32.partialorder %v748_v15, 1.0  ;;  %v1264_v17 = vsel %vm763_vm1, 1.0, %v1401_v44 }
  0x5c   : > { %1347 = vmatprep.mubr.msk.bf16.mxu1 %vm501_vm0, %v803_v16  ;;  %v1265_v18 = vsel %vm764_vm2, 1.0, %v1401_v44 }
  0x5d   : > { %v804_v19 = vpack.c.bf16 %v1265_v18, %v1264_v17 }
  0x5f   : > { %1348 = vmatmul.mubr.msk.bf16.gmra.mrb[12].mxu1 %vm501_vm0, %v804_v19 }
 0x106   : > { %v1319_v22 = vpop.f32.mrb[0].mxu0 }
 0x107   : > { %v631_v23 = vmul.f32 %v1319_v22, %v1631_v20  ;;  %v560_v24 = vpop.f32.mrb[1].mxu0 }
 0x108   : > { %v629_v44 = vmul.f32 %v1631_v20, %v560_v24  ;;  %v1320_v25 = vpop.f32.mrb[2].mxu0 }
 0x109   : > { %v653_v26 = vadd.f32 %v1636_v21, %v631_v23  ;;  %v632_v27 = vmul.f32 %v1320_v25, %v1631_v20  ;;  %v563_v28 = vpop.f32.mrb[3].mxu0 }
 0x10a   : > { %v651_v29 = vadd.f32 %v1636_v21, %v629_v44  ;;  %v630_v30 = vmul.f32 %v1631_v20, %v563_v28 }
 0x10b   : > { %670 = vst.msk [vmem:[%s1645_s14 + $0x10] sm:$0xff] %vm667_vm3, %v653_v26  ;;  %v654_v31 = vadd.f32 %v1636_v21, %v632_v27 }
 0x10c   : > { %668 = vst.msk [vmem:[%s1645_s14] sm:$0xff] %vm667_vm3, %v651_v29  ;;  %v652_v32 = vadd.f32 %v1636_v21, %v630_v30 }
 0x10d   : > { %671 = vst.msk [vmem:[%s1645_s14 + $0x18] sm:$0xff] %vm667_vm3, %v654_v31 }
 0x10e   : > { %669 = vst.msk [vmem:[%s1645_s14 + $0x8] sm:$0xff] %vm667_vm3, %v652_v32  ;;  %v1323_v33 = vpop.f32.mrb[4].mxu0 }
 0x10f   : > { %v635_v34 = vmul.f32 %v1323_v33, %v1631_v20  ;;  %v576_v35 = vpop.f32.mrb[5].mxu0 }
 0x110   : > { %v633_v36 = vmul.f32 %v1631_v20, %v576_v35  ;;  %v1324_v37 = vpop.f32.mrb[6].mxu0 }
 0x111   : > { %v657_v39 = vadd.f32 %v1636_v21, %v635_v34  ;;  %v636_v40 = vmul.f32 %v1324_v37, %v1631_v20  ;;  %v579_v41 = vpop.f32.mrb[7].mxu0 }
 0x112   : > { %v1337_v38 = vpop.f32.mrb[0].mxu1  ;;  %v655_v45 = vadd.f32 %v1636_v21, %v633_v36  ;;  %v634_v46 = vmul.f32 %v1631_v20, %v579_v41 }
 0x113   : > { %v928_v42 = vmul.f32 %v1337_v38, %v1631_v20  ;;  %v863_v43 = vpop.f32.mrb[1].mxu1  ;;  %674 = vst.msk [vmem:[%s1645_s14 + $0x30] sm:$0xff] %vm667_vm3, %v657_v39  ;;  %v658_v49 = vadd.f32 %v1636_v21, %v636_v40 }
 0x114   : > { %v926_v47 = vmul.f32 %v1631_v20, %v863_v43  ;;  %v1338_v48 = vpop.f32.mrb[2].mxu1  ;;  %672 = vst.msk [vmem:[%s1645_s14 + $0x20] sm:$0xff] %vm667_vm3, %v655_v45  ;;  %v656_v53 = vadd.f32 %v1636_v21, %v634_v46 }
 0x115   : > { %v944_v50 = vadd.f32 %v1636_v21, %v928_v42  ;;  %v929_v51 = vmul.f32 %v1338_v48, %v1631_v20  ;;  %v866_v52 = vpop.f32.mrb[3].mxu1  ;;  %675 = vst.msk [vmem:[%s1645_s14 + $0x38] sm:$0xff] %vm667_vm3, %v658_v49 }
 0x116   : > { %v942_v54 = vadd.f32 %v1636_v21, %v926_v47  ;;  %v927_v55 = vmul.f32 %v1631_v20, %v866_v52  ;;  %673 = vst.msk [vmem:[%s1645_s14 + $0x28] sm:$0xff] %vm667_vm3, %v656_v53 }
 0x117   : > { %1276 = vst.msk [vmem:[%s1645_s14 + $0x90] sm:$0xff] %vm667_vm3, %v944_v50  ;;  %v945_v56 = vadd.f32 %v1636_v21, %v929_v51 }
 0x118   : > { %1274 = vst.msk [vmem:[%s1645_s14 + $0x80] sm:$0xff] %vm667_vm3, %v942_v54  ;;  %v943_v57 = vadd.f32 %v1636_v21, %v927_v55 }
 0x119   : > { %1277 = vst.msk [vmem:[%s1645_s14 + $0x98] sm:$0xff] %vm667_vm3, %v945_v56  ;;  %v1078_v56 = vld [vmem:[%s1645_s14 + $0x10] sm:$0xff] (%p1457_p5) }
 0x11a   : > { %1275 = vst.msk [vmem:[%s1645_s14 + $0x88] sm:$0xff] %vm667_vm3, %v943_v57  ;;  %v1080_v57 = vld [vmem:[%s1645_s14 + $0x18] sm:$0xff] (%p1457_p5)  ;;  %1079 = vst [vmem:[%s1779_s23 + $0x10] sm:$0xff] (%p1457_p5), %v1078_v56 }
 0x11b   : > { %v1341_v58 = vpop.f32.mrb[4].mxu1  ;;  %1081 = vst [vmem:[%s1779_s23 + $0x18] sm:$0xff] (%p1457_p5), %v1080_v57 }
 0x11c   : > { %v1327_v59 = vpop.f32.mrb[8].mxu0  ;;  %v932_v60 = vmul.f32 %v1341_v58, %v1631_v20  ;;  %v879_v61 = vpop.f32.mrb[5].mxu1  ;;  %v1082_v58 = vld [vmem:[%s1645_s14 + $0x20] sm:$0xff] (%p1457_p5) }
 0x11d   : > { %v639_v62 = vmul.f32 %v1327_v59, %v1631_v20  ;;  %v592_v63 = vpop.f32.mrb[9].mxu0  ;;  %v930_v0 = vmul.f32 %v1631_v20, %v879_v61  ;;  %v1342_v1 = vpop.f32.mrb[6].mxu1  ;;  %v1084_v59 = vld [vmem:[%s1645_s14 + $0x28] sm:$0xff] (%p1457_p5)  ;;  %1083 = vst [vmem:[%s1779_s23 + $0x20] sm:$0xff] (%p1457_p5), %v1082_v58  ;;  %v1088_v61 = vld [vmem:[%s1645_s14 + $0x38] sm:$0xff] (%p1457_p5) }
 0x11e   : > { %v637_v2 = vmul.f32 %v1631_v20, %v592_v63  ;;  %v1328_v3 = vpop.f32.mrb[10].mxu0  ;;  %v948_v4 = vadd.f32 %v1636_v21, %v932_v60  ;;  %v933_v5 = vmul.f32 %v1342_v1, %v1631_v20  ;;  %v882_v6 = vpop.f32.mrb[7].mxu1  ;;  %1085 = vst [vmem:[%s1779_s23 + $0x28] sm:$0xff] (%p1457_p5), %v1084_v59  ;;  %v1086_v60 = vld [vmem:[%s1645_s14 + $0x30] sm:$0xff] (%p1457_p5)  ;;  %1089 = vst [vmem:[%s1779_s23 + $0x38] sm:$0xff] (%p1457_p5), %v1088_v61 }
 0x11f   : > { %v661_v7 = vadd.f32 %v1636_v21, %v639_v62  ;;  %v640_v8 = vmul.f32 %v1328_v3, %v1631_v20  ;;  %v595_v9 = vpop.f32.mrb[11].mxu0  ;;  %v946_v10 = vadd.f32 %v1636_v21, %v930_v0  ;;  %v931_v11 = vmul.f32 %v1631_v20, %v882_v6  ;;  %1087 = vst [vmem:[%s1779_s23 + $0x30] sm:$0xff] (%p1457_p5), %v1086_v60  ;;  %v1106_v6 = vld [vmem:[%s1645_s14 + $0x80] sm:$0xff] (%p1457_p5) }
 0x120   : > { %v659_v12 = vadd.f32 %v1636_v21, %v637_v2  ;;  %v638_v13 = vmul.f32 %v1631_v20, %v595_v9  ;;  %1280 = vst.msk [vmem:[%s1645_s14 + $0xb0] sm:$0xff] %vm667_vm3, %v948_v4  ;;  %v949_v14 = vadd.f32 %v1636_v21, %v933_v5  ;;  %1107 = vst [vmem:[%s1779_s23 + $0x200] sm:$0xff] (%p1457_p5), %v1106_v6  ;;  %v1112_v9 = vld [vmem:[%s1645_s14 + $0x98] sm:$0xff] (%p1457_p5) }
 0x121   : > { %678 = vst.msk [vmem:[%s1645_s14 + $0x50] sm:$0xff] %vm667_vm3, %v661_v7  ;;  %v662_v15 = vadd.f32 %v1636_v21, %v640_v8  ;;  %1278 = vst.msk [vmem:[%s1645_s14 + $0xa0] sm:$0xff] %vm667_vm3, %v946_v10  ;;  %v947_v16 = vadd.f32 %v1636_v21, %v931_v11  ;;  %v1108_v7 = vld [vmem:[%s1645_s14 + $0x88] sm:$0xff] (%p1457_p5)  ;;  %v1110_v8 = vld [vmem:[%s1645_s14 + $0x90] sm:$0xff] (%p1457_p5) }
 0x122   : > { %676 = vst.msk [vmem:[%s1645_s14 + $0x40] sm:$0xff] %vm667_vm3, %v659_v12  ;;  %v660_v17 = vadd.f32 %v1636_v21, %v638_v13  ;;  %1281 = vst.msk [vmem:[%s1645_s14 + $0xb8] sm:$0xff] %vm667_vm3, %v949_v14 }
 0x123   : > { %679 = vst.msk [vmem:[%s1645_s14 + $0x58] sm:$0xff] %vm667_vm3, %v662_v15  ;;  %1279 = vst.msk [vmem:[%s1645_s14 + $0xa8] sm:$0xff] %vm667_vm3, %v947_v16 }
 0x124   : > { %677 = vst.msk [vmem:[%s1645_s14 + $0x48] sm:$0xff] %vm667_vm3, %v660_v17  ;;  %1109 = vst [vmem:[%s1779_s23 + $0x208] sm:$0xff] (%p1457_p5), %v1108_v7 }
 0x125   : > { %1111 = vst [vmem:[%s1779_s23 + $0x210] sm:$0xff] (%p1457_p5), %v1110_v8  ;;  %1113 = vst [vmem:[%s1779_s23 + $0x218] sm:$0xff] (%p1457_p5), %v1112_v9 }
 0x126   : > { %v1331_v18 = vpop.f32.mrb[12].mxu0 }
 0x127   : > { %v643_v22 = vmul.f32 %v1331_v18, %v1631_v20  ;;  %v608_v23 = vpop.f32.mrb[13].mxu0  ;;  %v1118_v12 = vld [vmem:[%s1645_s14 + $0xb0] sm:$0xff] (%p1457_p5) }
 0x128   : > { %v1345_v19 = vpop.f32.mrb[8].mxu1  ;;  %v641_v25 = vmul.f32 %v1631_v20, %v608_v23  ;;  %v1332_v26 = vpop.f32.mrb[14].mxu0  ;;  %v1094_v0 = vld [vmem:[%s1645_s14 + $0x50] sm:$0xff] (%p1457_p5)  ;;  %v1114_v10 = vld [vmem:[%s1645_s14 + $0xa0] sm:$0xff] (%p1457_p5)  ;;  %1119 = vst [vmem:[%s1779_s23 + $0x230] sm:$0xff] (%p1457_p5), %v1118_v12 }
 0x129   : > { %v936_v24 = vmul.f32 %v1345_v19, %v1631_v20  ;;  %v895_v44 = vpop.f32.mrb[9].mxu1  ;;  %v665_v29 = vadd.f32 %v1636_v21, %v643_v22  ;;  %v644_v30 = vmul.f32 %v1332_v26, %v1631_v20  ;;  %v611_v31 = vpop.f32.mrb[15].mxu0  ;;  %v1090_v62 = vld [vmem:[%s1645_s14 + $0x40] sm:$0xff] (%p1457_p5)  ;;  %1095 = vst [vmem:[%s1779_s23 + $0x50] sm:$0xff] (%p1457_p5), %v1094_v0  ;;  %1115 = vst [vmem:[%s1779_s23 + $0x220] sm:$0xff] (%p1457_p5), %v1114_v10  ;;  %v1120_v13 = vld [vmem:[%s1645_s14 + $0xb8] sm:$0xff] (%p1457_p5) }
 0x12a   : > { %v934_v27 = vmul.f32 %v1631_v20, %v895_v44  ;;  %v1346_v28 = vpop.f32.mrb[10].mxu1  ;;  %v663_v35 = vadd.f32 %v1636_v21, %v641_v25  ;;  %v642_v36 = vmul.f32 %v1631_v20, %v611_v31  ;;  %1091 = vst [vmem:[%s1779_s23 + $0x40] sm:$0xff] (%p1457_p5), %v1090_v62  ;;  %v1096_v1 = vld [vmem:[%s1645_s14 + $0x58] sm:$0xff] (%p1457_p5)  ;;  %v1116_v11 = vld [vmem:[%s1645_s14 + $0xa8] sm:$0xff] (%p1457_p5)  ;;  %1121 = vst [vmem:[%s1779_s23 + $0x238] sm:$0xff] (%p1457_p5), %v1120_v13 }
 0x12b   : > { %v952_v32 = vadd.f32 %v1636_v21, %v936_v24  ;;  %v937_v33 = vmul.f32 %v1346_v28, %v1631_v20  ;;  %v898_v34 = vpop.f32.mrb[11].mxu1  ;;  %682 = vst.msk [vmem:[%s1645_s14 + $0x70] sm:$0xff] %vm667_vm3, %v665_v29  ;;  %v666_v39 = vadd.f32 %v1636_v21, %v644_v30  ;;  %v1092_v63 = vld [vmem:[%s1645_s14 + $0x48] sm:$0xff] (%p1457_p5)  ;;  %1097 = vst [vmem:[%s1779_s23 + $0x58] sm:$0xff] (%p1457_p5), %v1096_v1 }
 0x12c   : > { %v950_v37 = vadd.f32 %v1636_v21, %v934_v27  ;;  %v935_v38 = vmul.f32 %v1631_v20, %v898_v34  ;;  %680 = vst.msk [vmem:[%s1645_s14 + $0x60] sm:$0xff] %vm667_vm3, %v663_v35  ;;  %v664_v41 = vadd.f32 %v1636_v21, %v642_v36  ;;  %1093 = vst [vmem:[%s1779_s23 + $0x48] sm:$0xff] (%p1457_p5), %v1092_v63 }
 0x12d   : > { %1284 = vst.msk [vmem:[%s1645_s14 + $0xd0] sm:$0xff] %vm667_vm3, %v952_v32  ;;  %v953_v40 = vadd.f32 %v1636_v21, %v937_v33  ;;  %683 = vst.msk [vmem:[%s1645_s14 + $0x78] sm:$0xff] %vm667_vm3, %v666_v39 }
 0x12e   : > { %1282 = vst.msk [vmem:[%s1645_s14 + $0xc0] sm:$0xff] %vm667_vm3, %v950_v37  ;;  %v951_v42 = vadd.f32 %v1636_v21, %v935_v38  ;;  %681 = vst.msk [vmem:[%s1645_s14 + $0x68] sm:$0xff] %vm667_vm3, %v664_v41 }
 0x12f   : > { %1285 = vst.msk [vmem:[%s1645_s14 + $0xd8] sm:$0xff] %vm667_vm3, %v953_v40  ;;  %1117 = vst [vmem:[%s1779_s23 + $0x228] sm:$0xff] (%p1457_p5), %v1116_v11 }
 0x130   : > { %1283 = vst.msk [vmem:[%s1645_s14 + $0xc8] sm:$0xff] %vm667_vm3, %v951_v42 }
 0x132   : > { %v1349_v43 = vpop.f32.mrb[12].mxu1  ;;  %v1102_v4 = vld [vmem:[%s1645_s14 + $0x70] sm:$0xff] (%p1457_p5) }
 0x133   : > { %v940_v45 = vmul.f32 %v1349_v43, %v1631_v20  ;;  %v911_v46 = vpop.f32.mrb[13].mxu1  ;;  %v1098_v2 = vld [vmem:[%s1645_s14 + $0x60] sm:$0xff] (%p1457_p5)  ;;  %1103 = vst [vmem:[%s1779_s23 + $0x70] sm:$0xff] (%p1457_p5), %v1102_v4 }
 0x134   : > { %v938_v47 = vmul.f32 %v1631_v20, %v911_v46  ;;  %v1350_v48 = vpop.f32.mrb[14].mxu1  ;;  %981 = sbr.rel (!%p1457_p5) target bundleno = 323 (0x143), region = 78  ;;  %1099 = vst [vmem:[%s1779_s23 + $0x60] sm:$0xff] (%p1457_p5), %v1098_v2  ;;  %v1104_v5 = vld [vmem:[%s1645_s14 + $0x78] sm:$0xff] (%p1457_p5)  ;;  %v1126_v16 = vld [vmem:[%s1645_s14 + $0xd0] sm:$0xff] (%p1457_p5) }
 0x135   : > { %v956_v49 = vadd.f32 %v1636_v21, %v940_v45  ;;  %v941_v50 = vmul.f32 %v1350_v48, %v1631_v20  ;;  %v914_v51 = vpop.f32.mrb[15].mxu1  ;;  %v1100_v3 = vld [vmem:[%s1645_s14 + $0x68] sm:$0xff] (%p1457_p5)  ;;  %1105 = vst [vmem:[%s1779_s23 + $0x78] sm:$0xff] (%p1457_p5), %v1104_v5  ;;  %v1122_v14 = vld [vmem:[%s1645_s14 + $0xc0] sm:$0xff] (%p1457_p5)  ;;  %1127 = vst [vmem:[%s1779_s23 + $0x250] sm:$0xff] (%p1457_p5), %v1126_v16 }
 0x136   : > { %v954_v52 = vadd.f32 %v1636_v21, %v938_v47  ;;  %v939_v53 = vmul.f32 %v1631_v20, %v914_v51  ;;  %v1074_v20 = vld [vmem:[%s1645_s14] sm:$0xff] (%p1457_p5)  ;;  %1101 = vst [vmem:[%s1779_s23 + $0x68] sm:$0xff] (%p1457_p5), %v1100_v3  ;;  %1123 = vst [vmem:[%s1779_s23 + $0x240] sm:$0xff] (%p1457_p5), %v1122_v14  ;;  %v1128_v17 = vld [vmem:[%s1645_s14 + $0xd8] sm:$0xff] (%p1457_p5) }
 0x137   : > { %1288 = vst.msk [vmem:[%s1645_s14 + $0xf0] sm:$0xff] %vm667_vm3, %v956_v49  ;;  %v957_v54 = vadd.f32 %v1636_v21, %v941_v50  ;;  %1075 = vst [vmem:[%s1779_s23] sm:$0xff] (%p1457_p5), %v1074_v20  ;;  %v1124_v15 = vld [vmem:[%s1645_s14 + $0xc8] sm:$0xff] (%p1457_p5) }
 0x138   : > { %1286 = vst.msk [vmem:[%s1645_s14 + $0xe0] sm:$0xff] %vm667_vm3, %v954_v52  ;;  %v955_v55 = vadd.f32 %v1636_v21, %v939_v53  ;;  %v1076_v21 = vld [vmem:[%s1645_s14 + $0x8] sm:$0xff] (%p1457_p5)  ;;  %1125 = vst [vmem:[%s1779_s23 + $0x248] sm:$0xff] (%p1457_p5), %v1124_v15 }
 0x139   : > { %1289 = vst.msk [vmem:[%s1645_s14 + $0xf8] sm:$0xff] %vm667_vm3, %v957_v54  ;;  %1077 = vst [vmem:[%s1779_s23 + $0x8] sm:$0xff] (%p1457_p5), %v1076_v21 }
 0x13a   : > { %1287 = vst.msk [vmem:[%s1645_s14 + $0xe8] sm:$0xff] %vm667_vm3, %v955_v55  ;;  %1129 = vst [vmem:[%s1779_s23 + $0x258] sm:$0xff] (%p1457_p5), %v1128_v17 }
 0x13e   : > { %v1134_v22 = vld [vmem:[%s1645_s14 + $0xf0] sm:$0xff] }
 0x13f   : > { %v1130_v18 = vld [vmem:[%s1645_s14 + $0xe0] sm:$0xff]  ;;  %1135 = vst [vmem:[%s1779_s23 + $0x270] sm:$0xff] %v1134_v22 }
 0x140   : > { %1131 = vst [vmem:[%s1779_s23 + $0x260] sm:$0xff] %v1130_v18  ;;  %v1136_v23 = vld [vmem:[%s1645_s14 + $0xf8] sm:$0xff] }
 0x141   : > { %v1132_v19 = vld [vmem:[%s1645_s14 + $0xe8] sm:$0xff]  ;;  %1137 = vst [vmem:[%s1779_s23 + $0x278] sm:$0xff] %v1136_v23 }
 0x142   : > { %1133 = vst [vmem:[%s1779_s23 + $0x268] sm:$0xff] %v1132_v19 }
 0x143 PF: > { %p11_p10 = scmp.ge.s32.totalorder %s1444_s19, 6   ;;  %s1858_s15 = smov %s1395_s16 }
 0x144   : > { %s1859_s16 = smov %s1455_s22  ;;  %s1860_s17 = smov %s1444_s19 }
 0x145   :  { %13 = sbr.rel (!%p11_p10) target bundleno = 2 (0x2), region = 149 }

// kernel: gwffn_forward.7
= control target key start
LH: loop header
LB: loop body
LE: loop exit
PB: predicated region body
PF: predicated region fallthrough
CT: control target
= control target key end

     0   :  { %s1791_s18 = smov 0   ;;  %s1793_s19 = smov 0   ;;  %s2341_s0 = inlined_call_operand.vmem [shape: f32[2,512,64], index: 0, kind: input, shape index: {}]   ;;  %s2342_s1 = inlined_call_operand.vmem [shape: f32[2,512,16], index: 1, kind: input, shape index: {}]   ;;  %s2343_s2 = inlined_call_operand.vmem [shape: bf16[64,16], index: 2, kind: input, shape index: {}]   ;;  %s2344_s3 = inlined_call_operand.vmem [shape: f32[1,16], index: 3, kind: input, shape index: {}]   ;;  %s2345_s4 = inlined_call_operand.vmem [shape: f32[1,16], index: 4, kind: input, shape index: {}]   ;;  %s2346_s5 = inlined_call_operand.vmem [shape: f32[2,512,16], index: 5, kind: output, shape index: {}]  }
   0x1   :  { %s1795_s20 = smov 0  }
   0x2 LB: > { %s1511_s21 = sadd.s32 4294967295, %s1758_s20   ;;  %s1808_s22 = sadd.s32 1, %s1758_s20   ;;  %s1758_s20 = sphi %s1795_s20, %s2351_s20   ;;  %s1754_s19 = sphi %s1793_s19, %s2350_s19   ;;  %s1750_s18 = sphi %s1791_s18, %s2349_s18  }
   0x3   : > { %s19_s23 = ssub.s32 %s1758_s20, %s1808_s22  ;;  %s22_s24 = sadd.s32 1, %s1754_s19 }
   0x4   : > { %p20_p0 = scmp.eq.s32.totalorder %s19_s23, 0  ;;  %p29_p1 = scmp.ne.s32.totalorder %s1754_s19, %s1750_s18 }
   0x5   : > { %p30_p2 = scmp.eq.s32.totalorder %s1758_s20, 0  ;;  %p148_p3 = scmp.eq.s32.totalorder %s1511_s21, 3 }
   0x6   : > { %s1819_s25 = scalar_select %p20_p0, %s1754_s19, %s22_s24  }
   0x7   : > { %p1821_p4 = por %p30_p2, %p29_p1  ;;  %p1825_p5 = por %p148_p3, %p29_p1 }
   0x8   : > { %p1514_p6 = scmp.ge.s32.totalorder %s1758_s20, 4 }
   0xa   : > { %179 = sbr.rel (%p1514_p6) target bundleno = 57 (0x39), region = 28 }
  0x11   : > { %182 = sbr.rel (!%p1821_p4) target bundleno = 37 (0x25), region = 32  ;;  %s184_s28 = sand.u32 (%p1821_p4), 1, %s1754_s19  }
  0x12   : > { %s1632_s29 = sshll.u32 (%p1821_p4), %s1758_s20, 7  ;;  %s1515_s30 = sshll.u32 (%p1821_p4), %s184_s28, 8 }
  0x13   : > { %s1837_s8 = scalar_lea.vmem (%p1821_p4), %s2341_s0, %s1632_s29  ;;  %s1842_s9 = scalar_lea.vmem (%p1821_p4), [#allocation2], %s1515_s30 }
  0x14   : > { %v279_v0 = vld [vmem:[%s1837_s8] sm:$0xff] (%p1821_p4)  ;;  %v281_v1 = vld [vmem:[%s1837_s8 + $0x8] sm:$0xff] (%p1821_p4)  ;;  %v283_v2 = vld [vmem:[%s1837_s8 + $0x10] sm:$0xff] (%p1821_p4) }
  0x15   : > { %280 = vst [vmem:[%s1842_s9] sm:$0xff] (%p1821_p4), %v279_v0  ;;  %282 = vst [vmem:[%s1842_s9 + $0x8] sm:$0xff] (%p1821_p4), %v281_v1  ;;  %v285_v3 = vld [vmem:[%s1837_s8 + $0x18] sm:$0xff] (%p1821_p4)  ;;  %v287_v4 = vld [vmem:[%s1837_s8 + $0x20] sm:$0xff] (%p1821_p4) }
  0x16   : > { %284 = vst [vmem:[%s1842_s9 + $0x10] sm:$0xff] (%p1821_p4), %v283_v2  ;;  %v289_v5 = vld [vmem:[%s1837_s8 + $0x28] sm:$0xff] (%p1821_p4)  ;;  %286 = vst [vmem:[%s1842_s9 + $0x18] sm:$0xff] (%p1821_p4), %v285_v3  ;;  %v291_v6 = vld [vmem:[%s1837_s8 + $0x30] sm:$0xff] (%p1821_p4) }
  0x17   : > { %288 = vst [vmem:[%s1842_s9 + $0x20] sm:$0xff] (%p1821_p4), %v287_v4  ;;  %290 = vst [vmem:[%s1842_s9 + $0x28] sm:$0xff] (%p1821_p4), %v289_v5  ;;  %v293_v7 = vld [vmem:[%s1837_s8 + $0x38] sm:$0xff] (%p1821_p4)  ;;  %v295_v8 = vld [vmem:[%s1837_s8 + $0x40] sm:$0xff] (%p1821_p4) }
  0x18   : > { %292 = vst [vmem:[%s1842_s9 + $0x30] sm:$0xff] %v291_v6  ;;  %294 = vst [vmem:[%s1842_s9 + $0x38] sm:$0xff] %v293_v7  ;;  %v297_v9 = vld [vmem:[%s1837_s8 + $0x48] sm:$0xff]  ;;  %v299_v10 = vld [vmem:[%s1837_s8 + $0x50] sm:$0xff] }
  0x19   : > { %296 = vst [vmem:[%s1842_s9 + $0x40] sm:$0xff] %v295_v8  ;;  %v301_v11 = vld [vmem:[%s1837_s8 + $0x58] sm:$0xff]  ;;  %298 = vst [vmem:[%s1842_s9 + $0x48] sm:$0xff] %v297_v9  ;;  %v303_v12 = vld [vmem:[%s1837_s8 + $0x60] sm:$0xff] }
  0x1a   : > { %300 = vst [vmem:[%s1842_s9 + $0x50] sm:$0xff] %v299_v10  ;;  %302 = vst [vmem:[%s1842_s9 + $0x58] sm:$0xff] %v301_v11  ;;  %v305_v13 = vld [vmem:[%s1837_s8 + $0x68] sm:$0xff]  ;;  %v307_v14 = vld [vmem:[%s1837_s8 + $0x70] sm:$0xff] }
  0x1b   : > { %304 = vst [vmem:[%s1842_s9 + $0x60] sm:$0xff] %v303_v12  ;;  %306 = vst [vmem:[%s1842_s9 + $0x68] sm:$0xff] %v305_v13  ;;  %v309_v15 = vld [vmem:[%s1837_s8 + $0x78] sm:$0xff]  ;;  %v311_v16 = vld [vmem:[%s1837_s8 + $0x200] sm:$0xff] }
  0x1c   : > { %308 = vst [vmem:[%s1842_s9 + $0x70] sm:$0xff] %v307_v14  ;;  %v313_v17 = vld [vmem:[%s1837_s8 + $0x208] sm:$0xff]  ;;  %310 = vst [vmem:[%s1842_s9 + $0x78] sm:$0xff] %v309_v15  ;;  %v315_v18 = vld [vmem:[%s1837_s8 + $0x210] sm:$0xff] }
  0x1d   : > { %312 = vst [vmem:[%s1842_s9 + $0x80] sm:$0xff] %v311_v16  ;;  %314 = vst [vmem:[%s1842_s9 + $0x88] sm:$0xff] %v313_v17  ;;  %v317_v19 = vld [vmem:[%s1837_s8 + $0x218] sm:$0xff]  ;;  %v319_v20 = vld [vmem:[%s1837_s8 + $0x220] sm:$0xff] }
  0x1e   : > { %316 = vst [vmem:[%s1842_s9 + $0x90] sm:$0xff] %v315_v18  ;;  %318 = vst [vmem:[%s1842_s9 + $0x98] sm:$0xff] %v317_v19  ;;  %v321_v21 = vld [vmem:[%s1837_s8 + $0x228] sm:$0xff]  ;;  %v323_v22 = vld [vmem:[%s1837_s8 + $0x230] sm:$0xff] }
  0x1f   : > { %320 = vst [vmem:[%s1842_s9 + $0xa0] sm:$0xff] %v319_v20  ;;  %v325_v23 = vld [vmem:[%s1837_s8 + $0x238] sm:$0xff]  ;;  %322 = vst [vmem:[%s1842_s9 + $0xa8] sm:$0xff] %v321_v21  ;;  %v327_v24 = vld [vmem:[%s1837_s8 + $0x240] sm:$0xff] }
  0x20   : > { %324 = vst [vmem:[%s1842_s9 + $0xb0] sm:$0xff] %v323_v22  ;;  %326 = vst [vmem:[%s1842_s9 + $0xb8] sm:$0xff] %v325_v23  ;;  %v329_v25 = vld [vmem:[%s1837_s8 + $0x248] sm:$0xff]  ;;  %v331_v26 = vld [vmem:[%s1837_s8 + $0x250] sm:$0xff] }
  0x21   : > { %328 = vst [vmem:[%s1842_s9 + $0xc0] sm:$0xff] %v327_v24  ;;  %330 = vst [vmem:[%s1842_s9 + $0xc8] sm:$0xff] %v329_v25  ;;  %v333_v27 = vld [vmem:[%s1837_s8 + $0x258] sm:$0xff]  ;;  %v335_v28 = vld [vmem:[%s1837_s8 + $0x260] sm:$0xff] }
  0x22   : > { %332 = vst [vmem:[%s1842_s9 + $0xd0] sm:$0xff] %v331_v26  ;;  %v337_v29 = vld [vmem:[%s1837_s8 + $0x268] sm:$0xff]  ;;  %334 = vst [vmem:[%s1842_s9 + $0xd8] sm:$0xff] %v333_v27  ;;  %v339_v30 = vld [vmem:[%s1837_s8 + $0x270] sm:$0xff] }
  0x23   : > { %336 = vst [vmem:[%s1842_s9 + $0xe0] sm:$0xff] %v335_v28  ;;  %338 = vst [vmem:[%s1842_s9 + $0xe8] sm:$0xff] %v337_v29  ;;  %v341_v31 = vld [vmem:[%s1837_s8 + $0x278] sm:$0xff] }
  0x24   : > { %340 = vst [vmem:[%s1842_s9 + $0xf0] sm:$0xff] %v339_v30  ;;  %342 = vst [vmem:[%s1842_s9 + $0xf8] sm:$0xff] %v341_v31 }
  0x25 PF: > { %348 = sbr.rel (!%p1821_p4) target bundleno = 57 (0x39), region = 70  ;;  %s350_s10 = sand.u32 (%p1821_p4), 1, %s1754_s19  }
  0x26   : > { %s1633_s11 = sshll.u32 (%p1821_p4), %s1758_s20, 7  ;;  %s1518_s12 = sshll.u32 (%p1821_p4), %s350_s10, 8 }
  0x27   : > { %s1912_s15 = scalar_lea.vmem (%p1821_p4), %s2342_s1, %s1633_s11  ;;  %s1917_s16 = scalar_lea.vmem (%p1821_p4), [#allocation3], %s1518_s12 }
  0x28   : > { %v445_v32 = vld [vmem:[%s1912_s15] sm:$0xff] (%p1821_p4)  ;;  %v447_v33 = vld [vmem:[%s1912_s15 + $0x8] sm:$0xff] (%p1821_p4)  ;;  %v449_v34 = vld [vmem:[%s1912_s15 + $0x10] sm:$0xff] (%p1821_p4) }
  0x29   : > { %446 = vst [vmem:[%s1917_s16] sm:$0xff] (%p1821_p4), %v445_v32  ;;  %448 = vst [vmem:[%s1917_s16 + $0x8] sm:$0xff] (%p1821_p4), %v447_v33  ;;  %v451_v35 = vld [vmem:[%s1912_s15 + $0x18] sm:$0xff] (%p1821_p4)  ;;  %v453_v36 = vld [vmem:[%s1912_s15 + $0x20] sm:$0xff] (%p1821_p4) }
  0x2a   : > { %450 = vst [vmem:[%s1917_s16 + $0x10] sm:$0xff] (%p1821_p4), %v449_v34  ;;  %v455_v37 = vld [vmem:[%s1912_s15 + $0x28] sm:$0xff] (%p1821_p4)  ;;  %452 = vst [vmem:[%s1917_s16 + $0x18] sm:$0xff] (%p1821_p4), %v451_v35  ;;  %v457_v38 = vld [vmem:[%s1912_s15 + $0x30] sm:$0xff] (%p1821_p4) }
  0x2b   : > { %454 = vst [vmem:[%s1917_s16 + $0x20] sm:$0xff] (%p1821_p4), %v453_v36  ;;  %456 = vst [vmem:[%s1917_s16 + $0x28] sm:$0xff] (%p1821_p4), %v455_v37  ;;  %v459_v39 = vld [vmem:[%s1912_s15 + $0x38] sm:$0xff] (%p1821_p4)  ;;  %v461_v40 = vld [vmem:[%s1912_s15 + $0x40] sm:$0xff] (%p1821_p4) }
  0x2c   : > { %458 = vst [vmem:[%s1917_s16 + $0x30] sm:$0xff] %v457_v38  ;;  %460 = vst [vmem:[%s1917_s16 + $0x38] sm:$0xff] %v459_v39  ;;  %v463_v41 = vld [vmem:[%s1912_s15 + $0x48] sm:$0xff]  ;;  %v465_v42 = vld [vmem:[%s1912_s15 + $0x50] sm:$0xff] }
  0x2d   : > { %462 = vst [vmem:[%s1917_s16 + $0x40] sm:$0xff] %v461_v40  ;;  %v467_v43 = vld [vmem:[%s1912_s15 + $0x58] sm:$0xff]  ;;  %464 = vst [vmem:[%s1917_s16 + $0x48] sm:$0xff] %v463_v41  ;;  %v469_v44 = vld [vmem:[%s1912_s15 + $0x60] sm:$0xff] }
  0x2e   : > { %466 = vst [vmem:[%s1917_s16 + $0x50] sm:$0xff] %v465_v42  ;;  %468 = vst [vmem:[%s1917_s16 + $0x58] sm:$0xff] %v467_v43  ;;  %v471_v45 = vld [vmem:[%s1912_s15 + $0x68] sm:$0xff]  ;;  %v473_v46 = vld [vmem:[%s1912_s15 + $0x70] sm:$0xff] }
  0x2f   : > { %470 = vst [vmem:[%s1917_s16 + $0x60] sm:$0xff] %v469_v44  ;;  %472 = vst [vmem:[%s1917_s16 + $0x68] sm:$0xff] %v471_v45  ;;  %v475_v47 = vld [vmem:[%s1912_s15 + $0x78] sm:$0xff]  ;;  %v477_v48 = vld [vmem:[%s1912_s15 + $0x200] sm:$0xff] }
  0x30   : > { %474 = vst [vmem:[%s1917_s16 + $0x70] sm:$0xff] %v473_v46  ;;  %v479_v49 = vld [vmem:[%s1912_s15 + $0x208] sm:$0xff]  ;;  %476 = vst [vmem:[%s1917_s16 + $0x78] sm:$0xff] %v475_v47  ;;  %v481_v50 = vld [vmem:[%s1912_s15 + $0x210] sm:$0xff] }
  0x31   : > { %478 = vst [vmem:[%s1917_s16 + $0x80] sm:$0xff] %v477_v48  ;;  %480 = vst [vmem:[%s1917_s16 + $0x88] sm:$0xff] %v479_v49  ;;  %v483_v51 = vld [vmem:[%s1912_s15 + $0x218] sm:$0xff]  ;;  %v485_v52 = vld [vmem:[%s1912_s15 + $0x220] sm:$0xff] }
  0x32   : > { %482 = vst [vmem:[%s1917_s16 + $0x90] sm:$0xff] %v481_v50  ;;  %484 = vst [vmem:[%s1917_s16 + $0x98] sm:$0xff] %v483_v51  ;;  %v487_v53 = vld [vmem:[%s1912_s15 + $0x228] sm:$0xff]  ;;  %v489_v54 = vld [vmem:[%s1912_s15 + $0x230] sm:$0xff] }
  0x33   : > { %486 = vst [vmem:[%s1917_s16 + $0xa0] sm:$0xff] %v485_v52  ;;  %v491_v55 = vld [vmem:[%s1912_s15 + $0x238] sm:$0xff]  ;;  %488 = vst [vmem:[%s1917_s16 + $0xa8] sm:$0xff] %v487_v53  ;;  %v493_v56 = vld [vmem:[%s1912_s15 + $0x240] sm:$0xff] }
  0x34   : > { %490 = vst [vmem:[%s1917_s16 + $0xb0] sm:$0xff] %v489_v54  ;;  %492 = vst [vmem:[%s1917_s16 + $0xb8] sm:$0xff] %v491_v55  ;;  %v495_v57 = vld [vmem:[%s1912_s15 + $0x248] sm:$0xff]  ;;  %v497_v58 = vld [vmem:[%s1912_s15 + $0x250] sm:$0xff] }
  0x35   : > { %494 = vst [vmem:[%s1917_s16 + $0xc0] sm:$0xff] %v493_v56  ;;  %496 = vst [vmem:[%s1917_s16 + $0xc8] sm:$0xff] %v495_v57  ;;  %v499_v59 = vld [vmem:[%s1912_s15 + $0x258] sm:$0xff]  ;;  %v501_v60 = vld [vmem:[%s1912_s15 + $0x260] sm:$0xff] }
  0x36   : > { %498 = vst [vmem:[%s1917_s16 + $0xd0] sm:$0xff] %v497_v58  ;;  %v503_v61 = vld [vmem:[%s1912_s15 + $0x268] sm:$0xff]  ;;  %500 = vst [vmem:[%s1917_s16 + $0xd8] sm:$0xff] %v499_v59  ;;  %v505_v62 = vld [vmem:[%s1912_s15 + $0x270] sm:$0xff] }
  0x37   : > { %502 = vst [vmem:[%s1917_s16 + $0xe0] sm:$0xff] %v501_v60  ;;  %504 = vst [vmem:[%s1917_s16 + $0xe8] sm:$0xff] %v503_v61  ;;  %v507_v63 = vld [vmem:[%s1912_s15 + $0x278] sm:$0xff] }
  0x38   : > { %506 = vst [vmem:[%s1917_s16 + $0xf0] sm:$0xff] %v505_v62  ;;  %508 = vst [vmem:[%s1917_s16 + $0xf8] sm:$0xff] %v507_v63 }
  0x39 PF: > { %p1521_p7 = scmp.ge.s32.totalorder %s1758_s20, 1  ;;  %p513_p8 = scmp.lt.s32.totalorder %s1758_s20, 5 }
  0x3b   : > { %p514_p9 = pnand %p1521_p7, %p513_p8 }
  0x3c   : > { %v1732_v0 = vld [vmem:[%s2343_s2] sm:$0xff] (!%p514_p9)   ;;  %s520_s24 = sand.u32 (!%p514_p9), 1, %s1750_s18   ;;  %v1733_v1 = vld [vmem:[%s2343_s2 + $0x8] sm:$0xff] (!%p514_p9)   ;;  %v1734_v2 = vld [vmem:[%s2343_s2 + $0x10] sm:$0xff] (!%p514_p9)   ;;  %vm732_vm0 = vcmask (!%p514_p9), 523264   ;;  %v1760_v15 = vmov (!%p514_p9), 0.0  }
  0x3d   : > { %517 = sbr.rel (%p514_p9) target bundleno = 345 (0x159), region = 108  ;;  %s1989_s29 = sshll.u32 (!%p514_p9), %s520_s24, 8  ;;  %1659 = vmatprep.subr.bf16.mxu0 (!%p514_p9), %v1732_v0  ;;  %1683 = vmatprep.subr.bf16.mxu1 (!%p514_p9), %v1732_v0  ;;  %v1735_v14 = vld [vmem:[%s2343_s2 + $0x18] sm:$0xff] (!%p514_p9)  }
  0x3e   : > { %1660 = vmatpush3.bf16.msra.mxu0 (!%p514_p9), %v1732_v0  ;;  %1684 = vmatpush3.bf16.msra.mxu1 (!%p514_p9), %v1732_v0  ;;  %s1995_s7 = scalar_lea.vmem (!%p514_p9), [#allocation2], %s1989_s29  ;;  %s2094_s13 = scalar_lea.vmem (!%p514_p9), [#allocation3], %s1989_s29 }
  0x3f   : > { %1661 = vmatprep.subr.bf16.mxu0 (!%p514_p9), %v1733_v1  ;;  %1685 = vmatprep.subr.bf16.mxu1 (!%p514_p9), %v1733_v1  ;;  %v571_v3 = vld [vmem:[%s1995_s7] sm:$0xff] (!%p514_p9)  ;;  %v572_v4 = vld [vmem:[%s1995_s7 + $0x8] sm:$0xff] (!%p514_p9)  ;;  %v573_v5 = vld [vmem:[%s1995_s7 + $0x10] sm:$0xff] (!%p514_p9)  ;;  %s2108_s14 = scalar_lea.vmem (!%p514_p9), [#allocation4], %s1989_s29 }
  0x40   : > { %v588_v6 = vmul.f32 (!%p514_p9), 0.5, %v571_v3  ;;  %v589_v7 = vmul.f32 (!%p514_p9), 0.5, %v572_v4  ;;  %v574_v8 = vld [vmem:[%s1995_s7 + $0x18] sm:$0xff] (!%p514_p9)  ;;  %v590_v9 = vmul.f32 (!%p514_p9), 0.5, %v573_v5  ;;  %v575_v11 = vld [vmem:[%s1995_s7 + $0x20] sm:$0xff] (!%p514_p9)  ;;  %v576_v12 = vld [vmem:[%s1995_s7 + $0x28] sm:$0xff] (!%p514_p9) }
  0x41   : > { %v591_v10 = vmul.f32 (!%p514_p9), 0.5, %v574_v8  ;;  %v592_v13 = vmul.f32 (!%p514_p9), 0.5, %v575_v11  ;;  %v577_v19 = vld [vmem:[%s1995_s7 + $0x30] sm:$0xff] (!%p514_p9)  ;;  %v1555_v27 = vld [vmem:[%s1995_s7 + $0x80] sm:$0xff] (!%p514_p9)  ;;  %v1556_v28 = vld [vmem:[%s1995_s7 + $0x88] sm:$0xff] (!%p514_p9)  ;;  %v593_v29 = vmul.f32 (!%p514_p9), 0.5, %v576_v12 }
  0x42   : > { %1662 = vmatpush3.bf16.msra.mxu0 (!%p514_p9), %v1733_v1  ;;  %1686 = vmatpush3.bf16.msra.mxu1 (!%p514_p9), %v1733_v1  ;;  %vm620_vm1 = vcmp.ge.f32.partialorder (!%p514_p9), %v588_v6, 1.0  ;;  %vm621_vm2 = vcmp.ge.f32.partialorder (!%p514_p9), %v589_v7, 1.0  ;;  %vm622_vm3 = vcmp.ge.f32.partialorder (!%p514_p9), %v590_v9, 1.0  ;;  %v1557_v32 = vld [vmem:[%s1995_s7 + $0x90] sm:$0xff] (!%p514_p9)  ;;  %v1558_v33 = vld [vmem:[%s1995_s7 + $0x98] sm:$0xff] (!%p514_p9)  ;;  %v594_v34 = vmul.f32 (!%p514_p9), 0.5, %v577_v19 }
  0x43   : > { %1663 = vmatprep.subr.bf16.mxu0 (!%p514_p9), %v1734_v2  ;;  %1687 = vmatprep.subr.bf16.mxu1 (!%p514_p9), %v1734_v2  ;;  %v1525_v16 = vsel (!%p514_p9), %vm620_vm1, 1.0, %v1760_v15  ;;  %v1526_v17 = vsel (!%p514_p9), %vm621_vm2, 1.0, %v1760_v15  ;;  %vm623_vm4 = vcmp.ge.f32.partialorder (!%p514_p9), %v591_v10, 1.0  ;;  %v1527_v18 = vsel (!%p514_p9), %vm622_vm3, 1.0, %v1760_v15  ;;  %v578_v38 = vld [vmem:[%s1995_s7 + $0x38] sm:$0xff] (!%p514_p9)  ;;  %v1559_v61 = vld [vmem:[%s1995_s7 + $0xa0] sm:$0xff] (!%p514_p9) }
  0x44   : > { %v668_v20 = vsub.f32 1.0, %v1525_v16  ;;  %v669_v21 = vsub.f32 1.0, %v1526_v17  ;;  %v700_v22 = vpack.c.bf16 %v1526_v17, %v1525_v16  ;;  %v1528_v23 = vsel %vm623_vm4, 1.0, %v1760_v15  ;;  %v1560_v0 = vld [vmem:[%s1995_s7 + $0xa8] sm:$0xff]  ;;  %v1561_v1 = vld [vmem:[%s1995_s7 + $0xb0] sm:$0xff]  ;;  %v1562_v11 = vld [vmem:[%s1995_s7 + $0xb8] sm:$0xff] }
  0x45   : > { %v670_v24 = vsub.f32 1.0, %v1527_v18  ;;  %v671_v25 = vsub.f32 1.0, %v1528_v23  ;;  %v701_v26 = vpack.c.bf16 %v1528_v23, %v1527_v18  ;;  %vm624_vm5 = vcmp.ge.f32.partialorder %v592_v13, 1.0  ;;  %v580_v5 = vld [vmem:[%s1995_s7 + $0x48] sm:$0xff]  ;;  %v582_v12 = vld [vmem:[%s1995_s7 + $0x58] sm:$0xff]  ;;  %s1634_s15 = sshll.u32 (%p1825_p5), %s1511_s21, 7 }
  0x46   : > { %1664 = vmatpush3.bf16.msra.mxu0 %v1734_v2  ;;  %1688 = vmatpush3.bf16.msra.mxu1 %v1734_v2  ;;  %v684_v30 = vmul.f32 %v668_v20, %v588_v6  ;;  %v685_v31 = vmul.f32 %v669_v21, %v589_v7  ;;  %vm625_vm6 = vcmp.ge.f32.partialorder %v593_v29, 1.0  ;;  %v1529_v37 = vsel %vm624_vm5, 1.0, %v1760_v15  ;;  %v579_v2 = vld [vmem:[%s1995_s7 + $0x40] sm:$0xff]  ;;  %v581_v6 = vld [vmem:[%s1995_s7 + $0x50] sm:$0xff]  ;;  %s2268_s27 = scalar_lea.vmem (%p1825_p5), %s2346_s5, %s1634_s15 }
  0x47   : > { %1665 = vmatprep.subr.bf16.mxu0 %v1735_v14  ;;  %1667 = vmatprep.mubr.msk.bf16.mxu0 %vm732_vm0, %v700_v22  ;;  %v686_v35 = vmul.f32 %v670_v24, %v590_v9  ;;  %v687_v36 = vmul.f32 %v671_v25, %v591_v10  ;;  %v1530_v41 = vsel %vm625_vm6, 1.0, %v1760_v15  ;;  %v672_v42 = vsub.f32 1.0, %v1529_v37 }
  0x48   : > { %1689 = vmatprep.subr.bf16.mxu1 %v1735_v14  ;;  %v964_v39 = vsub.f32 %v1555_v27, %v684_v30  ;;  %v965_v40 = vsub.f32 %v1556_v28, %v685_v31  ;;  %v673_v45 = vsub.f32 1.0, %v1530_v41  ;;  %v702_v46 = vpack.c.bf16 %v1530_v41, %v1529_v37 }
  0x49   : > { %v966_v43 = vsub.f32 %v1557_v32, %v686_v35  ;;  %v967_v44 = vsub.f32 %v1558_v33, %v687_v36  ;;  %v688_v49 = vmul.f32 %v672_v42, %v592_v13  ;;  %v595_v50 = vmul.f32 0.5, %v578_v38 }
  0x4a   : > { %1666 = vmatpush3.bf16.msra.mxu0 %v1735_v14  ;;  %1690 = vmatpush3.bf16.msra.mxu1 %v1735_v14  ;;  %v980_v47 = vmul.f32 0.5, %v964_v39  ;;  %v981_v48 = vmul.f32 0.5, %v965_v40  ;;  %v689_v53 = vmul.f32 %v673_v45, %v593_v29  ;;  %vm626_vm7 = vcmp.ge.f32.partialorder %v594_v34, 1.0  ;;  %v1563_v39 = vld [vmem:[%s1995_s7 + $0xc0] sm:$0xff]  ;;  %v584_v45 = vld [vmem:[%s1995_s7 + $0x68] sm:$0xff] }
  0x4b   : > { %v982_v51 = vmul.f32 0.5, %v966_v43  ;;  %v983_v52 = vmul.f32 0.5, %v967_v44  ;;  %vm627_vm8 = vcmp.ge.f32.partialorder %v595_v50, 1.0  ;;  %v1531_v56 = vsel %vm626_vm7, 1.0, %v1760_v15  ;;  %v1564_v43 = vld [vmem:[%s1995_s7 + $0xc8] sm:$0xff]  ;;  %v583_v44 = vld [vmem:[%s1995_s7 + $0x60] sm:$0xff] }
  0x4c   : > { %v996_v54 = vadd.f32 %v980_v47, %v684_v30  ;;  %v997_v55 = vadd.f32 %v981_v48, %v685_v31  ;;  %v1532_v59 = vsel %vm627_vm8, 1.0, %v1760_v15  ;;  %v674_v60 = vsub.f32 1.0, %v1531_v56 }
  0x4d   : > { %1668 = vmatmul.mubr.msk.bf16.vlgmr.msra.gmra.mrb[0].mxu0 %vm732_vm0, %v701_v26  ;;  %v998_v57 = vadd.f32 %v982_v51, %v686_v35  ;;  %v999_v58 = vadd.f32 %v983_v52, %v687_v36  ;;  %v675_v62 = vsub.f32 1.0, %v1532_v59  ;;  %v703_v63 = vpack.c.bf16 %v1532_v59, %v1531_v56  ;;  %v586_v51 = vld [vmem:[%s1995_s7 + $0x78] sm:$0xff] }
  0x4e   : > { %vm1012_vm9 = vcmp.ge.f32.partialorder %v996_v54, 1.0  ;;  %vm1013_vm10 = vcmp.ge.f32.partialorder %v997_v55, 1.0  ;;  %1671 = vmatprep.mubr.msk.bf16.mxu0 %vm732_vm0, %v702_v46  ;;  %v690_v10 = vmul.f32 %v674_v60, %v594_v34  ;;  %v968_v16 = vsub.f32 %v1559_v61, %v688_v49  ;;  %v1566_v59 = vld [vmem:[%s1995_s7 + $0xd8] sm:$0xff] }
  0x4f   : > { %v1571_v3 = vsel %vm1012_vm9, 1.0, %v1760_v15  ;;  %v1572_v4 = vsel %vm1013_vm10, 1.0, %v1760_v15  ;;  %vm1014_vm11 = vcmp.ge.f32.partialorder %v998_v57, 1.0  ;;  %vm1015_vm12 = vcmp.ge.f32.partialorder %v999_v58, 1.0  ;;  %v1565_v58 = vld [vmem:[%s1995_s7 + $0xd0] sm:$0xff] }
  0x50   : > { %v1060_v7 = vpack.c.bf16 %v1572_v4, %v1571_v3  ;;  %v1573_v8 = vsel %vm1014_vm11, 1.0, %v1760_v15  ;;  %v1574_v9 = vsel %vm1015_vm12, 1.0, %v1760_v15  ;;  %v691_v14 = vmul.f32 %v675_v62, %v595_v50  ;;  %v585_v50 = vld [vmem:[%s1995_s7 + $0x70] sm:$0xff] }
  0x51   : > { %v1061_v13 = vpack.c.bf16 %v1574_v9, %v1573_v8  ;;  %v969_v17 = vsub.f32 %v1560_v0, %v689_v53  ;;  %v970_v18 = vsub.f32 %v1561_v1, %v690_v10  ;;  %v596_v19 = vmul.f32 0.5, %v579_v2 }
  0x52   : > { %1691 = vmatprep.mubr.msk.bf16.mxu1 %vm732_vm0, %v1060_v7  ;;  %v597_v20 = vmul.f32 0.5, %v580_v5  ;;  %v598_v21 = vmul.f32 0.5, %v581_v6  ;;  %v984_v22 = vmul.f32 0.5, %v968_v16  ;;  %v971_v24 = vsub.f32 %v1562_v11, %v691_v14  ;;  %v1567_v16 = vld [vmem:[%s1995_s7 + $0xe0] sm:$0xff] }
  0x53   : > { %1692 = vmatmul.mubr.msk.bf16.vlgmr.msra.gmra.mrb[0].mxu1 %vm732_vm0, %v1061_v13  ;;  %v985_v23 = vmul.f32 0.5, %v969_v17  ;;  %v599_v25 = vmul.f32 0.5, %v582_v12  ;;  %v986_v26 = vmul.f32 0.5, %v970_v18  ;;  %vm628_vm13 = vcmp.ge.f32.partialorder %v596_v19, 1.0 }
  0x54   : > { %vm629_vm14 = vcmp.ge.f32.partialorder %v597_v20, 1.0  ;;  %vm630_vm15 = vcmp.ge.f32.partialorder %v598_v21, 1.0  ;;  %v1000_v27 = vadd.f32 %v984_v22, %v688_v49  ;;  %v987_v29 = vmul.f32 0.5, %v971_v24 }
  0x55   : > { %1672 = vmatmul.mubr.msk.bf16.gmra.mrb[4].mxu0 %vm732_vm0, %v703_v63  ;;  %v1001_v28 = vadd.f32 %v985_v23, %v689_v53  ;;  %v1533_v30 = vsel %vm628_vm13, 1.0, %v1760_v15  ;;  %v1002_v31 = vadd.f32 %v986_v26, %v690_v10  ;;  %v1534_v32 = vsel %vm629_vm14, 1.0, %v1760_v15 }
  0x56   : > { %v676_v33 = vsub.f32 1.0, %v1533_v30  ;;  %vm631_vm1 = vcmp.ge.f32.partialorder %v599_v25, 1.0  ;;  %vm1016_vm2 = vcmp.ge.f32.partialorder %v1000_v27, 1.0  ;;  %v1003_v34 = vadd.f32 %v987_v29, %v691_v14 }
  0x57   : > { %vm1017_vm3 = vcmp.ge.f32.partialorder %v1001_v28, 1.0  ;;  %v677_v35 = vsub.f32 1.0, %v1534_v32  ;;  %v1575_v36 = vsel %vm1016_vm2, 1.0, %v1760_v15  ;;  %vm1018_vm4 = vcmp.ge.f32.partialorder %v1002_v31, 1.0 }
  0x58   : > { %v1576_v37 = vsel %vm1017_vm3, 1.0, %v1760_v15  ;;  %v692_v38 = vmul.f32 %v676_v33, %v596_v19  ;;  %vm1019_vm5 = vcmp.ge.f32.partialorder %v1003_v34, 1.0  ;;  %v1577_v41 = vsel %vm1018_vm4, 1.0, %v1760_v15  ;;  %v1569_v33 = vld [vmem:[%s1995_s7 + $0xf0] sm:$0xff] }
  0x59   : > { %v1062_v40 = vpack.c.bf16 %v1576_v37, %v1575_v36  ;;  %v693_v42 = vmul.f32 %v677_v35, %v597_v20  ;;  %v1578_v46 = vsel %vm1019_vm5, 1.0, %v1760_v15  ;;  %v704_v47 = vpack.c.bf16 %v1534_v32, %v1533_v30 }
  0x5a   : > { %v1535_v48 = vsel %vm630_vm15, 1.0, %v1760_v15  ;;  %v1536_v49 = vsel %vm631_vm1, 1.0, %v1760_v15  ;;  %v1063_v52 = vpack.c.bf16 %v1578_v46, %v1577_v41  ;;  %v972_v56 = vsub.f32 %v1563_v39, %v692_v38 }
  0x5b   : > { %1695 = vmatprep.mubr.msk.bf16.mxu1 %vm732_vm0, %v1062_v40  ;;  %v678_v53 = vsub.f32 1.0, %v1535_v48  ;;  %v679_v54 = vsub.f32 1.0, %v1536_v49  ;;  %v705_v55 = vpack.c.bf16 %v1536_v49, %v1535_v48  ;;  %1675 = vmatprep.mubr.msk.bf16.mxu0 %vm732_vm0, %v704_v47  ;;  %v973_v57 = vsub.f32 %v1564_v43, %v693_v42 }
  0x5c   : > { %v600_v60 = vmul.f32 0.5, %v583_v44  ;;  %v601_v61 = vmul.f32 0.5, %v584_v45  ;;  %1696 = vmatmul.mubr.msk.bf16.gmra.mrb[4].mxu1 %vm732_vm0, %v1063_v52  ;;  %v602_v0 = vmul.f32 0.5, %v585_v50  ;;  %v603_v1 = vmul.f32 0.5, %v586_v51 }
  0x5d   : > { %v694_v62 = vmul.f32 %v678_v53, %v598_v21  ;;  %v695_v63 = vmul.f32 %v679_v54, %v599_v25  ;;  %1676 = vmatmul.mubr.msk.bf16.gmra.mrb[8].mxu0 %vm732_vm0, %v705_v55  ;;  %v988_v2 = vmul.f32 0.5, %v972_v56  ;;  %v989_v3 = vmul.f32 0.5, %v973_v57  ;;  %v1568_v25 = vld [vmem:[%s1995_s7 + $0xe8] sm:$0xff]  ;;  %v2085_v55 = vld [vmem:[%s2344_s3] ss:$0 sm:$0xff] }
  0x5e   : > { %vm632_vm6 = vcmp.ge.f32.partialorder %v600_v60, 1.0  ;;  %vm633_vm7 = vcmp.ge.f32.partialorder %v601_v61, 1.0  ;;  %vm634_vm8 = vcmp.ge.f32.partialorder %v602_v0, 1.0  ;;  %vm635_vm11 = vcmp.ge.f32.partialorder %v603_v1, 1.0  ;;  %v2090_v56 = vld [vmem:[%s2345_s4] ss:$0 sm:$0xff] }
  0x5f   : > { %v974_v4 = vsub.f32 %v1565_v58, %v694_v62  ;;  %v975_v5 = vsub.f32 %v1566_v59, %v695_v63  ;;  %v1537_v6 = vsel %vm632_vm6, 1.0, %v1760_v15  ;;  %v1538_v7 = vsel %vm633_vm7, 1.0, %v1760_v15 }
  0x60   : > { %v1004_v8 = vadd.f32 %v988_v2, %v692_v38  ;;  %v1005_v9 = vadd.f32 %v989_v3, %v693_v42  ;;  %v680_v10 = vsub.f32 1.0, %v1537_v6  ;;  %v681_v11 = vsub.f32 1.0, %v1538_v7  ;;  %v1570_v38 = vld [vmem:[%s1995_s7 + $0xf8] sm:$0xff] }
  0x61   : > { %v990_v12 = vmul.f32 0.5, %v974_v4  ;;  %v991_v13 = vmul.f32 0.5, %v975_v5  ;;  %v706_v14 = vpack.c.bf16 %v1538_v7, %v1537_v6  ;;  %v1539_v24 = vsel %vm634_vm8, 1.0, %v1760_v15  ;;  %v901_v3 = vld [vmem:[%s2094_s13 + $0x18] sm:$0xff]  ;;  %v899_v7 = vld [vmem:[%s2094_s13 + $0x8] sm:$0xff] }
  0x62   : > { %vm1020_vm9 = vcmp.ge.f32.partialorder %v1004_v8, 1.0  ;;  %vm1021_vm10 = vcmp.ge.f32.partialorder %v1005_v9, 1.0  ;;  %v696_v17 = vmul.f32 %v680_v10, %v600_v60  ;;  %v697_v18 = vmul.f32 %v681_v11, %v601_v61 }
  0x63   : > { %v1579_v19 = vsel %vm1020_vm9, 1.0, %v1760_v15  ;;  %v1580_v20 = vsel %vm1021_vm10, 1.0, %v1760_v15  ;;  %v1006_v21 = vadd.f32 %v990_v12, %v694_v62  ;;  %v1007_v22 = vadd.f32 %v991_v13, %v695_v63  ;;  %1679 = vmatprep.mubr.msk.bf16.mxu0 %vm732_vm0, %v706_v14  ;;  %v898_v63 = vld [vmem:[%s2094_s13] sm:$0xff] }
  0x64   : > { %v1064_v23 = vpack.c.bf16 %v1580_v20, %v1579_v19  ;;  %v976_v26 = vsub.f32 %v1567_v16, %v696_v17  ;;  %v1540_v27 = vsel %vm635_vm11, 1.0, %v1760_v15  ;;  %v682_v28 = vsub.f32 1.0, %v1539_v24  ;;  %v1597_v16 = vld [vmem:[%s2094_s13 + $0x90] sm:$0xff] }
  0x65   : > { %vm1022_vm12 = vcmp.ge.f32.partialorder %v1006_v21, 1.0  ;;  %vm1023_vm13 = vcmp.ge.f32.partialorder %v1007_v22, 1.0  ;;  %v683_v31 = vsub.f32 1.0, %v1540_v27  ;;  %v707_v32 = vpack.c.bf16 %v1540_v27, %v1539_v24  ;;  %v1595_v21 = vld [vmem:[%s2094_s13 + $0x80] sm:$0xff]  ;;  %v1598_v27 = vld [vmem:[%s2094_s13 + $0x98] sm:$0xff] }
  0x66   : > { %1699 = vmatprep.mubr.msk.bf16.mxu1 %vm732_vm0, %v1064_v23  ;;  %v1581_v29 = vsel %vm1022_vm12, 1.0, %v1760_v15  ;;  %v1582_v30 = vsel %vm1023_vm13, 1.0, %v1760_v15  ;;  %v698_v35 = vmul.f32 %v682_v28, %v602_v0  ;;  %v977_v36 = vsub.f32 %v1568_v25, %v697_v18 }
  0x67   : > { %v1065_v34 = vpack.c.bf16 %v1582_v30, %v1581_v29  ;;  %v992_v37 = vmul.f32 0.5, %v976_v26  ;;  %v699_v39 = vmul.f32 %v683_v31, %v603_v1  ;;  %1680 = vmatmul.mubr.msk.bf16.gmra.mrb[12].mxu0 %vm732_vm0, %v707_v32  ;;  %v904_v29 = vld [vmem:[%s2094_s13 + $0x30] sm:$0xff] }
  0x68   : > { %v993_v40 = vmul.f32 0.5, %v977_v36  ;;  %v978_v42 = vsub.f32 %v1569_v33, %v698_v35  ;;  %v902_v36 = vld [vmem:[%s2094_s13 + $0x20] sm:$0xff] }
  0x69   : > { %1700 = vmatmul.mubr.msk.bf16.gmra.mrb[8].mxu1 %vm732_vm0, %v1065_v34  ;;  %v1008_v41 = vadd.f32 %v992_v37, %v696_v17  ;;  %v979_v43 = vsub.f32 %v1570_v38, %v699_v39  ;;  %v1596_v34 = vld [vmem:[%s2094_s13 + $0x88] sm:$0xff] }
  0x6a   : > { %v1009_v44 = vadd.f32 %v993_v40, %v697_v18  ;;  %v994_v45 = vmul.f32 0.5, %v978_v42  ;;  %v905_v42 = vld [vmem:[%s2094_s13 + $0x38] sm:$0xff] }
  0x6b   : > { %vm1024_vm14 = vcmp.ge.f32.partialorder %v1008_v41, 1.0  ;;  %v995_v47 = vmul.f32 0.5, %v979_v43 }
  0x6c   : > { %v1583_v46 = vsel %vm1024_vm14, 1.0, %v1760_v15  ;;  %vm1025_vm15 = vcmp.ge.f32.partialorder %v1009_v44, 1.0  ;;  %v1010_v48 = vadd.f32 %v994_v45, %v698_v35 }
  0x6d   : > { %v1584_v49 = vsel %vm1025_vm15, 1.0, %v1760_v15  ;;  %v1011_v50 = vadd.f32 %v995_v47, %v699_v39  ;;  %v903_v47 = vld [vmem:[%s2094_s13 + $0x28] sm:$0xff] }
  0x6e   : > { %v1066_v51 = vpack.c.bf16 %v1584_v49, %v1583_v46  ;;  %vm1026_vm1 = vcmp.ge.f32.partialorder %v1010_v48, 1.0 }
  0x6f   : > { %vm1027_vm2 = vcmp.ge.f32.partialorder %v1011_v50, 1.0  ;;  %v1585_v52 = vsel %vm1026_vm1, 1.0, %v1760_v15 }
  0x70   : > { %1703 = vmatprep.mubr.msk.bf16.mxu1 %vm732_vm0, %v1066_v51  ;;  %v1586_v53 = vsel %vm1027_vm2, 1.0, %v1760_v15  ;;  %v900_v15 = vld [vmem:[%s2094_s13 + $0x10] sm:$0xff] }
  0x71   : > { %v1067_v54 = vpack.c.bf16 %v1586_v53, %v1585_v52 }
  0x73   : > { %1704 = vmatmul.mubr.msk.bf16.gmra.mrb[12].mxu1 %vm732_vm0, %v1067_v54  ;;  %vm930_vm0 = vcmask 130048  }
 0x120   : > { %v1669_v57 = vpop.f32.mrb[0].mxu0 }
 0x121   : > { %v862_v58 = vmul.f32 %v1669_v57, %v2085_v55  ;;  %v791_v59 = vpop.f32.mrb[1].mxu0 }
 0x122   : > { %v860_v60 = vmul.f32 %v2085_v55, %v791_v59  ;;  %v1670_v61 = vpop.f32.mrb[2].mxu0 }
 0x123   : > { %v884_v62 = vadd.f32 %v2090_v56, %v862_v58  ;;  %v863_v0 = vmul.f32 %v1670_v61, %v2085_v55  ;;  %v794_v1 = vpop.f32.mrb[3].mxu0 }
 0x124   : > { %v882_v2 = vadd.f32 %v2090_v56, %v860_v60  ;;  %v861_v4 = vmul.f32 %v2085_v55, %v794_v1  ;;  %v1601_v60 = vld [vmem:[%s2094_s13 + $0xb0] sm:$0xff] }
 0x125   : > { %v916_v5 = vadd.f32 %v900_v15, %v884_v62  ;;  %v885_v6 = vadd.f32 %v2090_v56, %v863_v0 }
 0x126   : > { %v914_v8 = vadd.f32 %v898_v63, %v882_v2  ;;  %v883_v9 = vadd.f32 %v2090_v56, %v861_v4  ;;  %v1693_v10 = vpop.f32.mrb[0].mxu1  ;;  %v908_v63 = vld [vmem:[%s2094_s13 + $0x50] sm:$0xff] }
 0x127   : > { %933 = vst.msk [vmem:[%s2108_s14 + $0x10] sm:$0xff] %vm930_vm0, %v916_v5  ;;  %v917_v11 = vadd.f32 %v901_v3, %v885_v6  ;;  %v1191_v12 = vmul.f32 %v1693_v10, %v2085_v55  ;;  %v1126_v13 = vpop.f32.mrb[1].mxu1  ;;  %v1599_v3 = vld [vmem:[%s2094_s13 + $0xa0] sm:$0xff] }
 0x128   : > { %931 = vst.msk [vmem:[%s2108_s14] sm:$0xff] %vm930_vm0, %v914_v8  ;;  %v915_v14 = vadd.f32 %v899_v7, %v883_v9  ;;  %v1189_v17 = vmul.f32 %v2085_v55, %v1126_v13  ;;  %v1694_v18 = vpop.f32.mrb[2].mxu1  ;;  %v1673_v19 = vpop.f32.mrb[4].mxu0  ;;  %v906_v7 = vld [vmem:[%s2094_s13 + $0x40] sm:$0xff] }
 0x129   : > { %934 = vst.msk [vmem:[%s2108_s14 + $0x18] sm:$0xff] %vm930_vm0, %v917_v11  ;;  %v1207_v20 = vadd.f32 %v2090_v56, %v1191_v12  ;;  %v1192_v22 = vmul.f32 %v1694_v18, %v2085_v55  ;;  %v1129_v23 = vpop.f32.mrb[3].mxu1  ;;  %v866_v24 = vmul.f32 %v1673_v19, %v2085_v55  ;;  %v807_v25 = vpop.f32.mrb[5].mxu0  ;;  %v1602_v11 = vld [vmem:[%s2094_s13 + $0xb8] sm:$0xff]  ;;  %v1600_v19 = vld [vmem:[%s2094_s13 + $0xa8] sm:$0xff] }
 0x12a   : > { %932 = vst.msk [vmem:[%s2108_s14 + $0x8] sm:$0xff] %vm930_vm0, %v915_v14  ;;  %v1205_v26 = vadd.f32 %v2090_v56, %v1189_v17  ;;  %v1190_v28 = vmul.f32 %v2085_v55, %v1129_v23  ;;  %v864_v30 = vmul.f32 %v2085_v55, %v807_v25  ;;  %v1674_v31 = vpop.f32.mrb[6].mxu0  ;;  %v909_v14 = vld [vmem:[%s2094_s13 + $0x58] sm:$0xff] }
 0x12b   : > { %v1240_v32 = vadd.f32 %v1597_v16, %v1207_v20  ;;  %v1208_v33 = vadd.f32 %v2090_v56, %v1192_v22  ;;  %v888_v35 = vadd.f32 %v2090_v56, %v866_v24  ;;  %v867_v37 = vmul.f32 %v1674_v31, %v2085_v55  ;;  %v810_v38 = vpop.f32.mrb[7].mxu0  ;;  %v907_v22 = vld [vmem:[%s2094_s13 + $0x48] sm:$0xff] }
 0x12c   : > { %v1238_v39 = vadd.f32 %v1595_v21, %v1205_v26  ;;  %v1206_v40 = vadd.f32 %v2090_v56, %v1190_v28  ;;  %v886_v41 = vadd.f32 %v2090_v56, %v864_v30  ;;  %v865_v43 = vmul.f32 %v2085_v55, %v810_v38 }
 0x12d   : > { %1613 = vst.msk [vmem:[%s2108_s14 + $0x90] sm:$0xff] %vm930_vm0, %v1240_v32  ;;  %v1241_v44 = vadd.f32 %v1598_v27, %v1208_v33  ;;  %v920_v45 = vadd.f32 %v904_v29, %v888_v35  ;;  %v889_v46 = vadd.f32 %v2090_v56, %v867_v37  ;;  %v912_v37 = vld [vmem:[%s2094_s13 + $0x70] sm:$0xff] }
 0x12e   : > { %1611 = vst.msk [vmem:[%s2108_s14 + $0x80] sm:$0xff] %vm930_vm0, %v1238_v39  ;;  %v1239_v48 = vadd.f32 %v1596_v34, %v1206_v40  ;;  %v918_v49 = vadd.f32 %v902_v36, %v886_v41  ;;  %v887_v50 = vadd.f32 %v2090_v56, %v865_v43  ;;  %v1605_v40 = vld [vmem:[%s2094_s13 + $0xd0] sm:$0xff] }
 0x12f   : > { %1614 = vst.msk [vmem:[%s2108_s14 + $0x98] sm:$0xff] %vm930_vm0, %v1241_v44  ;;  %937 = vst.msk [vmem:[%s2108_s14 + $0x30] sm:$0xff] %vm930_vm0, %v920_v45  ;;  %v921_v51 = vadd.f32 %v905_v42, %v889_v46  ;;  %v1697_v53 = vpop.f32.mrb[4].mxu1  ;;  %v910_v44 = vld [vmem:[%s2094_s13 + $0x60] sm:$0xff] }
 0x130   : > { %1612 = vst.msk [vmem:[%s2108_s14 + $0x88] sm:$0xff] %vm930_vm0, %v1239_v48  ;;  %935 = vst.msk [vmem:[%s2108_s14 + $0x20] sm:$0xff] %vm930_vm0, %v918_v49  ;;  %v919_v52 = vadd.f32 %v903_v47, %v887_v50  ;;  %v1677_v54 = vpop.f32.mrb[8].mxu0  ;;  %v1195_v57 = vmul.f32 %v1697_v53, %v2085_v55  ;;  %v1142_v58 = vpop.f32.mrb[5].mxu1  ;;  %v1603_v48 = vld [vmem:[%s2094_s13 + $0xc0] sm:$0xff] }
 0x131   : > { %938 = vst.msk [vmem:[%s2108_s14 + $0x38] sm:$0xff] %vm930_vm0, %v921_v51  ;;  %v870_v59 = vmul.f32 %v1677_v54, %v2085_v55  ;;  %v823_v15 = vpop.f32.mrb[9].mxu0  ;;  %v1193_v61 = vmul.f32 %v2085_v55, %v1142_v58  ;;  %v1698_v62 = vpop.f32.mrb[6].mxu1 }
 0x132   : > { %936 = vst.msk [vmem:[%s2108_s14 + $0x28] sm:$0xff] %vm930_vm0, %v919_v52  ;;  %v868_v0 = vmul.f32 %v2085_v55, %v823_v15  ;;  %v1678_v1 = vpop.f32.mrb[10].mxu0  ;;  %v1211_v2 = vadd.f32 %v2090_v56, %v1195_v57  ;;  %v1196_v4 = vmul.f32 %v1698_v62, %v2085_v55  ;;  %v1145_v5 = vpop.f32.mrb[7].mxu1  ;;  %v913_v52 = vld [vmem:[%s2094_s13 + $0x78] sm:$0xff] }
 0x133   : > { %v892_v6 = vadd.f32 %v2090_v56, %v870_v59  ;;  %v871_v8 = vmul.f32 %v1678_v1, %v2085_v55  ;;  %v826_v9 = vpop.f32.mrb[11].mxu0  ;;  %v1209_v10 = vadd.f32 %v2090_v56, %v1193_v61  ;;  %v1194_v12 = vmul.f32 %v2085_v55, %v1145_v5  ;;  %v1606_v57 = vld [vmem:[%s2094_s13 + $0xd8] sm:$0xff] }
 0x134   : > { %v890_v13 = vadd.f32 %v2090_v56, %v868_v0  ;;  %v869_v16 = vmul.f32 %v2085_v55, %v826_v9  ;;  %v1244_v17 = vadd.f32 %v1601_v60, %v1211_v2  ;;  %v1212_v18 = vadd.f32 %v2090_v56, %v1196_v4  ;;  %v911_v60 = vld [vmem:[%s2094_s13 + $0x68] sm:$0xff] }
 0x135   : > { %v924_v20 = vadd.f32 %v908_v63, %v892_v6  ;;  %v893_v21 = vadd.f32 %v2090_v56, %v871_v8  ;;  %v1242_v23 = vadd.f32 %v1599_v3, %v1209_v10  ;;  %v1210_v24 = vadd.f32 %v2090_v56, %v1194_v12  ;;  %v1604_v63 = vld [vmem:[%s2094_s13 + $0xc8] sm:$0xff] }
 0x136   : > { %v922_v25 = vadd.f32 %v906_v7, %v890_v13  ;;  %v891_v26 = vadd.f32 %v2090_v56, %v869_v16  ;;  %1617 = vst.msk [vmem:[%s2108_s14 + $0xb0] sm:$0xff] %vm930_vm0, %v1244_v17  ;;  %v1245_v27 = vadd.f32 %v1602_v11, %v1212_v18  ;;  %v1609_v11 = vld [vmem:[%s2094_s13 + $0xf0] sm:$0xff]  ;;  %v1607_v16 = vld [vmem:[%s2094_s13 + $0xe0] sm:$0xff] }
 0x137   : > { %941 = vst.msk [vmem:[%s2108_s14 + $0x50] sm:$0xff] %vm930_vm0, %v924_v20  ;;  %v925_v28 = vadd.f32 %v909_v14, %v893_v21  ;;  %1615 = vst.msk [vmem:[%s2108_s14 + $0xa0] sm:$0xff] %vm930_vm0, %v1242_v23  ;;  %v1243_v29 = vadd.f32 %v1600_v19, %v1210_v24  ;;  %v1610_v20 = vld [vmem:[%s2094_s13 + $0xf8] sm:$0xff]  ;;  %v1608_v24 = vld [vmem:[%s2094_s13 + $0xe8] sm:$0xff] }
 0x138   : > { %939 = vst.msk [vmem:[%s2108_s14 + $0x40] sm:$0xff] %vm930_vm0, %v922_v25  ;;  %v923_v30 = vadd.f32 %v907_v22, %v891_v26  ;;  %1618 = vst.msk [vmem:[%s2108_s14 + $0xb8] sm:$0xff] %vm930_vm0, %v1245_v27 }
 0x139   : > { %942 = vst.msk [vmem:[%s2108_s14 + $0x58] sm:$0xff] %vm930_vm0, %v925_v28  ;;  %1616 = vst.msk [vmem:[%s2108_s14 + $0xa8] sm:$0xff] %vm930_vm0, %v1243_v29  ;;  %v1374_v29 = vld [vmem:[%s2108_s14 + $0x10] sm:$0xff] (%p1825_p5) }
 0x13a   : > { %940 = vst.msk [vmem:[%s2108_s14 + $0x48] sm:$0xff] %vm930_vm0, %v923_v30  ;;  %v1681_v31 = vpop.f32.mrb[12].mxu0  ;;  %v1376_v30 = vld [vmem:[%s2108_s14 + $0x18] sm:$0xff] (%p1825_p5)  ;;  %1375 = vst [vmem:[%s2268_s27 + $0x10] sm:$0xff] (%p1825_p5), %v1374_v29 }
 0x13b   : > { %v874_v33 = vmul.f32 %v1681_v31, %v2085_v55  ;;  %v839_v34 = vpop.f32.mrb[13].mxu0  ;;  %v1378_v31 = vld [vmem:[%s2108_s14 + $0x20] sm:$0xff] (%p1825_p5)  ;;  %1377 = vst [vmem:[%s2268_s27 + $0x18] sm:$0xff] (%p1825_p5), %v1376_v30 }
 0x13c   : > { %v1701_v32 = vpop.f32.mrb[8].mxu1  ;;  %v872_v38 = vmul.f32 %v2085_v55, %v839_v34  ;;  %v1682_v39 = vpop.f32.mrb[14].mxu0  ;;  %1379 = vst [vmem:[%s2268_s27 + $0x20] sm:$0xff] (%p1825_p5), %v1378_v31  ;;  %v1384_v34 = vld [vmem:[%s2108_s14 + $0x38] sm:$0xff] (%p1825_p5) }
 0x13d   : > { %v1199_v35 = vmul.f32 %v1701_v32, %v2085_v55  ;;  %v1158_v36 = vpop.f32.mrb[9].mxu1  ;;  %v896_v43 = vadd.f32 %v2090_v56, %v874_v33  ;;  %v875_v45 = vmul.f32 %v1682_v39, %v2085_v55  ;;  %v842_v46 = vpop.f32.mrb[15].mxu0  ;;  %v1380_v32 = vld [vmem:[%s2108_s14 + $0x28] sm:$0xff] (%p1825_p5)  ;;  %v1382_v33 = vld [vmem:[%s2108_s14 + $0x30] sm:$0xff] (%p1825_p5)  ;;  %1385 = vst [vmem:[%s2268_s27 + $0x38] sm:$0xff] (%p1825_p5), %v1384_v34 }
 0x13e   : > { %v1197_v41 = vmul.f32 %v2085_v55, %v1158_v36  ;;  %v1702_v42 = vpop.f32.mrb[10].mxu1  ;;  %v894_v51 = vadd.f32 %v2090_v56, %v872_v38  ;;  %v873_v53 = vmul.f32 %v2085_v55, %v842_v46  ;;  %1381 = vst [vmem:[%s2268_s27 + $0x28] sm:$0xff] (%p1825_p5), %v1380_v32  ;;  %1383 = vst [vmem:[%s2268_s27 + $0x30] sm:$0xff] (%p1825_p5), %v1382_v33  ;;  %v1408_v46 = vld [vmem:[%s2108_s14 + $0x98] sm:$0xff] (%p1825_p5) }
 0x13f   : > { %v1215_v47 = vadd.f32 %v2090_v56, %v1199_v35  ;;  %v1200_v49 = vmul.f32 %v1702_v42, %v2085_v55  ;;  %v1161_v50 = vpop.f32.mrb[11].mxu1  ;;  %v928_v59 = vadd.f32 %v912_v37, %v896_v43  ;;  %v897_v15 = vadd.f32 %v2090_v56, %v875_v45  ;;  %v1386_v35 = vld [vmem:[%s2108_s14 + $0x40] sm:$0xff] (%p1825_p5)  ;;  %v1390_v37 = vld [vmem:[%s2108_s14 + $0x50] sm:$0xff] (%p1825_p5)  ;;  %1409 = vst [vmem:[%s2268_s27 + $0x218] sm:$0xff] (%p1825_p5), %v1408_v46 }
 0x140   : > { %v1213_v54 = vadd.f32 %v2090_v56, %v1197_v41  ;;  %v1198_v58 = vmul.f32 %v2085_v55, %v1161_v50  ;;  %v926_v0 = vadd.f32 %v910_v44, %v894_v51  ;;  %v895_v1 = vadd.f32 %v2090_v56, %v873_v53  ;;  %1387 = vst [vmem:[%s2268_s27 + $0x40] sm:$0xff] (%p1825_p5), %v1386_v35  ;;  %v1392_v38 = vld [vmem:[%s2108_s14 + $0x58] sm:$0xff] (%p1825_p5)  ;;  %v1402_v43 = vld [vmem:[%s2108_s14 + $0x80] sm:$0xff] (%p1825_p5)  ;;  %v1404_v44 = vld [vmem:[%s2108_s14 + $0x88] sm:$0xff] (%p1825_p5) }
 0x141   : > { %v1248_v61 = vadd.f32 %v1605_v40, %v1215_v47  ;;  %v1216_v62 = vadd.f32 %v2090_v56, %v1200_v49  ;;  %945 = vst.msk [vmem:[%s2108_s14 + $0x70] sm:$0xff] %vm930_vm0, %v928_v59  ;;  %v929_v4 = vadd.f32 %v913_v52, %v897_v15  ;;  %v1388_v36 = vld [vmem:[%s2108_s14 + $0x48] sm:$0xff] (%p1825_p5)  ;;  %1391 = vst [vmem:[%s2268_s27 + $0x50] sm:$0xff] (%p1825_p5), %v1390_v37  ;;  %v1406_v45 = vld [vmem:[%s2108_s14 + $0x90] sm:$0xff] (%p1825_p5) }
 0x142   : > { %v1246_v2 = vadd.f32 %v1603_v48, %v1213_v54  ;;  %v1214_v3 = vadd.f32 %v2090_v56, %v1198_v58  ;;  %943 = vst.msk [vmem:[%s2108_s14 + $0x60] sm:$0xff] %vm930_vm0, %v926_v0  ;;  %v927_v6 = vadd.f32 %v911_v60, %v895_v1  ;;  %1389 = vst [vmem:[%s2268_s27 + $0x48] sm:$0xff] (%p1825_p5), %v1388_v36  ;;  %v1410_v47 = vld [vmem:[%s2108_s14 + $0xa0] sm:$0xff] (%p1825_p5)  ;;  %v1412_v48 = vld [vmem:[%s2108_s14 + $0xa8] sm:$0xff] (%p1825_p5) }
 0x143   : > { %1621 = vst.msk [vmem:[%s2108_s14 + $0xd0] sm:$0xff] %vm930_vm0, %v1248_v61  ;;  %v1249_v5 = vadd.f32 %v1606_v57, %v1216_v62  ;;  %946 = vst.msk [vmem:[%s2108_s14 + $0x78] sm:$0xff] %vm930_vm0, %v929_v4  ;;  %v1414_v49 = vld [vmem:[%s2108_s14 + $0xb0] sm:$0xff] (%p1825_p5)  ;;  %v1416_v50 = vld [vmem:[%s2108_s14 + $0xb8] sm:$0xff] (%p1825_p5) }
 0x144   : > { %1619 = vst.msk [vmem:[%s2108_s14 + $0xc0] sm:$0xff] %vm930_vm0, %v1246_v2  ;;  %v1247_v7 = vadd.f32 %v1604_v63, %v1214_v3  ;;  %944 = vst.msk [vmem:[%s2108_s14 + $0x68] sm:$0xff] %vm930_vm0, %v927_v6 }
 0x145   : > { %1622 = vst.msk [vmem:[%s2108_s14 + $0xd8] sm:$0xff] %vm930_vm0, %v1249_v5  ;;  %1393 = vst [vmem:[%s2268_s27 + $0x58] sm:$0xff] (%p1825_p5), %v1392_v38 }
 0x146   : > { %1620 = vst.msk [vmem:[%s2108_s14 + $0xc8] sm:$0xff] %vm930_vm0, %v1247_v7  ;;  %v1705_v8 = vpop.f32.mrb[12].mxu1  ;;  %1403 = vst [vmem:[%s2268_s27 + $0x200] sm:$0xff] (%p1825_p5), %v1402_v43 }
 0x147   : > { %v1203_v9 = vmul.f32 %v1705_v8, %v2085_v55  ;;  %v1174_v10 = vpop.f32.mrb[13].mxu1  ;;  %1405 = vst [vmem:[%s2268_s27 + $0x208] sm:$0xff] (%p1825_p5), %v1404_v44  ;;  %1407 = vst [vmem:[%s2268_s27 + $0x210] sm:$0xff] (%p1825_p5), %v1406_v45 }
 0x148   : > { %v1201_v12 = vmul.f32 %v2085_v55, %v1174_v10  ;;  %v1706_v13 = vpop.f32.mrb[14].mxu1  ;;  %v1398_v41 = vld [vmem:[%s2108_s14 + $0x70] sm:$0xff] (%p1825_p5)  ;;  %1411 = vst [vmem:[%s2268_s27 + $0x220] sm:$0xff] (%p1825_p5), %v1410_v47  ;;  %1413 = vst [vmem:[%s2268_s27 + $0x228] sm:$0xff] (%p1825_p5), %v1412_v48 }
 0x149   : > { %v1219_v14 = vadd.f32 %v2090_v56, %v1203_v9  ;;  %v1204_v17 = vmul.f32 %v1706_v13, %v2085_v55  ;;  %v1177_v18 = vpop.f32.mrb[15].mxu1  ;;  %v1394_v39 = vld [vmem:[%s2108_s14 + $0x60] sm:$0xff] (%p1825_p5)  ;;  %1399 = vst [vmem:[%s2268_s27 + $0x70] sm:$0xff] (%p1825_p5), %v1398_v41  ;;  %1415 = vst [vmem:[%s2268_s27 + $0x230] sm:$0xff] (%p1825_p5), %v1414_v49 }
 0x14a   : > { %v1217_v19 = vadd.f32 %v2090_v56, %v1201_v12  ;;  %v1202_v21 = vmul.f32 %v2085_v55, %v1177_v18  ;;  %1277 = sbr.rel (!%p1825_p5) target bundleno = 345 (0x159), region = 120  ;;  %v1370_v55 = vld [vmem:[%s2108_s14] sm:$0xff] (%p1825_p5)  ;;  %1395 = vst [vmem:[%s2268_s27 + $0x60] sm:$0xff] (%p1825_p5), %v1394_v39  ;;  %v1400_v42 = vld [vmem:[%s2108_s14 + $0x78] sm:$0xff] (%p1825_p5)  ;;  %1417 = vst [vmem:[%s2268_s27 + $0x238] sm:$0xff] (%p1825_p5), %v1416_v50 }
 0x14b   : > { %v1252_v22 = vadd.f32 %v1609_v11, %v1219_v14  ;;  %v1220_v23 = vadd.f32 %v2090_v56, %v1204_v17  ;;  %1371 = vst [vmem:[%s2268_s27] sm:$0xff] (%p1825_p5), %v1370_v55  ;;  %v1396_v40 = vld [vmem:[%s2108_s14 + $0x68] sm:$0xff] (%p1825_p5)  ;;  %1401 = vst [vmem:[%s2268_s27 + $0x78] sm:$0xff] (%p1825_p5), %v1400_v42  ;;  %v1418_v51 = vld [vmem:[%s2108_s14 + $0xc0] sm:$0xff] (%p1825_p5) }
 0x14c   : > { %v1250_v25 = vadd.f32 %v1607_v16, %v1217_v19  ;;  %v1218_v26 = vadd.f32 %v2090_v56, %v1202_v21  ;;  %v1372_v56 = vld [vmem:[%s2108_s14 + $0x8] sm:$0xff] (%p1825_p5)  ;;  %1397 = vst [vmem:[%s2268_s27 + $0x68] sm:$0xff] (%p1825_p5), %v1396_v40  ;;  %v1422_v53 = vld [vmem:[%s2108_s14 + $0xd0] sm:$0xff] (%p1825_p5)  ;;  %1419 = vst [vmem:[%s2268_s27 + $0x240] sm:$0xff] (%p1825_p5), %v1418_v51 }
 0x14d   : > { %1625 = vst.msk [vmem:[%s2108_s14 + $0xf0] sm:$0xff] %vm930_vm0, %v1252_v22  ;;  %v1253_v27 = vadd.f32 %v1610_v20, %v1220_v23  ;;  %1373 = vst [vmem:[%s2268_s27 + $0x8] sm:$0xff] (%p1825_p5), %v1372_v56  ;;  %v1420_v52 = vld [vmem:[%s2108_s14 + $0xc8] sm:$0xff] (%p1825_p5)  ;;  %v1424_v54 = vld [vmem:[%s2108_s14 + $0xd8] sm:$0xff] (%p1825_p5) }
 0x14e   : > { %1623 = vst.msk [vmem:[%s2108_s14 + $0xe0] sm:$0xff] %vm930_vm0, %v1250_v25  ;;  %v1251_v28 = vadd.f32 %v1608_v24, %v1218_v26  ;;  %1421 = vst [vmem:[%s2268_s27 + $0x248] sm:$0xff] (%p1825_p5), %v1420_v52 }
 0x14f   : > { %1626 = vst.msk [vmem:[%s2108_s14 + $0xf8] sm:$0xff] %vm930_vm0, %v1253_v27  ;;  %1423 = vst [vmem:[%s2268_s27 + $0x250] sm:$0xff] (%p1825_p5), %v1422_v53 }
 0x150   : > { %1624 = vst.msk [vmem:[%s2108_s14 + $0xe8] sm:$0xff] %vm930_vm0, %v1251_v28  ;;  %1425 = vst [vmem:[%s2268_s27 + $0x258] sm:$0xff] (%p1825_p5), %v1424_v54 }
 0x154   : > { %v1430_v59 = vld [vmem:[%s2108_s14 + $0xf0] sm:$0xff] }
 0x155   : > { %v1426_v57 = vld [vmem:[%s2108_s14 + $0xe0] sm:$0xff]  ;;  %1431 = vst [vmem:[%s2268_s27 + $0x270] sm:$0xff] %v1430_v59 }
 0x156   : > { %1427 = vst [vmem:[%s2268_s27 + $0x260] sm:$0xff] %v1426_v57  ;;  %v1432_v15 = vld [vmem:[%s2108_s14 + $0xf8] sm:$0xff] }
 0x157   : > { %v1428_v58 = vld [vmem:[%s2108_s14 + $0xe8] sm:$0xff]  ;;  %1433 = vst [vmem:[%s2268_s27 + $0x278] sm:$0xff] %v1432_v15 }
 0x158   : > { %1429 = vst [vmem:[%s2268_s27 + $0x268] sm:$0xff] %v1428_v58 }
 0x159 PF: > { %p12_p10 = scmp.ge.s32.totalorder %s1808_s22, 6   ;;  %s2349_s18 = smov %s1754_s19 }
 0x15a   : > { %s2350_s19 = smov %s1819_s25  ;;  %s2351_s20 = smov %s1808_s22 }
 0x15b   :  { %14 = sbr.rel (!%p12_p10) target bundleno = 2 (0x2), region = 200 }

// kernel: gwffn_forward.5
= control target key start
LH: loop header
LB: loop body
LE: loop exit
PB: predicated region body
PF: predicated region fallthrough
CT: control target
= control target key end

     0   :  { %s9014_s15 = smov 0   ;;  %s9016_s16 = smov 0   ;;  %s11197_s0 = inlined_call_operand.vmem [shape: f32[2,2,16,16,64], index: 0, kind: input, shape index: {}]   ;;  %s11198_s1 = inlined_call_operand.vmem [shape: bf16[9,64,64], index: 1, kind: input, shape index: {}]   ;;  %s11199_s2 = inlined_call_operand.vmem [shape: f32[1,64], index: 2, kind: input, shape index: {}]   ;;  %s11200_s3 = inlined_call_operand.vmem [shape: f32[1,64], index: 3, kind: input, shape index: {}]   ;;  %s11201_s4 = inlined_call_operand.vmem [shape: f32[2,2,16,16,64], index: 4, kind: output, shape index: {}]  }
   0x1   :  { %s9018_s17 = smov 0   ;;  %s9020_s18 = smov 0  }
   0x2   :  { %s9022_s19 = smov 0  }
   0x3 LB: > { %s26_s20 = sadd.s32 1, %s8982_s18  ;;  %s6869_s21 = sadd.s32 4294967295, %s8986_s19   ;;  %s8986_s19 = sphi %s9022_s19, %s14_s19   ;;  %s8982_s18 = sphi %s9020_s18, %s11206_s18   ;;  %s8978_s17 = sphi %s9018_s17, %s11205_s17   ;;  %s8974_s16 = sphi %s9016_s16, %s11204_s16   ;;  %s8970_s15 = sphi %s9014_s15, %s11203_s15  }
   0x4   : > { %p28_p0 = scmp.ge.s32.totalorder %s26_s20, 2  ;;  %p42_p1 = scmp.ne.s32.totalorder %s8974_s16, %s8970_s15 }
   0x5   : > { %p43_p2 = scmp.eq.s32.totalorder %s8986_s19, 0  ;;  %p152_p4 = scmp.eq.s32.totalorder %s6869_s21, 1 }
   0x6   : > { %s11208_s20 = smov (%p28_p0, %s26_s20), 0  ;;  %s35_s23 = sadd.s32 1, %s8974_s16 }
   0x7   : > { %p44_p3 = por %p43_p2, %p42_p1  ;;  %s30_s22 = ssub.s32 %s8982_s18, %s11208_s20 }
   0x8   : > { %p33_p5 = scmp.eq.s32.totalorder %s30_s22, 0  ;;  %p9049_p6 = por %p152_p4, %p42_p1 }
   0x9   : > { %p6875_p7 = scmp.ge.s32.totalorder %s8986_s19, 2 }
   0xa   : > { %s9054_s25 = scalar_select %p33_p5, %s8974_s16, %s35_s23  }
   0xb   : > { %196 = sbr.rel (%p6875_p7) target bundleno = 54 (0x36), region = 28 }
  0x12   : > { %199 = sbr.rel (!%p44_p3) target bundleno = 54 (0x36), region = 32  ;;  %s201_s26 = sand.u32 (%p44_p3), 1, %s8974_s16  }
  0x13   : > { %s7373_s27 = sshll.u32 (%p44_p3), %s8982_s18, 8  ;;  %s6876_s28 = sshll.u32 (%p44_p3), %s201_s26, 9 }
  0x14   : > { %s9062_s5 = scalar_lea.vmem (%p44_p3), %s11197_s0, %s7373_s27  ;;  %s9067_s6 = scalar_lea.vmem (%p44_p3), [#allocation3], %s6876_s28 }
  0x15   : > { %v361_v0 = vld [vmem:[%s9062_s5] sm:$0xff] (%p44_p3)  ;;  %v363_v1 = vld [vmem:[%s9062_s5 + $0x8] sm:$0xff] (%p44_p3)  ;;  %v365_v2 = vld [vmem:[%s9062_s5 + $0x10] sm:$0xff] (%p44_p3) }
  0x16   : > { %362 = vst [vmem:[%s9067_s6] sm:$0xff] (%p44_p3), %v361_v0  ;;  %364 = vst [vmem:[%s9067_s6 + $0x8] sm:$0xff] (%p44_p3), %v363_v1  ;;  %v367_v3 = vld [vmem:[%s9062_s5 + $0x18] sm:$0xff] (%p44_p3)  ;;  %v369_v4 = vld [vmem:[%s9062_s5 + $0x20] sm:$0xff] (%p44_p3) }
  0x17   : > { %366 = vst [vmem:[%s9067_s6 + $0x10] sm:$0xff] (%p44_p3), %v365_v2  ;;  %v371_v5 = vld [vmem:[%s9062_s5 + $0x28] sm:$0xff] (%p44_p3)  ;;  %368 = vst [vmem:[%s9067_s6 + $0x18] sm:$0xff] (%p44_p3), %v367_v3  ;;  %v373_v6 = vld [vmem:[%s9062_s5 + $0x30] sm:$0xff] (%p44_p3) }
  0x18   : > { %370 = vst [vmem:[%s9067_s6 + $0x20] sm:$0xff] (%p44_p3), %v369_v4  ;;  %372 = vst [vmem:[%s9067_s6 + $0x28] sm:$0xff] (%p44_p3), %v371_v5  ;;  %v375_v7 = vld [vmem:[%s9062_s5 + $0x38] sm:$0xff] (%p44_p3)  ;;  %v377_v8 = vld [vmem:[%s9062_s5 + $0x40] sm:$0xff] (%p44_p3) }
  0x19   : > { %374 = vst [vmem:[%s9067_s6 + $0x30] sm:$0xff] %v373_v6  ;;  %376 = vst [vmem:[%s9067_s6 + $0x38] sm:$0xff] %v375_v7  ;;  %v379_v9 = vld [vmem:[%s9062_s5 + $0x48] sm:$0xff]  ;;  %v381_v10 = vld [vmem:[%s9062_s5 + $0x50] sm:$0xff] }
  0x1a   : > { %378 = vst [vmem:[%s9067_s6 + $0x40] sm:$0xff] %v377_v8  ;;  %v383_v11 = vld [vmem:[%s9062_s5 + $0x58] sm:$0xff]  ;;  %380 = vst [vmem:[%s9067_s6 + $0x48] sm:$0xff] %v379_v9  ;;  %v385_v12 = vld [vmem:[%s9062_s5 + $0x60] sm:$0xff] }
  0x1b   : > { %382 = vst [vmem:[%s9067_s6 + $0x50] sm:$0xff] %v381_v10  ;;  %384 = vst [vmem:[%s9067_s6 + $0x58] sm:$0xff] %v383_v11  ;;  %v387_v13 = vld [vmem:[%s9062_s5 + $0x68] sm:$0xff]  ;;  %v389_v14 = vld [vmem:[%s9062_s5 + $0x70] sm:$0xff] }
  0x1c   : > { %386 = vst [vmem:[%s9067_s6 + $0x60] sm:$0xff] %v385_v12  ;;  %388 = vst [vmem:[%s9067_s6 + $0x68] sm:$0xff] %v387_v13  ;;  %v391_v15 = vld [vmem:[%s9062_s5 + $0x78] sm:$0xff]  ;;  %v393_v16 = vld [vmem:[%s9062_s5 + $0x80] sm:$0xff] }
  0x1d   : > { %390 = vst [vmem:[%s9067_s6 + $0x70] sm:$0xff] %v389_v14  ;;  %v395_v17 = vld [vmem:[%s9062_s5 + $0x88] sm:$0xff]  ;;  %392 = vst [vmem:[%s9067_s6 + $0x78] sm:$0xff] %v391_v15  ;;  %v397_v18 = vld [vmem:[%s9062_s5 + $0x90] sm:$0xff] }
  0x1e   : > { %394 = vst [vmem:[%s9067_s6 + $0x80] sm:$0xff] %v393_v16  ;;  %396 = vst [vmem:[%s9067_s6 + $0x88] sm:$0xff] %v395_v17  ;;  %v399_v19 = vld [vmem:[%s9062_s5 + $0x98] sm:$0xff]  ;;  %v401_v20 = vld [vmem:[%s9062_s5 + $0xa0] sm:$0xff] }
  0x1f   : > { %398 = vst [vmem:[%s9067_s6 + $0x90] sm:$0xff] %v397_v18  ;;  %400 = vst [vmem:[%s9067_s6 + $0x98] sm:$0xff] %v399_v19  ;;  %v403_v21 = vld [vmem:[%s9062_s5 + $0xa8] sm:$0xff]  ;;  %v405_v22 = vld [vmem:[%s9062_s5 + $0xb0] sm:$0xff] }
  0x20   : > { %402 = vst [vmem:[%s9067_s6 + $0xa0] sm:$0xff] %v401_v20  ;;  %v407_v23 = vld [vmem:[%s9062_s5 + $0xb8] sm:$0xff]  ;;  %404 = vst [vmem:[%s9067_s6 + $0xa8] sm:$0xff] %v403_v21  ;;  %v409_v24 = vld [vmem:[%s9062_s5 + $0xc0] sm:$0xff] }
  0x21   : > { %406 = vst [vmem:[%s9067_s6 + $0xb0] sm:$0xff] %v405_v22  ;;  %408 = vst [vmem:[%s9067_s6 + $0xb8] sm:$0xff] %v407_v23  ;;  %v411_v25 = vld [vmem:[%s9062_s5 + $0xc8] sm:$0xff]  ;;  %v413_v26 = vld [vmem:[%s9062_s5 + $0xd0] sm:$0xff] }
  0x22   : > { %410 = vst [vmem:[%s9067_s6 + $0xc0] sm:$0xff] %v409_v24  ;;  %412 = vst [vmem:[%s9067_s6 + $0xc8] sm:$0xff] %v411_v25  ;;  %v415_v27 = vld [vmem:[%s9062_s5 + $0xd8] sm:$0xff]  ;;  %v417_v28 = vld [vmem:[%s9062_s5 + $0xe0] sm:$0xff] }
  0x23   : > { %414 = vst [vmem:[%s9067_s6 + $0xd0] sm:$0xff] %v413_v26  ;;  %v419_v29 = vld [vmem:[%s9062_s5 + $0xe8] sm:$0xff]  ;;  %416 = vst [vmem:[%s9067_s6 + $0xd8] sm:$0xff] %v415_v27  ;;  %v421_v30 = vld [vmem:[%s9062_s5 + $0xf0] sm:$0xff] }
  0x24   : > { %418 = vst [vmem:[%s9067_s6 + $0xe0] sm:$0xff] %v417_v28  ;;  %420 = vst [vmem:[%s9067_s6 + $0xe8] sm:$0xff] %v419_v29  ;;  %v423_v31 = vld [vmem:[%s9062_s5 + $0xf8] sm:$0xff]  ;;  %v425_v32 = vld [vmem:[%s9062_s5 + $0x200] sm:$0xff] }
  0x25   : > { %422 = vst [vmem:[%s9067_s6 + $0xf0] sm:$0xff] %v421_v30  ;;  %424 = vst [vmem:[%s9067_s6 + $0xf8] sm:$0xff] %v423_v31  ;;  %v427_v33 = vld [vmem:[%s9062_s5 + $0x208] sm:$0xff]  ;;  %v429_v34 = vld [vmem:[%s9062_s5 + $0x210] sm:$0xff] }
  0x26   : > { %426 = vst [vmem:[%s9067_s6 + $0x100] sm:$0xff] %v425_v32  ;;  %v431_v35 = vld [vmem:[%s9062_s5 + $0x218] sm:$0xff]  ;;  %428 = vst [vmem:[%s9067_s6 + $0x108] sm:$0xff] %v427_v33  ;;  %v433_v36 = vld [vmem:[%s9062_s5 + $0x220] sm:$0xff] }
  0x27   : > { %430 = vst [vmem:[%s9067_s6 + $0x110] sm:$0xff] %v429_v34  ;;  %432 = vst [vmem:[%s9067_s6 + $0x118] sm:$0xff] %v431_v35  ;;  %v435_v37 = vld [vmem:[%s9062_s5 + $0x228] sm:$0xff]  ;;  %v437_v38 = vld [vmem:[%s9062_s5 + $0x230] sm:$0xff] }
  0x28   : > { %434 = vst [vmem:[%s9067_s6 + $0x120] sm:$0xff] %v433_v36  ;;  %436 = vst [vmem:[%s9067_s6 + $0x128] sm:$0xff] %v435_v37  ;;  %v439_v39 = vld [vmem:[%s9062_s5 + $0x238] sm:$0xff]  ;;  %v441_v40 = vld [vmem:[%s9062_s5 + $0x240] sm:$0xff] }
  0x29   : > { %438 = vst [vmem:[%s9067_s6 + $0x130] sm:$0xff] %v437_v38  ;;  %v443_v41 = vld [vmem:[%s9062_s5 + $0x248] sm:$0xff]  ;;  %440 = vst [vmem:[%s9067_s6 + $0x138] sm:$0xff] %v439_v39  ;;  %v445_v42 = vld [vmem:[%s9062_s5 + $0x250] sm:$0xff] }
  0x2a   : > { %442 = vst [vmem:[%s9067_s6 + $0x140] sm:$0xff] %v441_v40  ;;  %444 = vst [vmem:[%s9067_s6 + $0x148] sm:$0xff] %v443_v41  ;;  %v447_v43 = vld [vmem:[%s9062_s5 + $0x258] sm:$0xff]  ;;  %v449_v44 = vld [vmem:[%s9062_s5 + $0x260] sm:$0xff] }
  0x2b   : > { %446 = vst [vmem:[%s9067_s6 + $0x150] sm:$0xff] %v445_v42  ;;  %448 = vst [vmem:[%s9067_s6 + $0x158] sm:$0xff] %v447_v43  ;;  %v451_v45 = vld [vmem:[%s9062_s5 + $0x268] sm:$0xff]  ;;  %v453_v46 = vld [vmem:[%s9062_s5 + $0x270] sm:$0xff] }
  0x2c   : > { %450 = vst [vmem:[%s9067_s6 + $0x160] sm:$0xff] %v449_v44  ;;  %v455_v47 = vld [vmem:[%s9062_s5 + $0x278] sm:$0xff]  ;;  %452 = vst [vmem:[%s9067_s6 + $0x168] sm:$0xff] %v451_v45  ;;  %v457_v48 = vld [vmem:[%s9062_s5 + $0x280] sm:$0xff] }
  0x2d   : > { %454 = vst [vmem:[%s9067_s6 + $0x170] sm:$0xff] %v453_v46  ;;  %456 = vst [vmem:[%s9067_s6 + $0x178] sm:$0xff] %v455_v47  ;;  %v459_v49 = vld [vmem:[%s9062_s5 + $0x288] sm:$0xff]  ;;  %v461_v50 = vld [vmem:[%s9062_s5 + $0x290] sm:$0xff] }
  0x2e   : > { %458 = vst [vmem:[%s9067_s6 + $0x180] sm:$0xff] %v457_v48  ;;  %460 = vst [vmem:[%s9067_s6 + $0x188] sm:$0xff] %v459_v49  ;;  %v463_v51 = vld [vmem:[%s9062_s5 + $0x298] sm:$0xff]  ;;  %v465_v52 = vld [vmem:[%s9062_s5 + $0x2a0] sm:$0xff] }
  0x2f   : > { %462 = vst [vmem:[%s9067_s6 + $0x190] sm:$0xff] %v461_v50  ;;  %v467_v53 = vld [vmem:[%s9062_s5 + $0x2a8] sm:$0xff]  ;;  %464 = vst [vmem:[%s9067_s6 + $0x198] sm:$0xff] %v463_v51  ;;  %v469_v54 = vld [vmem:[%s9062_s5 + $0x2b0] sm:$0xff] }
  0x30   : > { %466 = vst [vmem:[%s9067_s6 + $0x1a0] sm:$0xff] %v465_v52  ;;  %468 = vst [vmem:[%s9067_s6 + $0x1a8] sm:$0xff] %v467_v53  ;;  %v471_v55 = vld [vmem:[%s9062_s5 + $0x2b8] sm:$0xff]  ;;  %v473_v56 = vld [vmem:[%s9062_s5 + $0x2c0] sm:$0xff] }
  0x31   : > { %470 = vst [vmem:[%s9067_s6 + $0x1b0] sm:$0xff] %v469_v54  ;;  %472 = vst [vmem:[%s9067_s6 + $0x1b8] sm:$0xff] %v471_v55  ;;  %v475_v57 = vld [vmem:[%s9062_s5 + $0x2c8] sm:$0xff]  ;;  %v477_v58 = vld [vmem:[%s9062_s5 + $0x2d0] sm:$0xff] }
  0x32   : > { %474 = vst [vmem:[%s9067_s6 + $0x1c0] sm:$0xff] %v473_v56  ;;  %v479_v59 = vld [vmem:[%s9062_s5 + $0x2d8] sm:$0xff]  ;;  %476 = vst [vmem:[%s9067_s6 + $0x1c8] sm:$0xff] %v475_v57  ;;  %v481_v60 = vld [vmem:[%s9062_s5 + $0x2e0] sm:$0xff] }
  0x33   : > { %478 = vst [vmem:[%s9067_s6 + $0x1d0] sm:$0xff] %v477_v58  ;;  %480 = vst [vmem:[%s9067_s6 + $0x1d8] sm:$0xff] %v479_v59  ;;  %v483_v61 = vld [vmem:[%s9062_s5 + $0x2e8] sm:$0xff]  ;;  %v485_v62 = vld [vmem:[%s9062_s5 + $0x2f0] sm:$0xff] }
  0x34   : > { %482 = vst [vmem:[%s9067_s6 + $0x1e0] sm:$0xff] %v481_v60  ;;  %484 = vst [vmem:[%s9067_s6 + $0x1e8] sm:$0xff] %v483_v61  ;;  %v487_v63 = vld [vmem:[%s9062_s5 + $0x2f8] sm:$0xff] }
  0x35   : > { %486 = vst [vmem:[%s9067_s6 + $0x1f0] sm:$0xff] %v485_v62  ;;  %488 = vst [vmem:[%s9067_s6 + $0x1f8] sm:$0xff] %v487_v63 }
  0x36 PF: > { %p6879_p8 = scmp.ge.s32.totalorder %s8986_s19, 1  ;;  %p493_p9 = scmp.lt.s32.totalorder %s8986_s19, 3 }
  0x38   : > { %p494_p10 = pnand %p6879_p8, %p493_p9 }
  0x39   : > { %v8908_v0 = vld [vmem:[%s11198_s1 + $0x20] sm:$0xff] (!%p494_p10)   ;;  %vm550_vm0 = vcmask (!%p494_p10), 523264   ;;  %v9205_v2 = vld [vmem:[%s11198_s1 + $0x28] sm:$0xff] (!%p494_p10)   ;;  %v8988_v3 = vmov (!%p494_p10), 0.0   ;;  %vm553_vm1 = vcmask (!%p494_p10), 517120   ;;  %vm565_vm2 = vcmask (!%p494_p10), 516096  }
  0x3a   : > { %497 = sbr.rel (%p494_p10) target bundleno = 915 (0x393), region = 70  ;;  %v8909_v1 = vld [vmem:[%s11198_s1 + $0x80] sm:$0xff] (!%p494_p10)   ;;  %7699 = vmatprep.subr.bf16.mxu1 (!%p494_p10), %v8908_v0  ;;  %551 = vst.msk [vmem:[#allocation2] sm:$0xff] (!%p494_p10), %vm550_vm0, %v8988_v3  ;;  %552 = vst.msk [vmem:[#allocation2 + $0x8] sm:$0xff] (!%p494_p10), %vm550_vm0, %v8988_v3  ;;  %v9226_v4 = vld [vmem:[%s11198_s1 + $0x88] sm:$0xff] (!%p494_p10)   ;;  %s500_s23 = sand.u32 (!%p494_p10), 1, %s8970_s15  }
  0x3b   : > { %555 = vst.msk [vmem:[#allocation2 + $0x1b0] sm:$0xff] (!%p494_p10), %vm550_vm0, %v8988_v3  ;;  %556 = vst.msk [vmem:[#allocation2 + $0x1b8] sm:$0xff] (!%p494_p10), %vm550_vm0, %v8988_v3  ;;  %7987 = vmatprep.subr.bf16.mxu0 (!%p494_p10), %v8909_v1  ;;  %7700 = vmatpush3.bf16.msra.mxu1 (!%p494_p10), %v8908_v0  ;;  %v9236_v5 = vld [vmem:[%s11198_s1 + $0x30] sm:$0xff] (!%p494_p10)   ;;  %s9387_s27 = sshll.u32 (!%p494_p10), %s500_s23, 9  ;;  %v8914_v7 = vld [vmem:[%s11198_s1 + $0x38] sm:$0xff] (!%p494_p10)  }
  0x3c   : > { %559 = vst.msk [vmem:[#allocation2 + $0x198] sm:$0xff] (!%p494_p10), %vm550_vm0, %v8988_v3  ;;  %560 = vst.msk [vmem:[#allocation2 + $0x1a0] sm:$0xff] (!%p494_p10), %vm550_vm0, %v8988_v3  ;;  %7988 = vmatpush3.bf16.msra.mxu0 (!%p494_p10), %v8909_v1  ;;  %7701 = vmatprep.subr.bf16.mxu1 (!%p494_p10), %v9205_v2  ;;  %v8913_v6 = vld [vmem:[%s11198_s1 + $0x90] sm:$0xff] (!%p494_p10)   ;;  %s9396_s30 = scalar_lea.vmem (!%p494_p10), [#allocation3], %s9387_s27  ;;  %v8915_v10 = vld [vmem:[%s11198_s1 + $0x98] sm:$0xff] (!%p494_p10)   ;;  %s10770_s29 = scalar_lea.vmem (!%p494_p10), [#allocation4], %s9387_s27 }
  0x3d   : > { %562 = vst.msk [vmem:[#allocation2 + $0x348] sm:$0xff] (!%p494_p10), %vm550_vm0, %v8988_v3  ;;  %563 = vst.msk [vmem:[#allocation2 + $0x350] sm:$0xff] (!%p494_p10), %vm550_vm0, %v8988_v3  ;;  %7989 = vmatprep.subr.bf16.mxu0 (!%p494_p10), %v9226_v4  ;;  %v638_v8 = vld [vmem:[%s9396_s30] sm:$0xff] (!%p494_p10)  ;;  %v639_v9 = vld [vmem:[%s9396_s30 + $0x8] sm:$0xff] (!%p494_p10) }
  0x3e   : > { %554 = vst.msk [vmem:[#allocation2 + $0x10] sm:$0x3] (!%p494_p10), %vm553_vm1, %v8988_v3  ;;  %557 = vst.msk [vmem:[#allocation2 + $0x1c0] sm:$0x3] (!%p494_p10), %vm553_vm1, %v8988_v3  ;;  %v671_v12 = vmul.f32 (!%p494_p10), 0.5, %v638_v8  ;;  %v9403_v13 = vmul.f32 (!%p494_p10), 0.5, %v639_v9 }
  0x3f   : > { %561 = vst.msk [vmem:[#allocation2 + $0x1a8] sm:$0x3] (!%p494_p10), %vm553_vm1, %v8988_v3  ;;  %564 = vst.msk [vmem:[#allocation2 + $0x358] sm:$0x3] (!%p494_p10), %vm553_vm1, %v8988_v3  ;;  %7702 = vmatpush3.bf16.msra.mxu1 (!%p494_p10), %v9205_v2  ;;  %v9408_v15 = vld [vmem:[%s11198_s1] sm:$0xff] (!%p494_p10)   ;;  %v640_v17 = vld [vmem:[%s9396_s30 + $0x10] sm:$0xff] (!%p494_p10) }
  0x40   : > { %566 = vst.msk [vmem:[#allocation2] sm:$0x1] (!%p494_p10), %vm565_vm2, %v8988_v3  ;;  %602 = vst.msk [vmem:[#allocation2 + $0x11] sm:$0x1] (!%p494_p10), %vm565_vm2, %v8988_v3  ;;  %7990 = vmatpush3.bf16.msra.mxu0 (!%p494_p10), %v9226_v4  ;;  %7703 = vmatprep.subr.bf16.mxu1 (!%p494_p10), %v9236_v5  ;;  %vm735_vm3 = vcmp.ge.f32.partialorder (!%p494_p10), %v671_v12, 1.0  ;;  %vm736_vm4 = vcmp.ge.f32.partialorder (!%p494_p10), %v9403_v13, 1.0 }
  0x41   : > { %567 = vst.msk [vmem:[#allocation2 + $0x18] sm:$0x1] %vm565_vm2, %v8988_v3  ;;  %568 = vst.msk [vmem:[#allocation2 + $0x30] sm:$0x1] %vm565_vm2, %v8988_v3  ;;  %7991 = vmatprep.subr.bf16.mxu0 %v8913_v6  ;;  %v1292_v11 = vld [vmem:[#allocation2 + $0x1] sm:$0xff]  ;;  %v641_v18 = vld [vmem:[%s9396_s30 + $0x18] sm:$0xff] }
  0x42   : > { %569 = vst.msk [vmem:[#allocation2 + $0x48] sm:$0x1] %vm565_vm2, %v8988_v3  ;;  %570 = vst.msk [vmem:[#allocation2 + $0x60] sm:$0x1] %vm565_vm2, %v8988_v3  ;;  %v6882_v19 = vsel %vm735_vm3, 1.0, %v8988_v3  ;;  %v6883_v20 = vsel %vm736_vm4, 1.0, %v8988_v3 }
  0x43   : > { %571 = vst.msk [vmem:[#allocation2 + $0x78] sm:$0x1] %vm565_vm2, %v8988_v3  ;;  %572 = vst.msk [vmem:[#allocation2 + $0x90] sm:$0x1] %vm565_vm2, %v8988_v3  ;;  %7704 = vmatpush3.bf16.msra.mxu1 %v9236_v5  ;;  %v9416_v21 = vmul.f32 0.5, %v640_v17  ;;  %v9418_v22 = vmul.f32 0.5, %v641_v18 }
  0x44   : > { %573 = vst.msk [vmem:[#allocation2 + $0xa8] sm:$0x1] %vm565_vm2, %v8988_v3  ;;  %574 = vst.msk [vmem:[#allocation2 + $0xc0] sm:$0x1] %vm565_vm2, %v8988_v3  ;;  %7992 = vmatpush3.bf16.msra.mxu0 %v8913_v6  ;;  %7705 = vmatprep.subr.bf16.mxu1 %v8914_v7  ;;  %v9426_v23 = vld [vmem:[%s11198_s1 + $0xa0] sm:$0xff]   ;;  %v643_v25 = vld [vmem:[%s9396_s30 + $0x28] sm:$0xff] }
  0x45   : > { %575 = vst.msk [vmem:[#allocation2 + $0xd8] sm:$0x1] %vm565_vm2, %v8988_v3  ;;  %576 = vst.msk [vmem:[#allocation2 + $0xf0] sm:$0x1] %vm565_vm2, %v8988_v3  ;;  %v1293_v14 = vld [vmem:[#allocation2 + $0x9] sm:$0xff]  ;;  %7993 = vmatprep.subr.bf16.mxu0 %v8915_v10  ;;  %v642_v24 = vld [vmem:[%s9396_s30 + $0x20] sm:$0xff] }
  0x46   : > { %577 = vst.msk [vmem:[#allocation2 + $0x108] sm:$0x1] %vm565_vm2, %v8988_v3  ;;  %578 = vst.msk [vmem:[#allocation2 + $0x120] sm:$0x1] %vm565_vm2, %v8988_v3  ;;  %v1356_v16 = vpack.c.bf16 %v1293_v14, %v1292_v11  ;;  %vm737_vm5 = vcmp.ge.f32.partialorder %v9416_v21, 1.0  ;;  %vm738_vm6 = vcmp.ge.f32.partialorder %v9418_v22, 1.0 }
  0x47   : > { %579 = vst.msk [vmem:[#allocation2 + $0x138] sm:$0x1] %vm565_vm2, %v8988_v3  ;;  %580 = vst.msk [vmem:[#allocation2 + $0x150] sm:$0x1] %vm565_vm2, %v8988_v3  ;;  %v9432_v26 = vmul.f32 0.5, %v642_v24  ;;  %v9434_v27 = vmul.f32 0.5, %v643_v25  ;;  %7706 = vmatpush3.bf16.msra.mxu1 %v8914_v7 }
  0x48   : > { %581 = vst.msk [vmem:[#allocation2 + $0x168] sm:$0x1] %vm565_vm2, %v8988_v3  ;;  %582 = vst.msk [vmem:[#allocation2 + $0x180] sm:$0x1] %vm565_vm2, %v8988_v3  ;;  %7707 = vmatprep.mubr.msk.bf16.mxu1 %vm550_vm0, %v1356_v16  ;;  %v9437_v28 = vsel %vm737_vm5, 1.0, %v8988_v3  ;;  %v9440_v29 = vsel %vm738_vm6, 1.0, %v8988_v3  ;;  %7994 = vmatpush3.bf16.msra.mxu0 %v8915_v10 }
  0x49   : > { %585 = vst.msk [vmem:[#allocation2 + $0x1c8] sm:$0x1] %vm565_vm2, %v8988_v3  ;;  %586 = vst.msk [vmem:[#allocation2 + $0x1e0] sm:$0x1] %vm565_vm2, %v8988_v3  ;;  %v644_v30 = vld [vmem:[%s9396_s30 + $0x30] sm:$0xff]  ;;  %v831_v31 = vsub.f32 1.0, %v6882_v19  ;;  %7771 = vmatprep.subr.bf16.mxu1 %v9408_v15  ;;  %8059 = vmatprep.subr.bf16.mxu0 %v9426_v23 }
  0x4a   : > { %587 = vst.msk [vmem:[#allocation2 + $0x1f8] sm:$0x1] %vm565_vm2, %v8988_v3  ;;  %588 = vst.msk [vmem:[#allocation2 + $0x210] sm:$0x1] %vm565_vm2, %v8988_v3  ;;  %vm739_vm7 = vcmp.ge.f32.partialorder %v9432_v26, 1.0  ;;  %vm740_vm8 = vcmp.ge.f32.partialorder %v9434_v27, 1.0 }
  0x4b   : > { %589 = vst.msk [vmem:[#allocation2 + $0x228] sm:$0x1] %vm565_vm2, %v8988_v3  ;;  %590 = vst.msk [vmem:[#allocation2 + $0x240] sm:$0x1] %vm565_vm2, %v8988_v3  ;;  %v645_v32 = vld [vmem:[%s9396_s30 + $0x38] sm:$0xff]  ;;  %v646_v33 = vld [vmem:[%s9396_s30 + $0x40] sm:$0xff]  ;;  %v9472_v44 = vmul.f32 %v831_v31, %v671_v12 }
  0x4c   : > { %591 = vst.msk [vmem:[#allocation2 + $0x258] sm:$0x1] %vm565_vm2, %v8988_v3  ;;  %592 = vst.msk [vmem:[#allocation2 + $0x270] sm:$0x1] %vm565_vm2, %v8988_v3  ;;  %v647_v34 = vld [vmem:[%s9396_s30 + $0x48] sm:$0xff]  ;;  %v9455_v35 = vsel %vm739_vm7, 1.0, %v8988_v3 }
  0x4d   : > { %593 = vst.msk [vmem:[#allocation2 + $0x288] sm:$0x1] %vm565_vm2, %v8988_v3  ;;  %594 = vst.msk [vmem:[#allocation2 + $0x2a0] sm:$0x1] %vm565_vm2, %v8988_v3  ;;  %v9458_v36 = vsel %vm740_vm8, 1.0, %v8988_v3  ;;  %v832_v37 = vsub.f32 1.0, %v6883_v20 }
  0x4e   : > { %595 = vst.msk [vmem:[#allocation2 + $0x2b8] sm:$0x1] %vm565_vm2, %v8988_v3  ;;  %596 = vst.msk [vmem:[#allocation2 + $0x2d0] sm:$0x1] %vm565_vm2, %v8988_v3  ;;  %v9464_v38 = vmul.f32 0.5, %v644_v30  ;;  %v9466_v39 = vmul.f32 0.5, %v645_v32 }
  0x4f   : > { %597 = vst.msk [vmem:[#allocation2 + $0x2e8] sm:$0x1] %vm565_vm2, %v8988_v3  ;;  %598 = vst.msk [vmem:[#allocation2 + $0x300] sm:$0x1] %vm565_vm2, %v8988_v3  ;;  %v9468_v42 = vmul.f32 0.5, %v646_v33  ;;  %v9470_v43 = vmul.f32 0.5, %v647_v34  ;;  %v9493_v52 = vmul.f32 %v832_v37, %v9403_v13 }
  0x50   : > { %599 = vst.msk [vmem:[#allocation2 + $0x318] sm:$0x1] %vm565_vm2, %v8988_v3  ;;  %600 = vst.msk [vmem:[#allocation2 + $0x330] sm:$0x1] %vm565_vm2, %v8988_v3  ;;  %v9475_v45 = vld [vmem:[%s9396_s30 + $0x100] sm:$0xff]  ;;  %vm741_vm9 = vcmp.ge.f32.partialorder %v9464_v38, 1.0 }
  0x51   : > { %603 = vst.msk [vmem:[#allocation2 + $0x29] sm:$0x1] %vm565_vm2, %v8988_v3  ;;  %604 = vst.msk [vmem:[#allocation2 + $0x41] sm:$0x1] %vm565_vm2, %v8988_v3  ;;  %v8919_v47 = vld [vmem:[%s11198_s1 + $0x8] sm:$0xff]   ;;  %vm742_vm10 = vcmp.ge.f32.partialorder %v9466_v39, 1.0  ;;  %v961_v5 = vsub.f32 %v9475_v45, %v9472_v44 }
  0x52   : > { %605 = vst.msk [vmem:[#allocation2 + $0x59] sm:$0x1] %vm565_vm2, %v8988_v3  ;;  %606 = vst.msk [vmem:[#allocation2 + $0x71] sm:$0x1] %vm565_vm2, %v8988_v3  ;;  %v9482_v48 = vld [vmem:[%s9396_s30 + $0x108] sm:$0xff]  ;;  %v9486_v49 = vsel %vm741_vm9, 1.0, %v8988_v3 }
  0x53   : > { %607 = vst.msk [vmem:[#allocation2 + $0x89] sm:$0x1] %vm565_vm2, %v8988_v3  ;;  %608 = vst.msk [vmem:[#allocation2 + $0xa1] sm:$0x1] %vm565_vm2, %v8988_v3  ;;  %vm743_vm11 = vcmp.ge.f32.partialorder %v9468_v42, 1.0  ;;  %vm744_vm12 = vcmp.ge.f32.partialorder %v9470_v43, 1.0  ;;  %v962_v9 = vsub.f32 %v9482_v48, %v9493_v52 }
  0x54   : > { %609 = vst.msk [vmem:[#allocation2 + $0xb9] sm:$0x1] %vm565_vm2, %v8988_v3  ;;  %610 = vst.msk [vmem:[#allocation2 + $0xd1] sm:$0x1] %vm565_vm2, %v8988_v3  ;;  %v648_v50 = vld [vmem:[%s9396_s30 + $0x50] sm:$0xff]  ;;  %v649_v51 = vld [vmem:[%s9396_s30 + $0x58] sm:$0xff] }
  0x55   : > { %611 = vst.msk [vmem:[#allocation2 + $0xe9] sm:$0x1] %vm565_vm2, %v8988_v3  ;;  %612 = vst.msk [vmem:[#allocation2 + $0x101] sm:$0x1] %vm565_vm2, %v8988_v3  ;;  %v9498_v55 = vsel %vm742_vm10, 1.0, %v8988_v3  ;;  %v650_v56 = vld [vmem:[%s9396_s30 + $0x60] sm:$0xff] }
  0x56   : > { %613 = vst.msk [vmem:[#allocation2 + $0x119] sm:$0x1] %vm565_vm2, %v8988_v3  ;;  %614 = vst.msk [vmem:[#allocation2 + $0x131] sm:$0x1] %vm565_vm2, %v8988_v3  ;;  %v9507_v58 = vsel %vm743_vm11, 1.0, %v8988_v3  ;;  %v9510_v59 = vsel %vm744_vm12, 1.0, %v8988_v3 }
  0x57   : > { %615 = vst.msk [vmem:[#allocation2 + $0x149] sm:$0x1] %vm565_vm2, %v8988_v3  ;;  %616 = vst.msk [vmem:[#allocation2 + $0x161] sm:$0x1] %vm565_vm2, %v8988_v3  ;;  %v8918_v60 = vld [vmem:[%s11198_s1 + $0xa8] sm:$0xff]   ;;  %v833_v62 = vsub.f32 1.0, %v9437_v28 }
  0x58   : > { %617 = vst.msk [vmem:[#allocation2 + $0x179] sm:$0x1] %vm565_vm2, %v8988_v3  ;;  %618 = vst.msk [vmem:[#allocation2 + $0x191] sm:$0x1] %vm565_vm2, %v8988_v3  ;;  %v651_v61 = vld [vmem:[%s9396_s30 + $0x68] sm:$0xff]  ;;  %v834_v63 = vsub.f32 1.0, %v9440_v29 }
  0x59   : > { %621 = vst.msk [vmem:[#allocation2 + $0x1d9] sm:$0x1] %vm565_vm2, %v8988_v3  ;;  %622 = vst.msk [vmem:[#allocation2 + $0x1f1] sm:$0x1] %vm565_vm2, %v8988_v3  ;;  %v9522_v2 = vmul.f32 0.5, %v648_v50  ;;  %v652_v4 = vld [vmem:[%s9396_s30 + $0x70] sm:$0xff]  ;;  %v9576_v31 = vmul.f32 %v833_v62, %v9416_v21 }
  0x5a   : > { %623 = vst.msk [vmem:[#allocation2 + $0x209] sm:$0x1] %vm565_vm2, %v8988_v3  ;;  %624 = vst.msk [vmem:[#allocation2 + $0x221] sm:$0x1] %vm565_vm2, %v8988_v3  ;;  %v9529_v7 = vmul.f32 0.5, %v649_v51  ;;  %v9531_v8 = vmul.f32 0.5, %v650_v56 }
  0x5b   : > { %625 = vst.msk [vmem:[#allocation2 + $0x239] sm:$0x1] %vm565_vm2, %v8988_v3  ;;  %626 = vst.msk [vmem:[#allocation2 + $0x251] sm:$0x1] %vm565_vm2, %v8988_v3  ;;  %v835_v10 = vsub.f32 1.0, %v9455_v35  ;;  %vm745_vm13 = vcmp.ge.f32.partialorder %v9522_v2, 1.0 }
  0x5c   : > { %627 = vst.msk [vmem:[#allocation2 + $0x269] sm:$0x1] %vm565_vm2, %v8988_v3  ;;  %628 = vst.msk [vmem:[#allocation2 + $0x281] sm:$0x1] %vm565_vm2, %v8988_v3  ;;  %v9538_v11 = vmul.f32 0.5, %v651_v61  ;;  %v653_v12 = vld [vmem:[%s9396_s30 + $0x78] sm:$0xff] }
  0x5d   : > { %629 = vst.msk [vmem:[#allocation2 + $0x299] sm:$0x1] %vm565_vm2, %v8988_v3  ;;  %630 = vst.msk [vmem:[#allocation2 + $0x2b1] sm:$0x1] %vm565_vm2, %v8988_v3  ;;  %vm746_vm14 = vcmp.ge.f32.partialorder %v9529_v7, 1.0  ;;  %v9544_v13 = vsel %vm745_vm13, 1.0, %v8988_v3 }
  0x5e   : > { %631 = vst.msk [vmem:[#allocation2 + $0x2c9] sm:$0x1] %vm565_vm2, %v8988_v3  ;;  %632 = vst.msk [vmem:[#allocation2 + $0x2e1] sm:$0x1] %vm565_vm2, %v8988_v3  ;;  %vm747_vm15 = vcmp.ge.f32.partialorder %v9531_v8, 1.0  ;;  %v9547_v14 = vmul.f32 0.5, %v652_v4 }
  0x5f   : > { %633 = vst.msk [vmem:[#allocation2 + $0x2f9] sm:$0x1] %vm565_vm2, %v8988_v3  ;;  %634 = vst.msk [vmem:[#allocation2 + $0x311] sm:$0x1] %vm565_vm2, %v8988_v3  ;;  %v8920_v16 = vld [vmem:[%s11198_s1 + $0xb0] sm:$0xff]   ;;  %v9554_v17 = vsel %vm746_vm14, 1.0, %v8988_v3 }
  0x60   : > { %635 = vst.msk [vmem:[#allocation2 + $0x329] sm:$0x1] %vm565_vm2, %v8988_v3  ;;  %636 = vst.msk [vmem:[#allocation2 + $0x341] sm:$0x1] %vm565_vm2, %v8988_v3  ;;  %vm748_vm1 = vcmp.ge.f32.partialorder %v9538_v11, 1.0  ;;  %v9560_v18 = vsel %vm747_vm15, 1.0, %v8988_v3 }
  0x61   : > { %583 = vst.msk [vmem:[#allocation2 + $0x198] sm:$0x1] %vm565_vm2, %v8988_v3  ;;  %584 = vst.msk [vmem:[#allocation2 + $0x1b0] sm:$0x1] %vm565_vm2, %v8988_v3  ;;  %v9567_v24 = vsel %vm748_vm1, 1.0, %v8988_v3  ;;  %v9571_v25 = vmul.f32 0.5, %v653_v12 }
  0x62   : > { %601 = vst.msk [vmem:[#allocation2 + $0x348] sm:$0x1] %vm565_vm2, %v8988_v3  ;;  %619 = vst.msk [vmem:[#allocation2 + $0x1a9] sm:$0x1] %vm565_vm2, %v8988_v3  ;;  %v657_v30 = vld [vmem:[%s9396_s30 + $0x98] sm:$0xff]  ;;  %v658_v34 = vld [vmem:[%s9396_s30 + $0xa0] sm:$0xff] }
  0x63   : > { %620 = vst.msk [vmem:[#allocation2 + $0x1c1] sm:$0x1] %vm565_vm2, %v8988_v3  ;;  %637 = vst.msk [vmem:[#allocation2 + $0x359] sm:$0x1] %vm565_vm2, %v8988_v3  ;;  %vm749_vm2 = vcmp.ge.f32.partialorder %v9547_v14, 1.0  ;;  %vm750_vm3 = vcmp.ge.f32.partialorder %v9571_v25, 1.0 }
  0x64   : > { %896 = vst.msk [vmem:[#allocation2 + $0x19] sm:$0xff] %vm550_vm0, %v6882_v19  ;;  %897 = vst.msk [vmem:[#allocation2 + $0x21] sm:$0xff] %vm550_vm0, %v6883_v20  ;;  %v655_v19 = vld [vmem:[%s9396_s30 + $0x88] sm:$0xff]  ;;  %v836_v20 = vsub.f32 1.0, %v9458_v36  ;;  %v8921_v21 = vld [vmem:[%s11198_s1 + $0xb8] sm:$0xff]   ;;  %v837_v45 = vsub.f32 1.0, %v9486_v49 }
  0x65   : > { %898 = vst.msk [vmem:[#allocation2 + $0x31] sm:$0xff] %vm550_vm0, %v9437_v28  ;;  %899 = vst.msk [vmem:[#allocation2 + $0x39] sm:$0xff] %vm550_vm0, %v9440_v29  ;;  %v656_v28 = vld [vmem:[%s9396_s30 + $0x90] sm:$0xff]  ;;  %v9594_v48 = vsel %vm750_vm3, 1.0, %v8988_v3  ;;  %v838_v50 = vsub.f32 1.0, %v9498_v55  ;;  %v839_v51 = vsub.f32 1.0, %v9507_v58 }
  0x66   : > { %900 = vst.msk [vmem:[#allocation2 + $0x49] sm:$0xff] %vm550_vm0, %v9455_v35  ;;  %901 = vst.msk [vmem:[#allocation2 + $0x51] sm:$0xff] %vm550_vm0, %v9458_v36  ;;  %v993_v35 = vmul.f32 0.5, %v961_v5  ;;  %v994_v36 = vmul.f32 0.5, %v962_v9  ;;  %v9614_v56 = vmul.f32 0.5, %v657_v30  ;;  %v840_v61 = vsub.f32 1.0, %v9510_v59 }
  0x67   : > { %902 = vst.msk [vmem:[#allocation2 + $0x61] sm:$0xff] %vm550_vm0, %v9486_v49  ;;  %903 = vst.msk [vmem:[#allocation2 + $0x69] sm:$0xff] %vm550_vm0, %v9498_v55  ;;  %v9604_v49 = vmul.f32 0.5, %v655_v19  ;;  %v9612_v55 = vmul.f32 0.5, %v656_v28  ;;  %v660_v9 = vld [vmem:[%s9396_s30 + $0xb0] sm:$0xff]  ;;  %v661_v12 = vld [vmem:[%s9396_s30 + $0xb8] sm:$0xff] }
  0x68   : > { %904 = vst.msk [vmem:[#allocation2 + $0x79] sm:$0xff] %vm550_vm0, %v9507_v58  ;;  %905 = vst.msk [vmem:[#allocation2 + $0x81] sm:$0xff] %vm550_vm0, %v9510_v59  ;;  %v9621_v58 = vmul.f32 %v834_v63, %v9418_v22  ;;  %vm754_vm7 = vcmp.ge.f32.partialorder %v9614_v56, 1.0  ;;  %v9641_v59 = vadd.f32 %v993_v35, %v9472_v44  ;;  %v9694_v30 = vmul.f32 0.5, %v660_v9  ;;  %v668_v9 = vld [vmem:[%s9396_s30 + $0xf0] sm:$0xff]  ;;  %s7374_s27 = sshll.u32 (%p9049_p6), %s8978_s17, 8 }
  0x69   : > { %906 = vst.msk [vmem:[#allocation2 + $0x91] sm:$0xff] %vm550_vm0, %v9544_v13  ;;  %907 = vst.msk [vmem:[#allocation2 + $0x99] sm:$0xff] %vm550_vm0, %v9554_v17  ;;  %vm752_vm5 = vcmp.ge.f32.partialorder %v9604_v49, 1.0  ;;  %vm753_vm6 = vcmp.ge.f32.partialorder %v9612_v55, 1.0  ;;  %v842_v35 = vsub.f32 1.0, %v9554_v17  ;;  %s11055_s7 = scalar_lea.vmem (%p9049_p6), %s11201_s4, %s7374_s27 }
  0x6a   : > { %908 = vst.msk [vmem:[#allocation2 + $0xa9] sm:$0xff] %vm550_vm0, %v9560_v18  ;;  %909 = vst.msk [vmem:[#allocation2 + $0xb1] sm:$0xff] %vm550_vm0, %v9567_v24  ;;  %v9634_v63 = vsel %vm752_vm5, 1.0, %v8988_v3  ;;  %vm757_vm10 = vcmp.ge.f32.partialorder %v9694_v30, 1.0  ;;  %vm1057_vm12 = vcmp.ge.f32.partialorder %v9641_v59, 1.0 }
  0x6b   : > { %v3371_v40 = vld [vmem:[#allocation2 + $0x19] sm:$0xff]  ;;  %v3372_v41 = vld [vmem:[#allocation2 + $0x21] sm:$0xff]  ;;  %911 = vst.msk [vmem:[#allocation2 + $0xc9] sm:$0xff] %vm550_vm0, %v9594_v48  ;;  %913 = vst.msk [vmem:[#allocation2 + $0xe1] sm:$0xff] %vm550_vm0, %v9634_v63 }
  0x6c   : > { %v3435_v46 = vpack.c.bf16 %v3372_v41, %v3371_v40  ;;  %v3373_v53 = vld [vmem:[#allocation2 + $0x31] sm:$0xff]  ;;  %v3374_v54 = vld [vmem:[#allocation2 + $0x39] sm:$0xff] }
  0x6d   : > { %v3436_v57 = vpack.c.bf16 %v3374_v54, %v3373_v53  ;;  %v3375_v0 = vld [vmem:[#allocation2 + $0x49] sm:$0xff]  ;;  %v3376_v1 = vld [vmem:[#allocation2 + $0x51] sm:$0xff] }
  0x6e   : > { %7995 = vmatprep.mubr.msk.bf16.mxu0 %vm550_vm0, %v3435_v46  ;;  %7708 = vmatmul.mubr.msk.bf16.vlgmr.msra.gmra.mrb[0].mxu1 %vm550_vm0, %v3435_v46  ;;  %v3437_v6 = vpack.c.bf16 %v3376_v1, %v3375_v0  ;;  %v3378_v32 = vld [vmem:[#allocation2 + $0x69] sm:$0xff]  ;;  %v9644_v1 = vmul.f32 %v836_v20, %v9434_v27  ;;  %v9657_v27 = vsel %vm754_vm7, 1.0, %v8988_v3 }
  0x6f   : > { %7772 = vmatpush3.bf16.msra.mxu1 %v9408_v15  ;;  %7996 = vmatmul.mubr.msk.bf16.vlgmr.msra.gmra.mrb[0].mxu0 %vm550_vm0, %v3436_v57  ;;  %v654_v15 = vld [vmem:[%s9396_s30 + $0x80] sm:$0xff]  ;;  %v659_v53 = vld [vmem:[%s9396_s30 + $0xa8] sm:$0xff]  ;;  %v8922_v0 = vld [vmem:[%s11198_s1 + $0x10] sm:$0xff]   ;;  %915 = vst.msk [vmem:[#allocation2 + $0xf9] sm:$0xff] %vm550_vm0, %v9657_v27 }
  0x70   : > { %7773 = vmatprep.subr.bf16.mxu1 %v8919_v47  ;;  %7711 = vmatprep.mubr.msk.bf16.mxu1 %vm550_vm0, %v3436_v57  ;;  %v9582_v33 = vmul.f32 0.5, %v654_v15  ;;  %v3379_v40 = vld [vmem:[#allocation2 + $0x79] sm:$0xff]  ;;  %v3380_v41 = vld [vmem:[#allocation2 + $0x81] sm:$0xff]  ;;  %v9616_v57 = vmul.f32 0.5, %v658_v34  ;;  %v3381_v62 = vld [vmem:[#allocation2 + $0x91] sm:$0xff]  ;;  %v841_v34 = vsub.f32 1.0, %v9544_v13 }
  0x71   : > { %8060 = vmatpush3.bf16.msra.mxu0 %v9426_v23  ;;  %7999 = vmatprep.mubr.msk.bf16.mxu0 %vm550_vm0, %v3437_v6  ;;  %v3377_v23 = vld [vmem:[#allocation2 + $0x61] sm:$0xff]  ;;  %v3439_v46 = vpack.c.bf16 %v3380_v41, %v3379_v40  ;;  %v3382_v29 = vld [vmem:[#allocation2 + $0x99] sm:$0xff]  ;;  %v3383_v22 = vld [vmem:[#allocation2 + $0xa9] sm:$0xff] }
  0x72   : > { %8061 = vmatprep.subr.bf16.mxu0 %v8918_v60  ;;  %v3438_v37 = vpack.c.bf16 %v3378_v32, %v3377_v23  ;;  %vm751_vm4 = vcmp.ge.f32.partialorder %v9582_v33, 1.0  ;;  %v3440_v4 = vpack.c.bf16 %v3382_v29, %v3381_v62  ;;  %v3384_v5 = vld [vmem:[#allocation2 + $0xb1] sm:$0xff]  ;;  %vm755_vm8 = vcmp.ge.f32.partialorder %v9616_v57, 1.0  ;;  %v662_v15 = vld [vmem:[%s9396_s30 + $0xc0] sm:$0xff]  ;;  %v663_v20 = vld [vmem:[%s9396_s30 + $0xc8] sm:$0xff] }
  0x73   : > { %7774 = vmatpush3.bf16.msra.mxu1 %v8919_v47  ;;  %v9591_v47 = vsel %vm749_vm2, 1.0, %v8988_v3  ;;  %v9610_v54 = vsel %vm751_vm4, 1.0, %v8988_v3  ;;  %v3441_v44 = vpack.c.bf16 %v3384_v5, %v3383_v22  ;;  %v9675_v19 = vsel %vm755_vm8, 1.0, %v8988_v3  ;;  %v9681_v23 = vld [vmem:[%s11198_s1 + $0xc0] sm:$0xff]   ;;  %v664_v32 = vld [vmem:[%s9396_s30 + $0xd0] sm:$0xff] }
  0x74   : > { %910 = vst.msk [vmem:[#allocation2 + $0xc1] sm:$0xff] %vm550_vm0, %v9591_v47  ;;  %912 = vst.msk [vmem:[#allocation2 + $0xd9] sm:$0xff] %vm550_vm0, %v9610_v54  ;;  %7775 = vmatprep.subr.bf16.mxu1 %v8922_v0  ;;  %v3386_v13 = vld [vmem:[#allocation2 + $0xc9] sm:$0xff]  ;;  %v9709_v17 = vmul.f32 0.5, %v662_v15  ;;  %v9711_v40 = vmul.f32 0.5, %v663_v20  ;;  %v9745_v29 = vmul.f32 %v842_v35, %v9529_v7 }
  0x75   : > { %8062 = vmatpush3.bf16.msra.mxu0 %v8918_v60  ;;  %v9624_v60 = vmul.f32 %v835_v10, %v9432_v26  ;;  %v9638_v26 = vmul.f32 0.5, %v659_v53  ;;  %v9653_v10 = vadd.f32 %v994_v36, %v9493_v52  ;;  %v9668_v52 = vmul.f32 %v838_v50, %v9466_v39  ;;  %916 = vst.msk [vmem:[#allocation2 + $0x109] sm:$0xff] %vm550_vm0, %v9675_v19  ;;  %v3388_v50 = vld [vmem:[#allocation2 + $0xe1] sm:$0xff] }
  0x76   : > { %7712 = vmatmul.mubr.msk.bf16.gmra.mrb[4].mxu1 %vm550_vm0, %v3437_v6  ;;  %8063 = vmatprep.subr.bf16.mxu0 %v8920_v16  ;;  %v9649_v6 = vsel %vm753_vm6, 1.0, %v8988_v3  ;;  %v9687_v39 = vmul.f32 %v840_v61, %v9470_v43  ;;  %v9703_v43 = vmul.f32 0.5, %v661_v12  ;;  %v844_v36 = vsub.f32 1.0, %v9567_v24  ;;  %v665_v24 = vld [vmem:[%s9396_s30 + $0xd8] sm:$0xff] }
  0x77   : > { %8000 = vmatmul.mubr.msk.bf16.gmra.mrb[4].mxu0 %vm550_vm0, %v3438_v37  ;;  %7715 = vmatprep.mubr.msk.bf16.mxu1 %vm550_vm0, %v3438_v37  ;;  %914 = vst.msk [vmem:[#allocation2 + $0xf1] sm:$0xff] %vm550_vm0, %v9649_v6  ;;  %vm756_vm9 = vcmp.ge.f32.partialorder %v9638_v26, 1.0  ;;  %vm759_vm13 = vcmp.ge.f32.partialorder %v9709_v17, 1.0  ;;  %vm760_vm14 = vcmp.ge.f32.partialorder %v9711_v40, 1.0  ;;  %vm1058_vm15 = vcmp.ge.f32.partialorder %v9653_v10, 1.0  ;;  %v3390_v35 = vld [vmem:[#allocation2 + $0xf9] sm:$0xff] }
  0x78   : > { %8003 = vmatprep.mubr.msk.bf16.mxu0 %vm550_vm0, %v3439_v46  ;;  %7776 = vmatpush3.bf16.msra.mxu1 %v8922_v0  ;;  %v9690_v28 = vsel %vm756_vm9, 1.0, %v8988_v3  ;;  %vm758_vm11 = vcmp.ge.f32.partialorder %v9703_v43, 1.0  ;;  %v847_v61 = vsub.f32 1.0, %v9610_v54  ;;  %v9739_v62 = vsel %vm760_vm14, 1.0, %v8988_v3 }
  0x79   : > { %8064 = vmatpush3.bf16.msra.mxu0 %v8920_v16  ;;  %v9665_v16 = vmul.f32 %v837_v45, %v9464_v38  ;;  %v9684_v38 = vmul.f32 %v839_v51, %v9468_v42  ;;  %v843_v42 = vsub.f32 1.0, %v9560_v18  ;;  %917 = vst.msk [vmem:[#allocation2 + $0x111] sm:$0xff] %vm550_vm0, %v9690_v28  ;;  %v845_v18 = vsub.f32 1.0, %v9591_v47  ;;  %v666_v47 = vld [vmem:[%s9396_s30 + $0xe0] sm:$0xff]  ;;  %921 = vst.msk [vmem:[#allocation2 + $0x141] sm:$0xff] %vm550_vm0, %v9739_v62 }
  0x7a   : > { %8065 = vmatprep.subr.bf16.mxu0 %v8921_v21  ;;  %v9719_v45 = vmul.f32 0.5, %v664_v32  ;;  %v9724_v51 = vsel %vm758_vm11, 1.0, %v8988_v3  ;;  %v9742_v0 = vmul.f32 %v841_v34, %v9522_v2  ;;  %v9752_v22 = vmul.f32 0.5, %v665_v24 }
  0x7b   : > { %v3385_v37 = vld [vmem:[#allocation2 + $0xc1] sm:$0xff]  ;;  %v3387_v41 = vld [vmem:[#allocation2 + $0xd9] sm:$0xff]  ;;  %919 = vst.msk [vmem:[#allocation2 + $0x129] sm:$0xff] %vm550_vm0, %v9724_v51  ;;  %v9756_v5 = vmul.f32 %v843_v42, %v9531_v8  ;;  %v9759_v2 = vmul.f32 %v844_v36, %v9538_v11  ;;  %v9763_v7 = vmul.f32 0.5, %v666_v47  ;;  %v9768_v12 = vmul.f32 %v845_v18, %v9547_v14 }
  0x7c   : > { %v3442_v53 = vpack.c.bf16 %v3386_v13, %v3385_v37  ;;  %v3443_v54 = vpack.c.bf16 %v3388_v50, %v3387_v41  ;;  %vm761_vm1 = vcmp.ge.f32.partialorder %v9719_v45, 1.0  ;;  %vm762_vm2 = vcmp.ge.f32.partialorder %v9752_v22, 1.0  ;;  %v3391_v37 = vld [vmem:[#allocation2 + $0x109] sm:$0xff]  ;;  %v6918_v50 = vld [vmem:[%s9396_s30 + $0x120] sm:$0xff] }
  0x7d   : > { %8066 = vmatpush3.bf16.msra.mxu0 %v8921_v21  ;;  %v9716_v21 = vsel %vm757_vm10, 1.0, %v8988_v3  ;;  %v9775_v8 = vsel %vm761_vm1, 1.0, %v8988_v3  ;;  %v848_v11 = vsub.f32 1.0, %v9634_v63  ;;  %v9780_v20 = vmul.f32 %v847_v61, %v9582_v33 }
  0x7e   : > { %7716 = vmatmul.mubr.msk.bf16.gmra.mrb[8].mxu1 %vm550_vm0, %v3439_v46  ;;  %8131 = vmatprep.subr.bf16.mxu0 %v9681_v23  ;;  %v846_v46 = vsub.f32 1.0, %v9594_v48  ;;  %918 = vst.msk [vmem:[#allocation2 + $0x121] sm:$0xff] %vm550_vm0, %v9716_v21  ;;  %v9736_v48 = vsel %vm759_vm13, 1.0, %v8988_v3  ;;  %v9783_v32 = vsel %vm762_vm2, 1.0, %v8988_v3  ;;  %922 = vst.msk [vmem:[#allocation2 + $0x151] sm:$0xff] %vm550_vm0, %v9775_v8  ;;  %v3389_v34 = vld [vmem:[#allocation2 + $0xf1] sm:$0xff] }
  0x7f   : > { %7719 = vmatprep.mubr.msk.bf16.mxu1 %vm550_vm0, %v3440_v4  ;;  %8004 = vmatmul.mubr.msk.bf16.gmra.mrb[8].mxu0 %vm550_vm0, %v3440_v4  ;;  %920 = vst.msk [vmem:[#allocation2 + $0x139] sm:$0xff] %vm550_vm0, %v9736_v48  ;;  %v667_v4 = vld [vmem:[%s9396_s30 + $0xe8] sm:$0xff]  ;;  %923 = vst.msk [vmem:[#allocation2 + $0x159] sm:$0xff] %vm550_vm0, %v9783_v32  ;;  %vm763_vm3 = vcmp.ge.f32.partialorder %v9763_v7, 1.0  ;;  %v9794_v33 = vmul.f32 0.5, %v668_v9  ;;  %v850_v42 = vsub.f32 1.0, %v9657_v27  ;;  %v3444_v27 = vpack.c.bf16 %v3390_v35, %v3389_v34 }
  0x80   : > { %8007 = vmatprep.mubr.msk.bf16.mxu0 %vm550_vm0, %v3441_v44  ;;  %v9771_v15 = vmul.f32 %v846_v46, %v9571_v25  ;;  %v9787_v14 = vmul.f32 0.5, %v667_v4  ;;  %v849_v25 = vsub.f32 1.0, %v9649_v6  ;;  %v851_v36 = vsub.f32 1.0, %v9675_v19  ;;  %v3392_v6 = vld [vmem:[#allocation2 + $0x111] sm:$0xff]  ;;  %v6919_v4 = vld [vmem:[%s9396_s30 + $0x128] sm:$0xff] }
  0x81   : > { %v9802_v13 = vsel %vm763_vm3, 1.0, %v8988_v3  ;;  %v852_v18 = vsub.f32 1.0, %v9690_v28  ;;  %v853_v41 = vsub.f32 1.0, %v9716_v21  ;;  %vm765_vm5 = vcmp.ge.f32.partialorder %v9794_v33, 1.0  ;;  %v6916_v21 = vld [vmem:[%s9396_s30 + $0x110] sm:$0xff]  ;;  %v6917_v46 = vld [vmem:[%s9396_s30 + $0x118] sm:$0xff] }
  0x82   : > { %vm764_vm4 = vcmp.ge.f32.partialorder %v9787_v14, 1.0  ;;  %924 = vst.msk [vmem:[#allocation2 + $0x169] sm:$0xff] %vm550_vm0, %v9802_v13  ;;  %v854_v19 = vsub.f32 1.0, %v9724_v51  ;;  %v9817_v28 = vsel %vm765_vm5, 1.0, %v8988_v3  ;;  %v9823_v47 = vmul.f32 %v848_v11, %v9604_v49  ;;  %v6920_v9 = vld [vmem:[%s9396_s30 + $0x130] sm:$0xff] }
  0x83   : > { %v9807_v24 = vsel %vm764_vm4, 1.0, %v8988_v3  ;;  %v855_v51 = vsub.f32 1.0, %v9736_v48  ;;  %926 = vst.msk [vmem:[#allocation2 + $0x181] sm:$0xff] %vm550_vm0, %v9817_v28  ;;  %v9838_v34 = vmul.f32 %v850_v42, %v9614_v56  ;;  %v9842_v49 = vmul.f32 %v851_v36, %v9616_v57  ;;  %v3396_v36 = vld [vmem:[#allocation2 + $0x141] sm:$0xff] }
  0x84   : > { %925 = vst.msk [vmem:[#allocation2 + $0x171] sm:$0xff] %vm550_vm0, %v9807_v24  ;;  %v6946_v48 = vsel %vm1057_vm12, 1.0, %v8988_v3  ;;  %v9854_v56 = vmul.f32 %v852_v18, %v9638_v26  ;;  %v9857_v11 = vmul.f32 %v853_v41, %v9694_v30  ;;  %v6947_v35 = vsel %vm1058_vm15, 1.0, %v8988_v3 }
  0x85   : > { %v3393_v57 = vld [vmem:[#allocation2 + $0x121] sm:$0xff]  ;;  %1154 = vst.msk [vmem:[#allocation2 + $0x1c9] sm:$0xff] %vm550_vm0, %v6946_v48  ;;  %v963_v59 = vsub.f32 %v6916_v21, %v9576_v31  ;;  %v9866_v42 = vmul.f32 %v854_v19, %v9703_v43  ;;  %v856_v26 = vsub.f32 1.0, %v9739_v62  ;;  %1155 = vst.msk [vmem:[#allocation2 + $0x1d1] sm:$0xff] %vm550_vm0, %v6947_v35  ;;  %v964_v10 = vsub.f32 %v6917_v46, %v9621_v58 }
  0x86   : > { %7720 = vmatmul.mubr.msk.bf16.gmra.mrb[12].mxu1 %vm550_vm0, %v3441_v44  ;;  %v669_v44 = vld [vmem:[%s9396_s30 + $0xf8] sm:$0xff]  ;;  %v857_v18 = vsub.f32 1.0, %v9775_v8  ;;  %v966_v41 = vsub.f32 %v6919_v4, %v9644_v1  ;;  %v6922_v62 = vld [vmem:[%s9396_s30 + $0x140] sm:$0xff]  ;;  %v967_v21 = vsub.f32 %v6920_v9, %v9665_v16  ;;  %v6923_v48 = vld [vmem:[%s9396_s30 + $0x148] sm:$0xff] }
  0x87   : > { %7723 = vmatprep.mubr.msk.bf16.mxu1 %vm550_vm0, %v3442_v53  ;;  %8008 = vmatmul.mubr.msk.bf16.gmra.mrb[12].mxu0 %vm550_vm0, %v3442_v53  ;;  %v9796_v63 = vmul.f32 0.5, %v669_v44  ;;  %v3445_v53 = vpack.c.bf16 %v3392_v6, %v3391_v37  ;;  %v9835_v44 = vmul.f32 %v849_v25, %v9612_v55  ;;  %v8924_v55 = vld [vmem:[%s11198_s1 + $0x18] sm:$0xff]   ;;  %v3394_v25 = vld [vmem:[#allocation2 + $0x129] sm:$0xff]  ;;  %v965_v37 = vsub.f32 %v6918_v50, %v9624_v60 }
  0x88   : > { %8011 = vmatprep.mubr.msk.bf16.mxu0 %vm550_vm0, %v3443_v54  ;;  %v3395_v30 = vld [vmem:[#allocation2 + $0x139] sm:$0xff]  ;;  %v9874_v6 = vmul.f32 %v855_v51, %v9709_v17  ;;  %v995_v43 = vmul.f32 0.5, %v963_v59  ;;  %7777 = vmatprep.subr.bf16.mxu1 %v8924_v55  ;;  %v3446_v50 = vpack.c.bf16 %v3394_v25, %v3393_v57  ;;  %v998_v51 = vmul.f32 0.5, %v966_v41 }
  0x89   : > { %vm766_vm6 = vcmp.ge.f32.partialorder %v9796_v63, 1.0  ;;  %v997_v19 = vmul.f32 0.5, %v965_v37  ;;  %7778 = vmatpush3.bf16.msra.mxu1 %v8924_v55  ;;  %v3447_v35 = vpack.c.bf16 %v3396_v36, %v3395_v30  ;;  %v999_v59 = vmul.f32 0.5, %v967_v21  ;;  %v6925_v25 = vld [vmem:[%s9396_s30 + $0x158] sm:$0xff]  ;;  %v3399_v21 = vld [vmem:[#allocation2 + $0x169] sm:$0xff] }
  0x8a   : > { %v9828_v61 = vsel %vm766_vm6, 1.0, %v8988_v3  ;;  %v1027_v17 = vadd.f32 %v995_v43, %v9576_v31  ;;  %v1030_v9 = vadd.f32 %v998_v51, %v9644_v1  ;;  %v970_v55 = vsub.f32 %v6923_v48, %v9687_v39  ;;  %v3398_v30 = vld [vmem:[#allocation2 + $0x159] sm:$0xff] }
  0x8b   : > { %927 = vst.msk [vmem:[#allocation2 + $0x189] sm:$0xff] %vm550_vm0, %v9828_v61  ;;  %v1029_v4 = vadd.f32 %v997_v19, %v9624_v60  ;;  %v9891_v31 = vmul.f32 %v856_v26, %v9711_v40  ;;  %v6924_v60 = vld [vmem:[%s9396_s30 + $0x150] sm:$0xff]  ;;  %v858_v40 = vsub.f32 1.0, %v9783_v32  ;;  %v6927_v19 = vld [vmem:[%s9396_s30 + $0x168] sm:$0xff] }
  0x8c   : > { %vm1059_vm7 = vcmp.ge.f32.partialorder %v1027_v17, 1.0  ;;  %vm1062_vm10 = vcmp.ge.f32.partialorder %v1030_v9, 1.0  ;;  %v3397_v26 = vld [vmem:[#allocation2 + $0x151] sm:$0xff]  ;;  %v1002_v41 = vmul.f32 0.5, %v970_v55 }
  0x8d   : > { %vm1061_vm9 = vcmp.ge.f32.partialorder %v1029_v4, 1.0  ;;  %v6951_v36 = vsel %vm1062_vm10, 1.0, %v8988_v3  ;;  %v9922_v4 = vld [vmem:[#allocation2 + $0x1b9] sm:$0xff]  ;;  %v6928_v9 = vld [vmem:[%s9396_s30 + $0x170] sm:$0xff] }
  0x8e   : > { %7724 = vmatmul.mubr.msk.bf16.gmra.mrb[16].mxu1 %vm550_vm0, %v3443_v54  ;;  %v6921_v54 = vld [vmem:[%s9396_s30 + $0x138] sm:$0xff]  ;;  %v6950_v1 = vsel %vm1061_vm9, 1.0, %v8988_v3  ;;  %1159 = vst.msk [vmem:[#allocation2 + $0x201] sm:$0xff] %vm550_vm0, %v6951_v36  ;;  %v1034_v51 = vadd.f32 %v1002_v41, %v9687_v39  ;;  %v6931_v36 = vld [vmem:[%s9396_s30 + $0x188] sm:$0xff]  ;;  %v6932_v32 = vld [vmem:[%s9396_s30 + $0x190] sm:$0xff] }
  0x8f   : > { %7727 = vmatprep.mubr.msk.bf16.mxu1 %vm550_vm0, %v3444_v27  ;;  %8012 = vmatmul.mubr.msk.bf16.gmra.mrb[16].mxu0 %vm550_vm0, %v3444_v27  ;;  %v996_v27 = vmul.f32 0.5, %v964_v10  ;;  %v968_v46 = vsub.f32 %v6921_v54, %v9668_v52  ;;  %v969_v10 = vsub.f32 %v6922_v62, %v9684_v38  ;;  %1158 = vst.msk [vmem:[#allocation2 + $0x1f9] sm:$0xff] %vm550_vm0, %v6950_v1 }
  0x90   : > { %8015 = vmatprep.mubr.msk.bf16.mxu0 %vm550_vm0, %v3445_v53  ;;  %v971_v62 = vsub.f32 %v6924_v60, %v9742_v0  ;;  %vm1066_vm14 = vcmp.ge.f32.partialorder %v1034_v51, 1.0 }
  0x91   : > { %v1028_v8 = vadd.f32 %v996_v27, %v9621_v58  ;;  %v1000_v54 = vmul.f32 0.5, %v968_v46  ;;  %v6948_v58 = vsel %vm1059_vm7, 1.0, %v8988_v3  ;;  %v1001_v43 = vmul.f32 0.5, %v969_v10  ;;  %v6926_v27 = vld [vmem:[%s9396_s30 + $0x160] sm:$0xff]  ;;  %v3400_v46 = vld [vmem:[#allocation2 + $0x171] sm:$0xff] }
  0x92   : > { %1156 = vst.msk [vmem:[#allocation2 + $0x1e1] sm:$0xff] %vm550_vm0, %v6948_v58  ;;  %v974_v10 = vsub.f32 %v6927_v19, %v9759_v2  ;;  %v3449_v55 = vpack.c.bf16 %v3400_v46, %v3399_v21  ;;  %v6955_v60 = vsel %vm1066_vm14, 1.0, %v8988_v3  ;;  %v3401_v19 = vld [vmem:[#allocation2 + $0x181] sm:$0xff]  ;;  %v3402_v21 = vld [vmem:[#allocation2 + $0x189] sm:$0xff] }
  0x93   : > { %vm1060_vm8 = vcmp.ge.f32.partialorder %v1028_v8, 1.0  ;;  %v1032_v37 = vadd.f32 %v1000_v54, %v9668_v52  ;;  %v1033_v48 = vadd.f32 %v1001_v43, %v9684_v38  ;;  %v1003_v8 = vmul.f32 0.5, %v971_v62  ;;  %v6929_v54 = vld [vmem:[%s9396_s30 + $0x178] sm:$0xff]  ;;  %1163 = vst.msk [vmem:[#allocation2 + $0x231] sm:$0xff] %vm550_vm0, %v6955_v60  ;;  %v3950_v43 = vld [vmem:[#allocation2 + $0x22] sm:$0xff] }
  0x94   : > { %v6949_v57 = vsel %vm1060_vm8, 1.0, %v8988_v3  ;;  %v973_v38 = vsub.f32 %v6926_v27, %v9756_v5  ;;  %v9958_v27 = vmul.f32 %v858_v40, %v9752_v22  ;;  %v978_v22 = vsub.f32 %v6931_v36, %v9823_v47  ;;  %v6933_v40 = vld [vmem:[%s9396_s30 + $0x198] sm:$0xff] }
  0x95   : > { %1157 = vst.msk [vmem:[#allocation2 + $0x1e9] sm:$0xff] %vm550_vm0, %v6949_v57  ;;  %vm1064_vm12 = vcmp.ge.f32.partialorder %v1032_v37, 1.0  ;;  %vm1065_vm13 = vcmp.ge.f32.partialorder %v1033_v48, 1.0  ;;  %v1035_v58 = vadd.f32 %v1003_v8, %v9742_v0  ;;  %v975_v0 = vsub.f32 %v6928_v9, %v9768_v12  ;;  %v3951_v36 = vld [vmem:[#allocation2 + $0x32] sm:$0xff] }
  0x96   : > { %7728 = vmatmul.mubr.msk.bf16.gmra.mrb[20].mxu1 %vm550_vm0, %v3445_v53  ;;  %v1031_v53 = vadd.f32 %v999_v59, %v9665_v16  ;;  %v9908_v16 = vmul.f32 %v857_v18, %v9719_v45  ;;  %v972_v45 = vsub.f32 %v6925_v25, %v9745_v29  ;;  %v3448_v18 = vpack.c.bf16 %v3398_v30, %v3397_v26  ;;  %v9943_v26 = vld [vmem:[#allocation2 + $0x1a] sm:$0xff] }
  0x97   : > { %7731 = vmatprep.mubr.msk.bf16.mxu1 %vm550_vm0, %v3446_v50  ;;  %8016 = vmatmul.mubr.msk.bf16.gmra.mrb[20].mxu0 %vm550_vm0, %v3446_v50  ;;  %v9917_v50 = vld [vmem:[#allocation2 + $0x1b1] sm:$0xff]  ;;  %v6953_v17 = vsel %vm1064_vm12, 1.0, %v8988_v3  ;;  %v6954_v39 = vsel %vm1065_vm13, 1.0, %v8988_v3  ;;  %v1005_v1 = vmul.f32 0.5, %v973_v38  ;;  %vm1067_vm15 = vcmp.ge.f32.partialorder %v1035_v58, 1.0 }
  0x98   : > { %8019 = vmatprep.mubr.msk.bf16.mxu0 %vm550_vm0, %v3447_v35  ;;  %vm1063_vm11 = vcmp.ge.f32.partialorder %v1031_v53, 1.0  ;;  %1161 = vst.msk [vmem:[#allocation2 + $0x219] sm:$0xff] %vm550_vm0, %v6953_v17  ;;  %v1004_v59 = vmul.f32 0.5, %v972_v45  ;;  %1162 = vst.msk [vmem:[#allocation2 + $0x229] sm:$0xff] %vm550_vm0, %v6954_v39  ;;  %v1006_v53 = vmul.f32 0.5, %v974_v10  ;;  %v1372_v25 = vpack.c.bf16 %v9922_v4, %v9917_v50  ;;  %v6934_v10 = vld [vmem:[%s9396_s30 + $0x1a0] sm:$0xff] }
  0x99   : > { %v6952_v52 = vsel %vm1063_vm11, 1.0, %v8988_v3  ;;  %v976_v30 = vsub.f32 %v6929_v54, %v9771_v15  ;;  %v859_v37 = vsub.f32 1.0, %v9802_v13  ;;  %v6956_v41 = vsel %vm1067_vm15, 1.0, %v8988_v3  ;;  %v1326_v54 = vld [vmem:[#allocation2 + $0x1c9] sm:$0xff]  ;;  %v1327_v39 = vld [vmem:[#allocation2 + $0x1d1] sm:$0xff]  ;;  %v1328_v60 = vld [vmem:[#allocation2 + $0x1e1] sm:$0xff] }
  0x9a   : > { %1160 = vst.msk [vmem:[#allocation2 + $0x211] sm:$0xff] %vm550_vm0, %v6952_v52  ;;  %v1036_v57 = vadd.f32 %v1004_v59, %v9745_v29  ;;  %v6930_v29 = vld [vmem:[%s9396_s30 + $0x180] sm:$0xff]  ;;  %v1037_v62 = vadd.f32 %v1005_v1, %v9756_v5  ;;  %1164 = vst.msk [vmem:[#allocation2 + $0x241] sm:$0xff] %vm550_vm0, %v6956_v41  ;;  %v1038_v46 = vadd.f32 %v1006_v53, %v9759_v2  ;;  %v1007_v52 = vmul.f32 0.5, %v975_v0  ;;  %v6936_v0 = vld [vmem:[%s9396_s30 + $0x1b0] sm:$0xff] }
  0x9b   : > { %v1008_v5 = vmul.f32 0.5, %v976_v30  ;;  %v977_v48 = vsub.f32 %v6930_v29, %v9780_v20  ;;  %v4013_v45 = vpack.c.bf16 %v3950_v43, %v9943_v26  ;;  %v3450_v50 = vpack.c.bf16 %v3402_v21, %v3401_v19  ;;  %v6937_v30 = vld [vmem:[%s9396_s30 + $0x1b8] sm:$0xff] }
  0x9c   : > { %vm1068_vm1 = vcmp.ge.f32.partialorder %v1036_v57, 1.0  ;;  %vm1069_vm2 = vcmp.ge.f32.partialorder %v1037_v62, 1.0  ;;  %vm1070_vm3 = vcmp.ge.f32.partialorder %v1038_v46, 1.0  ;;  %v1039_v2 = vadd.f32 %v1007_v52, %v9768_v12  ;;  %v6935_v12 = vld [vmem:[%s9396_s30 + $0x1a8] sm:$0xff]  ;;  %v3954_v19 = vld [vmem:[#allocation2 + $0x52] sm:$0xff] }
  0x9d   : > { %v6957_v13 = vsel %vm1068_vm1, 1.0, %v8988_v3  ;;  %v6959_v17 = vsel %vm1070_vm3, 1.0, %v8988_v3  ;;  %v1040_v51 = vadd.f32 %v1008_v5, %v9771_v15  ;;  %v1009_v8 = vmul.f32 0.5, %v977_v48  ;;  %v1329_v57 = vld [vmem:[#allocation2 + $0x1e9] sm:$0xff] }
  0x9e   : > { %7732 = vmatmul.mubr.msk.bf16.gmra.mrb[24].mxu1 %vm550_vm0, %v3447_v35  ;;  %v9939_v35 = vld [vmem:[%s11198_s1 + $0x40] sm:$0xff]   ;;  %1165 = vst.msk [vmem:[#allocation2 + $0x249] sm:$0xff] %vm550_vm0, %v6957_v13  ;;  %1167 = vst.msk [vmem:[#allocation2 + $0x261] sm:$0xff] %vm550_vm0, %v6959_v17  ;;  %vm1071_vm4 = vcmp.ge.f32.partialorder %v1039_v2, 1.0  ;;  %v1010_v4 = vmul.f32 0.5, %v978_v22  ;;  %v979_v59 = vsub.f32 %v6932_v32, %v9835_v44  ;;  %v980_v38 = vsub.f32 %v6933_v40, %v9838_v34  ;;  %v3953_v62 = vld [vmem:[#allocation2 + $0x4a] sm:$0xff] }
  0x9f   : > { %7735 = vmatprep.mubr.msk.bf16.mxu1 %vm550_vm0, %v3448_v18  ;;  %8020 = vmatmul.mubr.msk.bf16.gmra.mrb[24].mxu0 %vm550_vm0, %v3448_v18  ;;  %v6958_v18 = vsel %vm1069_vm2, 1.0, %v8988_v3  ;;  %v860_v9 = vsub.f32 1.0, %v9807_v24  ;;  %vm1072_vm5 = vcmp.ge.f32.partialorder %v1040_v51, 1.0  ;;  %v6960_v15 = vsel %vm1071_vm4, 1.0, %v8988_v3  ;;  %v6938_v22 = vld [vmem:[%s9396_s30 + $0x1c0] sm:$0xff]  ;;  %v10011_v40 = vld [vmem:[%s11198_s1 + $0xc8] sm:$0xff]  }
  0xa0   : > { %7843 = vmatprep.subr.bf16.mxu1 %v9939_v35  ;;  %8023 = vmatprep.mubr.msk.bf16.mxu0 %vm550_vm0, %v3449_v55  ;;  %1166 = vst.msk [vmem:[#allocation2 + $0x259] sm:$0xff] %vm550_vm0, %v6958_v18  ;;  %v9986_v58 = vmul.f32 %v859_v37, %v9763_v7  ;;  %v6961_v1 = vsel %vm1072_vm5, 1.0, %v8988_v3  ;;  %1168 = vst.msk [vmem:[#allocation2 + $0x271] sm:$0xff] %vm550_vm0, %v6960_v15  ;;  %v1042_v53 = vadd.f32 %v1010_v4, %v9823_v47  ;;  %v3952_v37 = vld [vmem:[#allocation2 + $0x3a] sm:$0xff] }
  0xa1   : > { %1169 = vst.msk [vmem:[#allocation2 + $0x279] sm:$0xff] %vm550_vm0, %v6961_v1  ;;  %v1012_v26 = vmul.f32 0.5, %v980_v38  ;;  %v982_v7 = vsub.f32 %v6935_v12, %v9854_v56  ;;  %v1373_v29 = vpack.c.bf16 %v1327_v39, %v1326_v54  ;;  %v1374_v41 = vpack.c.bf16 %v1329_v57, %v1328_v60  ;;  %v1330_v2 = vld [vmem:[#allocation2 + $0x1f9] sm:$0xff]  ;;  %v6940_v38 = vld [vmem:[%s9396_s30 + $0x1d0] sm:$0xff]  ;;  %v3955_v60 = vld [vmem:[#allocation2 + $0x62] sm:$0xff] }
  0xa2   : > { %vm1074_vm7 = vcmp.ge.f32.partialorder %v1042_v53, 1.0  ;;  %v983_v5 = vsub.f32 %v6936_v0, %v9857_v11  ;;  %v984_v48 = vsub.f32 %v6937_v30, %v9866_v42  ;;  %v4014_v32 = vpack.c.bf16 %v3952_v37, %v3951_v36  ;;  %v1332_v54 = vld [vmem:[#allocation2 + $0x211] sm:$0xff]  ;;  %v3958_v0 = vld [vmem:[#allocation2 + $0x82] sm:$0xff] }
  0xa3   : > { %v6963_v21 = vsel %vm1074_vm7, 1.0, %v8988_v3  ;;  %v1044_v13 = vadd.f32 %v1012_v26, %v9838_v34  ;;  %v1014_v52 = vmul.f32 0.5, %v982_v7  ;;  %v4015_v18 = vpack.c.bf16 %v3954_v19, %v3953_v62  ;;  %v3956_v57 = vld [vmem:[#allocation2 + $0x6a] sm:$0xff]  ;;  %v3957_v7 = vld [vmem:[#allocation2 + $0x7a] sm:$0xff] }
  0xa4   : > { %1171 = vst.msk [vmem:[#allocation2 + $0x291] sm:$0xff] %vm550_vm0, %v6963_v21  ;;  %v1016_v4 = vmul.f32 0.5, %v984_v48  ;;  %v10028_v12 = vmul.f32 %v860_v9, %v9787_v14  ;;  %v987_v9 = vsub.f32 %v6940_v38, %v9908_v16  ;;  %v6943_v26 = vld [vmem:[%s9396_s30 + $0x1e8] sm:$0xff]  ;;  %v8927_v30 = vld [vmem:[%s11198_s1 + $0xd0] sm:$0xff]   ;;  %v4017_v62 = vpack.c.bf16 %v3958_v0, %v3957_v7  ;;  %v8929_v48 = vld [vmem:[%s11198_s1 + $0xd8] sm:$0xff]  }
  0xa5   : > { %vm1076_vm9 = vcmp.ge.f32.partialorder %v1044_v13, 1.0  ;;  %v1046_v51 = vadd.f32 %v1014_v52, %v9854_v56  ;;  %v1333_v56 = vld [vmem:[#allocation2 + $0x219] sm:$0xff]  ;;  %v1335_v13 = vld [vmem:[#allocation2 + $0x231] sm:$0xff] }
  0xa6   : > { %7736 = vmatmul.mubr.msk.bf16.gmra.mrb[28].mxu1 %vm550_vm0, %v3449_v55  ;;  %v1041_v55 = vadd.f32 %v1009_v8, %v9780_v20  ;;  %v981_v20 = vsub.f32 %v6934_v10, %v9842_v49  ;;  %v6965_v17 = vsel %vm1076_vm9, 1.0, %v8988_v3  ;;  %v1015_v8 = vmul.f32 0.5, %v983_v5  ;;  %v6941_v10 = vld [vmem:[%s9396_s30 + $0x1d8] sm:$0xff] }
  0xa7   : > { %7739 = vmatprep.mubr.msk.bf16.mxu1 %vm550_vm0, %v1372_v25  ;;  %v1011_v25 = vmul.f32 0.5, %v979_v59  ;;  %8024 = vmatmul.mubr.msk.bf16.gmra.mrb[28].mxu0 %vm550_vm0, %v3450_v50  ;;  %v1331_v50 = vld [vmem:[#allocation2 + $0x201] sm:$0xff]  ;;  %1173 = vst.msk [vmem:[#allocation2 + $0x2a9] sm:$0xff] %vm550_vm0, %v6965_v17  ;;  %vm1078_vm11 = vcmp.ge.f32.partialorder %v1046_v51, 1.0  ;;  %v1048_v14 = vadd.f32 %v1016_v4, %v9866_v42  ;;  %v988_v53 = vsub.f32 %v6941_v10, %v9958_v27  ;;  %v1338_v38 = vld [vmem:[#allocation2 + $0x259] sm:$0xff] }
  0xa8   : > { %vm1073_vm6 = vcmp.ge.f32.partialorder %v1041_v55, 1.0  ;;  %8067 = vmatprep.mubr.msk.bf16.mxu0 %vm550_vm0, %v4013_v45  ;;  %v1013_v46 = vmul.f32 0.5, %v981_v20  ;;  %v1047_v15 = vadd.f32 %v1015_v8, %v9857_v11  ;;  %v1375_v55 = vpack.c.bf16 %v1331_v50, %v1330_v2  ;;  %v3961_v2 = vld [vmem:[#allocation2 + $0xaa] sm:$0xff]  ;;  %v3962_v50 = vld [vmem:[#allocation2 + $0xb2] sm:$0xff] }
  0xa9   : > { %v6962_v47 = vsel %vm1073_vm6, 1.0, %v8988_v3  ;;  %v1043_v43 = vadd.f32 %v1011_v25, %v9835_v44  ;;  %v6939_v44 = vld [vmem:[%s9396_s30 + $0x1c8] sm:$0xff]  ;;  %v6967_v1 = vsel %vm1078_vm11, 1.0, %v8988_v3  ;;  %v6942_v25 = vld [vmem:[%s9396_s30 + $0x1e0] sm:$0xff]  ;;  %v1376_v20 = vpack.c.bf16 %v1333_v56, %v1332_v54  ;;  %v6944_v54 = vld [vmem:[%s9396_s30 + $0x1f0] sm:$0xff] }
  0xaa   : > { %1170 = vst.msk [vmem:[#allocation2 + $0x289] sm:$0xff] %vm550_vm0, %v6962_v47  ;;  %v1045_v45 = vadd.f32 %v1013_v46, %v9842_v49  ;;  %v985_v49 = vsub.f32 %v6938_v22, %v9874_v6  ;;  %v986_v59 = vsub.f32 %v6939_v44, %v9891_v31  ;;  %1175 = vst.msk [vmem:[#allocation2 + $0x2c1] sm:$0xff] %vm550_vm0, %v6967_v1  ;;  %vm1079_vm12 = vcmp.ge.f32.partialorder %v1047_v15, 1.0  ;;  %v1336_v22 = vld [vmem:[#allocation2 + $0x241] sm:$0xff]  ;;  %v1337_v44 = vld [vmem:[#allocation2 + $0x249] sm:$0xff] }
  0xab   : > { %vm1075_vm8 = vcmp.ge.f32.partialorder %v1043_v43, 1.0  ;;  %vm1080_vm13 = vcmp.ge.f32.partialorder %v1048_v14, 1.0  ;;  %v1019_v47 = vmul.f32 0.5, %v987_v9  ;;  %v1020_v43 = vmul.f32 0.5, %v988_v53  ;;  %v10089_v56 = vld [vmem:[%s11198_s1 + $0xe0] sm:$0xff]  }
  0xac   : > { %v6964_v34 = vsel %vm1075_vm8, 1.0, %v8988_v3  ;;  %vm1077_vm10 = vcmp.ge.f32.partialorder %v1045_v45, 1.0  ;;  %v1017_v24 = vmul.f32 0.5, %v985_v49  ;;  %v1018_v11 = vmul.f32 0.5, %v986_v59  ;;  %v1341_v15 = vld [vmem:[#allocation2 + $0x279] sm:$0xff] }
  0xad   : > { %1172 = vst.msk [vmem:[#allocation2 + $0x2a1] sm:$0xff] %vm550_vm0, %v6964_v34  ;;  %v6966_v39 = vsel %vm1077_vm10, 1.0, %v8988_v3  ;;  %v6969_v36 = vsel %vm1080_vm13, 1.0, %v8988_v3  ;;  %v1051_v21 = vadd.f32 %v1019_v47, %v9908_v16  ;;  %v1052_v52 = vadd.f32 %v1020_v43, %v9958_v27  ;;  %v3965_v14 = vld [vmem:[#allocation2 + $0xda] sm:$0xff]  ;;  %v3969_v43 = vld [vmem:[#allocation2 + $0x10a] sm:$0xff] }
  0xae   : > { %7740 = vmatmul.mubr.msk.bf16.gmra.mrb[32].mxu1 %vm550_vm0, %v1373_v29  ;;  %1174 = vst.msk [vmem:[#allocation2 + $0x2b9] sm:$0xff] %vm550_vm0, %v6966_v39  ;;  %v1049_v42 = vadd.f32 %v1017_v24, %v9874_v6  ;;  %v4016_v29 = vpack.c.bf16 %v3956_v57, %v3955_v60  ;;  %v1050_v37 = vadd.f32 %v1018_v11, %v9891_v31  ;;  %1177 = vst.msk [vmem:[#allocation2 + $0x2d9] sm:$0xff] %vm550_vm0, %v6969_v36  ;;  %v1334_v31 = vld [vmem:[#allocation2 + $0x229] sm:$0xff]  ;;  %v1340_v39 = vld [vmem:[#allocation2 + $0x271] sm:$0xff] }
  0xaf   : > { %7743 = vmatprep.mubr.msk.bf16.mxu1 %vm550_vm0, %v1374_v41  ;;  %8068 = vmatmul.mubr.msk.bf16.vlgmr.msra.gmra.mrb[0].mxu0 %vm550_vm0, %v4014_v32  ;;  %v989_v41 = vsub.f32 %v6942_v25, %v9986_v58  ;;  %v990_v6 = vsub.f32 %v6943_v26, %v10028_v12  ;;  %vm1083_vm1 = vcmp.ge.f32.partialorder %v1051_v21, 1.0  ;;  %v3959_v32 = vld [vmem:[#allocation2 + $0x92] sm:$0xff]  ;;  %vm1084_vm2 = vcmp.ge.f32.partialorder %v1052_v52, 1.0  ;;  %v3963_v60 = vld [vmem:[#allocation2 + $0xc2] sm:$0xff]  ;;  %v3968_v36 = vld [vmem:[#allocation2 + $0xfa] sm:$0xff] }
  0xb0   : > { %8132 = vmatpush3.bf16.msra.mxu0 %v9681_v23  ;;  %8071 = vmatprep.mubr.msk.bf16.mxu0 %vm550_vm0, %v4015_v18  ;;  %v6968_v23 = vsel %vm1079_vm12, 1.0, %v8988_v3  ;;  %vm1081_vm14 = vcmp.ge.f32.partialorder %v1049_v42, 1.0  ;;  %vm1082_vm15 = vcmp.ge.f32.partialorder %v1050_v37, 1.0  ;;  %v861_v34 = vsub.f32 1.0, %v9817_v28  ;;  %v3960_v18 = vld [vmem:[#allocation2 + $0x9a] sm:$0xff]  ;;  %v3966_v24 = vld [vmem:[#allocation2 + $0xe2] sm:$0xff] }
  0xb1   : > { %8133 = vmatprep.subr.bf16.mxu0 %v10011_v40  ;;  %1176 = vst.msk [vmem:[#allocation2 + $0x2d1] sm:$0xff] %vm550_vm0, %v6968_v23  ;;  %v6970_v19 = vsel %vm1081_vm14, 1.0, %v8988_v3  ;;  %v6971_v46 = vsel %vm1082_vm15, 1.0, %v8988_v3  ;;  %v1021_v5 = vmul.f32 0.5, %v989_v41  ;;  %v1022_v16 = vmul.f32 0.5, %v990_v6  ;;  %v1342_v25 = vld [vmem:[#allocation2 + $0x289] sm:$0xff] }
  0xb2   : > { %1178 = vst.msk [vmem:[#allocation2 + $0x2e9] sm:$0xff] %vm550_vm0, %v6970_v19  ;;  %1179 = vst.msk [vmem:[#allocation2 + $0x2f1] sm:$0xff] %vm550_vm0, %v6971_v46  ;;  %v1377_v45 = vpack.c.bf16 %v1335_v13, %v1334_v31  ;;  %v6973_v17 = vsel %vm1084_vm2, 1.0, %v8988_v3  ;;  %v862_v8 = vsub.f32 1.0, %v9828_v61  ;;  %v1378_v4 = vpack.c.bf16 %v1337_v44, %v1336_v22  ;;  %v1343_v26 = vld [vmem:[#allocation2 + $0x291] sm:$0xff]  ;;  %v1347_v13 = vld [vmem:[#allocation2 + $0x2c1] sm:$0xff] }
  0xb3   : > { %v1053_v27 = vadd.f32 %v1021_v5, %v9986_v58  ;;  %v1054_v51 = vadd.f32 %v1022_v16, %v10028_v12  ;;  %1181 = vst.msk [vmem:[#allocation2 + $0x309] sm:$0xff] %vm550_vm0, %v6973_v17  ;;  %v4018_v58 = vpack.c.bf16 %v3960_v18, %v3959_v32  ;;  %v893_v59 = vmul.f32 %v861_v34, %v9794_v33  ;;  %v1339_v12 = vld [vmem:[#allocation2 + $0x261] sm:$0xff]  ;;  %v6945_v33 = vld [vmem:[%s9396_s30 + $0x1f8] sm:$0xff] }
  0xb4   : > { %8134 = vmatpush3.bf16.msra.mxu0 %v10011_v40  ;;  %v6972_v40 = vsel %vm1083_vm1, 1.0, %v8988_v3  ;;  %v4019_v61 = vpack.c.bf16 %v3962_v50, %v3961_v2  ;;  %v894_v10 = vmul.f32 %v862_v8, %v9796_v63  ;;  %v3964_v63 = vld [vmem:[#allocation2 + $0xca] sm:$0xff]  ;;  %v1380_v1 = vpack.c.bf16 %v1341_v15, %v1340_v39  ;;  %v1344_v0 = vld [vmem:[#allocation2 + $0x2a1] sm:$0xff]  ;;  %v3970_v41 = vld [vmem:[#allocation2 + $0x112] sm:$0xff] }
  0xb5   : > { %8135 = vmatprep.subr.bf16.mxu0 %v8927_v30  ;;  %1180 = vst.msk [vmem:[#allocation2 + $0x301] sm:$0xff] %vm550_vm0, %v6972_v40  ;;  %vm1085_vm3 = vcmp.ge.f32.partialorder %v1053_v27, 1.0  ;;  %vm1086_vm4 = vcmp.ge.f32.partialorder %v1054_v51, 1.0  ;;  %v991_v57 = vsub.f32 %v6944_v54, %v893_v59  ;;  %v4020_v53 = vpack.c.bf16 %v3964_v63, %v3963_v60  ;;  %v1346_v21 = vld [vmem:[#allocation2 + $0x2b9] sm:$0xff]  ;;  %v3971_v5 = vld [vmem:[#allocation2 + $0x122] sm:$0xff]  ;;  %v3977_v8 = vld [vmem:[#allocation2 + $0x16a] sm:$0xff] }
  0xb6   : > { %7744 = vmatmul.mubr.msk.bf16.gmra.mrb[36].mxu1 %vm550_vm0, %v1375_v55  ;;  %v6974_v28 = vsel %vm1085_vm3, 1.0, %v8988_v3  ;;  %v6975_v49 = vsel %vm1086_vm4, 1.0, %v8988_v3  ;;  %v1379_v55 = vpack.c.bf16 %v1339_v12, %v1338_v38  ;;  %v992_v11 = vsub.f32 %v6945_v33, %v894_v10  ;;  %v1349_v52 = vld [vmem:[#allocation2 + $0x2d9] sm:$0xff]  ;;  %v3974_v16 = vld [vmem:[#allocation2 + $0x142] sm:$0xff]  ;;  %v3980_v54 = vld [vmem:[#allocation2 + $0x18a] sm:$0xff] }
  0xb7   : > { %7747 = vmatprep.mubr.msk.bf16.mxu1 %vm550_vm0, %v1376_v20  ;;  %8072 = vmatmul.mubr.msk.bf16.gmra.mrb[4].mxu0 %vm550_vm0, %v4016_v29  ;;  %1182 = vst.msk [vmem:[#allocation2 + $0x319] sm:$0xff] %vm550_vm0, %v6974_v28  ;;  %1183 = vst.msk [vmem:[#allocation2 + $0x321] sm:$0xff] %vm550_vm0, %v6975_v49  ;;  %v1023_v9 = vmul.f32 0.5, %v991_v57  ;;  %v4021_v7 = vpack.c.bf16 %v3966_v24, %v3965_v14  ;;  %v3967_v29 = vld [vmem:[#allocation2 + $0xf2] sm:$0xff]  ;;  %v1381_v47 = vpack.c.bf16 %v1343_v26, %v1342_v25  ;;  %v3973_v44 = vld [vmem:[#allocation2 + $0x13a] sm:$0xff] }
  0xb8   : > { %8075 = vmatprep.mubr.msk.bf16.mxu0 %vm550_vm0, %v4017_v62  ;;  %8136 = vmatpush3.bf16.msra.mxu0 %v8927_v30  ;;  %v1024_v20 = vmul.f32 0.5, %v992_v11  ;;  %v1345_v30 = vld [vmem:[#allocation2 + $0x2a9] sm:$0xff]  ;;  %v4022_v19 = vpack.c.bf16 %v3968_v36, %v3967_v29  ;;  %v4023_v31 = vpack.c.bf16 %v3970_v41, %v3969_v43  ;;  %v1348_v46 = vld [vmem:[#allocation2 + $0x2d1] sm:$0xff]  ;;  %v10108_v40 = vpack.c.bf16 %v3974_v16, %v3973_v44  ;;  %v3976_v17 = vld [vmem:[#allocation2 + $0x15a] sm:$0xff] }
  0xb9   : > { %8137 = vmatprep.subr.bf16.mxu0 %v8929_v48  ;;  %v1055_v23 = vadd.f32 %v1023_v9, %v893_v59  ;;  %v1382_v62 = vpack.c.bf16 %v1345_v30, %v1344_v0  ;;  %v1384_v22 = vpack.c.bf16 %v1349_v52, %v1348_v46  ;;  %v1350_v27 = vld [vmem:[#allocation2 + $0x2e9] sm:$0xff]  ;;  %v1351_v34 = vld [vmem:[#allocation2 + $0x2f1] sm:$0xff]  ;;  %v1191_v57 = vld [vmem:[#allocation2 + $0x20] sm:$0xff] }
  0xba   : > { %v1056_v42 = vadd.f32 %v1024_v20, %v894_v10  ;;  %v1353_v18 = vld [vmem:[#allocation2 + $0x309] sm:$0xff]  ;;  %v1385_v2 = vpack.c.bf16 %v1351_v34, %v1350_v27  ;;  %v3975_v50 = vld [vmem:[#allocation2 + $0x152] sm:$0xff]  ;;  %v3985_v25 = vld [vmem:[#allocation2 + $0x1fa] sm:$0xff] }
  0xbb   : > { %vm1087_vm5 = vcmp.ge.f32.partialorder %v1055_v23, 1.0  ;;  %v10114_v28 = vpack.c.bf16 %v3976_v17, %v3975_v50  ;;  %v1189_v38 = vld [vmem:[#allocation2 + $0x8] sm:$0xff]  ;;  %v3982_v33 = vld [vmem:[#allocation2 + $0x1d2] sm:$0xff]  ;;  %v1196_v30 = vld [vmem:[#allocation2 + $0x60] sm:$0xff] }
  0xbc   : > { %8138 = vmatpush3.bf16.msra.mxu0 %v8929_v48  ;;  %vm1088_vm6 = vcmp.ge.f32.partialorder %v1056_v42, 1.0  ;;  %v6976_v37 = vsel %vm1087_vm5, 1.0, %v8988_v3  ;;  %v3972_v48 = vld [vmem:[#allocation2 + $0x12a] sm:$0xff]  ;;  %v3979_v12 = vld [vmem:[#allocation2 + $0x182] sm:$0xff]  ;;  %v1190_v63 = vld [vmem:[#allocation2 + $0x18] sm:$0xff] }
  0xbd   : > { %8203 = vmatprep.subr.bf16.mxu0 %v10089_v56  ;;  %v6977_v6 = vsel %vm1088_vm6, 1.0, %v8988_v3  ;;  %1184 = vst.msk [vmem:[#allocation2 + $0x331] sm:$0xff] %vm550_vm0, %v6976_v37  ;;  %v1383_v3 = vpack.c.bf16 %v1347_v13, %v1346_v21  ;;  %v4024_v32 = vpack.c.bf16 %v3972_v48, %v3971_v5  ;;  %v3981_v15 = vld [vmem:[#allocation2 + $0x1ca] sm:$0xff]  ;;  %v1193_v14 = vld [vmem:[#allocation2 + $0x38] sm:$0xff]  ;;  %v1253_v24 = vpack.c.bf16 %v1191_v57, %v1190_v63  ;;  %v3983_v11 = vld [vmem:[#allocation2 + $0x1e2] sm:$0xff] }
  0xbe   : > { %7748 = vmatmul.mubr.msk.bf16.gmra.mrb[40].mxu1 %vm550_vm0, %v1377_v45  ;;  %1185 = vst.msk [vmem:[#allocation2 + $0x339] sm:$0xff] %vm550_vm0, %v6977_v6  ;;  %v1352_v45 = vld [vmem:[#allocation2 + $0x301] sm:$0xff]  ;;  %v1354_v49 = vld [vmem:[#allocation2 + $0x319] sm:$0xff]  ;;  %v10125_v60 = vpack.c.bf16 %v3982_v33, %v3981_v15  ;;  %v3984_v9 = vld [vmem:[#allocation2 + $0x1ea] sm:$0xff] }
  0xbf   : > { %7751 = vmatprep.mubr.msk.bf16.mxu1 %vm550_vm0, %v1378_v4  ;;  %8076 = vmatmul.mubr.msk.bf16.gmra.mrb[8].mxu0 %vm550_vm0, %v4018_v58  ;;  %v1386_v51 = vpack.c.bf16 %v1353_v18, %v1352_v45  ;;  %v3978_v4 = vld [vmem:[#allocation2 + $0x172] sm:$0xff]  ;;  %v1355_v59 = vld [vmem:[#allocation2 + $0x321] sm:$0xff]  ;;  %v3989_v41 = vld [vmem:[#allocation2 + $0x22a] sm:$0xff] }
  0xc0   : > { %8079 = vmatprep.mubr.msk.bf16.mxu0 %vm550_vm0, %v4019_v61  ;;  %v10117_v58 = vpack.c.bf16 %v3978_v4, %v3977_v8  ;;  %v1188_v61 = vld [vmem:[#allocation2] sm:$0xff]  ;;  %v1387_v10 = vpack.c.bf16 %v1355_v59, %v1354_v49  ;;  %v8928_v20 = vld [vmem:[%s11198_s1 + $0x48] sm:$0xff]   ;;  %v1195_v42 = vld [vmem:[#allocation2 + $0x50] sm:$0xff] }
  0xc1   : > { %v1252_v39 = vpack.c.bf16 %v1189_v38, %v1188_v61  ;;  %v3986_v26 = vld [vmem:[#allocation2 + $0x202] sm:$0xff]  ;;  %v8930_v36 = vld [vmem:[%s11198_s1 + $0x50] sm:$0xff]   ;;  %v1201_v52 = vld [vmem:[#allocation2 + $0x98] sm:$0xff] }
  0xc2   : > { %v10139_v0 = vpack.c.bf16 %v3986_v26, %v3985_v25  ;;  %v1194_v23 = vld [vmem:[#allocation2 + $0x48] sm:$0xff]  ;;  %v3990_v6 = vld [vmem:[#allocation2 + $0x232] sm:$0xff]  ;;  %v1199_v13 = vld [vmem:[#allocation2 + $0x80] sm:$0xff] }
  0xc3   : > { %v1197_v29 = vld [vmem:[#allocation2 + $0x68] sm:$0xff]  ;;  %v10151_v37 = vpack.c.bf16 %v1195_v42, %v1194_v23  ;;  %v10162_v21 = vpack.c.bf16 %v3990_v6, %v3989_v41  ;;  %v1200_v46 = vld [vmem:[#allocation2 + $0x90] sm:$0xff]  ;;  %v3993_v16 = vld [vmem:[#allocation2 + $0x25a] sm:$0xff] }
  0xc4   : > { %v10153_v43 = vpack.c.bf16 %v1197_v29, %v1196_v30  ;;  %v3991_v48 = vld [vmem:[#allocation2 + $0x242] sm:$0xff]  ;;  %v10177_v44 = vpack.c.bf16 %v1201_v52, %v1200_v46  ;;  %v1203_v18 = vld [vmem:[#allocation2 + $0xb0] sm:$0xff]  ;;  %v3996_v8 = vld [vmem:[#allocation2 + $0x27a] sm:$0xff] }
  0xc5   : > { %v1202_v45 = vld [vmem:[#allocation2 + $0xa8] sm:$0xff]  ;;  %v3998_v59 = vld [vmem:[#allocation2 + $0x292] sm:$0xff]  ;;  %v4001_v57 = vld [vmem:[#allocation2 + $0x2ba] sm:$0xff] }
  0xc6   : > { %7752 = vmatmul.mubr.msk.bf16.gmra.mrb[44].mxu1 %vm550_vm0, %v1379_v55  ;;  %v4028_v55 = vpack.c.bf16 %v3980_v54, %v3979_v12  ;;  %v1205_v50 = vld [vmem:[#allocation2 + $0xc8] sm:$0xff]  ;;  %v10192_v17 = vpack.c.bf16 %v1203_v18, %v1202_v45  ;;  %v1207_v12 = vld [vmem:[#allocation2 + $0xe0] sm:$0xff]  ;;  %v1208_v54 = vld [vmem:[#allocation2 + $0xf0] sm:$0xff] }
  0xc7   : > { %7755 = vmatprep.mubr.msk.bf16.mxu1 %vm550_vm0, %v1380_v1  ;;  %8080 = vmatmul.mubr.msk.bf16.gmra.mrb[12].mxu0 %vm550_vm0, %v4020_v53  ;;  %v1192_v1 = vld [vmem:[#allocation2 + $0x30] sm:$0xff]  ;;  %v3999_v33 = vld [vmem:[#allocation2 + $0x2a2] sm:$0xff]  ;;  %v4004_v42 = vld [vmem:[#allocation2 + $0x2da] sm:$0xff] }
  0xc8   : > { %8083 = vmatprep.mubr.msk.bf16.mxu0 %vm550_vm0, %v4021_v7  ;;  %v10131_v53 = vpack.c.bf16 %v1193_v14, %v1192_v1  ;;  %v10136_v7 = vpack.c.bf16 %v3984_v9, %v3983_v11  ;;  %v3997_v49 = vld [vmem:[#allocation2 + $0x28a] sm:$0xff]  ;;  %v4002_v1 = vld [vmem:[#allocation2 + $0x2c2] sm:$0xff]  ;;  %v4003_v23 = vld [vmem:[#allocation2 + $0x2d2] sm:$0xff] }
  0xc9   : > { %v10200_v38 = vpack.c.bf16 %v3998_v59, %v3997_v49  ;;  %v1210_v11 = vld [vmem:[#allocation2 + $0x108] sm:$0xff]  ;;  %v1211_v9 = vld [vmem:[#allocation2 + $0x110] sm:$0xff]  ;;  %v1212_v25 = vld [vmem:[#allocation2 + $0x120] sm:$0xff] }
  0xca   : > { %v1213_v26 = vld [vmem:[#allocation2 + $0x128] sm:$0xff]  ;;  %v1214_v41 = vld [vmem:[#allocation2 + $0x138] sm:$0xff]  ;;  %v1215_v6 = vld [vmem:[#allocation2 + $0x140] sm:$0xff] }
  0xcb   : > { %v10226_v30 = vpack.c.bf16 %v1213_v26, %v1212_v25  ;;  %v4005_v29 = vld [vmem:[#allocation2 + $0x2ea] sm:$0xff]  ;;  %v4007_v46 = vld [vmem:[#allocation2 + $0x302] sm:$0xff]  ;;  %v4011_v49 = vld [vmem:[#allocation2 + $0x332] sm:$0xff] }
  0xcc   : > { %v4008_v52 = vld [vmem:[#allocation2 + $0x30a] sm:$0xff]  ;;  %v4012_v59 = vld [vmem:[#allocation2 + $0x33a] sm:$0xff] }
  0xcd   : > { %v1218_v18 = vld [vmem:[#allocation2 + $0x168] sm:$0xff]  ;;  %v1228_v26 = vld [vmem:[#allocation2 + $0x210] sm:$0xff] }
  0xce   : > { %7756 = vmatmul.mubr.msk.bf16.gmra.mrb[48].mxu1 %vm550_vm0, %v1381_v47  ;;  %v3988_v47 = vld [vmem:[#allocation2 + $0x21a] sm:$0xff]  ;;  %v8933_v25 = vld [vmem:[%s11198_s1 + $0xe8] sm:$0xff]  }
  0xcf   : > { %7759 = vmatprep.mubr.msk.bf16.mxu1 %vm550_vm0, %v1382_v62  ;;  %8084 = vmatmul.mubr.msk.bf16.gmra.mrb[16].mxu0 %vm550_vm0, %v4022_v19  ;;  %v8932_v62 = vld [vmem:[%s11198_s1 + $0x58] sm:$0xff]  }
  0xd0   : > { %8087 = vmatprep.mubr.msk.bf16.mxu0 %vm550_vm0, %v4023_v31  ;;  %v1198_v31 = vld [vmem:[#allocation2 + $0x78] sm:$0xff] }
  0xd1   : > { %v10175_v5 = vpack.c.bf16 %v1199_v13, %v1198_v31  ;;  %v1217_v31 = vld [vmem:[#allocation2 + $0x158] sm:$0xff]  ;;  %v10240_v13 = vpack.c.bf16 %v1215_v6, %v1214_v41  ;;  %v1233_v41 = vld [vmem:[#allocation2 + $0x248] sm:$0xff] }
  0xd6   : > { %7760 = vmatmul.mubr.msk.bf16.gmra.mrb[52].mxu1 %vm550_vm0, %v1383_v3  ;;  %v10169_v3 = vld [vmem:[%s11198_s1 + $0x60] sm:$0xff]  }
  0xd7   : > { %7763 = vmatprep.mubr.msk.bf16.mxu1 %vm550_vm0, %v1384_v22  ;;  %8088 = vmatmul.mubr.msk.bf16.gmra.mrb[20].mxu0 %vm550_vm0, %v4024_v32  ;;  %v3992_v22 = vld [vmem:[#allocation2 + $0x24a] sm:$0xff]  ;;  %v3994_v32 = vld [vmem:[#allocation2 + $0x262] sm:$0xff] }
  0xd8   : > { %8091 = vmatprep.mubr.msk.bf16.mxu0 %vm550_vm0, %v10108_v40  ;;  %v10180_v27 = vpack.c.bf16 %v3992_v22, %v3991_v48  ;;  %v10184_v34 = vpack.c.bf16 %v3994_v32, %v3993_v16  ;;  %v4009_v22 = vld [vmem:[#allocation2 + $0x31a] sm:$0xff]  ;;  %v4010_v16 = vld [vmem:[#allocation2 + $0x322] sm:$0xff]  ;;  %v10244_v32 = vpack.c.bf16 %v4008_v52, %v4007_v46  ;;  %v1236_v46 = vld [vmem:[#allocation2 + $0x270] sm:$0xff] }
  0xd9   : > { %v10248_v45 = vpack.c.bf16 %v4010_v16, %v4009_v22  ;;  %v1237_v52 = vld [vmem:[#allocation2 + $0x278] sm:$0xff] }
  0xda   : > { %v10315_v16 = vpack.c.bf16 %v1237_v52, %v1236_v46  ;;  %v8936_v52 = vld [vmem:[%s11198_s1 + $0x68] sm:$0xff]  }
  0xde   : > { %7764 = vmatmul.mubr.msk.bf16.gmra.mrb[56].mxu1 %vm550_vm0, %v1385_v2  ;;  %v1204_v2 = vld [vmem:[#allocation2 + $0xc0] sm:$0xff] }
  0xdf   : > { %7767 = vmatprep.mubr.msk.bf16.mxu1 %vm550_vm0, %v1386_v51  ;;  %8092 = vmatmul.mubr.msk.bf16.gmra.mrb[24].mxu0 %vm550_vm0, %v10114_v28  ;;  %v3995_v51 = vld [vmem:[#allocation2 + $0x272] sm:$0xff]  ;;  %v10194_v4 = vpack.c.bf16 %v1205_v50, %v1204_v2 }
  0xe0   : > { %8095 = vmatprep.mubr.msk.bf16.mxu0 %vm550_vm0, %v10117_v58  ;;  %v10196_v61 = vpack.c.bf16 %v3996_v8, %v3995_v51  ;;  %v1219_v2 = vld [vmem:[#allocation2 + $0x170] sm:$0xff]  ;;  %v1221_v51 = vld [vmem:[#allocation2 + $0x1b8] sm:$0xff] }
  0xe1   : > { %v1220_v50 = vld [vmem:[#allocation2 + $0x1b0] sm:$0xff]  ;;  %v10256_v8 = vpack.c.bf16 %v1219_v2, %v1218_v18  ;;  %v1238_v18 = vld [vmem:[#allocation2 + $0x288] sm:$0xff] }
  0xe2   : > { %v1239_v2 = vld [vmem:[#allocation2 + $0x290] sm:$0xff] }
  0xe6   : > { %7768 = vmatmul.mubr.msk.bf16.gmra.mrb[60].mxu1 %vm550_vm0, %v1387_v10  ;;  %v1206_v10 = vld [vmem:[#allocation2 + $0xd8] sm:$0xff] }
  0xe7   : > { %7779 = vmatprep.mubr.msk.bf16.mxu1 %vm550_vm0, %v1252_v39  ;;  %8096 = vmatmul.mubr.msk.bf16.gmra.mrb[28].mxu0 %vm550_vm0, %v4028_v55  ;;  %v1209_v39 = vld [vmem:[#allocation2 + $0xf8] sm:$0xff]  ;;  %v10208_v15 = vpack.c.bf16 %v1207_v12, %v1206_v10  ;;  %v4000_v55 = vld [vmem:[#allocation2 + $0x2aa] sm:$0xff]  ;;  %v1268_v10 = vpack.c.bf16 %v1221_v51, %v1220_v50  ;;  %v4044_v12 = vpack.c.bf16 %v4012_v59, %v4011_v49  ;;  %v1240_v50 = vld [vmem:[#allocation2 + $0x2a0] sm:$0xff] }
  0xe8   : > { %8099 = vmatprep.mubr.msk.bf16.mxu0 %vm550_vm0, %v10125_v60  ;;  %v10210_v63 = vpack.c.bf16 %v1209_v39, %v1208_v54  ;;  %v10212_v14 = vpack.c.bf16 %v4000_v55, %v3999_v33  ;;  %v1222_v54 = vld [vmem:[#allocation2 + $0x1c8] sm:$0xff]  ;;  %v1223_v39 = vld [vmem:[#allocation2 + $0x1d0] sm:$0xff]  ;;  %v1224_v33 = vld [vmem:[#allocation2 + $0x1e0] sm:$0xff] }
  0xe9   : > { %v1225_v55 = vld [vmem:[#allocation2 + $0x1e8] sm:$0xff]  ;;  %v1242_v49 = vld [vmem:[#allocation2 + $0x2b8] sm:$0xff]  ;;  %v1243_v59 = vld [vmem:[#allocation2 + $0x2c0] sm:$0xff] }
  0xea   : > { %v1241_v51 = vld [vmem:[#allocation2 + $0x2a8] sm:$0xff] }
  0xee   : > { %7780 = vmatmul.mubr.msk.bf16.vlgmr.msra.gmra.mrb[0].mxu1 %vm550_vm0, %v1253_v24  ;;  %v10216_v24 = vpack.c.bf16 %v4002_v1, %v4001_v57  ;;  %v1269_v57 = vpack.c.bf16 %v1223_v39, %v1222_v54  ;;  %v10264_v1 = vpack.c.bf16 %v1225_v55, %v1224_v33  ;;  %v1246_v54 = vld [vmem:[#allocation2 + $0x2e8] sm:$0xff]  ;;  %v1247_v39 = vld [vmem:[#allocation2 + $0x2f0] sm:$0xff]  ;;  %v1248_v33 = vld [vmem:[#allocation2 + $0x300] sm:$0xff] }
  0xef   : > { %7844 = vmatpush3.bf16.msra.mxu1 %v9939_v35  ;;  %7783 = vmatprep.mubr.msk.bf16.mxu1 %vm550_vm0, %v10131_v53  ;;  %v3987_v35 = vld [vmem:[#allocation2 + $0x212] sm:$0xff]  ;;  %v1249_v55 = vld [vmem:[#allocation2 + $0x308] sm:$0xff] }
  0xf0   : > { %7845 = vmatprep.subr.bf16.mxu1 %v8928_v20  ;;  %8100 = vmatmul.mubr.msk.bf16.gmra.mrb[32].mxu0 %vm550_vm0, %v10136_v7  ;;  %v10158_v19 = vpack.c.bf16 %v3988_v47, %v3987_v35  ;;  %v10228_v35 = vpack.c.bf16 %v4004_v42, %v4003_v23  ;;  %v1229_v23 = vld [vmem:[#allocation2 + $0x218] sm:$0xff] }
  0xf1   : > { %8103 = vmatprep.mubr.msk.bf16.mxu0 %vm550_vm0, %v10139_v0  ;;  %v10279_v42 = vpack.c.bf16 %v1229_v23, %v1228_v26  ;;  %v1251_v26 = vld [vmem:[#allocation2 + $0x320] sm:$0xff]  ;;  %v2216_v23 = vld [vmem:[#allocation2 + $0xa] sm:$0xff] }
  0xf3   : > { %7846 = vmatpush3.bf16.msra.mxu1 %v8928_v20  ;;  %v10224_v20 = vpack.c.bf16 %v1211_v9, %v1210_v11  ;;  %v1226_v11 = vld [vmem:[#allocation2 + $0x1f8] sm:$0xff]  ;;  %v1227_v9 = vld [vmem:[#allocation2 + $0x200] sm:$0xff] }
  0xf4   : > { %7847 = vmatprep.subr.bf16.mxu1 %v8930_v36 }
  0xf6   : > { %7784 = vmatmul.mubr.msk.bf16.gmra.mrb[4].mxu1 %vm550_vm0, %v10151_v37 }
  0xf7   : > { %7787 = vmatprep.mubr.msk.bf16.mxu1 %vm550_vm0, %v10153_v43  ;;  %7848 = vmatpush3.bf16.msra.mxu1 %v8930_v36  ;;  %v4006_v36 = vld [vmem:[#allocation2 + $0x2f2] sm:$0xff] }
  0xf8   : > { %7849 = vmatprep.subr.bf16.mxu1 %v8932_v62  ;;  %8104 = vmatmul.mubr.msk.bf16.gmra.mrb[36].mxu0 %vm550_vm0, %v10158_v19  ;;  %v10232_v47 = vpack.c.bf16 %v4006_v36, %v4005_v29  ;;  %v8935_v29 = vld [vmem:[%s11198_s1 + $0xf0] sm:$0xff]   ;;  %v1232_v36 = vld [vmem:[#allocation2 + $0x240] sm:$0xff] }
  0xf9   : > { %8107 = vmatprep.mubr.msk.bf16.mxu0 %vm550_vm0, %v10162_v21 }
  0xfb   : > { %7850 = vmatpush3.bf16.msra.mxu1 %v8932_v62  ;;  %v1216_v62 = vld [vmem:[#allocation2 + $0x150] sm:$0xff] }
  0xfc   : > { %7915 = vmatprep.subr.bf16.mxu1 %v10169_v3  ;;  %v10242_v48 = vpack.c.bf16 %v1217_v31, %v1216_v62  ;;  %v10297_v62 = vpack.c.bf16 %v1233_v41, %v1232_v36  ;;  %v10302_v31 = vld [vmem:[%s11198_s1 + $0x100] sm:$0xff]  }
  0xfd   : > { %v2217_v36 = vld [vmem:[#allocation2 + $0x1a] sm:$0xff]  ;;  %v2218_v41 = vld [vmem:[#allocation2 + $0x22] sm:$0xff] }
  0xfe   : > { %7788 = vmatmul.mubr.msk.bf16.gmra.mrb[8].mxu1 %vm550_vm0, %v10175_v5 }
  0xff   : > { %7791 = vmatprep.mubr.msk.bf16.mxu1 %vm550_vm0, %v10177_v44 }
 0x100   : > { %8108 = vmatmul.mubr.msk.bf16.gmra.mrb[40].mxu0 %vm550_vm0, %v10180_v27 }
 0x101   : > { %8111 = vmatprep.mubr.msk.bf16.mxu0 %vm550_vm0, %v10184_v34 }
 0x106   : > { %7792 = vmatmul.mubr.msk.bf16.gmra.mrb[12].mxu1 %vm550_vm0, %v10192_v17 }
 0x107   : > { %7795 = vmatprep.mubr.msk.bf16.mxu1 %vm550_vm0, %v10194_v4 }
 0x108   : > { %8112 = vmatmul.mubr.msk.bf16.gmra.mrb[44].mxu0 %vm550_vm0, %v10196_v61 }
 0x109   : > { %8115 = vmatprep.mubr.msk.bf16.mxu0 %vm550_vm0, %v10200_v38 }
 0x10e   : > { %7796 = vmatmul.mubr.msk.bf16.gmra.mrb[16].mxu1 %vm550_vm0, %v10208_v15 }
 0x10f   : > { %7799 = vmatprep.mubr.msk.bf16.mxu1 %vm550_vm0, %v10210_v63 }
 0x110   : > { %8116 = vmatmul.mubr.msk.bf16.gmra.mrb[48].mxu0 %vm550_vm0, %v10212_v14 }
 0x111   : > { %8119 = vmatprep.mubr.msk.bf16.mxu0 %vm550_vm0, %v10216_v24 }
 0x116   : > { %7800 = vmatmul.mubr.msk.bf16.gmra.mrb[20].mxu1 %vm550_vm0, %v10224_v20 }
 0x117   : > { %7803 = vmatprep.mubr.msk.bf16.mxu1 %vm550_vm0, %v10226_v30 }
 0x118   : > { %8120 = vmatmul.mubr.msk.bf16.gmra.mrb[52].mxu0 %vm550_vm0, %v10228_v35 }
 0x119   : > { %8123 = vmatprep.mubr.msk.bf16.mxu0 %vm550_vm0, %v10232_v47 }
 0x11e   : > { %7804 = vmatmul.mubr.msk.bf16.gmra.mrb[24].mxu1 %vm550_vm0, %v10240_v13 }
 0x11f   : > { %7807 = vmatprep.mubr.msk.bf16.mxu1 %vm550_vm0, %v10242_v48 }
 0x120   : > { %8124 = vmatmul.mubr.msk.bf16.gmra.mrb[56].mxu0 %vm550_vm0, %v10244_v32 }
 0x121   : > { %8127 = vmatprep.mubr.msk.bf16.mxu0 %vm550_vm0, %v10248_v45 }
 0x126   : > { %7808 = vmatmul.mubr.msk.bf16.gmra.mrb[28].mxu1 %vm550_vm0, %v10256_v8 }
 0x127   : > { %7811 = vmatprep.mubr.msk.bf16.mxu1 %vm550_vm0, %v1268_v10  ;;  %v1244_v10 = vld [vmem:[#allocation2 + $0x2d0] sm:$0xff] }
 0x128   : > { %8128 = vmatmul.mubr.msk.bf16.gmra.mrb[60].mxu0 %vm550_vm0, %v4044_v12  ;;  %v1245_v12 = vld [vmem:[#allocation2 + $0x2d8] sm:$0xff] }
 0x129   : > { %8139 = vmatprep.mubr.msk.bf16.mxu0 %vm550_vm0, %v10131_v53  ;;  %v10277_v53 = vpack.c.bf16 %v1227_v9, %v1226_v11  ;;  %v4557_v11 = vld [vmem:[#allocation2 + $0x188] sm:$0xff] }
 0x12e   : > { %7812 = vmatmul.mubr.msk.bf16.gmra.mrb[32].mxu1 %vm550_vm0, %v1269_v57  ;;  %v4556_v57 = vld [vmem:[#allocation2 + $0x180] sm:$0xff] }
 0x12f   : > { %7815 = vmatprep.mubr.msk.bf16.mxu1 %vm550_vm0, %v10264_v1  ;;  %v10355_v9 = vpack.c.bf16 %v4557_v11, %v4556_v57  ;;  %v2232_v57 = vld [vmem:[#allocation2 + $0xca] sm:$0xff] }
 0x130   : > { %8140 = vmatmul.mubr.msk.bf16.vlgmr.msra.gmra.mrb[0].mxu0 %vm550_vm0, %v10151_v37  ;;  %v1231_v37 = vld [vmem:[#allocation2 + $0x230] sm:$0xff] }
 0x131   : > { %8204 = vmatpush3.bf16.msra.mxu0 %v10089_v56  ;;  %8143 = vmatprep.mubr.msk.bf16.mxu0 %vm550_vm0, %v10153_v43  ;;  %v1230_v56 = vld [vmem:[#allocation2 + $0x228] sm:$0xff]  ;;  %v8937_v43 = vld [vmem:[%s11198_s1 + $0xf8] sm:$0xff]  }
 0x132   : > { %8205 = vmatprep.subr.bf16.mxu0 %v8933_v25  ;;  %v10295_v6 = vpack.c.bf16 %v1231_v37, %v1230_v56  ;;  %v4559_v56 = vld [vmem:[#allocation2 + $0x1a0] sm:$0xff] }
 0x135   : > { %8206 = vmatpush3.bf16.msra.mxu0 %v8933_v25  ;;  %v1250_v25 = vld [vmem:[#allocation2 + $0x318] sm:$0xff] }
 0x136   : > { %7816 = vmatmul.mubr.msk.bf16.gmra.mrb[36].mxu1 %vm550_vm0, %v10277_v53  ;;  %8207 = vmatprep.subr.bf16.mxu0 %v8935_v29 }
 0x137   : > { %7819 = vmatprep.mubr.msk.bf16.mxu1 %vm550_vm0, %v10279_v42 }
 0x138   : > { %8144 = vmatmul.mubr.msk.bf16.gmra.mrb[4].mxu0 %vm550_vm0, %v10175_v5  ;;  %v1234_v5 = vld [vmem:[#allocation2 + $0x258] sm:$0xff] }
 0x139   : > { %8147 = vmatprep.mubr.msk.bf16.mxu0 %vm550_vm0, %v10177_v44  ;;  %8208 = vmatpush3.bf16.msra.mxu0 %v8935_v29  ;;  %v1235_v44 = vld [vmem:[#allocation2 + $0x260] sm:$0xff]  ;;  %v4558_v29 = vld [vmem:[#allocation2 + $0x198] sm:$0xff] }
 0x13a   : > { %8209 = vmatprep.subr.bf16.mxu0 %v8937_v43  ;;  %v10313_v22 = vpack.c.bf16 %v1235_v44, %v1234_v5  ;;  %v2219_v5 = vld [vmem:[#allocation2 + $0x32] sm:$0xff]  ;;  %v2220_v44 = vld [vmem:[#allocation2 + $0x3a] sm:$0xff] }
 0x13b   : > { %v10371_v46 = vpack.c.bf16 %v2220_v44, %v2219_v5  ;;  %v2247_v5 = vld [vmem:[#allocation2 + $0x1b2] sm:$0xff]  ;;  %v2248_v44 = vld [vmem:[#allocation2 + $0x1ba] sm:$0xff] }
 0x13d   : > { %8210 = vmatpush3.bf16.msra.mxu0 %v8937_v43  ;;  %v4607_v43 = vpack.c.bf16 %v4559_v56, %v4558_v29  ;;  %v2236_v29 = vld [vmem:[#allocation2 + $0xfa] sm:$0xff]  ;;  %v2237_v56 = vld [vmem:[#allocation2 + $0x10a] sm:$0xff] }
 0x13e   : > { %7820 = vmatmul.mubr.msk.bf16.gmra.mrb[40].mxu1 %vm550_vm0, %v10295_v6  ;;  %8275 = vmatprep.subr.bf16.mxu0 %v10302_v31 }
 0x13f   : > { %7823 = vmatprep.mubr.msk.bf16.mxu1 %vm550_vm0, %v10297_v62 }
 0x140   : > { %8148 = vmatmul.mubr.msk.bf16.gmra.mrb[8].mxu0 %vm550_vm0, %v10192_v17  ;;  %v10325_v17 = vpack.c.bf16 %v1239_v2, %v1238_v18  ;;  %v2221_v18 = vld [vmem:[#allocation2 + $0x4a] sm:$0xff]  ;;  %v2222_v2 = vld [vmem:[#allocation2 + $0x52] sm:$0xff] }
 0x141   : > { %8151 = vmatprep.mubr.msk.bf16.mxu0 %vm550_vm0, %v10194_v4  ;;  %v10327_v4 = vpack.c.bf16 %v1241_v51, %v1240_v50  ;;  %v2223_v50 = vld [vmem:[#allocation2 + $0x62] sm:$0xff]  ;;  %v2224_v51 = vld [vmem:[#allocation2 + $0x6a] sm:$0xff] }
 0x146   : > { %7824 = vmatmul.mubr.msk.bf16.gmra.mrb[44].mxu1 %vm550_vm0, %v10313_v22 }
 0x147   : > { %7827 = vmatprep.mubr.msk.bf16.mxu1 %vm550_vm0, %v10315_v16 }
 0x148   : > { %8152 = vmatmul.mubr.msk.bf16.gmra.mrb[12].mxu0 %vm550_vm0, %v10208_v15  ;;  %v10337_v15 = vpack.c.bf16 %v1243_v59, %v1242_v49  ;;  %v10387_v49 = vpack.c.bf16 %v2222_v2, %v2221_v18  ;;  %v8940_v59 = vld [vmem:[%s11198_s1 + $0x78] sm:$0xff]  }
 0x149   : > { %8155 = vmatprep.mubr.msk.bf16.mxu0 %vm550_vm0, %v10210_v63  ;;  %v10339_v63 = vpack.c.bf16 %v1245_v12, %v1244_v10  ;;  %v2226_v10 = vld [vmem:[#allocation2 + $0x82] sm:$0xff]  ;;  %v2228_v12 = vld [vmem:[#allocation2 + $0x9a] sm:$0xff] }
 0x14a   : > { %v5107_v18 = vld [vmem:[#allocation2 + $0x39] sm:$0xff] }
 0x14e   : > { %7828 = vmatmul.mubr.msk.bf16.gmra.mrb[48].mxu1 %vm550_vm0, %v10325_v17 }
 0x14f   : > { %7831 = vmatprep.mubr.msk.bf16.mxu1 %vm550_vm0, %v10327_v4 }
 0x150   : > { %8156 = vmatmul.mubr.msk.bf16.gmra.mrb[16].mxu0 %vm550_vm0, %v10224_v20  ;;  %v10349_v20 = vpack.c.bf16 %v1247_v39, %v1246_v54 }
 0x151   : > { %8159 = vmatprep.mubr.msk.bf16.mxu0 %vm550_vm0, %v10226_v30  ;;  %v10351_v30 = vpack.c.bf16 %v1249_v55, %v1248_v33  ;;  %v10409_v33 = vld [vmem:[%s11198_s1 + $0x80] sm:$0xff]  }
 0x152   : > { %v2231_v55 = vld [vmem:[#allocation2 + $0xc2] sm:$0xff] }
 0x156   : > { %7832 = vmatmul.mubr.msk.bf16.gmra.mrb[52].mxu1 %vm550_vm0, %v10337_v15 }
 0x157   : > { %7835 = vmatprep.mubr.msk.bf16.mxu1 %vm550_vm0, %v10339_v63 }
 0x158   : > { %8160 = vmatmul.mubr.msk.bf16.gmra.mrb[20].mxu0 %vm550_vm0, %v10240_v13  ;;  %v2215_v13 = vld [vmem:[#allocation2 + $0x2] sm:$0xff] }
 0x159   : > { %8163 = vmatprep.mubr.msk.bf16.mxu0 %vm550_vm0, %v10242_v48  ;;  %v10363_v48 = vpack.c.bf16 %v1251_v26, %v1250_v25  ;;  %v2279_v37 = vpack.c.bf16 %v2216_v23, %v2215_v13  ;;  %v10422_v25 = vpack.c.bf16 %v2232_v57, %v2231_v55  ;;  %v2233_v26 = vld [vmem:[#allocation2 + $0xda] sm:$0xff]  ;;  %v2234_v13 = vld [vmem:[#allocation2 + $0xe2] sm:$0xff]  ;;  %v2235_v23 = vld [vmem:[#allocation2 + $0xf2] sm:$0xff] }
 0x15a   : > { %v5117_v55 = vld [vmem:[#allocation2 + $0xb1] sm:$0xff]  ;;  %v5118_v57 = vld [vmem:[#allocation2 + $0xc1] sm:$0xff] }
 0x15e   : > { %7836 = vmatmul.mubr.msk.bf16.gmra.mrb[56].mxu1 %vm550_vm0, %v10349_v20 }
 0x15f   : > { %7839 = vmatprep.mubr.msk.bf16.mxu1 %vm550_vm0, %v10351_v30 }
 0x160   : > { %8164 = vmatmul.mubr.msk.bf16.gmra.mrb[24].mxu0 %vm550_vm0, %v10256_v8  ;;  %v2280_v8 = vpack.c.bf16 %v2218_v41, %v2217_v36  ;;  %v2240_v36 = vld [vmem:[#allocation2 + $0x12a] sm:$0xff]  ;;  %v4589_v41 = vld [vmem:[#allocation2 + $0x338] sm:$0xff] }
 0x161   : > { %8167 = vmatprep.mubr.msk.bf16.mxu0 %vm550_vm0, %v10355_v9 }
 0x166   : > { %7840 = vmatmul.mubr.msk.bf16.gmra.mrb[60].mxu1 %vm550_vm0, %v10363_v48 }
 0x167   : > { %7851 = vmatprep.mubr.msk.bf16.mxu1 %vm550_vm0, %v2279_v37  ;;  %v2238_v37 = vld [vmem:[#allocation2 + $0x112] sm:$0xff] }
 0x168   : > { %8168 = vmatmul.mubr.msk.bf16.gmra.mrb[28].mxu0 %vm550_vm0, %v4607_v43  ;;  %v2239_v43 = vld [vmem:[#allocation2 + $0x122] sm:$0xff] }
 0x169   : > { %8171 = vmatprep.mubr.msk.bf16.mxu0 %vm550_vm0, %v10264_v1  ;;  %v8938_v1 = vld [vmem:[%s11198_s1 + $0x70] sm:$0xff]  }
 0x16e   : > { %7852 = vmatmul.mubr.msk.bf16.vlgmr.msra.gmra.mrb[0].mxu1 %vm550_vm0, %v2280_v8  ;;  %v2295_v8 = vpack.c.bf16 %v2248_v44, %v2247_v5  ;;  %v5130_v44 = vld [vmem:[#allocation2 + $0x151] sm:$0xff] }
 0x16f   : > { %7916 = vmatpush3.bf16.msra.mxu1 %v10169_v3  ;;  %7855 = vmatprep.mubr.msk.bf16.mxu1 %vm550_vm0, %v10371_v46  ;;  %v10389_v3 = vpack.c.bf16 %v2224_v51, %v2223_v50  ;;  %v5110_v50 = vld [vmem:[#allocation2 + $0x61] sm:$0xff]  ;;  %v5111_v51 = vld [vmem:[#allocation2 + $0x69] sm:$0xff] }
 0x170   : > { %7917 = vmatprep.subr.bf16.mxu1 %v8936_v52  ;;  %8172 = vmatmul.mubr.msk.bf16.gmra.mrb[32].mxu0 %vm550_vm0, %v10277_v53  ;;  %v2225_v53 = vld [vmem:[#allocation2 + $0x7a] sm:$0xff] }
 0x171   : > { %8175 = vmatprep.mubr.msk.bf16.mxu0 %vm550_vm0, %v10279_v42  ;;  %v2227_v42 = vld [vmem:[#allocation2 + $0x92] sm:$0xff]  ;;  %v10402_v54 = vpack.c.bf16 %v2226_v10, %v2225_v53  ;;  %v5113_v10 = vld [vmem:[#allocation2 + $0x81] sm:$0xff] }
 0x172   : > { %v10404_v39 = vpack.c.bf16 %v2228_v12, %v2227_v42  ;;  %v5112_v53 = vld [vmem:[#allocation2 + $0x79] sm:$0xff]  ;;  %v5114_v42 = vld [vmem:[#allocation2 + $0x91] sm:$0xff] }
 0x173   : > { %7918 = vmatpush3.bf16.msra.mxu1 %v8936_v52  ;;  %v5106_v52 = vld [vmem:[#allocation2 + $0x31] sm:$0xff]  ;;  %v5115_v12 = vld [vmem:[#allocation2 + $0x99] sm:$0xff] }
 0x174   : > { %7919 = vmatprep.subr.bf16.mxu1 %v8938_v1 }
 0x176   : > { %7856 = vmatmul.mubr.msk.bf16.gmra.mrb[4].mxu1 %vm550_vm0, %v10387_v49 }
 0x177   : > { %7859 = vmatprep.mubr.msk.bf16.mxu1 %vm550_vm0, %v10389_v3  ;;  %7920 = vmatpush3.bf16.msra.mxu1 %v8938_v1 }
 0x178   : > { %7921 = vmatprep.subr.bf16.mxu1 %v8940_v59  ;;  %8176 = vmatmul.mubr.msk.bf16.gmra.mrb[36].mxu0 %vm550_vm0, %v10295_v6  ;;  %v2229_v6 = vld [vmem:[#allocation2 + $0xaa] sm:$0xff] }
 0x179   : > { %8179 = vmatprep.mubr.msk.bf16.mxu0 %vm550_vm0, %v10297_v62  ;;  %v2230_v62 = vld [vmem:[#allocation2 + $0xb2] sm:$0xff] }
 0x17a   : > { %v10420_v11 = vpack.c.bf16 %v2230_v62, %v2229_v6  ;;  %v5174_v6 = vpack.c.bf16 %v5115_v12, %v5114_v42  ;;  %v5116_v62 = vld [vmem:[#allocation2 + $0xa9] sm:$0xff]  ;;  %v5140_v12 = vld [vmem:[#allocation2 + $0x1f9] sm:$0xff] }
 0x17b   : > { %7922 = vmatpush3.bf16.msra.mxu1 %v8940_v59  ;;  %v5172_v59 = vpack.c.bf16 %v5111_v51, %v5110_v50  ;;  %v5138_v51 = vld [vmem:[#allocation2 + $0x1e1] sm:$0xff] }
 0x17c   : > { %8347 = vmatprep.subr.bf16.mxu1 %v10409_v33 }
 0x17e   : > { %7860 = vmatmul.mubr.msk.bf16.gmra.mrb[8].mxu1 %vm550_vm0, %v10402_v54 }
 0x17f   : > { %7863 = vmatprep.mubr.msk.bf16.mxu1 %vm550_vm0, %v10404_v39 }
 0x180   : > { %8180 = vmatmul.mubr.msk.bf16.gmra.mrb[40].mxu0 %vm550_vm0, %v10313_v22  ;;  %v10432_v22 = vpack.c.bf16 %v2234_v13, %v2233_v26  ;;  %v5119_v26 = vld [vmem:[#allocation2 + $0xc9] sm:$0xff]  ;;  %v5120_v13 = vld [vmem:[#allocation2 + $0xd9] sm:$0xff] }
 0x181   : > { %8183 = vmatprep.mubr.msk.bf16.mxu0 %vm550_vm0, %v10315_v16  ;;  %v10434_v16 = vpack.c.bf16 %v2236_v29, %v2235_v23  ;;  %v5121_v23 = vld [vmem:[#allocation2 + $0xe1] sm:$0xff]  ;;  %v5122_v29 = vld [vmem:[#allocation2 + $0xf1] sm:$0xff] }
 0x186   : > { %7864 = vmatmul.mubr.msk.bf16.gmra.mrb[12].mxu1 %vm550_vm0, %v10420_v11 }
 0x187   : > { %7867 = vmatprep.mubr.msk.bf16.mxu1 %vm550_vm0, %v10422_v25 }
 0x188   : > { %8184 = vmatmul.mubr.msk.bf16.gmra.mrb[44].mxu0 %vm550_vm0, %v10325_v17  ;;  %v10444_v17 = vpack.c.bf16 %v2238_v37, %v2237_v56  ;;  %v5123_v56 = vld [vmem:[#allocation2 + $0xf9] sm:$0xff]  ;;  %v5177_v37 = vpack.c.bf16 %v5121_v23, %v5120_v13  ;;  %v5144_v23 = vld [vmem:[#allocation2 + $0x229] sm:$0xff] }
 0x189   : > { %8187 = vmatprep.mubr.msk.bf16.mxu0 %vm550_vm0, %v10327_v4  ;;  %v10446_v4 = vpack.c.bf16 %v2240_v36, %v2239_v43  ;;  %v5178_v43 = vpack.c.bf16 %v5123_v56, %v5122_v29  ;;  %v5126_v36 = vld [vmem:[#allocation2 + $0x121] sm:$0xff] }
 0x18a   : > { %v5146_v56 = vld [vmem:[#allocation2 + $0x241] sm:$0xff] }
 0x18e   : > { %7868 = vmatmul.mubr.msk.bf16.gmra.mrb[16].mxu1 %vm550_vm0, %v10432_v22 }
 0x18f   : > { %7871 = vmatprep.mubr.msk.bf16.mxu1 %vm550_vm0, %v10434_v16 }
 0x190   : > { %8188 = vmatmul.mubr.msk.bf16.gmra.mrb[48].mxu0 %vm550_vm0, %v10337_v15  ;;  %v4588_v15 = vld [vmem:[#allocation2 + $0x330] sm:$0xff] }
 0x191   : > { %8191 = vmatprep.mubr.msk.bf16.mxu0 %vm550_vm0, %v10339_v63  ;;  %v10458_v63 = vpack.c.bf16 %v4589_v41, %v4588_v15  ;;  %v5127_v15 = vld [vmem:[#allocation2 + $0x129] sm:$0xff] }
 0x192   : > { %v5180_v5 = vpack.c.bf16 %v5127_v15, %v5126_v36  ;;  %v2803_v36 = vld [vmem:[#allocation2 + $0x90] sm:$0xff]  ;;  %v2804_v15 = vld [vmem:[#allocation2 + $0x98] sm:$0xff] }
 0x196   : > { %7872 = vmatmul.mubr.msk.bf16.gmra.mrb[20].mxu1 %vm550_vm0, %v10444_v17 }
 0x197   : > { %7875 = vmatprep.mubr.msk.bf16.mxu1 %vm550_vm0, %v10446_v4 }
 0x198   : > { %8192 = vmatmul.mubr.msk.bf16.gmra.mrb[52].mxu0 %vm550_vm0, %v10349_v20  ;;  %v4590_v20 = vld [vmem:[#allocation2 + $0x348] sm:$0xff] }
 0x199   : > { %8195 = vmatprep.mubr.msk.bf16.mxu0 %vm550_vm0, %v10351_v30  ;;  %v4591_v30 = vld [vmem:[#allocation2 + $0x350] sm:$0xff] }
 0x19a   : > { %v4623_v2 = vpack.c.bf16 %v4591_v30, %v4590_v20  ;;  %v5131_v20 = vld [vmem:[#allocation2 + $0x159] sm:$0xff] }
 0x19e   : > { %7876 = vmatmul.mubr.msk.bf16.gmra.mrb[24].mxu1 %vm550_vm0, %v10108_v40  ;;  %v5170_v40 = vpack.c.bf16 %v5107_v18, %v5106_v52  ;;  %v5134_v52 = vld [vmem:[#allocation2 + $0x181] sm:$0xff]  ;;  %v5135_v18 = vld [vmem:[#allocation2 + $0x189] sm:$0xff] }
 0x19f   : > { %7879 = vmatprep.mubr.msk.bf16.mxu1 %vm550_vm0, %v10114_v28  ;;  %v5108_v28 = vld [vmem:[#allocation2 + $0x49] sm:$0xff] }
 0x1a0   : > { %8196 = vmatmul.mubr.msk.bf16.gmra.mrb[56].mxu0 %vm550_vm0, %v10363_v48  ;;  %v5109_v48 = vld [vmem:[#allocation2 + $0x51] sm:$0xff] }
 0x1a1   : > { %8199 = vmatprep.mubr.msk.bf16.mxu0 %vm550_vm0, %v10458_v63  ;;  %v5171_v1 = vpack.c.bf16 %v5109_v48, %v5108_v28  ;;  %v2794_v28 = vld [vmem:[#allocation2 + $0x20] sm:$0xff] }
 0x1a2   : > { %v5137_v48 = vld [vmem:[#allocation2 + $0x1a1] sm:$0xff] }
 0x1a6   : > { %7880 = vmatmul.mubr.msk.bf16.gmra.mrb[28].mxu1 %vm550_vm0, %v10117_v58  ;;  %v8941_v58 = vld [vmem:[%s11198_s1 + $0x108] sm:$0xff]  }
 0x1a7   : > { %7883 = vmatprep.mubr.msk.bf16.mxu1 %vm550_vm0, %v2295_v8  ;;  %v5182_v8 = vpack.c.bf16 %v5131_v20, %v5130_v44  ;;  %v5148_v44 = vld [vmem:[#allocation2 + $0x259] sm:$0xff]  ;;  %v5149_v20 = vld [vmem:[#allocation2 + $0x261] sm:$0xff] }
 0x1a8   : > { %8200 = vmatmul.mubr.msk.bf16.gmra.mrb[60].mxu0 %vm550_vm0, %v4623_v2 }
 0x1a9   : > { %8211 = vmatprep.mubr.msk.bf16.mxu0 %vm550_vm0, %v5170_v40  ;;  %v5184_v40 = vpack.c.bf16 %v5135_v18, %v5134_v52  ;;  %v2807_v18 = vld [vmem:[#allocation2 + $0xc0] sm:$0xff] }
 0x1ae   : > { %7884 = vmatmul.mubr.msk.bf16.gmra.mrb[32].mxu1 %vm550_vm0, %v10125_v60  ;;  %v8942_v60 = vld [vmem:[%s11198_s1 + $0x110] sm:$0xff]  }
 0x1af   : > { %7887 = vmatprep.mubr.msk.bf16.mxu1 %vm550_vm0, %v10136_v7  ;;  %v5173_v7 = vpack.c.bf16 %v5113_v10, %v5112_v53  ;;  %v2797_v53 = vld [vmem:[#allocation2 + $0x48] sm:$0xff]  ;;  %v2798_v10 = vld [vmem:[#allocation2 + $0x50] sm:$0xff] }
 0x1b0   : > { %8212 = vmatmul.mubr.msk.bf16.vlgmr.msra.gmra.mrb[0].mxu0 %vm550_vm0, %v5171_v1  ;;  %v5139_v1 = vld [vmem:[#allocation2 + $0x1e9] sm:$0xff] }
 0x1b1   : > { %8276 = vmatpush3.bf16.msra.mxu0 %v10302_v31  ;;  %8215 = vmatprep.mubr.msk.bf16.mxu0 %vm550_vm0, %v5172_v59  ;;  %v8943_v31 = vld [vmem:[%s11198_s1 + $0x118] sm:$0xff]  }
 0x1b2   : > { %8277 = vmatprep.subr.bf16.mxu0 %v8941_v58 }
 0x1b5   : > { %8278 = vmatpush3.bf16.msra.mxu0 %v8941_v58  ;;  %v2796_v58 = vld [vmem:[#allocation2 + $0x38] sm:$0xff] }
 0x1b6   : > { %7888 = vmatmul.mubr.msk.bf16.gmra.mrb[36].mxu1 %vm550_vm0, %v10139_v0  ;;  %8279 = vmatprep.subr.bf16.mxu0 %v8942_v60  ;;  %v5175_v0 = vpack.c.bf16 %v5117_v55, %v5116_v62  ;;  %v2799_v55 = vld [vmem:[#allocation2 + $0x60] sm:$0xff] }
 0x1b7   : > { %7891 = vmatprep.mubr.msk.bf16.mxu1 %vm550_vm0, %v10158_v19  ;;  %v5176_v19 = vpack.c.bf16 %v5119_v26, %v5118_v57  ;;  %v2800_v57 = vld [vmem:[#allocation2 + $0x68] sm:$0xff]  ;;  %v2801_v26 = vld [vmem:[#allocation2 + $0x78] sm:$0xff] }
 0x1b8   : > { %8216 = vmatmul.mubr.msk.bf16.gmra.mrb[4].mxu0 %vm550_vm0, %v5173_v7  ;;  %v2859_v7 = vpack.c.bf16 %v2798_v10, %v2797_v53  ;;  %v2860_v13 = vpack.c.bf16 %v2800_v57, %v2799_v55  ;;  %v2812_v53 = vld [vmem:[#allocation2 + $0xf8] sm:$0xff]  ;;  %v2813_v10 = vld [vmem:[#allocation2 + $0x108] sm:$0xff] }
 0x1b9   : > { %8219 = vmatprep.mubr.msk.bf16.mxu0 %vm550_vm0, %v5174_v6  ;;  %8280 = vmatpush3.bf16.msra.mxu0 %v8942_v60  ;;  %v5141_v60 = vld [vmem:[#allocation2 + $0x201] sm:$0xff]  ;;  %v5142_v6 = vld [vmem:[#allocation2 + $0x211] sm:$0xff]  ;;  %v5159_v55 = vld [vmem:[#allocation2 + $0x2d9] sm:$0xff] }
 0x1ba   : > { %8281 = vmatprep.subr.bf16.mxu0 %v8943_v31 }
 0x1bd   : > { %8282 = vmatpush3.bf16.msra.mxu0 %v8943_v31  ;;  %v5143_v31 = vld [vmem:[#allocation2 + $0x219] sm:$0xff] }
 0x1be   : > { %7892 = vmatmul.mubr.msk.bf16.gmra.mrb[40].mxu1 %vm550_vm0, %v10162_v21  ;;  %v5124_v21 = vld [vmem:[#allocation2 + $0x109] sm:$0xff]  ;;  %v10534_v62 = vpack.c.bf16 %v5143_v31, %v5142_v6  ;;  %v5158_v31 = vld [vmem:[#allocation2 + $0x2d1] sm:$0xff] }
 0x1bf   : > { %7895 = vmatprep.mubr.msk.bf16.mxu1 %vm550_vm0, %v10180_v27  ;;  %v5125_v27 = vld [vmem:[#allocation2 + $0x111] sm:$0xff] }
 0x1c0   : > { %8220 = vmatmul.mubr.msk.bf16.gmra.mrb[8].mxu0 %vm550_vm0, %v5175_v0  ;;  %v5179_v41 = vpack.c.bf16 %v5125_v27, %v5124_v21  ;;  %v2802_v0 = vld [vmem:[#allocation2 + $0x80] sm:$0xff] }
 0x1c1   : > { %8223 = vmatprep.mubr.msk.bf16.mxu0 %vm550_vm0, %v5176_v19  ;;  %v8945_v19 = vld [vmem:[%s11198_s1 + $0x88] sm:$0xff]   ;;  %v2861_v29 = vpack.c.bf16 %v2802_v0, %v2801_v26  ;;  %v10584_v26 = vpack.c.bf16 %v5159_v55, %v5158_v31  ;;  %v2815_v0 = vld [vmem:[#allocation2 + $0x120] sm:$0xff]  ;;  %v2834_v31 = vld [vmem:[#allocation2 + $0x230] sm:$0xff] }
 0x1c6   : > { %7896 = vmatmul.mubr.msk.bf16.gmra.mrb[44].mxu1 %vm550_vm0, %v10184_v34  ;;  %v5128_v34 = vld [vmem:[#allocation2 + $0x139] sm:$0xff] }
 0x1c7   : > { %7899 = vmatprep.mubr.msk.bf16.mxu1 %vm550_vm0, %v10196_v61  ;;  %v5129_v61 = vld [vmem:[#allocation2 + $0x141] sm:$0xff] }
 0x1c8   : > { %8224 = vmatmul.mubr.msk.bf16.gmra.mrb[12].mxu0 %vm550_vm0, %v5177_v37  ;;  %v5181_v30 = vpack.c.bf16 %v5129_v61, %v5128_v34  ;;  %v5147_v37 = vld [vmem:[#allocation2 + $0x249] sm:$0xff]  ;;  %v8947_v34 = vld [vmem:[%s11198_s1 + $0x98] sm:$0xff]   ;;  %v2862_v61 = vpack.c.bf16 %v2804_v15, %v2803_v36 }
 0x1c9   : > { %8227 = vmatprep.mubr.msk.bf16.mxu0 %vm550_vm0, %v5178_v43  ;;  %v8946_v43 = vld [vmem:[%s11198_s1 + $0x90] sm:$0xff]   ;;  %v10551_v27 = vpack.c.bf16 %v5147_v37, %v5146_v56 }
 0x1ca   : > { %v5161_v56 = vld [vmem:[#allocation2 + $0x2f1] sm:$0xff]  ;;  %v5163_v36 = vld [vmem:[#allocation2 + $0x309] sm:$0xff] }
 0x1ce   : > { %7900 = vmatmul.mubr.msk.bf16.gmra.mrb[48].mxu1 %vm550_vm0, %v10200_v38  ;;  %v5132_v38 = vld [vmem:[#allocation2 + $0x169] sm:$0xff] }
 0x1cf   : > { %7903 = vmatprep.mubr.msk.bf16.mxu1 %vm550_vm0, %v10212_v14  ;;  %v5133_v14 = vld [vmem:[#allocation2 + $0x171] sm:$0xff] }
 0x1d0   : > { %8228 = vmatmul.mubr.msk.bf16.gmra.mrb[16].mxu0 %vm550_vm0, %v5179_v41  ;;  %v5183_v2 = vpack.c.bf16 %v5133_v14, %v5132_v38  ;;  %v2805_v41 = vld [vmem:[#allocation2 + $0xa8] sm:$0xff]  ;;  %v5151_v38 = vld [vmem:[#allocation2 + $0x279] sm:$0xff]  ;;  %v10561_v14 = vpack.c.bf16 %v5149_v20, %v5148_v44  ;;  %v2822_v44 = vld [vmem:[#allocation2 + $0x170] sm:$0xff] }
 0x1d1   : > { %8231 = vmatprep.mubr.msk.bf16.mxu0 %vm550_vm0, %v5180_v5  ;;  %v2806_v5 = vld [vmem:[#allocation2 + $0xb0] sm:$0xff] }
 0x1d6   : > { %7904 = vmatmul.mubr.msk.bf16.gmra.mrb[52].mxu1 %vm550_vm0, %v10216_v24  ;;  %v2793_v24 = vld [vmem:[#allocation2 + $0x18] sm:$0xff] }
 0x1d7   : > { %7907 = vmatprep.mubr.msk.bf16.mxu1 %vm550_vm0, %v10228_v35  ;;  %v5136_v35 = vld [vmem:[#allocation2 + $0x199] sm:$0xff]  ;;  %v2857_v50 = vpack.c.bf16 %v2794_v28, %v2793_v24 }
 0x1d8   : > { %8232 = vmatmul.mubr.msk.bf16.gmra.mrb[20].mxu0 %vm550_vm0, %v5181_v30  ;;  %v5185_v59 = vpack.c.bf16 %v5137_v48, %v5136_v35  ;;  %v2863_v30 = vpack.c.bf16 %v2806_v5, %v2805_v41  ;;  %v2810_v24 = vld [vmem:[#allocation2 + $0xe0] sm:$0xff]  ;;  %v5152_v35 = vld [vmem:[#allocation2 + $0x289] sm:$0xff]  ;;  %v5153_v48 = vld [vmem:[#allocation2 + $0x291] sm:$0xff] }
 0x1d9   : > { %8235 = vmatprep.mubr.msk.bf16.mxu0 %vm550_vm0, %v5182_v8  ;;  %v5150_v8 = vld [vmem:[#allocation2 + $0x271] sm:$0xff] }
 0x1da   : > { %v10564_v52 = vpack.c.bf16 %v5151_v38, %v5150_v8  ;;  %v2819_v5 = vld [vmem:[#allocation2 + $0x150] sm:$0xff]  ;;  %v5165_v8 = vld [vmem:[#allocation2 + $0x321] sm:$0xff] }
 0x1de   : > { %7908 = vmatmul.mubr.msk.bf16.gmra.mrb[56].mxu1 %vm550_vm0, %v10232_v47  ;;  %v10525_v47 = vpack.c.bf16 %v5139_v1, %v5138_v51  ;;  %v5154_v51 = vld [vmem:[#allocation2 + $0x2a1] sm:$0xff]  ;;  %v5155_v1 = vld [vmem:[#allocation2 + $0x2a9] sm:$0xff] }
 0x1df   : > { %7911 = vmatprep.mubr.msk.bf16.mxu1 %vm550_vm0, %v10244_v32  ;;  %v2795_v32 = vld [vmem:[#allocation2 + $0x30] sm:$0xff] }
 0x1e0   : > { %8236 = vmatmul.mubr.msk.bf16.gmra.mrb[24].mxu0 %vm550_vm0, %v5183_v2  ;;  %v2858_v42 = vpack.c.bf16 %v2796_v58, %v2795_v32  ;;  %v2808_v2 = vld [vmem:[#allocation2 + $0xc8] sm:$0xff]  ;;  %v10574_v32 = vpack.c.bf16 %v5155_v1, %v5154_v51  ;;  %v2811_v58 = vld [vmem:[#allocation2 + $0xf0] sm:$0xff] }
 0x1e1   : > { %8239 = vmatprep.mubr.msk.bf16.mxu0 %vm550_vm0, %v5184_v40  ;;  %v2809_v40 = vld [vmem:[#allocation2 + $0xd8] sm:$0xff]  ;;  %v2864_v28 = vpack.c.bf16 %v2808_v2, %v2807_v18 }
 0x1e2   : > { %v5166_v18 = vld [vmem:[#allocation2 + $0x331] sm:$0xff]  ;;  %v5167_v2 = vld [vmem:[#allocation2 + $0x339] sm:$0xff] }
 0x1e6   : > { %7912 = vmatmul.mubr.msk.bf16.gmra.mrb[60].mxu1 %vm550_vm0, %v10248_v45  ;;  %v10531_v45 = vpack.c.bf16 %v5141_v60, %v5140_v12  ;;  %v2866_v12 = vpack.c.bf16 %v2812_v53, %v2811_v58  ;;  %v5156_v60 = vld [vmem:[#allocation2 + $0x2b9] sm:$0xff]  ;;  %v2828_v53 = vld [vmem:[#allocation2 + $0x1e8] sm:$0xff] }
 0x1e7   : > { %7923 = vmatprep.mubr.msk.bf16.mxu1 %vm550_vm0, %v2857_v50  ;;  %v2865_v50 = vpack.c.bf16 %v2810_v24, %v2809_v40  ;;  %v10604_v24 = vpack.c.bf16 %v5167_v2, %v5166_v18  ;;  %v2827_v58 = vld [vmem:[#allocation2 + $0x1e0] sm:$0xff]  ;;  %v5708_v18 = vld [vmem:[#allocation2 + $0x152] sm:$0xff] }
 0x1e8   : > { %8240 = vmatmul.mubr.msk.bf16.gmra.mrb[28].mxu0 %vm550_vm0, %v5185_v59  ;;  %v10571_v59 = vpack.c.bf16 %v5153_v48, %v5152_v35  ;;  %v2826_v35 = vld [vmem:[#allocation2 + $0x1d0] sm:$0xff]  ;;  %v5709_v2 = vld [vmem:[#allocation2 + $0x15a] sm:$0xff] }
 0x1e9   : > { %8243 = vmatprep.mubr.msk.bf16.mxu0 %vm550_vm0, %v10525_v47  ;;  %v5168_v48 = vld [vmem:[#allocation2 + $0x349] sm:$0xff] }
 0x1ee   : > { %7924 = vmatmul.mubr.msk.bf16.vlgmr.msra.gmra.mrb[0].mxu1 %vm550_vm0, %v2858_v42  ;;  %v2814_v42 = vld [vmem:[#allocation2 + $0x110] sm:$0xff] }
 0x1ef   : > { %8351 = vmatpush3.bf16.msra.mxu1 %v10409_v33  ;;  %7927 = vmatprep.mubr.msk.bf16.mxu1 %vm550_vm0, %v2859_v7  ;;  %v5145_v33 = vld [vmem:[#allocation2 + $0x231] sm:$0xff]  ;;  %v5157_v7 = vld [vmem:[#allocation2 + $0x2c1] sm:$0xff]  ;;  %v2867_v6 = vpack.c.bf16 %v2814_v42, %v2813_v10 }
 0x1f0   : > { %8348 = vmatprep.subr.bf16.mxu1 %v8945_v19  ;;  %8244 = vmatmul.mubr.msk.bf16.gmra.mrb[32].mxu0 %vm550_vm0, %v10531_v45  ;;  %v10548_v21 = vpack.c.bf16 %v5145_v33, %v5144_v23  ;;  %v10581_v57 = vpack.c.bf16 %v5157_v7, %v5156_v60  ;;  %v2818_v23 = vld [vmem:[#allocation2 + $0x140] sm:$0xff]  ;;  %v2829_v10 = vld [vmem:[#allocation2 + $0x1f8] sm:$0xff]  ;;  %v2831_v7 = vld [vmem:[#allocation2 + $0x210] sm:$0xff] }
 0x1f1   : > { %8247 = vmatprep.mubr.msk.bf16.mxu0 %vm550_vm0, %v10534_v62  ;;  %v2830_v42 = vld [vmem:[#allocation2 + $0x200] sm:$0xff] }
 0x1f2   : > { %v2875_v60 = vpack.c.bf16 %v2830_v42, %v2829_v10  ;;  %v5712_v10 = vld [vmem:[#allocation2 + $0x182] sm:$0xff]  ;;  %v5713_v42 = vld [vmem:[#allocation2 + $0x18a] sm:$0xff] }
 0x1f3   : > { %8352 = vmatpush3.bf16.msra.mxu1 %v8945_v19  ;;  %v2816_v19 = vld [vmem:[#allocation2 + $0x128] sm:$0xff] }
 0x1f4   : > { %8349 = vmatprep.subr.bf16.mxu1 %v8946_v43  ;;  %v2868_v33 = vpack.c.bf16 %v2816_v19, %v2815_v0  ;;  %v2836_v19 = vld [vmem:[#allocation2 + $0x248] sm:$0xff] }
 0x1f6   : > { %7928 = vmatmul.mubr.msk.bf16.gmra.mrb[4].mxu1 %vm550_vm0, %v2860_v13  ;;  %v2817_v13 = vld [vmem:[#allocation2 + $0x138] sm:$0xff] }
 0x1f7   : > { %7931 = vmatprep.mubr.msk.bf16.mxu1 %vm550_vm0, %v2861_v29  ;;  %8353 = vmatpush3.bf16.msra.mxu1 %v8946_v43  ;;  %v5160_v29 = vld [vmem:[#allocation2 + $0x2e9] sm:$0xff]  ;;  %v2869_v37 = vpack.c.bf16 %v2818_v23, %v2817_v13  ;;  %v5162_v43 = vld [vmem:[#allocation2 + $0x301] sm:$0xff]  ;;  %v2837_v13 = vld [vmem:[#allocation2 + $0x258] sm:$0xff] }
 0x1f8   : > { %8350 = vmatprep.subr.bf16.mxu1 %v8947_v34  ;;  %8248 = vmatmul.mubr.msk.bf16.gmra.mrb[36].mxu0 %vm550_vm0, %v10548_v21  ;;  %v10591_v15 = vpack.c.bf16 %v5161_v56, %v5160_v29  ;;  %v10594_v41 = vpack.c.bf16 %v5163_v36, %v5162_v43  ;;  %v2838_v23 = vld [vmem:[#allocation2 + $0x260] sm:$0xff]  ;;  %v2840_v29 = vld [vmem:[#allocation2 + $0x278] sm:$0xff]  ;;  %v2841_v56 = vld [vmem:[#allocation2 + $0x288] sm:$0xff] }
 0x1f9   : > { %8251 = vmatprep.mubr.msk.bf16.mxu0 %vm550_vm0, %v10551_v27  ;;  %v2844_v36 = vld [vmem:[#allocation2 + $0x2a8] sm:$0xff] }
 0x1fb   : > { %8354 = vmatpush3.bf16.msra.mxu1 %v8947_v34  ;;  %v2820_v34 = vld [vmem:[#allocation2 + $0x158] sm:$0xff] }
 0x1fc   : > { %v2870_v20 = vpack.c.bf16 %v2820_v34, %v2819_v5  ;;  %v2845_v5 = vld [vmem:[#allocation2 + $0x2b8] sm:$0xff]  ;;  %v2846_v34 = vld [vmem:[#allocation2 + $0x2c0] sm:$0xff] }
 0x1fe   : > { %7932 = vmatmul.mubr.msk.bf16.gmra.mrb[8].mxu1 %vm550_vm0, %v2862_v61  ;;  %v2821_v61 = vld [vmem:[#allocation2 + $0x168] sm:$0xff] }
 0x1ff   : > { %7935 = vmatprep.mubr.msk.bf16.mxu1 %vm550_vm0, %v2863_v30  ;;  %v5164_v30 = vld [vmem:[#allocation2 + $0x319] sm:$0xff]  ;;  %v2871_v38 = vpack.c.bf16 %v2822_v44, %v2821_v61  ;;  %v2883_v61 = vpack.c.bf16 %v2846_v34, %v2845_v5 }
 0x200   : > { %8252 = vmatmul.mubr.msk.bf16.gmra.mrb[40].mxu0 %vm550_vm0, %v10561_v14  ;;  %v10601_v40 = vpack.c.bf16 %v5165_v8, %v5164_v30  ;;  %v2848_v44 = vld [vmem:[#allocation2 + $0x2d8] sm:$0xff]  ;;  %v2850_v30 = vld [vmem:[#allocation2 + $0x2f0] sm:$0xff] }
 0x201   : > { %8255 = vmatprep.mubr.msk.bf16.mxu0 %vm550_vm0, %v10564_v52  ;;  %v5706_v8 = vld [vmem:[#allocation2 + $0x13a] sm:$0xff]  ;;  %v5728_v5 = vld [vmem:[#allocation2 + $0x272] sm:$0xff] }
 0x202   : > { %v5729_v34 = vld [vmem:[#allocation2 + $0x27a] sm:$0xff] }
 0x206   : > { %7936 = vmatmul.mubr.msk.bf16.gmra.mrb[12].mxu1 %vm550_vm0, %v2864_v28  ;;  %v2825_v28 = vld [vmem:[#allocation2 + $0x1c8] sm:$0xff] }
 0x207   : > { %7939 = vmatprep.mubr.msk.bf16.mxu1 %vm550_vm0, %v2865_v50  ;;  %v5169_v50 = vld [vmem:[#allocation2 + $0x351] sm:$0xff]  ;;  %v2873_v51 = vpack.c.bf16 %v2826_v35, %v2825_v28  ;;  %v5760_v35 = vpack.c.bf16 %v5709_v2, %v5708_v18  ;;  %v5740_v18 = vld [vmem:[#allocation2 + $0x302] sm:$0xff] }
 0x208   : > { %8256 = vmatmul.mubr.msk.bf16.gmra.mrb[44].mxu0 %vm550_vm0, %v10571_v59  ;;  %v5201_v1 = vpack.c.bf16 %v5169_v50, %v5168_v48  ;;  %v2851_v48 = vld [vmem:[#allocation2 + $0x300] sm:$0xff]  ;;  %v2852_v50 = vld [vmem:[#allocation2 + $0x308] sm:$0xff] }
 0x209   : > { %8259 = vmatprep.mubr.msk.bf16.mxu0 %vm550_vm0, %v10574_v32  ;;  %v5741_v2 = vld [vmem:[#allocation2 + $0x30a] sm:$0xff] }
 0x20e   : > { %7940 = vmatmul.mubr.msk.bf16.gmra.mrb[16].mxu1 %vm550_vm0, %v2866_v12  ;;  %v2874_v12 = vpack.c.bf16 %v2828_v53, %v2827_v58  ;;  %v5711_v58 = vld [vmem:[#allocation2 + $0x172] sm:$0xff] }
 0x20f   : > { %7943 = vmatprep.mubr.msk.bf16.mxu1 %vm550_vm0, %v2867_v6  ;;  %v2832_v6 = vld [vmem:[#allocation2 + $0x218] sm:$0xff] }
 0x210   : > { %8260 = vmatmul.mubr.msk.bf16.gmra.mrb[48].mxu0 %vm550_vm0, %v10581_v57  ;;  %v2876_v55 = vpack.c.bf16 %v2832_v6, %v2831_v7  ;;  %v3403_v7 = vld [vmem:[#allocation2 + $0x1c9] sm:$0xff]  ;;  %v3404_v6 = vld [vmem:[#allocation2 + $0x1d1] sm:$0xff] }
 0x211   : > { %8263 = vmatprep.mubr.msk.bf16.mxu0 %vm550_vm0, %v10584_v26 }
 0x216   : > { %7944 = vmatmul.mubr.msk.bf16.gmra.mrb[20].mxu1 %vm550_vm0, %v2868_v33  ;;  %v2879_v33 = vpack.c.bf16 %v2838_v23, %v2837_v13  ;;  %v5718_v23 = vld [vmem:[#allocation2 + $0x1fa] sm:$0xff] }
 0x217   : > { %7947 = vmatprep.mubr.msk.bf16.mxu1 %vm550_vm0, %v2869_v37  ;;  %v2842_v37 = vld [vmem:[#allocation2 + $0x290] sm:$0xff] }
 0x218   : > { %8264 = vmatmul.mubr.msk.bf16.gmra.mrb[52].mxu0 %vm550_vm0, %v10591_v15  ;;  %v2881_v43 = vpack.c.bf16 %v2842_v37, %v2841_v56  ;;  %v5723_v37 = vld [vmem:[#allocation2 + $0x232] sm:$0xff] }
 0x219   : > { %8267 = vmatprep.mubr.msk.bf16.mxu0 %vm550_vm0, %v10594_v41 }
 0x21e   : > { %7948 = vmatmul.mubr.msk.bf16.gmra.mrb[24].mxu1 %vm550_vm0, %v2870_v20  ;;  %v2849_v20 = vld [vmem:[#allocation2 + $0x2e8] sm:$0xff] }
 0x21f   : > { %7951 = vmatprep.mubr.msk.bf16.mxu1 %vm550_vm0, %v2871_v38  ;;  %v5707_v38 = vld [vmem:[#allocation2 + $0x142] sm:$0xff] }
 0x220   : > { %8268 = vmatmul.mubr.msk.bf16.gmra.mrb[56].mxu0 %vm550_vm0, %v10601_v40  ;;  %v5759_v28 = vpack.c.bf16 %v5707_v38, %v5706_v8  ;;  %v5737_v8 = vld [vmem:[#allocation2 + $0x2da] sm:$0xff] }
 0x221   : > { %8271 = vmatprep.mubr.msk.bf16.mxu0 %vm550_vm0, %v10604_v24 }
 0x226   : > { %7952 = vmatmul.mubr.msk.bf16.gmra.mrb[28].mxu1 %vm550_vm0, %v10355_v9  ;;  %v2833_v9 = vld [vmem:[#allocation2 + $0x228] sm:$0xff] }
 0x227   : > { %7955 = vmatprep.mubr.msk.bf16.mxu1 %vm550_vm0, %v2873_v51  ;;  %v2877_v0 = vpack.c.bf16 %v2834_v31, %v2833_v9  ;;  %v2853_v51 = vld [vmem:[#allocation2 + $0x318] sm:$0xff]  ;;  %v5715_v31 = vld [vmem:[#allocation2 + $0x1a2] sm:$0xff] }
 0x228   : > { %8272 = vmatmul.mubr.msk.bf16.gmra.mrb[60].mxu0 %vm550_vm0, %v5201_v1  ;;  %v2854_v1 = vld [vmem:[#allocation2 + $0x320] sm:$0xff] }
 0x229   : > { %8283 = vmatprep.mubr.msk.bf16.mxu0 %vm550_vm0, %v10371_v46  ;;  %v2835_v46 = vld [vmem:[#allocation2 + $0x240] sm:$0xff]  ;;  %v2887_v53 = vpack.c.bf16 %v2854_v1, %v2853_v51 }
 0x22a   : > { %v5714_v9 = vld [vmem:[#allocation2 + $0x19a] sm:$0xff] }
 0x22e   : > { %7956 = vmatmul.mubr.msk.bf16.gmra.mrb[32].mxu1 %vm550_vm0, %v2874_v12 }
 0x22f   : > { %7959 = vmatprep.mubr.msk.bf16.mxu1 %vm550_vm0, %v2875_v60  ;;  %v5762_v60 = vpack.c.bf16 %v5713_v42, %v5712_v10 }
 0x230   : > { %8284 = vmatmul.mubr.msk.bf16.vlgmr.msra.gmra.mrb[0].mxu0 %vm550_vm0, %v10387_v49  ;;  %v2878_v49 = vpack.c.bf16 %v2836_v19, %v2835_v46  ;;  %v5717_v46 = vld [vmem:[#allocation2 + $0x1ea] sm:$0xff]  ;;  %v5763_v19 = vpack.c.bf16 %v5715_v31, %v5714_v9 }
 0x231   : > { %8287 = vmatprep.mubr.msk.bf16.mxu0 %vm550_vm0, %v10389_v3  ;;  %v2839_v3 = vld [vmem:[#allocation2 + $0x270] sm:$0xff] }
 0x236   : > { %7960 = vmatmul.mubr.msk.bf16.gmra.mrb[36].mxu1 %vm550_vm0, %v2876_v55  ;;  %v3451_v55 = vpack.c.bf16 %v3404_v6, %v3403_v7 }
 0x237   : > { %7963 = vmatprep.mubr.msk.bf16.mxu1 %vm550_vm0, %v2877_v0  ;;  %v5716_v0 = vld [vmem:[#allocation2 + $0x1e2] sm:$0xff] }
 0x238   : > { %8288 = vmatmul.mubr.msk.bf16.gmra.mrb[4].mxu0 %vm550_vm0, %v10402_v54  ;;  %v2880_v54 = vpack.c.bf16 %v2840_v29, %v2839_v3  ;;  %v5764_v13 = vpack.c.bf16 %v5717_v46, %v5716_v0  ;;  %v5721_v3 = vld [vmem:[#allocation2 + $0x21a] sm:$0xff] }
 0x239   : > { %8291 = vmatprep.mubr.msk.bf16.mxu0 %vm550_vm0, %v10404_v39  ;;  %v2843_v39 = vld [vmem:[#allocation2 + $0x2a0] sm:$0xff] }
 0x23e   : > { %7964 = vmatmul.mubr.msk.bf16.gmra.mrb[40].mxu1 %vm550_vm0, %v2878_v49  ;;  %v5719_v49 = vld [vmem:[#allocation2 + $0x202] sm:$0xff] }
 0x23f   : > { %7967 = vmatprep.mubr.msk.bf16.mxu1 %vm550_vm0, %v2879_v33  ;;  %v5720_v33 = vld [vmem:[#allocation2 + $0x212] sm:$0xff]  ;;  %v5765_v29 = vpack.c.bf16 %v5719_v49, %v5718_v23 }
 0x240   : > { %8292 = vmatmul.mubr.msk.bf16.gmra.mrb[8].mxu0 %vm550_vm0, %v10420_v11  ;;  %v2882_v11 = vpack.c.bf16 %v2844_v36, %v2843_v39  ;;  %v5766_v56 = vpack.c.bf16 %v5721_v3, %v5720_v33 }
 0x241   : > { %8295 = vmatprep.mubr.msk.bf16.mxu0 %vm550_vm0, %v10422_v25  ;;  %v2847_v25 = vld [vmem:[#allocation2 + $0x2d0] sm:$0xff] }
 0x246   : > { %7968 = vmatmul.mubr.msk.bf16.gmra.mrb[44].mxu1 %vm550_vm0, %v2880_v54  ;;  %v5724_v54 = vld [vmem:[#allocation2 + $0x242] sm:$0xff] }
 0x247   : > { %7971 = vmatprep.mubr.msk.bf16.mxu1 %vm550_vm0, %v2881_v43  ;;  %v5725_v43 = vld [vmem:[#allocation2 + $0x24a] sm:$0xff] }
 0x248   : > { %8296 = vmatmul.mubr.msk.bf16.gmra.mrb[12].mxu0 %vm550_vm0, %v10432_v22  ;;  %v2884_v22 = vpack.c.bf16 %v2848_v44, %v2847_v25  ;;  %v5768_v36 = vpack.c.bf16 %v5725_v43, %v5724_v54  ;;  %v5732_v25 = vld [vmem:[#allocation2 + $0x2a2] sm:$0xff]  ;;  %v5733_v44 = vld [vmem:[#allocation2 + $0x2aa] sm:$0xff] }
 0x249   : > { %8299 = vmatprep.mubr.msk.bf16.mxu0 %vm550_vm0, %v10434_v16  ;;  %v2885_v16 = vpack.c.bf16 %v2850_v30, %v2849_v20  ;;  %v5772_v30 = vpack.c.bf16 %v5733_v44, %v5732_v25 }
 0x24e   : > { %7972 = vmatmul.mubr.msk.bf16.gmra.mrb[48].mxu1 %vm550_vm0, %v2882_v11 }
 0x24f   : > { %7975 = vmatprep.mubr.msk.bf16.mxu1 %vm550_vm0, %v2883_v61  ;;  %v5770_v61 = vpack.c.bf16 %v5729_v34, %v5728_v5 }
 0x250   : > { %8300 = vmatmul.mubr.msk.bf16.gmra.mrb[16].mxu0 %vm550_vm0, %v10444_v17  ;;  %v2886_v17 = vpack.c.bf16 %v2852_v50, %v2851_v48  ;;  %v5744_v48 = vld [vmem:[#allocation2 + $0x332] sm:$0xff]  ;;  %v5745_v50 = vld [vmem:[#allocation2 + $0x33a] sm:$0xff] }
 0x251   : > { %8303 = vmatprep.mubr.msk.bf16.mxu0 %vm550_vm0, %v10446_v4  ;;  %v5710_v4 = vld [vmem:[#allocation2 + $0x16a] sm:$0xff]  ;;  %v5778_v1 = vpack.c.bf16 %v5745_v50, %v5744_v48 }
 0x252   : > { %v5761_v12 = vpack.c.bf16 %v5711_v58, %v5710_v4 }
 0x256   : > { %7976 = vmatmul.mubr.msk.bf16.gmra.mrb[52].mxu1 %vm550_vm0, %v2884_v22  ;;  %v5736_v22 = vld [vmem:[#allocation2 + $0x2d2] sm:$0xff] }
 0x257   : > { %7979 = vmatprep.mubr.msk.bf16.mxu1 %vm550_vm0, %v2885_v16  ;;  %v5774_v16 = vpack.c.bf16 %v5737_v8, %v5736_v22 }
 0x258   : > { %8304 = vmatmul.mubr.msk.bf16.gmra.mrb[20].mxu0 %vm550_vm0, %v5759_v28 }
 0x259   : > { %8307 = vmatprep.mubr.msk.bf16.mxu0 %vm550_vm0, %v5760_v35  ;;  %v5776_v35 = vpack.c.bf16 %v5741_v2, %v5740_v18 }
 0x25e   : > { %7980 = vmatmul.mubr.msk.bf16.gmra.mrb[56].mxu1 %vm550_vm0, %v2886_v17 }
 0x25f   : > { %7983 = vmatprep.mubr.msk.bf16.mxu1 %vm550_vm0, %v2887_v53 }
 0x260   : > { %8308 = vmatmul.mubr.msk.bf16.gmra.mrb[24].mxu0 %vm550_vm0, %v5761_v12 }
 0x261   : > { %8311 = vmatprep.mubr.msk.bf16.mxu0 %vm550_vm0, %v5762_v60 }
 0x266   : > { %7984 = vmatmul.mubr.msk.bf16.gmra.mrb[60].mxu1 %vm550_vm0, %v10458_v63  ;;  %v5722_v63 = vld [vmem:[#allocation2 + $0x22a] sm:$0xff] }
 0x267   : > { %8027 = vmatprep.mubr.msk.bf16.mxu1 %vm550_vm0, %v3451_v55  ;;  %v5767_v39 = vpack.c.bf16 %v5723_v37, %v5722_v63 }
 0x268   : > { %8312 = vmatmul.mubr.msk.bf16.gmra.mrb[28].mxu0 %vm550_vm0, %v5763_v19 }
 0x269   : > { %8315 = vmatprep.mubr.msk.bf16.mxu0 %vm550_vm0, %v5764_v13 }
 0x26e   : > { %8028 = vmatmul.mubr.msk.bf16.vlgmr.msra.gmra.mrb[32].mxu1 %vm550_vm0, %v10525_v47  ;;  %v5726_v47 = vld [vmem:[#allocation2 + $0x25a] sm:$0xff] }
 0x26f   : > { %8031 = vmatprep.mubr.msk.bf16.mxu1 %vm550_vm0, %v10531_v45  ;;  %v5727_v45 = vld [vmem:[#allocation2 + $0x262] sm:$0xff] }
 0x270   : > { %8316 = vmatmul.mubr.msk.bf16.gmra.mrb[32].mxu0 %vm550_vm0, %v5765_v29  ;;  %v5769_v11 = vpack.c.bf16 %v5727_v45, %v5726_v47  ;;  %v10756_v45 = vld [vmem:[%s11199_s2] ss:$0 sm:$0xff] }
 0x271   : > { %8319 = vmatprep.mubr.msk.bf16.mxu0 %vm550_vm0, %v5766_v56 }
 0x276   : > { %8032 = vmatmul.mubr.msk.bf16.gmra.mrb[36].mxu1 %vm550_vm0, %v10534_v62  ;;  %v5730_v62 = vld [vmem:[#allocation2 + $0x28a] sm:$0xff] }
 0x277   : > { %8035 = vmatprep.mubr.msk.bf16.mxu1 %vm550_vm0, %v10548_v21  ;;  %v5731_v21 = vld [vmem:[#allocation2 + $0x292] sm:$0xff] }
 0x278   : > { %8320 = vmatmul.mubr.msk.bf16.gmra.mrb[36].mxu0 %vm550_vm0, %v5767_v39  ;;  %v5771_v20 = vpack.c.bf16 %v5731_v21, %v5730_v62 }
 0x279   : > { %8323 = vmatprep.mubr.msk.bf16.mxu0 %vm550_vm0, %v5768_v36 }
 0x27e   : > { %8036 = vmatmul.mubr.msk.bf16.gmra.mrb[40].mxu1 %vm550_vm0, %v10551_v27  ;;  %v5734_v27 = vld [vmem:[#allocation2 + $0x2ba] sm:$0xff] }
 0x27f   : > { %8039 = vmatprep.mubr.msk.bf16.mxu1 %vm550_vm0, %v10561_v14  ;;  %v5735_v14 = vld [vmem:[#allocation2 + $0x2c2] sm:$0xff] }
 0x280   : > { %8324 = vmatmul.mubr.msk.bf16.gmra.mrb[40].mxu0 %vm550_vm0, %v5769_v11  ;;  %v5773_v38 = vpack.c.bf16 %v5735_v14, %v5734_v27 }
 0x281   : > { %8327 = vmatprep.mubr.msk.bf16.mxu0 %vm550_vm0, %v5770_v61  ;;  %v10761_v61 = vld [vmem:[%s11200_s3] ss:$0 sm:$0xff] }
 0x286   : > { %8040 = vmatmul.mubr.msk.bf16.gmra.mrb[44].mxu1 %vm550_vm0, %v10564_v52  ;;  %v5738_v52 = vld [vmem:[#allocation2 + $0x2ea] sm:$0xff] }
 0x287   : > { %8043 = vmatprep.mubr.msk.bf16.mxu1 %vm550_vm0, %v10571_v59  ;;  %v5739_v59 = vld [vmem:[#allocation2 + $0x2f2] sm:$0xff] }
 0x288   : > { %8328 = vmatmul.mubr.msk.bf16.gmra.mrb[44].mxu0 %vm550_vm0, %v5771_v20  ;;  %v5775_v28 = vpack.c.bf16 %v5739_v59, %v5738_v52 }
 0x289   : > { %8331 = vmatprep.mubr.msk.bf16.mxu0 %vm550_vm0, %v5772_v30 }
 0x28e   : > { %8044 = vmatmul.mubr.msk.bf16.gmra.mrb[48].mxu1 %vm550_vm0, %v10574_v32  ;;  %v5742_v32 = vld [vmem:[#allocation2 + $0x31a] sm:$0xff] }
 0x28f   : > { %8047 = vmatprep.mubr.msk.bf16.mxu1 %vm550_vm0, %v10581_v57  ;;  %v5743_v57 = vld [vmem:[#allocation2 + $0x322] sm:$0xff] }
 0x290   : > { %8332 = vmatmul.mubr.msk.bf16.gmra.mrb[48].mxu0 %vm550_vm0, %v5773_v38  ;;  %v5777_v51 = vpack.c.bf16 %v5743_v57, %v5742_v32 }
 0x291   : > { %8335 = vmatprep.mubr.msk.bf16.mxu0 %vm550_vm0, %v5774_v16 }
 0x296   : > { %8048 = vmatmul.mubr.msk.bf16.gmra.mrb[52].mxu1 %vm550_vm0, %v10584_v26  ;;  %v5746_v26 = vld [vmem:[#allocation2 + $0x34a] sm:$0xff] }
 0x297   : > { %8051 = vmatprep.mubr.msk.bf16.mxu1 %vm550_vm0, %v10591_v15  ;;  %v5747_v15 = vld [vmem:[#allocation2 + $0x352] sm:$0xff] }
 0x298   : > { %8336 = vmatmul.mubr.msk.bf16.gmra.mrb[52].mxu0 %vm550_vm0, %v5775_v28  ;;  %v5779_v17 = vpack.c.bf16 %v5747_v15, %v5746_v26 }
 0x299   : > { %8339 = vmatprep.mubr.msk.bf16.mxu0 %vm550_vm0, %v5776_v35 }
 0x29e   : > { %8052 = vmatmul.mubr.msk.bf16.gmra.mrb[56].mxu1 %vm550_vm0, %v10594_v41 }
 0x29f   : > { %8055 = vmatprep.mubr.msk.bf16.mxu1 %vm550_vm0, %v10601_v40 }
 0x2a0   : > { %8340 = vmatmul.mubr.msk.bf16.gmra.mrb[56].mxu0 %vm550_vm0, %v5777_v51 }
 0x2a1   : > { %8343 = vmatprep.mubr.msk.bf16.mxu0 %vm550_vm0, %v5778_v1 }
 0x2a6   : > { %8056 = vmatmul.mubr.msk.bf16.gmra.mrb[60].mxu1 %vm550_vm0, %v10604_v24 }
 0x2a8   : > { %8344 = vmatmul.mubr.msk.bf16.gmra.mrb[60].mxu0 %vm550_vm0, %v5779_v17 }
 0x2c1   : > { %v7925_v4 = vpop.f32.mrb[0].mxu1 }
 0x2c2   : > { %v3052_v58 = vpop.f32.mrb[1].mxu1 }
 0x2c3   : > { %v7926_v53 = vpop.f32.mrb[2].mxu1 }
 0x2c4   : > { %v3055_v41 = vpop.f32.mrb[3].mxu1 }
 0x2c9   : > { %v7929_v10 = vpop.f32.mrb[4].mxu1 }
 0x2ca   : > { %v3068_v42 = vpop.f32.mrb[5].mxu1 }
 0x2cb   : > { %v7930_v12 = vpop.f32.mrb[6].mxu1 }
 0x2cc   : > { %v3071_v40 = vpop.f32.mrb[7].mxu1 }
 0x2d1   : > { %v10705_v60 = vpop.f32.mrb[8].mxu1 }
 0x2d2   : > { %v10707_v7 = vpop.f32.mrb[9].mxu1 }
 0x2d3   : > { %v10709_v6 = vpop.f32.mrb[10].mxu1 }
 0x2d4   : > { %v10711_v9 = vpop.f32.mrb[11].mxu1 }
 0x2d9   : > { %v10713_v31 = vpop.f32.mrb[12].mxu1 }
 0x2da   : > { %v10715_v24 = vpop.f32.mrb[13].mxu1 }
 0x2db   : > { %v10717_v55 = vpop.f32.mrb[14].mxu1 }
 0x2dc   : > { %v10719_v0 = vpop.f32.mrb[15].mxu1 }
 0x2e1   : > { %v10721_v46 = vpop.f32.mrb[16].mxu1 }
 0x2e2   : > { %v10723_v19 = vpop.f32.mrb[17].mxu1 }
 0x2e3   : > { %v10725_v13 = vpop.f32.mrb[18].mxu1 }
 0x2e4   : > { %v10727_v23 = vpop.f32.mrb[19].mxu1 }
 0x2e9   : > { %v10729_v49 = vpop.f32.mrb[20].mxu1 }
 0x2ea   : > { %v10731_v33 = vpop.f32.mrb[21].mxu1 }
 0x2eb   : > { %v10733_v3 = vpop.f32.mrb[22].mxu1 }
 0x2ec   : > { %v10735_v29 = vpop.f32.mrb[23].mxu1 }
 0x2f1   : > { %v10737_v56 = vpop.f32.mrb[24].mxu1 }
 0x2f2   : > { %v10739_v63 = vpop.f32.mrb[25].mxu1 }
 0x2f3   : > { %v10741_v37 = vpop.f32.mrb[26].mxu1 }
 0x2f4   : > { %v10743_v54 = vpop.f32.mrb[27].mxu1 }
 0x2f9   : > { %v10745_v43 = vpop.f32.mrb[28].mxu1 }
 0x2fa   : > { %v10747_v39 = vpop.f32.mrb[29].mxu1 }
 0x2fb   : > { %v10749_v36 = vpop.f32.mrb[30].mxu1 }
 0x2fc   : > { %v10751_v47 = vpop.f32.mrb[31].mxu1 }
 0x303   : > { %v8285_v5 = vpop.f32.mrb[0].mxu0 }
 0x304   : > { %v8355_v34 = vadd.f32 %v8285_v5, %v7925_v4  ;;  %v5943_v11 = vpop.f32.mrb[1].mxu0 }
 0x305   : > { %v8356_v62 = vadd.f32 %v5943_v11, %v3052_v58  ;;  %v8286_v21 = vpop.f32.mrb[2].mxu0 }
 0x306   : > { %v6270_v25 = vmul.f32 %v8355_v34, %v10756_v45  ;;  %v8357_v44 = vadd.f32 %v8286_v21, %v7926_v53  ;;  %v5946_v20 = vpop.f32.mrb[3].mxu0 }
 0x307   : > { %v6268_v30 = vmul.f32 %v8356_v62, %v10756_v45  ;;  %v8358_v27 = vadd.f32 %v5946_v20, %v3055_v41 }
 0x308   : > { %v6340_v14 = vadd.f32 %v10761_v61, %v6270_v25  ;;  %v6271_v22 = vmul.f32 %v8357_v44, %v10756_v45 }
 0x309   : > { %v6338_v8 = vadd.f32 %v10761_v61, %v6268_v30  ;;  %v6269_v38 = vmul.f32 %v8358_v27, %v10756_v45 }
 0x30a   : > { %6404 = vst.msk [vmem:[%s10770_s29 + $0x10] sm:$0xff] %vm550_vm0, %v6340_v14  ;;  %v6341_v16 = vadd.f32 %v10761_v61, %v6271_v22 }
 0x30b   : > { %6402 = vst.msk [vmem:[%s10770_s29] sm:$0xff] %vm550_vm0, %v6338_v8  ;;  %v6339_v52 = vadd.f32 %v10761_v61, %v6269_v38  ;;  %v8289_v59 = vpop.f32.mrb[4].mxu0 }
 0x30c   : > { %6405 = vst.msk [vmem:[%s10770_s29 + $0x18] sm:$0xff] %vm550_vm0, %v6341_v16  ;;  %v8359_v18 = vadd.f32 %v8289_v59, %v7929_v10  ;;  %v5959_v2 = vpop.f32.mrb[5].mxu0 }
 0x30d   : > { %6403 = vst.msk [vmem:[%s10770_s29 + $0x8] sm:$0xff] %vm550_vm0, %v6339_v52  ;;  %v8360_v28 = vadd.f32 %v5959_v2, %v3068_v42  ;;  %v8290_v35 = vpop.f32.mrb[6].mxu0 }
 0x30e   : > { %v6274_v32 = vmul.f32 %v8359_v18, %v10756_v45  ;;  %v8361_v57 = vadd.f32 %v8290_v35, %v7930_v12  ;;  %v5962_v48 = vpop.f32.mrb[7].mxu0 }
 0x30f   : > { %v6272_v50 = vmul.f32 %v8360_v28, %v10756_v45  ;;  %v8362_v51 = vadd.f32 %v5962_v48, %v3071_v40 }
 0x310   : > { %v6344_v1 = vadd.f32 %v10761_v61, %v6274_v32  ;;  %v6275_v26 = vmul.f32 %v8361_v57, %v10756_v45 }
 0x311   : > { %v6342_v15 = vadd.f32 %v10761_v61, %v6272_v50  ;;  %v6273_v17 = vmul.f32 %v8362_v51, %v10756_v45 }
 0x312   : > { %6408 = vst.msk [vmem:[%s10770_s29 + $0x30] sm:$0xff] %vm550_vm0, %v6344_v1  ;;  %v6345_v4 = vadd.f32 %v10761_v61, %v6275_v26 }
 0x313   : > { %6406 = vst.msk [vmem:[%s10770_s29 + $0x20] sm:$0xff] %vm550_vm0, %v6342_v15  ;;  %v6343_v58 = vadd.f32 %v10761_v61, %v6273_v17  ;;  %v8293_v53 = vpop.f32.mrb[8].mxu0 }
 0x314   : > { %6409 = vst.msk [vmem:[%s10770_s29 + $0x38] sm:$0xff] %vm550_vm0, %v6345_v4  ;;  %v8363_v41 = vadd.f32 %v8293_v53, %v10705_v60  ;;  %v5975_v10 = vpop.f32.mrb[9].mxu0 }
 0x315   : > { %6407 = vst.msk [vmem:[%s10770_s29 + $0x28] sm:$0xff] %vm550_vm0, %v6343_v58  ;;  %v8364_v42 = vadd.f32 %v5975_v10, %v10707_v7  ;;  %v8294_v12 = vpop.f32.mrb[10].mxu0 }
 0x316   : > { %v6278_v40 = vmul.f32 %v8363_v41, %v10756_v45  ;;  %v8365_v5 = vadd.f32 %v8294_v12, %v10709_v6  ;;  %v5978_v34 = vpop.f32.mrb[11].mxu0 }
 0x317   : > { %v6276_v11 = vmul.f32 %v8364_v42, %v10756_v45  ;;  %v8366_v62 = vadd.f32 %v5978_v34, %v10711_v9 }
 0x318   : > { %v6348_v60 = vadd.f32 %v10761_v61, %v6278_v40  ;;  %v6279_v21 = vmul.f32 %v8365_v5, %v10756_v45 }
 0x319   : > { %v6346_v25 = vadd.f32 %v10761_v61, %v6276_v11  ;;  %v6277_v7 = vmul.f32 %v8366_v62, %v10756_v45 }
 0x31a   : > { %6412 = vst.msk [vmem:[%s10770_s29 + $0x50] sm:$0xff] %vm550_vm0, %v6348_v60  ;;  %v6349_v44 = vadd.f32 %v10761_v61, %v6279_v21 }
 0x31b   : > { %6410 = vst.msk [vmem:[%s10770_s29 + $0x40] sm:$0xff] %vm550_vm0, %v6346_v25  ;;  %v6347_v6 = vadd.f32 %v10761_v61, %v6277_v7  ;;  %v8297_v20 = vpop.f32.mrb[12].mxu0 }
 0x31c   : > { %6413 = vst.msk [vmem:[%s10770_s29 + $0x58] sm:$0xff] %vm550_vm0, %v6349_v44  ;;  %v8367_v9 = vadd.f32 %v8297_v20, %v10713_v31  ;;  %v5991_v30 = vpop.f32.mrb[13].mxu0 }
 0x31d   : > { %6411 = vst.msk [vmem:[%s10770_s29 + $0x48] sm:$0xff] %vm550_vm0, %v6347_v6  ;;  %v8368_v27 = vadd.f32 %v5991_v30, %v10715_v24  ;;  %v8298_v14 = vpop.f32.mrb[14].mxu0 }
 0x31e   : > { %v6282_v22 = vmul.f32 %v8367_v9, %v10756_v45  ;;  %v8369_v8 = vadd.f32 %v8298_v14, %v10717_v55  ;;  %v5994_v38 = vpop.f32.mrb[15].mxu0 }
 0x31f   : > { %v6280_v16 = vmul.f32 %v8368_v27, %v10756_v45  ;;  %v8370_v52 = vadd.f32 %v5994_v38, %v10719_v0 }
 0x320   : > { %v6352_v31 = vadd.f32 %v10761_v61, %v6282_v22  ;;  %v6283_v59 = vmul.f32 %v8369_v8, %v10756_v45 }
 0x321   : > { %v6350_v18 = vadd.f32 %v10761_v61, %v6280_v16  ;;  %v6281_v24 = vmul.f32 %v8370_v52, %v10756_v45 }
 0x322   : > { %6416 = vst.msk [vmem:[%s10770_s29 + $0x70] sm:$0xff] %vm550_vm0, %v6352_v31  ;;  %v6353_v2 = vadd.f32 %v10761_v61, %v6283_v59 }
 0x323   : > { %6414 = vst.msk [vmem:[%s10770_s29 + $0x60] sm:$0xff] %vm550_vm0, %v6350_v18  ;;  %v6351_v55 = vadd.f32 %v10761_v61, %v6281_v24  ;;  %v8301_v28 = vpop.f32.mrb[16].mxu0 }
 0x324   : > { %6417 = vst.msk [vmem:[%s10770_s29 + $0x78] sm:$0xff] %vm550_vm0, %v6353_v2  ;;  %v8371_v0 = vadd.f32 %v8301_v28, %v10721_v46  ;;  %v6007_v35 = vpop.f32.mrb[17].mxu0 }
 0x325   : > { %6415 = vst.msk [vmem:[%s10770_s29 + $0x68] sm:$0xff] %vm550_vm0, %v6351_v55  ;;  %v8372_v32 = vadd.f32 %v6007_v35, %v10723_v19  ;;  %v8302_v57 = vpop.f32.mrb[18].mxu0 }
 0x326   : > { %v6286_v48 = vmul.f32 %v8371_v0, %v10756_v45  ;;  %v8373_v50 = vadd.f32 %v8302_v57, %v10725_v13  ;;  %v6010_v51 = vpop.f32.mrb[19].mxu0 }
 0x327   : > { %v6284_v1 = vmul.f32 %v8372_v32, %v10756_v45  ;;  %v8374_v26 = vadd.f32 %v6010_v51, %v10727_v23 }
 0x328   : > { %v6356_v46 = vadd.f32 %v10761_v61, %v6286_v48  ;;  %v6287_v15 = vmul.f32 %v8373_v50, %v10756_v45 }
 0x329   : > { %v6354_v17 = vadd.f32 %v10761_v61, %v6284_v1  ;;  %v6285_v19 = vmul.f32 %v8374_v26, %v10756_v45 }
 0x32a   : > { %6420 = vst.msk [vmem:[%s10770_s29 + $0x90] sm:$0xff] %vm550_vm0, %v6356_v46  ;;  %v6357_v4 = vadd.f32 %v10761_v61, %v6287_v15 }
 0x32b   : > { %6418 = vst.msk [vmem:[%s10770_s29 + $0x80] sm:$0xff] %vm550_vm0, %v6354_v17  ;;  %v6355_v13 = vadd.f32 %v10761_v61, %v6285_v19  ;;  %v8305_v58 = vpop.f32.mrb[20].mxu0 }
 0x32c   : > { %6421 = vst.msk [vmem:[%s10770_s29 + $0x98] sm:$0xff] %vm550_vm0, %v6357_v4  ;;  %v8375_v23 = vadd.f32 %v8305_v58, %v10729_v49  ;;  %v6023_v53 = vpop.f32.mrb[21].mxu0 }
 0x32d   : > { %6419 = vst.msk [vmem:[%s10770_s29 + $0x88] sm:$0xff] %vm550_vm0, %v6355_v13  ;;  %v8376_v41 = vadd.f32 %v6023_v53, %v10731_v33  ;;  %v8306_v10 = vpop.f32.mrb[22].mxu0 }
 0x32e   : > { %v6290_v42 = vmul.f32 %v8375_v23, %v10756_v45  ;;  %v8377_v12 = vadd.f32 %v8306_v10, %v10733_v3  ;;  %v6026_v40 = vpop.f32.mrb[23].mxu0 }
 0x32f   : > { %v6288_v5 = vmul.f32 %v8376_v41, %v10756_v45  ;;  %v8378_v34 = vadd.f32 %v6026_v40, %v10735_v29 }
 0x330   : > { %v6360_v49 = vadd.f32 %v10761_v61, %v6290_v42  ;;  %v6291_v11 = vmul.f32 %v8377_v12, %v10756_v45 }
 0x331   : > { %v6358_v62 = vadd.f32 %v10761_v61, %v6288_v5  ;;  %v6289_v33 = vmul.f32 %v8378_v34, %v10756_v45 }
 0x332   : > { %6424 = vst.msk [vmem:[%s10770_s29 + $0xb0] sm:$0xff] %vm550_vm0, %v6360_v49  ;;  %v6361_v60 = vadd.f32 %v10761_v61, %v6291_v11 }
 0x333   : > { %6422 = vst.msk [vmem:[%s10770_s29 + $0xa0] sm:$0xff] %vm550_vm0, %v6358_v62  ;;  %v6359_v3 = vadd.f32 %v10761_v61, %v6289_v33  ;;  %v8309_v21 = vpop.f32.mrb[24].mxu0 }
 0x334   : > { %6425 = vst.msk [vmem:[%s10770_s29 + $0xb8] sm:$0xff] %vm550_vm0, %v6361_v60  ;;  %v8379_v29 = vadd.f32 %v8309_v21, %v10737_v56  ;;  %v6039_v25 = vpop.f32.mrb[25].mxu0 }
 0x335   : > { %6423 = vst.msk [vmem:[%s10770_s29 + $0xa8] sm:$0xff] %vm550_vm0, %v6359_v3  ;;  %v8380_v7 = vadd.f32 %v6039_v25, %v10739_v63  ;;  %v8310_v44 = vpop.f32.mrb[26].mxu0 }
 0x336   : > { %v6294_v6 = vmul.f32 %v8379_v29, %v10756_v45  ;;  %v8381_v20 = vadd.f32 %v8310_v44, %v10741_v37  ;;  %v6042_v9 = vpop.f32.mrb[27].mxu0 }
 0x337   : > { %v6292_v30 = vmul.f32 %v8380_v7, %v10756_v45  ;;  %v8382_v27 = vadd.f32 %v6042_v9, %v10743_v54 }
 0x338   : > { %v6364_v56 = vadd.f32 %v10761_v61, %v6294_v6  ;;  %v6295_v14 = vmul.f32 %v8381_v20, %v10756_v45 }
 0x339   : > { %v6362_v22 = vadd.f32 %v10761_v61, %v6292_v30  ;;  %v6293_v63 = vmul.f32 %v8382_v27, %v10756_v45 }
 0x33a   : > { %6428 = vst.msk [vmem:[%s10770_s29 + $0xd0] sm:$0xff] %vm550_vm0, %v6364_v56  ;;  %v6365_v8 = vadd.f32 %v10761_v61, %v6295_v14 }
 0x33b   : > { %6426 = vst.msk [vmem:[%s10770_s29 + $0xc0] sm:$0xff] %vm550_vm0, %v6362_v22  ;;  %v6363_v37 = vadd.f32 %v10761_v61, %v6293_v63  ;;  %v8313_v38 = vpop.f32.mrb[28].mxu0 }
 0x33c   : > { %6429 = vst.msk [vmem:[%s10770_s29 + $0xd8] sm:$0xff] %vm550_vm0, %v6365_v8  ;;  %v8383_v54 = vadd.f32 %v8313_v38, %v10745_v43  ;;  %v6055_v16 = vpop.f32.mrb[29].mxu0 }
 0x33d   : > { %6427 = vst.msk [vmem:[%s10770_s29 + $0xc8] sm:$0xff] %vm550_vm0, %v6363_v37  ;;  %v8384_v52 = vadd.f32 %v6055_v16, %v10747_v39  ;;  %v8314_v31 = vpop.f32.mrb[30].mxu0 }
 0x33e   : > { %v6298_v59 = vmul.f32 %v8383_v54, %v10756_v45  ;;  %v8385_v18 = vadd.f32 %v8314_v31, %v10749_v36  ;;  %v6058_v24 = vpop.f32.mrb[31].mxu0 }
 0x33f   : > { %v6296_v2 = vmul.f32 %v8384_v52, %v10756_v45  ;;  %v8386_v55 = vadd.f32 %v6058_v24, %v10751_v47 }
 0x340   : > { %v6368_v43 = vadd.f32 %v10761_v61, %v6298_v59  ;;  %v6299_v28 = vmul.f32 %v8385_v18, %v10756_v45 }
 0x341   : > { %v8029_v0 = vpop.f32.mrb[32].mxu1  ;;  %v6366_v39 = vadd.f32 %v10761_v61, %v6296_v2  ;;  %v6297_v35 = vmul.f32 %v8386_v55, %v10756_v45 }
 0x342   : > { %v3758_v32 = vpop.f32.mrb[33].mxu1  ;;  %6432 = vst.msk [vmem:[%s10770_s29 + $0xf0] sm:$0xff] %vm550_vm0, %v6368_v43  ;;  %v6369_v36 = vadd.f32 %v10761_v61, %v6299_v28 }
 0x343   : > { %v8030_v57 = vpop.f32.mrb[34].mxu1  ;;  %6430 = vst.msk [vmem:[%s10770_s29 + $0xe0] sm:$0xff] %vm550_vm0, %v6366_v39  ;;  %v6367_v47 = vadd.f32 %v10761_v61, %v6297_v35  ;;  %v8317_v48 = vpop.f32.mrb[32].mxu0 }
 0x344   : > { %v3761_v50 = vpop.f32.mrb[35].mxu1  ;;  %6433 = vst.msk [vmem:[%s10770_s29 + $0xf8] sm:$0xff] %vm550_vm0, %v6369_v36  ;;  %v8387_v51 = vadd.f32 %v8317_v48, %v8029_v0  ;;  %v6071_v1 = vpop.f32.mrb[33].mxu0 }
 0x345   : > { %6431 = vst.msk [vmem:[%s10770_s29 + $0xe8] sm:$0xff] %vm550_vm0, %v6367_v47  ;;  %v8388_v26 = vadd.f32 %v6071_v1, %v3758_v32  ;;  %v8318_v46 = vpop.f32.mrb[34].mxu0 }
 0x346   : > { %v6302_v15 = vmul.f32 %v8387_v51, %v10756_v45  ;;  %v8389_v17 = vadd.f32 %v8318_v46, %v8030_v57  ;;  %v6074_v19 = vpop.f32.mrb[35].mxu0 }
 0x347   : > { %v6300_v4 = vmul.f32 %v8388_v26, %v10756_v45  ;;  %v8390_v13 = vadd.f32 %v6074_v19, %v3761_v50 }
 0x348   : > { %v6372_v58 = vadd.f32 %v10761_v61, %v6302_v15  ;;  %v6303_v23 = vmul.f32 %v8389_v17, %v10756_v45 }
 0x349   : > { %v8033_v53 = vpop.f32.mrb[36].mxu1  ;;  %v6370_v41 = vadd.f32 %v10761_v61, %v6300_v4  ;;  %v6301_v10 = vmul.f32 %v8390_v13, %v10756_v45 }
 0x34a   : > { %v3774_v42 = vpop.f32.mrb[37].mxu1  ;;  %6436 = vst.msk [vmem:[%s10770_s29 + $0x110] sm:$0xff] %vm550_vm0, %v6372_v58  ;;  %v6373_v12 = vadd.f32 %v10761_v61, %v6303_v23 }
 0x34b   : > { %v8034_v40 = vpop.f32.mrb[38].mxu1  ;;  %6434 = vst.msk [vmem:[%s10770_s29 + $0x100] sm:$0xff] %vm550_vm0, %v6370_v41  ;;  %v6371_v5 = vadd.f32 %v10761_v61, %v6301_v10  ;;  %v8321_v34 = vpop.f32.mrb[36].mxu0 }
 0x34c   : > { %v3777_v49 = vpop.f32.mrb[39].mxu1  ;;  %6437 = vst.msk [vmem:[%s10770_s29 + $0x118] sm:$0xff] %vm550_vm0, %v6373_v12  ;;  %v8391_v11 = vadd.f32 %v8321_v34, %v8033_v53  ;;  %v6087_v62 = vpop.f32.mrb[37].mxu0 }
 0x34d   : > { %6435 = vst.msk [vmem:[%s10770_s29 + $0x108] sm:$0xff] %vm550_vm0, %v6371_v5  ;;  %v8392_v33 = vadd.f32 %v6087_v62, %v3774_v42  ;;  %v8322_v60 = vpop.f32.mrb[38].mxu0 }
 0x34e   : > { %v6306_v3 = vmul.f32 %v8391_v11, %v10756_v45  ;;  %v8393_v21 = vadd.f32 %v8322_v60, %v8034_v40  ;;  %v6090_v29 = vpop.f32.mrb[39].mxu0 }
 0x34f   : > { %v6304_v25 = vmul.f32 %v8392_v33, %v10756_v45  ;;  %v8394_v7 = vadd.f32 %v6090_v29, %v3777_v49 }
 0x350   : > { %v6376_v44 = vadd.f32 %v10761_v61, %v6306_v3  ;;  %v6307_v6 = vmul.f32 %v8393_v21, %v10756_v45 }
 0x351   : > { %v8037_v20 = vpop.f32.mrb[40].mxu1  ;;  %v6374_v9 = vadd.f32 %v10761_v61, %v6304_v25  ;;  %v6305_v30 = vmul.f32 %v8394_v7, %v10756_v45 }
 0x352   : > { %v3790_v27 = vpop.f32.mrb[41].mxu1  ;;  %6440 = vst.msk [vmem:[%s10770_s29 + $0x130] sm:$0xff] %vm550_vm0, %v6376_v44  ;;  %v6377_v56 = vadd.f32 %v10761_v61, %v6307_v6 }
 0x353   : > { %v8038_v14 = vpop.f32.mrb[42].mxu1  ;;  %6438 = vst.msk [vmem:[%s10770_s29 + $0x120] sm:$0xff] %vm550_vm0, %v6374_v9  ;;  %v6375_v22 = vadd.f32 %v10761_v61, %v6305_v30  ;;  %v8325_v63 = vpop.f32.mrb[40].mxu0 }
 0x354   : > { %v3793_v8 = vpop.f32.mrb[43].mxu1  ;;  %6441 = vst.msk [vmem:[%s10770_s29 + $0x138] sm:$0xff] %vm550_vm0, %v6377_v56  ;;  %v8395_v37 = vadd.f32 %v8325_v63, %v8037_v20  ;;  %v6103_v38 = vpop.f32.mrb[41].mxu0 }
 0x355   : > { %6439 = vst.msk [vmem:[%s10770_s29 + $0x128] sm:$0xff] %vm550_vm0, %v6375_v22  ;;  %v8396_v54 = vadd.f32 %v6103_v38, %v3790_v27  ;;  %v8326_v16 = vpop.f32.mrb[42].mxu0 }
 0x356   : > { %v6310_v52 = vmul.f32 %v8395_v37, %v10756_v45  ;;  %v8397_v31 = vadd.f32 %v8326_v16, %v8038_v14  ;;  %v6106_v59 = vpop.f32.mrb[43].mxu0 }
 0x357   : > { %v6308_v18 = vmul.f32 %v8396_v54, %v10756_v45  ;;  %v8398_v24 = vadd.f32 %v6106_v59, %v3793_v8 }
 0x358   : > { %v6380_v2 = vadd.f32 %v10761_v61, %v6310_v52  ;;  %v6311_v55 = vmul.f32 %v8397_v31, %v10756_v45 }
 0x359   : > { %v8041_v43 = vpop.f32.mrb[44].mxu1  ;;  %v6378_v28 = vadd.f32 %v10761_v61, %v6308_v18  ;;  %v6309_v0 = vmul.f32 %v8398_v24, %v10756_v45 }
 0x35a   : > { %v3806_v39 = vpop.f32.mrb[45].mxu1  ;;  %6444 = vst.msk [vmem:[%s10770_s29 + $0x150] sm:$0xff] %vm550_vm0, %v6380_v2  ;;  %v6381_v35 = vadd.f32 %v10761_v61, %v6311_v55 }
 0x35b   : > { %v8042_v32 = vpop.f32.mrb[46].mxu1  ;;  %6442 = vst.msk [vmem:[%s10770_s29 + $0x140] sm:$0xff] %vm550_vm0, %v6378_v28  ;;  %v6379_v36 = vadd.f32 %v10761_v61, %v6309_v0  ;;  %v8329_v57 = vpop.f32.mrb[44].mxu0 }
 0x35c   : > { %v3809_v47 = vpop.f32.mrb[47].mxu1  ;;  %6445 = vst.msk [vmem:[%s10770_s29 + $0x158] sm:$0xff] %vm550_vm0, %v6381_v35  ;;  %v8399_v48 = vadd.f32 %v8329_v57, %v8041_v43  ;;  %v6119_v50 = vpop.f32.mrb[45].mxu0 }
 0x35d   : > { %6443 = vst.msk [vmem:[%s10770_s29 + $0x148] sm:$0xff] %vm550_vm0, %v6379_v36  ;;  %v8400_v51 = vadd.f32 %v6119_v50, %v3806_v39  ;;  %v8330_v1 = vpop.f32.mrb[46].mxu0 }
 0x35e   : > { %v6314_v26 = vmul.f32 %v8399_v48, %v10756_v45  ;;  %v8401_v46 = vadd.f32 %v8330_v1, %v8042_v32  ;;  %v6122_v15 = vpop.f32.mrb[47].mxu0 }
 0x35f   : > { %v6312_v17 = vmul.f32 %v8400_v51, %v10756_v45  ;;  %v8402_v19 = vadd.f32 %v6122_v15, %v3809_v47 }
 0x360   : > { %v6384_v4 = vadd.f32 %v10761_v61, %v6314_v26  ;;  %v6315_v13 = vmul.f32 %v8401_v46, %v10756_v45 }
 0x361   : > { %v8045_v58 = vpop.f32.mrb[48].mxu1  ;;  %v6382_v23 = vadd.f32 %v10761_v61, %v6312_v17  ;;  %v6313_v53 = vmul.f32 %v8402_v19, %v10756_v45 }
 0x362   : > { %v3822_v41 = vpop.f32.mrb[49].mxu1  ;;  %6448 = vst.msk [vmem:[%s10770_s29 + $0x170] sm:$0xff] %vm550_vm0, %v6384_v4  ;;  %v6385_v10 = vadd.f32 %v10761_v61, %v6315_v13 }
 0x363   : > { %v8046_v42 = vpop.f32.mrb[50].mxu1  ;;  %6446 = vst.msk [vmem:[%s10770_s29 + $0x160] sm:$0xff] %vm550_vm0, %v6382_v23  ;;  %v6383_v12 = vadd.f32 %v10761_v61, %v6313_v53  ;;  %v8333_v40 = vpop.f32.mrb[48].mxu0 }
 0x364   : > { %v3825_v5 = vpop.f32.mrb[51].mxu1  ;;  %6449 = vst.msk [vmem:[%s10770_s29 + $0x178] sm:$0xff] %vm550_vm0, %v6385_v10  ;;  %v8403_v34 = vadd.f32 %v8333_v40, %v8045_v58  ;;  %v6135_v49 = vpop.f32.mrb[49].mxu0 }
 0x365   : > { %6447 = vst.msk [vmem:[%s10770_s29 + $0x168] sm:$0xff] %vm550_vm0, %v6383_v12  ;;  %v8404_v11 = vadd.f32 %v6135_v49, %v3822_v41  ;;  %v8334_v62 = vpop.f32.mrb[50].mxu0 }
 0x366   : > { %v6318_v33 = vmul.f32 %v8403_v34, %v10756_v45  ;;  %v8405_v60 = vadd.f32 %v8334_v62, %v8046_v42  ;;  %v6138_v3 = vpop.f32.mrb[51].mxu0 }
 0x367   : > { %v6316_v21 = vmul.f32 %v8404_v11, %v10756_v45  ;;  %v8406_v29 = vadd.f32 %v6138_v3, %v3825_v5 }
 0x368   : > { %v6388_v25 = vadd.f32 %v10761_v61, %v6318_v33  ;;  %v6319_v7 = vmul.f32 %v8405_v60, %v10756_v45 }
 0x369   : > { %v8049_v44 = vpop.f32.mrb[52].mxu1  ;;  %v6386_v6 = vadd.f32 %v10761_v61, %v6316_v21  ;;  %v6317_v20 = vmul.f32 %v8406_v29, %v10756_v45 }
 0x36a   : > { %v3838_v9 = vpop.f32.mrb[53].mxu1  ;;  %6452 = vst.msk [vmem:[%s10770_s29 + $0x190] sm:$0xff] %vm550_vm0, %v6388_v25  ;;  %v6389_v30 = vadd.f32 %v10761_v61, %v6319_v7 }
 0x36b   : > { %v8050_v27 = vpop.f32.mrb[54].mxu1  ;;  %6450 = vst.msk [vmem:[%s10770_s29 + $0x180] sm:$0xff] %vm550_vm0, %v6386_v6  ;;  %v6387_v56 = vadd.f32 %v10761_v61, %v6317_v20  ;;  %v8337_v14 = vpop.f32.mrb[52].mxu0  ;;  %v6634_v20 = vld [vmem:[%s10770_s29 + $0x10] sm:$0xff] (%p9049_p6) }
 0x36c   : > { %v3841_v22 = vpop.f32.mrb[55].mxu1  ;;  %6453 = vst.msk [vmem:[%s10770_s29 + $0x198] sm:$0xff] %vm550_vm0, %v6389_v30  ;;  %v8407_v63 = vadd.f32 %v8337_v14, %v8049_v44  ;;  %v6151_v8 = vpop.f32.mrb[53].mxu0  ;;  %v6638_v30 = vld [vmem:[%s10770_s29 + $0x20] sm:$0xff] (%p9049_p6)  ;;  %6635 = vst [vmem:[%s11055_s7 + $0x10] sm:$0xff] (%p9049_p6), %v6634_v20  ;;  %v6644_v14 = vld [vmem:[%s10770_s29 + $0x38] sm:$0xff] (%p9049_p6) }
 0x36d   : > { %6451 = vst.msk [vmem:[%s10770_s29 + $0x188] sm:$0xff] %vm550_vm0, %v6387_v56  ;;  %v8408_v37 = vadd.f32 %v6151_v8, %v3838_v9  ;;  %v8338_v38 = vpop.f32.mrb[54].mxu0  ;;  %v6636_v9 = vld [vmem:[%s10770_s29 + $0x18] sm:$0xff] (%p9049_p6)  ;;  %6639 = vst [vmem:[%s11055_s7 + $0x20] sm:$0xff] (%p9049_p6), %v6638_v30  ;;  %v6642_v56 = vld [vmem:[%s10770_s29 + $0x30] sm:$0xff] (%p9049_p6) }
 0x36e   : > { %v6322_v54 = vmul.f32 %v8407_v63, %v10756_v45  ;;  %v8409_v16 = vadd.f32 %v8338_v38, %v8050_v27  ;;  %v6154_v52 = vpop.f32.mrb[55].mxu0  ;;  %v6640_v27 = vld [vmem:[%s10770_s29 + $0x28] sm:$0xff] (%p9049_p6)  ;;  %6637 = vst [vmem:[%s11055_s7 + $0x18] sm:$0xff] (%p9049_p6), %v6636_v9  ;;  %6643 = vst [vmem:[%s11055_s7 + $0x30] sm:$0xff] (%p9049_p6), %v6642_v56  ;;  %v6650_v8 = vld [vmem:[%s10770_s29 + $0x50] sm:$0xff] (%p9049_p6) }
 0x36f   : > { %v6320_v31 = vmul.f32 %v8408_v37, %v10756_v45  ;;  %v8410_v59 = vadd.f32 %v6154_v52, %v3841_v22  ;;  %6641 = vst [vmem:[%s11055_s7 + $0x28] sm:$0xff] (%p9049_p6), %v6640_v27  ;;  %v6646_v22 = vld [vmem:[%s10770_s29 + $0x40] sm:$0xff] (%p9049_p6)  ;;  %6645 = vst [vmem:[%s11055_s7 + $0x38] sm:$0xff] (%p9049_p6), %v6644_v14  ;;  %v6648_v63 = vld [vmem:[%s10770_s29 + $0x48] sm:$0xff] (%p9049_p6) }
 0x370   : > { %v6392_v18 = vadd.f32 %v10761_v61, %v6322_v54  ;;  %v6323_v24 = vmul.f32 %v8409_v16, %v10756_v45  ;;  %6647 = vst [vmem:[%s11055_s7 + $0x40] sm:$0xff] (%p9049_p6), %v6646_v22  ;;  %v6652_v37 = vld [vmem:[%s10770_s29 + $0x58] sm:$0xff] (%p9049_p6)  ;;  %6649 = vst [vmem:[%s11055_s7 + $0x48] sm:$0xff] (%p9049_p6), %v6648_v63  ;;  %v6654_v38 = vld [vmem:[%s10770_s29 + $0x60] sm:$0xff] (%p9049_p6) }
 0x371   : > { %v8053_v2 = vpop.f32.mrb[56].mxu1  ;;  %v6390_v55 = vadd.f32 %v10761_v61, %v6320_v31  ;;  %v6321_v43 = vmul.f32 %v8410_v59, %v10756_v45  ;;  %6651 = vst [vmem:[%s11055_s7 + $0x50] sm:$0xff] (%p9049_p6), %v6650_v8  ;;  %6653 = vst [vmem:[%s11055_s7 + $0x58] sm:$0xff] (%p9049_p6), %v6652_v37  ;;  %v6656_v54 = vld [vmem:[%s10770_s29 + $0x68] sm:$0xff] (%p9049_p6)  ;;  %v6658_v16 = vld [vmem:[%s10770_s29 + $0x70] sm:$0xff] (%p9049_p6) }
 0x372   : > { %v3854_v28 = vpop.f32.mrb[57].mxu1  ;;  %6456 = vst.msk [vmem:[%s10770_s29 + $0x1b0] sm:$0xff] %vm550_vm0, %v6392_v18  ;;  %v6393_v0 = vadd.f32 %v10761_v61, %v6323_v24  ;;  %6655 = vst [vmem:[%s11055_s7 + $0x60] sm:$0xff] (%p9049_p6), %v6654_v38  ;;  %v6660_v52 = vld [vmem:[%s10770_s29 + $0x78] sm:$0xff] (%p9049_p6)  ;;  %v6662_v31 = vld [vmem:[%s10770_s29 + $0x80] sm:$0xff] (%p9049_p6) }
 0x373   : > { %v8054_v39 = vpop.f32.mrb[58].mxu1  ;;  %6454 = vst.msk [vmem:[%s10770_s29 + $0x1a0] sm:$0xff] %vm550_vm0, %v6390_v55  ;;  %v6391_v35 = vadd.f32 %v10761_v61, %v6321_v43  ;;  %v8341_v32 = vpop.f32.mrb[56].mxu0  ;;  %6657 = vst [vmem:[%s11055_s7 + $0x68] sm:$0xff] (%p9049_p6), %v6656_v54  ;;  %v6664_v59 = vld [vmem:[%s10770_s29 + $0x88] sm:$0xff] (%p9049_p6)  ;;  %v6666_v18 = vld [vmem:[%s10770_s29 + $0x90] sm:$0xff] (%p9049_p6) }
 0x374   : > { %v3857_v36 = vpop.f32.mrb[59].mxu1  ;;  %6457 = vst.msk [vmem:[%s10770_s29 + $0x1b8] sm:$0xff] %vm550_vm0, %v6393_v0  ;;  %v8411_v57 = vadd.f32 %v8341_v32, %v8053_v2  ;;  %v6167_v47 = vpop.f32.mrb[57].mxu0  ;;  %6659 = vst [vmem:[%s11055_s7 + $0x70] sm:$0xff] (%p9049_p6), %v6658_v16  ;;  %v6668_v24 = vld [vmem:[%s10770_s29 + $0x98] sm:$0xff] (%p9049_p6)  ;;  %v6670_v2 = vld [vmem:[%s10770_s29 + $0xa0] sm:$0xff] (%p9049_p6) }
 0x375   : > { %6455 = vst.msk [vmem:[%s10770_s29 + $0x1a8] sm:$0xff] %vm550_vm0, %v6391_v35  ;;  %v8412_v48 = vadd.f32 %v6167_v47, %v3854_v28  ;;  %v8342_v50 = vpop.f32.mrb[58].mxu0  ;;  %6661 = vst [vmem:[%s11055_s7 + $0x78] sm:$0xff] (%p9049_p6), %v6660_v52  ;;  %v6672_v55 = vld [vmem:[%s10770_s29 + $0xa8] sm:$0xff] (%p9049_p6)  ;;  %v6674_v43 = vld [vmem:[%s10770_s29 + $0xb0] sm:$0xff] (%p9049_p6) }
 0x376   : > { %v6326_v51 = vmul.f32 %v8411_v57, %v10756_v45  ;;  %v8413_v1 = vadd.f32 %v8342_v50, %v8054_v39  ;;  %v6170_v26 = vpop.f32.mrb[59].mxu0  ;;  %6663 = vst [vmem:[%s11055_s7 + $0x80] sm:$0xff] (%p9049_p6), %v6662_v31  ;;  %6665 = vst [vmem:[%s11055_s7 + $0x88] sm:$0xff] (%p9049_p6), %v6664_v59  ;;  %v6676_v28 = vld [vmem:[%s10770_s29 + $0xb8] sm:$0xff] (%p9049_p6)  ;;  %v6678_v0 = vld [vmem:[%s10770_s29 + $0xc0] sm:$0xff] (%p9049_p6) }
 0x377   : > { %v6324_v46 = vmul.f32 %v8412_v48, %v10756_v45  ;;  %v8414_v15 = vadd.f32 %v6170_v26, %v3857_v36  ;;  %6667 = vst [vmem:[%s11055_s7 + $0x90] sm:$0xff] (%p9049_p6), %v6666_v18  ;;  %6669 = vst [vmem:[%s11055_s7 + $0x98] sm:$0xff] (%p9049_p6), %v6668_v24  ;;  %v6680_v39 = vld [vmem:[%s10770_s29 + $0xc8] sm:$0xff] (%p9049_p6)  ;;  %v6682_v35 = vld [vmem:[%s10770_s29 + $0xd0] sm:$0xff] (%p9049_p6) }
 0x378   : > { %v6396_v17 = vadd.f32 %v10761_v61, %v6326_v51  ;;  %v6327_v19 = vmul.f32 %v8413_v1, %v10756_v45  ;;  %6671 = vst [vmem:[%s11055_s7 + $0xa0] sm:$0xff] (%p9049_p6), %v6670_v2  ;;  %6673 = vst [vmem:[%s11055_s7 + $0xa8] sm:$0xff] (%p9049_p6), %v6672_v55  ;;  %v6684_v32 = vld [vmem:[%s10770_s29 + $0xd8] sm:$0xff] (%p9049_p6)  ;;  %v6686_v36 = vld [vmem:[%s10770_s29 + $0xe0] sm:$0xff] (%p9049_p6) }
 0x379   : > { %v8057_v4 = vpop.f32.mrb[60].mxu1  ;;  %v6394_v13 = vadd.f32 %v10761_v61, %v6324_v46  ;;  %v6325_v58 = vmul.f32 %v8414_v15, %v10756_v45  ;;  %6675 = vst [vmem:[%s11055_s7 + $0xb0] sm:$0xff] (%p9049_p6), %v6674_v43  ;;  %6677 = vst [vmem:[%s11055_s7 + $0xb8] sm:$0xff] (%p9049_p6), %v6676_v28  ;;  %v6688_v57 = vld [vmem:[%s10770_s29 + $0xe8] sm:$0xff] (%p9049_p6)  ;;  %v6690_v47 = vld [vmem:[%s10770_s29 + $0xf0] sm:$0xff] (%p9049_p6) }
 0x37a   : > { %v3870_v23 = vpop.f32.mrb[61].mxu1  ;;  %6460 = vst.msk [vmem:[%s10770_s29 + $0x1d0] sm:$0xff] %vm550_vm0, %v6396_v17  ;;  %v6397_v53 = vadd.f32 %v10761_v61, %v6327_v19  ;;  %6679 = vst [vmem:[%s11055_s7 + $0xc0] sm:$0xff] (%p9049_p6), %v6678_v0  ;;  %v6692_v48 = vld [vmem:[%s10770_s29 + $0xf8] sm:$0xff] (%p9049_p6)  ;;  %v6694_v50 = vld [vmem:[%s10770_s29 + $0x100] sm:$0xff] (%p9049_p6) }
 0x37b   : > { %v8058_v41 = vpop.f32.mrb[62].mxu1  ;;  %6458 = vst.msk [vmem:[%s10770_s29 + $0x1c0] sm:$0xff] %vm550_vm0, %v6394_v13  ;;  %v6395_v10 = vadd.f32 %v10761_v61, %v6325_v58  ;;  %v8345_v42 = vpop.f32.mrb[60].mxu0  ;;  %6681 = vst [vmem:[%s11055_s7 + $0xc8] sm:$0xff] (%p9049_p6), %v6680_v39  ;;  %v6696_v51 = vld [vmem:[%s10770_s29 + $0x108] sm:$0xff] (%p9049_p6)  ;;  %v6698_v1 = vld [vmem:[%s10770_s29 + $0x110] sm:$0xff] (%p9049_p6) }
 0x37c   : > { %v3873_v12 = vpop.f32.mrb[63].mxu1  ;;  %6461 = vst.msk [vmem:[%s10770_s29 + $0x1d8] sm:$0xff] %vm550_vm0, %v6397_v53  ;;  %v8415_v40 = vadd.f32 %v8345_v42, %v8057_v4  ;;  %v6183_v5 = vpop.f32.mrb[61].mxu0  ;;  %6683 = vst [vmem:[%s11055_s7 + $0xd0] sm:$0xff] (%p9049_p6), %v6682_v35  ;;  %v6700_v26 = vld [vmem:[%s10770_s29 + $0x118] sm:$0xff] (%p9049_p6)  ;;  %v6702_v46 = vld [vmem:[%s10770_s29 + $0x120] sm:$0xff] (%p9049_p6) }
 0x37d   : > { %6459 = vst.msk [vmem:[%s10770_s29 + $0x1c8] sm:$0xff] %vm550_vm0, %v6395_v10  ;;  %v8416_v34 = vadd.f32 %v6183_v5, %v3870_v23  ;;  %v8346_v49 = vpop.f32.mrb[62].mxu0  ;;  %6685 = vst [vmem:[%s11055_s7 + $0xd8] sm:$0xff] (%p9049_p6), %v6684_v32  ;;  %v6704_v15 = vld [vmem:[%s10770_s29 + $0x128] sm:$0xff] (%p9049_p6)  ;;  %v6706_v17 = vld [vmem:[%s10770_s29 + $0x130] sm:$0xff] (%p9049_p6) }
 0x37e   : > { %v6330_v11 = vmul.f32 %v8415_v40, %v10756_v45  ;;  %v8417_v62 = vadd.f32 %v8346_v49, %v8058_v41  ;;  %v6186_v33 = vpop.f32.mrb[63].mxu0  ;;  %6687 = vst [vmem:[%s11055_s7 + $0xe0] sm:$0xff] (%p9049_p6), %v6686_v36  ;;  %6689 = vst [vmem:[%s11055_s7 + $0xe8] sm:$0xff] (%p9049_p6), %v6688_v57  ;;  %v6708_v19 = vld [vmem:[%s10770_s29 + $0x138] sm:$0xff] (%p9049_p6)  ;;  %v6710_v4 = vld [vmem:[%s10770_s29 + $0x140] sm:$0xff] (%p9049_p6) }
 0x37f   : > { %v6328_v60 = vmul.f32 %v8416_v34, %v10756_v45  ;;  %v8418_v3 = vadd.f32 %v6186_v33, %v3873_v12  ;;  %6472 = sbr.rel (!%p9049_p6) target bundleno = 915 (0x393), region = 78  ;;  %6691 = vst [vmem:[%s11055_s7 + $0xf0] sm:$0xff] (%p9049_p6), %v6690_v47  ;;  %6693 = vst [vmem:[%s11055_s7 + $0xf8] sm:$0xff] (%p9049_p6), %v6692_v48  ;;  %v6712_v13 = vld [vmem:[%s10770_s29 + $0x148] sm:$0xff] (%p9049_p6)  ;;  %v6714_v58 = vld [vmem:[%s10770_s29 + $0x150] sm:$0xff] (%p9049_p6) }
 0x380   : > { %v6400_v21 = vadd.f32 %v10761_v61, %v6330_v11  ;;  %v6331_v29 = vmul.f32 %v8417_v62, %v10756_v45  ;;  %6695 = vst [vmem:[%s11055_s7 + $0x200] sm:$0xff] (%p9049_p6), %v6694_v50  ;;  %6697 = vst [vmem:[%s11055_s7 + $0x208] sm:$0xff] (%p9049_p6), %v6696_v51  ;;  %v6716_v23 = vld [vmem:[%s10770_s29 + $0x158] sm:$0xff] (%p9049_p6)  ;;  %v6718_v53 = vld [vmem:[%s10770_s29 + $0x160] sm:$0xff] (%p9049_p6) }
 0x381   : > { %v6398_v25 = vadd.f32 %v10761_v61, %v6328_v60  ;;  %v6329_v7 = vmul.f32 %v8418_v3, %v10756_v45  ;;  %v6630_v45 = vld [vmem:[%s10770_s29] sm:$0xff] (%p9049_p6)  ;;  %6699 = vst [vmem:[%s11055_s7 + $0x210] sm:$0xff] (%p9049_p6), %v6698_v1  ;;  %6701 = vst [vmem:[%s11055_s7 + $0x218] sm:$0xff] (%p9049_p6), %v6700_v26  ;;  %v6720_v41 = vld [vmem:[%s10770_s29 + $0x168] sm:$0xff] (%p9049_p6) }
 0x382   : > { %6464 = vst.msk [vmem:[%s10770_s29 + $0x1f0] sm:$0xff] %vm550_vm0, %v6400_v21  ;;  %v6401_v44 = vadd.f32 %v10761_v61, %v6331_v29  ;;  %6631 = vst [vmem:[%s11055_s7] sm:$0xff] (%p9049_p6), %v6630_v45  ;;  %v6722_v10 = vld [vmem:[%s10770_s29 + $0x170] sm:$0xff] (%p9049_p6)  ;;  %v6724_v42 = vld [vmem:[%s10770_s29 + $0x178] sm:$0xff] (%p9049_p6) }
 0x383   : > { %6462 = vst.msk [vmem:[%s10770_s29 + $0x1e0] sm:$0xff] %vm550_vm0, %v6398_v25  ;;  %v6399_v6 = vadd.f32 %v10761_v61, %v6329_v7  ;;  %v6632_v61 = vld [vmem:[%s10770_s29 + $0x8] sm:$0xff] (%p9049_p6)  ;;  %6703 = vst [vmem:[%s11055_s7 + $0x220] sm:$0xff] (%p9049_p6), %v6702_v46  ;;  %v6726_v12 = vld [vmem:[%s10770_s29 + $0x180] sm:$0xff] (%p9049_p6) }
 0x384   : > { %6465 = vst.msk [vmem:[%s10770_s29 + $0x1f8] sm:$0xff] %vm550_vm0, %v6401_v44  ;;  %6633 = vst [vmem:[%s11055_s7 + $0x8] sm:$0xff] (%p9049_p6), %v6632_v61  ;;  %v6728_v40 = vld [vmem:[%s10770_s29 + $0x188] sm:$0xff] (%p9049_p6)  ;;  %v6730_v5 = vld [vmem:[%s10770_s29 + $0x190] sm:$0xff] (%p9049_p6) }
 0x385   : > { %6463 = vst.msk [vmem:[%s10770_s29 + $0x1e8] sm:$0xff] %vm550_vm0, %v6399_v6  ;;  %6705 = vst [vmem:[%s11055_s7 + $0x228] sm:$0xff] (%p9049_p6), %v6704_v15  ;;  %v6732_v34 = vld [vmem:[%s10770_s29 + $0x198] sm:$0xff] (%p9049_p6)  ;;  %v6734_v49 = vld [vmem:[%s10770_s29 + $0x1a0] sm:$0xff] (%p9049_p6) }
 0x386   : > { %6707 = vst [vmem:[%s11055_s7 + $0x230] sm:$0xff] %v6706_v17  ;;  %6709 = vst [vmem:[%s11055_s7 + $0x238] sm:$0xff] %v6708_v19  ;;  %v6736_v11 = vld [vmem:[%s10770_s29 + $0x1a8] sm:$0xff]  ;;  %v6738_v62 = vld [vmem:[%s10770_s29 + $0x1b0] sm:$0xff] }
 0x387   : > { %6711 = vst [vmem:[%s11055_s7 + $0x240] sm:$0xff] %v6710_v4  ;;  %6713 = vst [vmem:[%s11055_s7 + $0x248] sm:$0xff] %v6712_v13  ;;  %v6740_v33 = vld [vmem:[%s10770_s29 + $0x1b8] sm:$0xff]  ;;  %v6742_v60 = vld [vmem:[%s10770_s29 + $0x1c0] sm:$0xff] }
 0x388   : > { %6715 = vst [vmem:[%s11055_s7 + $0x250] sm:$0xff] %v6714_v58  ;;  %6717 = vst [vmem:[%s11055_s7 + $0x258] sm:$0xff] %v6716_v23  ;;  %v6744_v3 = vld [vmem:[%s10770_s29 + $0x1c8] sm:$0xff]  ;;  %v6746_v21 = vld [vmem:[%s10770_s29 + $0x1d0] sm:$0xff] }
 0x389   : > { %6719 = vst [vmem:[%s11055_s7 + $0x260] sm:$0xff] %v6718_v53  ;;  %6721 = vst [vmem:[%s11055_s7 + $0x268] sm:$0xff] %v6720_v41  ;;  %v6748_v29 = vld [vmem:[%s10770_s29 + $0x1d8] sm:$0xff]  ;;  %v6754_v44 = vld [vmem:[%s10770_s29 + $0x1f0] sm:$0xff] }
 0x38a   : > { %6723 = vst [vmem:[%s11055_s7 + $0x270] sm:$0xff] %v6722_v10  ;;  %6725 = vst [vmem:[%s11055_s7 + $0x278] sm:$0xff] %v6724_v42  ;;  %v6750_v25 = vld [vmem:[%s10770_s29 + $0x1e0] sm:$0xff] }
 0x38b   : > { %6727 = vst [vmem:[%s11055_s7 + $0x280] sm:$0xff] %v6726_v12  ;;  %6729 = vst [vmem:[%s11055_s7 + $0x288] sm:$0xff] %v6728_v40  ;;  %v6756_v6 = vld [vmem:[%s10770_s29 + $0x1f8] sm:$0xff] }
 0x38c   : > { %6731 = vst [vmem:[%s11055_s7 + $0x290] sm:$0xff] %v6730_v5  ;;  %6733 = vst [vmem:[%s11055_s7 + $0x298] sm:$0xff] %v6732_v34  ;;  %v6752_v7 = vld [vmem:[%s10770_s29 + $0x1e8] sm:$0xff] }
 0x38d   : > { %6735 = vst [vmem:[%s11055_s7 + $0x2a0] sm:$0xff] %v6734_v49  ;;  %6737 = vst [vmem:[%s11055_s7 + $0x2a8] sm:$0xff] %v6736_v11 }
 0x38e   : > { %6739 = vst [vmem:[%s11055_s7 + $0x2b0] sm:$0xff] %v6738_v62  ;;  %6741 = vst [vmem:[%s11055_s7 + $0x2b8] sm:$0xff] %v6740_v33 }
 0x38f   : > { %6743 = vst [vmem:[%s11055_s7 + $0x2c0] sm:$0xff] %v6742_v60  ;;  %6745 = vst [vmem:[%s11055_s7 + $0x2c8] sm:$0xff] %v6744_v3 }
 0x390   : > { %6747 = vst [vmem:[%s11055_s7 + $0x2d0] sm:$0xff] %v6746_v21  ;;  %6749 = vst [vmem:[%s11055_s7 + $0x2d8] sm:$0xff] %v6748_v29 }
 0x391   : > { %6751 = vst [vmem:[%s11055_s7 + $0x2e0] sm:$0xff] %v6750_v25  ;;  %6753 = vst [vmem:[%s11055_s7 + $0x2e8] sm:$0xff] %v6752_v7 }
 0x392   : > { %6755 = vst [vmem:[%s11055_s7 + $0x2f0] sm:$0xff] %v6754_v44  ;;  %6757 = vst [vmem:[%s11055_s7 + $0x2f8] sm:$0xff] %v6756_v6 }
 0x393 PF: > { %s14_s19 = sadd.s32 1, %s8986_s19   ;;  %s11203_s15 = smov %s8974_s16 }
 0x394   : > { %p11_p11 = scmp.ge.s32.totalorder %s14_s19, 4   ;;  %s11204_s16 = smov %s9054_s25 }
 0x395   : > { %s11205_s17 = smov %s8982_s18  ;;  %s11206_s18 = smov %s11208_s20 }
 0x396   :  { %13 = sbr.rel (!%p11_p11) target bundleno = 3 (0x3), region = 169 }

// kernel: gwffn_forward.6
= control target key start
LH: loop header
LB: loop body
LE: loop exit
PB: predicated region body
PF: predicated region fallthrough
CT: control target
= control target key end

     0   :  { %s9509_s18 = smov 0   ;;  %s9511_s19 = smov 0   ;;  %s11910_s0 = inlined_call_operand.vmem [shape: f32[2,2,16,16,64], index: 0, kind: input, shape index: {}]   ;;  %s11911_s1 = inlined_call_operand.vmem [shape: f32[2,2,16,16,64], index: 1, kind: input, shape index: {}]   ;;  %s11912_s2 = inlined_call_operand.vmem [shape: bf16[9,64,64], index: 2, kind: input, shape index: {}]   ;;  %s11913_s3 = inlined_call_operand.vmem [shape: f32[1,64], index: 3, kind: input, shape index: {}]   ;;  %s11914_s4 = inlined_call_operand.vmem [shape: f32[1,64], index: 4, kind: input, shape index: {}]   ;;  %s11915_s5 = inlined_call_operand.vmem [shape: f32[2,2,16,16,64], index: 5, kind: output, shape index: {}]  }
   0x1   :  { %s9513_s20 = smov 0   ;;  %s9515_s21 = smov 0  }
   0x2   :  { %s9517_s22 = smov 0  }
   0x3 LB: > { %s27_s23 = sadd.s32 1, %s9472_s21  ;;  %s7354_s24 = sadd.s32 4294967295, %s9476_s22   ;;  %s9476_s22 = sphi %s9517_s22, %s15_s22   ;;  %s9472_s21 = sphi %s9515_s21, %s11921_s21   ;;  %s9468_s20 = sphi %s9513_s20, %s11920_s20   ;;  %s9464_s19 = sphi %s9511_s19, %s11919_s19   ;;  %s9460_s18 = sphi %s9509_s18, %s11918_s18  }
   0x4   : > { %p29_p0 = scmp.ge.s32.totalorder %s27_s23, 2  ;;  %p43_p1 = scmp.ne.s32.totalorder %s9464_s19, %s9460_s18 }
   0x5   : > { %p44_p2 = scmp.eq.s32.totalorder %s9476_s22, 0  ;;  %p181_p4 = scmp.eq.s32.totalorder %s7354_s24, 1 }
   0x6   : > { %s11923_s23 = smov (%p29_p0, %s27_s23), 0  ;;  %s36_s27 = sadd.s32 1, %s9464_s19 }
   0x7   : > { %p9541_p3 = por %p44_p2, %p43_p1  ;;  %s31_s26 = ssub.s32 %s9472_s21, %s11923_s23 }
   0x8   : > { %p34_p5 = scmp.eq.s32.totalorder %s31_s26, 0  ;;  %p9548_p6 = por %p181_p4, %p43_p1 }
   0x9   : > { %p7360_p7 = scmp.ge.s32.totalorder %s9476_s22, 2 }
   0xa   : > { %s9553_s29 = scalar_select %p34_p5, %s9464_s19, %s36_s27  }
   0xb   : > { %225 = sbr.rel (%p7360_p7) target bundleno = 90 (0x5a), region = 28 }
  0x12   : > { %228 = sbr.rel (!%p9541_p3) target bundleno = 54 (0x36), region = 32  ;;  %s230_s30 = sand.u32 (%p9541_p3), 1, %s9464_s19  }
  0x13   : > { %s7862_s6 = sshll.u32 (%p9541_p3), %s9472_s21, 8  ;;  %s7361_s7 = sshll.u32 (%p9541_p3), %s230_s30, 9 }
  0x14   : > { %s9563_s10 = scalar_lea.vmem (%p9541_p3), %s11910_s0, %s7862_s6  ;;  %s9568_s11 = scalar_lea.vmem (%p9541_p3), [#allocation3], %s7361_s7 }
  0x15   : > { %v390_v0 = vld [vmem:[%s9563_s10] sm:$0xff] (%p9541_p3)  ;;  %v392_v1 = vld [vmem:[%s9563_s10 + $0x8] sm:$0xff] (%p9541_p3)  ;;  %v394_v2 = vld [vmem:[%s9563_s10 + $0x10] sm:$0xff] (%p9541_p3) }
  0x16   : > { %391 = vst [vmem:[%s9568_s11] sm:$0xff] (%p9541_p3), %v390_v0  ;;  %393 = vst [vmem:[%s9568_s11 + $0x8] sm:$0xff] (%p9541_p3), %v392_v1  ;;  %v396_v3 = vld [vmem:[%s9563_s10 + $0x18] sm:$0xff] (%p9541_p3)  ;;  %v398_v4 = vld [vmem:[%s9563_s10 + $0x20] sm:$0xff] (%p9541_p3) }
  0x17   : > { %395 = vst [vmem:[%s9568_s11 + $0x10] sm:$0xff] (%p9541_p3), %v394_v2  ;;  %v400_v5 = vld [vmem:[%s9563_s10 + $0x28] sm:$0xff] (%p9541_p3)  ;;  %397 = vst [vmem:[%s9568_s11 + $0x18] sm:$0xff] (%p9541_p3), %v396_v3  ;;  %v402_v6 = vld [vmem:[%s9563_s10 + $0x30] sm:$0xff] (%p9541_p3) }
  0x18   : > { %399 = vst [vmem:[%s9568_s11 + $0x20] sm:$0xff] (%p9541_p3), %v398_v4  ;;  %401 = vst [vmem:[%s9568_s11 + $0x28] sm:$0xff] (%p9541_p3), %v400_v5  ;;  %v404_v7 = vld [vmem:[%s9563_s10 + $0x38] sm:$0xff] (%p9541_p3)  ;;  %v406_v8 = vld [vmem:[%s9563_s10 + $0x40] sm:$0xff] (%p9541_p3) }
  0x19   : > { %403 = vst [vmem:[%s9568_s11 + $0x30] sm:$0xff] %v402_v6  ;;  %405 = vst [vmem:[%s9568_s11 + $0x38] sm:$0xff] %v404_v7  ;;  %v408_v9 = vld [vmem:[%s9563_s10 + $0x48] sm:$0xff]  ;;  %v410_v10 = vld [vmem:[%s9563_s10 + $0x50] sm:$0xff] }
  0x1a   : > { %407 = vst [vmem:[%s9568_s11 + $0x40] sm:$0xff] %v406_v8  ;;  %v412_v11 = vld [vmem:[%s9563_s10 + $0x58] sm:$0xff]  ;;  %409 = vst [vmem:[%s9568_s11 + $0x48] sm:$0xff] %v408_v9  ;;  %v414_v12 = vld [vmem:[%s9563_s10 + $0x60] sm:$0xff] }
  0x1b   : > { %411 = vst [vmem:[%s9568_s11 + $0x50] sm:$0xff] %v410_v10  ;;  %413 = vst [vmem:[%s9568_s11 + $0x58] sm:$0xff] %v412_v11  ;;  %v416_v13 = vld [vmem:[%s9563_s10 + $0x68] sm:$0xff]  ;;  %v418_v14 = vld [vmem:[%s9563_s10 + $0x70] sm:$0xff] }
  0x1c   : > { %415 = vst [vmem:[%s9568_s11 + $0x60] sm:$0xff] %v414_v12  ;;  %417 = vst [vmem:[%s9568_s11 + $0x68] sm:$0xff] %v416_v13  ;;  %v420_v15 = vld [vmem:[%s9563_s10 + $0x78] sm:$0xff]  ;;  %v422_v16 = vld [vmem:[%s9563_s10 + $0x80] sm:$0xff] }
  0x1d   : > { %419 = vst [vmem:[%s9568_s11 + $0x70] sm:$0xff] %v418_v14  ;;  %v424_v17 = vld [vmem:[%s9563_s10 + $0x88] sm:$0xff]  ;;  %421 = vst [vmem:[%s9568_s11 + $0x78] sm:$0xff] %v420_v15  ;;  %v426_v18 = vld [vmem:[%s9563_s10 + $0x90] sm:$0xff] }
  0x1e   : > { %423 = vst [vmem:[%s9568_s11 + $0x80] sm:$0xff] %v422_v16  ;;  %425 = vst [vmem:[%s9568_s11 + $0x88] sm:$0xff] %v424_v17  ;;  %v428_v19 = vld [vmem:[%s9563_s10 + $0x98] sm:$0xff]  ;;  %v430_v20 = vld [vmem:[%s9563_s10 + $0xa0] sm:$0xff] }
  0x1f   : > { %427 = vst [vmem:[%s9568_s11 + $0x90] sm:$0xff] %v426_v18  ;;  %429 = vst [vmem:[%s9568_s11 + $0x98] sm:$0xff] %v428_v19  ;;  %v432_v21 = vld [vmem:[%s9563_s10 + $0xa8] sm:$0xff]  ;;  %v434_v22 = vld [vmem:[%s9563_s10 + $0xb0] sm:$0xff] }
  0x20   : > { %431 = vst [vmem:[%s9568_s11 + $0xa0] sm:$0xff] %v430_v20  ;;  %v436_v23 = vld [vmem:[%s9563_s10 + $0xb8] sm:$0xff]  ;;  %433 = vst [vmem:[%s9568_s11 + $0xa8] sm:$0xff] %v432_v21  ;;  %v438_v24 = vld [vmem:[%s9563_s10 + $0xc0] sm:$0xff] }
  0x21   : > { %435 = vst [vmem:[%s9568_s11 + $0xb0] sm:$0xff] %v434_v22  ;;  %437 = vst [vmem:[%s9568_s11 + $0xb8] sm:$0xff] %v436_v23  ;;  %v440_v25 = vld [vmem:[%s9563_s10 + $0xc8] sm:$0xff]  ;;  %v442_v26 = vld [vmem:[%s9563_s10 + $0xd0] sm:$0xff] }
  0x22   : > { %439 = vst [vmem:[%s9568_s11 + $0xc0] sm:$0xff] %v438_v24  ;;  %441 = vst [vmem:[%s9568_s11 + $0xc8] sm:$0xff] %v440_v25  ;;  %v444_v27 = vld [vmem:[%s9563_s10 + $0xd8] sm:$0xff]  ;;  %v446_v28 = vld [vmem:[%s9563_s10 + $0xe0] sm:$0xff] }
  0x23   : > { %443 = vst [vmem:[%s9568_s11 + $0xd0] sm:$0xff] %v442_v26  ;;  %v448_v29 = vld [vmem:[%s9563_s10 + $0xe8] sm:$0xff]  ;;  %445 = vst [vmem:[%s9568_s11 + $0xd8] sm:$0xff] %v444_v27  ;;  %v450_v30 = vld [vmem:[%s9563_s10 + $0xf0] sm:$0xff] }
  0x24   : > { %447 = vst [vmem:[%s9568_s11 + $0xe0] sm:$0xff] %v446_v28  ;;  %449 = vst [vmem:[%s9568_s11 + $0xe8] sm:$0xff] %v448_v29  ;;  %v452_v31 = vld [vmem:[%s9563_s10 + $0xf8] sm:$0xff]  ;;  %v454_v32 = vld [vmem:[%s9563_s10 + $0x200] sm:$0xff] }
  0x25   : > { %451 = vst [vmem:[%s9568_s11 + $0xf0] sm:$0xff] %v450_v30  ;;  %453 = vst [vmem:[%s9568_s11 + $0xf8] sm:$0xff] %v452_v31  ;;  %v456_v33 = vld [vmem:[%s9563_s10 + $0x208] sm:$0xff]  ;;  %v458_v34 = vld [vmem:[%s9563_s10 + $0x210] sm:$0xff] }
  0x26   : > { %455 = vst [vmem:[%s9568_s11 + $0x100] sm:$0xff] %v454_v32  ;;  %v460_v35 = vld [vmem:[%s9563_s10 + $0x218] sm:$0xff]  ;;  %457 = vst [vmem:[%s9568_s11 + $0x108] sm:$0xff] %v456_v33  ;;  %v462_v36 = vld [vmem:[%s9563_s10 + $0x220] sm:$0xff] }
  0x27   : > { %459 = vst [vmem:[%s9568_s11 + $0x110] sm:$0xff] %v458_v34  ;;  %461 = vst [vmem:[%s9568_s11 + $0x118] sm:$0xff] %v460_v35  ;;  %v464_v37 = vld [vmem:[%s9563_s10 + $0x228] sm:$0xff]  ;;  %v466_v38 = vld [vmem:[%s9563_s10 + $0x230] sm:$0xff] }
  0x28   : > { %463 = vst [vmem:[%s9568_s11 + $0x120] sm:$0xff] %v462_v36  ;;  %465 = vst [vmem:[%s9568_s11 + $0x128] sm:$0xff] %v464_v37  ;;  %v468_v39 = vld [vmem:[%s9563_s10 + $0x238] sm:$0xff]  ;;  %v470_v40 = vld [vmem:[%s9563_s10 + $0x240] sm:$0xff] }
  0x29   : > { %467 = vst [vmem:[%s9568_s11 + $0x130] sm:$0xff] %v466_v38  ;;  %v472_v41 = vld [vmem:[%s9563_s10 + $0x248] sm:$0xff]  ;;  %469 = vst [vmem:[%s9568_s11 + $0x138] sm:$0xff] %v468_v39  ;;  %v474_v42 = vld [vmem:[%s9563_s10 + $0x250] sm:$0xff] }
  0x2a   : > { %471 = vst [vmem:[%s9568_s11 + $0x140] sm:$0xff] %v470_v40  ;;  %473 = vst [vmem:[%s9568_s11 + $0x148] sm:$0xff] %v472_v41  ;;  %v476_v43 = vld [vmem:[%s9563_s10 + $0x258] sm:$0xff]  ;;  %v478_v44 = vld [vmem:[%s9563_s10 + $0x260] sm:$0xff] }
  0x2b   : > { %475 = vst [vmem:[%s9568_s11 + $0x150] sm:$0xff] %v474_v42  ;;  %477 = vst [vmem:[%s9568_s11 + $0x158] sm:$0xff] %v476_v43  ;;  %v480_v45 = vld [vmem:[%s9563_s10 + $0x268] sm:$0xff]  ;;  %v482_v46 = vld [vmem:[%s9563_s10 + $0x270] sm:$0xff] }
  0x2c   : > { %479 = vst [vmem:[%s9568_s11 + $0x160] sm:$0xff] %v478_v44  ;;  %v484_v47 = vld [vmem:[%s9563_s10 + $0x278] sm:$0xff]  ;;  %481 = vst [vmem:[%s9568_s11 + $0x168] sm:$0xff] %v480_v45  ;;  %v486_v48 = vld [vmem:[%s9563_s10 + $0x280] sm:$0xff] }
  0x2d   : > { %483 = vst [vmem:[%s9568_s11 + $0x170] sm:$0xff] %v482_v46  ;;  %485 = vst [vmem:[%s9568_s11 + $0x178] sm:$0xff] %v484_v47  ;;  %v488_v49 = vld [vmem:[%s9563_s10 + $0x288] sm:$0xff]  ;;  %v490_v50 = vld [vmem:[%s9563_s10 + $0x290] sm:$0xff] }
  0x2e   : > { %487 = vst [vmem:[%s9568_s11 + $0x180] sm:$0xff] %v486_v48  ;;  %489 = vst [vmem:[%s9568_s11 + $0x188] sm:$0xff] %v488_v49  ;;  %v492_v51 = vld [vmem:[%s9563_s10 + $0x298] sm:$0xff]  ;;  %v494_v52 = vld [vmem:[%s9563_s10 + $0x2a0] sm:$0xff] }
  0x2f   : > { %491 = vst [vmem:[%s9568_s11 + $0x190] sm:$0xff] %v490_v50  ;;  %v496_v53 = vld [vmem:[%s9563_s10 + $0x2a8] sm:$0xff]  ;;  %493 = vst [vmem:[%s9568_s11 + $0x198] sm:$0xff] %v492_v51  ;;  %v498_v54 = vld [vmem:[%s9563_s10 + $0x2b0] sm:$0xff] }
  0x30   : > { %495 = vst [vmem:[%s9568_s11 + $0x1a0] sm:$0xff] %v494_v52  ;;  %497 = vst [vmem:[%s9568_s11 + $0x1a8] sm:$0xff] %v496_v53  ;;  %v500_v55 = vld [vmem:[%s9563_s10 + $0x2b8] sm:$0xff]  ;;  %v502_v56 = vld [vmem:[%s9563_s10 + $0x2c0] sm:$0xff] }
  0x31   : > { %499 = vst [vmem:[%s9568_s11 + $0x1b0] sm:$0xff] %v498_v54  ;;  %501 = vst [vmem:[%s9568_s11 + $0x1b8] sm:$0xff] %v500_v55  ;;  %v504_v57 = vld [vmem:[%s9563_s10 + $0x2c8] sm:$0xff]  ;;  %v506_v58 = vld [vmem:[%s9563_s10 + $0x2d0] sm:$0xff] }
  0x32   : > { %503 = vst [vmem:[%s9568_s11 + $0x1c0] sm:$0xff] %v502_v56  ;;  %v508_v59 = vld [vmem:[%s9563_s10 + $0x2d8] sm:$0xff]  ;;  %505 = vst [vmem:[%s9568_s11 + $0x1c8] sm:$0xff] %v504_v57  ;;  %v510_v60 = vld [vmem:[%s9563_s10 + $0x2e0] sm:$0xff] }
  0x33   : > { %507 = vst [vmem:[%s9568_s11 + $0x1d0] sm:$0xff] %v506_v58  ;;  %509 = vst [vmem:[%s9568_s11 + $0x1d8] sm:$0xff] %v508_v59  ;;  %v512_v61 = vld [vmem:[%s9563_s10 + $0x2e8] sm:$0xff]  ;;  %v514_v62 = vld [vmem:[%s9563_s10 + $0x2f0] sm:$0xff] }
  0x34   : > { %511 = vst [vmem:[%s9568_s11 + $0x1e0] sm:$0xff] %v510_v60  ;;  %513 = vst [vmem:[%s9568_s11 + $0x1e8] sm:$0xff] %v512_v61  ;;  %v516_v63 = vld [vmem:[%s9563_s10 + $0x2f8] sm:$0xff] }
  0x35   : > { %515 = vst [vmem:[%s9568_s11 + $0x1f0] sm:$0xff] %v514_v62  ;;  %517 = vst [vmem:[%s9568_s11 + $0x1f8] sm:$0xff] %v516_v63 }
  0x36 PF: > { %523 = sbr.rel (!%p9541_p3) target bundleno = 90 (0x5a), region = 70  ;;  %s525_s12 = sand.u32 (%p9541_p3), 1, %s9464_s19  }
  0x37   : > { %s7863_s13 = sshll.u32 (%p9541_p3), %s9472_s21, 8  ;;  %s7364_s14 = sshll.u32 (%p9541_p3), %s525_s12, 9 }
  0x38   : > { %s9702_s17 = scalar_lea.vmem (%p9541_p3), %s11911_s1, %s7863_s13  ;;  %s9707_s24 = scalar_lea.vmem (%p9541_p3), [#allocation4], %s7364_s14 }
  0x39   : > { %v685_v0 = vld [vmem:[%s9702_s17] sm:$0xff] (%p9541_p3)  ;;  %v687_v1 = vld [vmem:[%s9702_s17 + $0x8] sm:$0xff] (%p9541_p3)  ;;  %v689_v2 = vld [vmem:[%s9702_s17 + $0x10] sm:$0xff] (%p9541_p3) }
  0x3a   : > { %686 = vst [vmem:[%s9707_s24] sm:$0xff] (%p9541_p3), %v685_v0  ;;  %688 = vst [vmem:[%s9707_s24 + $0x8] sm:$0xff] (%p9541_p3), %v687_v1  ;;  %v691_v3 = vld [vmem:[%s9702_s17 + $0x18] sm:$0xff] (%p9541_p3)  ;;  %v693_v4 = vld [vmem:[%s9702_s17 + $0x20] sm:$0xff] (%p9541_p3) }
  0x3b   : > { %690 = vst [vmem:[%s9707_s24 + $0x10] sm:$0xff] (%p9541_p3), %v689_v2  ;;  %v695_v5 = vld [vmem:[%s9702_s17 + $0x28] sm:$0xff] (%p9541_p3)  ;;  %692 = vst [vmem:[%s9707_s24 + $0x18] sm:$0xff] (%p9541_p3), %v691_v3  ;;  %v697_v6 = vld [vmem:[%s9702_s17 + $0x30] sm:$0xff] (%p9541_p3) }
  0x3c   : > { %694 = vst [vmem:[%s9707_s24 + $0x20] sm:$0xff] (%p9541_p3), %v693_v4  ;;  %696 = vst [vmem:[%s9707_s24 + $0x28] sm:$0xff] (%p9541_p3), %v695_v5  ;;  %v699_v7 = vld [vmem:[%s9702_s17 + $0x38] sm:$0xff] (%p9541_p3)  ;;  %v701_v8 = vld [vmem:[%s9702_s17 + $0x40] sm:$0xff] (%p9541_p3) }
  0x3d   : > { %698 = vst [vmem:[%s9707_s24 + $0x30] sm:$0xff] %v697_v6  ;;  %700 = vst [vmem:[%s9707_s24 + $0x38] sm:$0xff] %v699_v7  ;;  %v703_v9 = vld [vmem:[%s9702_s17 + $0x48] sm:$0xff]  ;;  %v705_v10 = vld [vmem:[%s9702_s17 + $0x50] sm:$0xff] }
  0x3e   : > { %702 = vst [vmem:[%s9707_s24 + $0x40] sm:$0xff] %v701_v8  ;;  %v707_v11 = vld [vmem:[%s9702_s17 + $0x58] sm:$0xff]  ;;  %704 = vst [vmem:[%s9707_s24 + $0x48] sm:$0xff] %v703_v9  ;;  %v709_v12 = vld [vmem:[%s9702_s17 + $0x60] sm:$0xff] }
  0x3f   : > { %706 = vst [vmem:[%s9707_s24 + $0x50] sm:$0xff] %v705_v10  ;;  %708 = vst [vmem:[%s9707_s24 + $0x58] sm:$0xff] %v707_v11  ;;  %v711_v13 = vld [vmem:[%s9702_s17 + $0x68] sm:$0xff]  ;;  %v713_v14 = vld [vmem:[%s9702_s17 + $0x70] sm:$0xff] }
  0x40   : > { %710 = vst [vmem:[%s9707_s24 + $0x60] sm:$0xff] %v709_v12  ;;  %712 = vst [vmem:[%s9707_s24 + $0x68] sm:$0xff] %v711_v13  ;;  %v715_v15 = vld [vmem:[%s9702_s17 + $0x78] sm:$0xff]  ;;  %v717_v16 = vld [vmem:[%s9702_s17 + $0x80] sm:$0xff] }
  0x41   : > { %714 = vst [vmem:[%s9707_s24 + $0x70] sm:$0xff] %v713_v14  ;;  %v719_v17 = vld [vmem:[%s9702_s17 + $0x88] sm:$0xff]  ;;  %716 = vst [vmem:[%s9707_s24 + $0x78] sm:$0xff] %v715_v15  ;;  %v721_v18 = vld [vmem:[%s9702_s17 + $0x90] sm:$0xff] }
  0x42   : > { %718 = vst [vmem:[%s9707_s24 + $0x80] sm:$0xff] %v717_v16  ;;  %720 = vst [vmem:[%s9707_s24 + $0x88] sm:$0xff] %v719_v17  ;;  %v723_v19 = vld [vmem:[%s9702_s17 + $0x98] sm:$0xff]  ;;  %v725_v20 = vld [vmem:[%s9702_s17 + $0xa0] sm:$0xff] }
  0x43   : > { %722 = vst [vmem:[%s9707_s24 + $0x90] sm:$0xff] %v721_v18  ;;  %724 = vst [vmem:[%s9707_s24 + $0x98] sm:$0xff] %v723_v19  ;;  %v727_v21 = vld [vmem:[%s9702_s17 + $0xa8] sm:$0xff]  ;;  %v729_v22 = vld [vmem:[%s9702_s17 + $0xb0] sm:$0xff] }
  0x44   : > { %726 = vst [vmem:[%s9707_s24 + $0xa0] sm:$0xff] %v725_v20  ;;  %v731_v23 = vld [vmem:[%s9702_s17 + $0xb8] sm:$0xff]  ;;  %728 = vst [vmem:[%s9707_s24 + $0xa8] sm:$0xff] %v727_v21  ;;  %v733_v24 = vld [vmem:[%s9702_s17 + $0xc0] sm:$0xff] }
  0x45   : > { %730 = vst [vmem:[%s9707_s24 + $0xb0] sm:$0xff] %v729_v22  ;;  %732 = vst [vmem:[%s9707_s24 + $0xb8] sm:$0xff] %v731_v23  ;;  %v735_v25 = vld [vmem:[%s9702_s17 + $0xc8] sm:$0xff]  ;;  %v737_v26 = vld [vmem:[%s9702_s17 + $0xd0] sm:$0xff] }
  0x46   : > { %734 = vst [vmem:[%s9707_s24 + $0xc0] sm:$0xff] %v733_v24  ;;  %736 = vst [vmem:[%s9707_s24 + $0xc8] sm:$0xff] %v735_v25  ;;  %v739_v27 = vld [vmem:[%s9702_s17 + $0xd8] sm:$0xff]  ;;  %v741_v28 = vld [vmem:[%s9702_s17 + $0xe0] sm:$0xff] }
  0x47   : > { %738 = vst [vmem:[%s9707_s24 + $0xd0] sm:$0xff] %v737_v26  ;;  %v743_v29 = vld [vmem:[%s9702_s17 + $0xe8] sm:$0xff]  ;;  %740 = vst [vmem:[%s9707_s24 + $0xd8] sm:$0xff] %v739_v27  ;;  %v745_v30 = vld [vmem:[%s9702_s17 + $0xf0] sm:$0xff] }
  0x48   : > { %742 = vst [vmem:[%s9707_s24 + $0xe0] sm:$0xff] %v741_v28  ;;  %744 = vst [vmem:[%s9707_s24 + $0xe8] sm:$0xff] %v743_v29  ;;  %v747_v31 = vld [vmem:[%s9702_s17 + $0xf8] sm:$0xff]  ;;  %v749_v32 = vld [vmem:[%s9702_s17 + $0x200] sm:$0xff] }
  0x49   : > { %746 = vst [vmem:[%s9707_s24 + $0xf0] sm:$0xff] %v745_v30  ;;  %748 = vst [vmem:[%s9707_s24 + $0xf8] sm:$0xff] %v747_v31  ;;  %v751_v33 = vld [vmem:[%s9702_s17 + $0x208] sm:$0xff]  ;;  %v753_v34 = vld [vmem:[%s9702_s17 + $0x210] sm:$0xff] }
  0x4a   : > { %750 = vst [vmem:[%s9707_s24 + $0x100] sm:$0xff] %v749_v32  ;;  %v755_v35 = vld [vmem:[%s9702_s17 + $0x218] sm:$0xff]  ;;  %752 = vst [vmem:[%s9707_s24 + $0x108] sm:$0xff] %v751_v33  ;;  %v757_v36 = vld [vmem:[%s9702_s17 + $0x220] sm:$0xff] }
  0x4b   : > { %754 = vst [vmem:[%s9707_s24 + $0x110] sm:$0xff] %v753_v34  ;;  %756 = vst [vmem:[%s9707_s24 + $0x118] sm:$0xff] %v755_v35  ;;  %v759_v37 = vld [vmem:[%s9702_s17 + $0x228] sm:$0xff]  ;;  %v761_v38 = vld [vmem:[%s9702_s17 + $0x230] sm:$0xff] }
  0x4c   : > { %758 = vst [vmem:[%s9707_s24 + $0x120] sm:$0xff] %v757_v36  ;;  %760 = vst [vmem:[%s9707_s24 + $0x128] sm:$0xff] %v759_v37  ;;  %v763_v39 = vld [vmem:[%s9702_s17 + $0x238] sm:$0xff]  ;;  %v765_v40 = vld [vmem:[%s9702_s17 + $0x240] sm:$0xff] }
  0x4d   : > { %762 = vst [vmem:[%s9707_s24 + $0x130] sm:$0xff] %v761_v38  ;;  %v767_v41 = vld [vmem:[%s9702_s17 + $0x248] sm:$0xff]  ;;  %764 = vst [vmem:[%s9707_s24 + $0x138] sm:$0xff] %v763_v39  ;;  %v769_v42 = vld [vmem:[%s9702_s17 + $0x250] sm:$0xff] }
  0x4e   : > { %766 = vst [vmem:[%s9707_s24 + $0x140] sm:$0xff] %v765_v40  ;;  %768 = vst [vmem:[%s9707_s24 + $0x148] sm:$0xff] %v767_v41  ;;  %v771_v43 = vld [vmem:[%s9702_s17 + $0x258] sm:$0xff]  ;;  %v773_v44 = vld [vmem:[%s9702_s17 + $0x260] sm:$0xff] }
  0x4f   : > { %770 = vst [vmem:[%s9707_s24 + $0x150] sm:$0xff] %v769_v42  ;;  %772 = vst [vmem:[%s9707_s24 + $0x158] sm:$0xff] %v771_v43  ;;  %v775_v45 = vld [vmem:[%s9702_s17 + $0x268] sm:$0xff]  ;;  %v777_v46 = vld [vmem:[%s9702_s17 + $0x270] sm:$0xff] }
  0x50   : > { %774 = vst [vmem:[%s9707_s24 + $0x160] sm:$0xff] %v773_v44  ;;  %v779_v47 = vld [vmem:[%s9702_s17 + $0x278] sm:$0xff]  ;;  %776 = vst [vmem:[%s9707_s24 + $0x168] sm:$0xff] %v775_v45  ;;  %v781_v48 = vld [vmem:[%s9702_s17 + $0x280] sm:$0xff] }
  0x51   : > { %778 = vst [vmem:[%s9707_s24 + $0x170] sm:$0xff] %v777_v46  ;;  %780 = vst [vmem:[%s9707_s24 + $0x178] sm:$0xff] %v779_v47  ;;  %v783_v49 = vld [vmem:[%s9702_s17 + $0x288] sm:$0xff]  ;;  %v785_v50 = vld [vmem:[%s9702_s17 + $0x290] sm:$0xff] }
  0x52   : > { %782 = vst [vmem:[%s9707_s24 + $0x180] sm:$0xff] %v781_v48  ;;  %784 = vst [vmem:[%s9707_s24 + $0x188] sm:$0xff] %v783_v49  ;;  %v787_v51 = vld [vmem:[%s9702_s17 + $0x298] sm:$0xff]  ;;  %v789_v52 = vld [vmem:[%s9702_s17 + $0x2a0] sm:$0xff] }
  0x53   : > { %786 = vst [vmem:[%s9707_s24 + $0x190] sm:$0xff] %v785_v50  ;;  %v791_v53 = vld [vmem:[%s9702_s17 + $0x2a8] sm:$0xff]  ;;  %788 = vst [vmem:[%s9707_s24 + $0x198] sm:$0xff] %v787_v51  ;;  %v793_v54 = vld [vmem:[%s9702_s17 + $0x2b0] sm:$0xff] }
  0x54   : > { %790 = vst [vmem:[%s9707_s24 + $0x1a0] sm:$0xff] %v789_v52  ;;  %792 = vst [vmem:[%s9707_s24 + $0x1a8] sm:$0xff] %v791_v53  ;;  %v795_v55 = vld [vmem:[%s9702_s17 + $0x2b8] sm:$0xff]  ;;  %v797_v56 = vld [vmem:[%s9702_s17 + $0x2c0] sm:$0xff] }
  0x55   : > { %794 = vst [vmem:[%s9707_s24 + $0x1b0] sm:$0xff] %v793_v54  ;;  %796 = vst [vmem:[%s9707_s24 + $0x1b8] sm:$0xff] %v795_v55  ;;  %v799_v57 = vld [vmem:[%s9702_s17 + $0x2c8] sm:$0xff]  ;;  %v801_v58 = vld [vmem:[%s9702_s17 + $0x2d0] sm:$0xff] }
  0x56   : > { %798 = vst [vmem:[%s9707_s24 + $0x1c0] sm:$0xff] %v797_v56  ;;  %v803_v59 = vld [vmem:[%s9702_s17 + $0x2d8] sm:$0xff]  ;;  %800 = vst [vmem:[%s9707_s24 + $0x1c8] sm:$0xff] %v799_v57  ;;  %v805_v60 = vld [vmem:[%s9702_s17 + $0x2e0] sm:$0xff] }
  0x57   : > { %802 = vst [vmem:[%s9707_s24 + $0x1d0] sm:$0xff] %v801_v58  ;;  %804 = vst [vmem:[%s9707_s24 + $0x1d8] sm:$0xff] %v803_v59  ;;  %v807_v61 = vld [vmem:[%s9702_s17 + $0x2e8] sm:$0xff]  ;;  %v809_v62 = vld [vmem:[%s9702_s17 + $0x2f0] sm:$0xff] }
  0x58   : > { %806 = vst [vmem:[%s9707_s24 + $0x1e0] sm:$0xff] %v805_v60  ;;  %808 = vst [vmem:[%s9707_s24 + $0x1e8] sm:$0xff] %v807_v61  ;;  %v811_v63 = vld [vmem:[%s9702_s17 + $0x2f8] sm:$0xff] }
  0x59   : > { %810 = vst [vmem:[%s9707_s24 + $0x1f0] sm:$0xff] %v809_v62  ;;  %812 = vst [vmem:[%s9707_s24 + $0x1f8] sm:$0xff] %v811_v63 }
  0x5a PF: > { %p7367_p8 = scmp.ge.s32.totalorder %s9476_s22, 1  ;;  %p817_p9 = scmp.lt.s32.totalorder %s9476_s22, 3 }
  0x5c   : > { %p818_p10 = pnand %p7367_p8, %p817_p9 }
  0x5d   : > { %v9398_v0 = vld [vmem:[%s11912_s2 + $0x20] sm:$0xff] (!%p818_p10)   ;;  %vm887_vm0 = vcmask (!%p818_p10), 523264   ;;  %v9845_v2 = vld [vmem:[%s11912_s2 + $0x28] sm:$0xff] (!%p818_p10)   ;;  %v9478_v3 = vmov (!%p818_p10), 0.0   ;;  %vm890_vm1 = vcmask (!%p818_p10), 517120   ;;  %vm902_vm2 = vcmask (!%p818_p10), 516096  }
  0x5e   : > { %821 = sbr.rel (%p818_p10) target bundleno = 959 (0x3bf), region = 108  ;;  %v9399_v1 = vld [vmem:[%s11912_s2 + $0x80] sm:$0xff] (!%p818_p10)   ;;  %8189 = vmatprep.subr.bf16.mxu1 (!%p818_p10), %v9398_v0  ;;  %888 = vst.msk [vmem:[#allocation2] sm:$0xff] (!%p818_p10), %vm887_vm0, %v9478_v3  ;;  %889 = vst.msk [vmem:[#allocation2 + $0x8] sm:$0xff] (!%p818_p10), %vm887_vm0, %v9478_v3  ;;  %v9866_v4 = vld [vmem:[%s11912_s2 + $0x88] sm:$0xff] (!%p818_p10)   ;;  %s824_s12 = sand.u32 (!%p818_p10), 1, %s9460_s18  }
  0x5f   : > { %892 = vst.msk [vmem:[#allocation2 + $0x1b0] sm:$0xff] (!%p818_p10), %vm887_vm0, %v9478_v3  ;;  %893 = vst.msk [vmem:[#allocation2 + $0x1b8] sm:$0xff] (!%p818_p10), %vm887_vm0, %v9478_v3  ;;  %8477 = vmatprep.subr.bf16.mxu0 (!%p818_p10), %v9399_v1  ;;  %8190 = vmatpush3.bf16.msra.mxu1 (!%p818_p10), %v9398_v0  ;;  %v9876_v5 = vld [vmem:[%s11912_s2 + $0x30] sm:$0xff] (!%p818_p10)   ;;  %s10027_s14 = sshll.u32 (!%p818_p10), %s824_s12, 9  ;;  %v9404_v7 = vld [vmem:[%s11912_s2 + $0x38] sm:$0xff] (!%p818_p10)  }
  0x60   : > { %896 = vst.msk [vmem:[#allocation2 + $0x198] sm:$0xff] (!%p818_p10), %vm887_vm0, %v9478_v3  ;;  %897 = vst.msk [vmem:[#allocation2 + $0x1a0] sm:$0xff] (!%p818_p10), %vm887_vm0, %v9478_v3  ;;  %8478 = vmatpush3.bf16.msra.mxu0 (!%p818_p10), %v9399_v1  ;;  %8191 = vmatprep.subr.bf16.mxu1 (!%p818_p10), %v9845_v2  ;;  %v9403_v6 = vld [vmem:[%s11912_s2 + $0x90] sm:$0xff] (!%p818_p10)   ;;  %s10036_s17 = scalar_lea.vmem (!%p818_p10), [#allocation3], %s10027_s14  ;;  %v9405_v10 = vld [vmem:[%s11912_s2 + $0x98] sm:$0xff] (!%p818_p10)   ;;  %s11409_s27 = scalar_lea.vmem (!%p818_p10), [#allocation4], %s10027_s14 }
  0x61   : > { %899 = vst.msk [vmem:[#allocation2 + $0x348] sm:$0xff] (!%p818_p10), %vm887_vm0, %v9478_v3  ;;  %900 = vst.msk [vmem:[#allocation2 + $0x350] sm:$0xff] (!%p818_p10), %vm887_vm0, %v9478_v3  ;;  %8479 = vmatprep.subr.bf16.mxu0 (!%p818_p10), %v9866_v4  ;;  %v975_v8 = vld [vmem:[%s10036_s17] sm:$0xff] (!%p818_p10)  ;;  %v976_v9 = vld [vmem:[%s10036_s17 + $0x8] sm:$0xff] (!%p818_p10)  ;;  %s11423_s30 = scalar_lea.vmem (!%p818_p10), [#allocation5], %s10027_s14 }
  0x62   : > { %891 = vst.msk [vmem:[#allocation2 + $0x10] sm:$0x3] (!%p818_p10), %vm890_vm1, %v9478_v3  ;;  %894 = vst.msk [vmem:[#allocation2 + $0x1c0] sm:$0x3] (!%p818_p10), %vm890_vm1, %v9478_v3  ;;  %v1008_v12 = vmul.f32 (!%p818_p10), 0.5, %v975_v8  ;;  %v10043_v13 = vmul.f32 (!%p818_p10), 0.5, %v976_v9 }
  0x63   : > { %898 = vst.msk [vmem:[#allocation2 + $0x1a8] sm:$0x3] (!%p818_p10), %vm890_vm1, %v9478_v3  ;;  %901 = vst.msk [vmem:[#allocation2 + $0x358] sm:$0x3] (!%p818_p10), %vm890_vm1, %v9478_v3  ;;  %8192 = vmatpush3.bf16.msra.mxu1 (!%p818_p10), %v9845_v2  ;;  %v10048_v15 = vld [vmem:[%s11912_s2] sm:$0xff] (!%p818_p10)   ;;  %v977_v17 = vld [vmem:[%s10036_s17 + $0x10] sm:$0xff] (!%p818_p10) }
  0x64   : > { %903 = vst.msk [vmem:[#allocation2] sm:$0x1] (!%p818_p10), %vm902_vm2, %v9478_v3  ;;  %939 = vst.msk [vmem:[#allocation2 + $0x11] sm:$0x1] (!%p818_p10), %vm902_vm2, %v9478_v3  ;;  %8480 = vmatpush3.bf16.msra.mxu0 (!%p818_p10), %v9866_v4  ;;  %8193 = vmatprep.subr.bf16.mxu1 (!%p818_p10), %v9876_v5  ;;  %vm1072_vm3 = vcmp.ge.f32.partialorder (!%p818_p10), %v1008_v12, 1.0  ;;  %vm1073_vm4 = vcmp.ge.f32.partialorder (!%p818_p10), %v10043_v13, 1.0 }
  0x65   : > { %904 = vst.msk [vmem:[#allocation2 + $0x18] sm:$0x1] %vm902_vm2, %v9478_v3  ;;  %905 = vst.msk [vmem:[#allocation2 + $0x30] sm:$0x1] %vm902_vm2, %v9478_v3  ;;  %8481 = vmatprep.subr.bf16.mxu0 %v9403_v6  ;;  %v1629_v11 = vld [vmem:[#allocation2 + $0x1] sm:$0xff]  ;;  %v978_v18 = vld [vmem:[%s10036_s17 + $0x18] sm:$0xff] }
  0x66   : > { %906 = vst.msk [vmem:[#allocation2 + $0x48] sm:$0x1] %vm902_vm2, %v9478_v3  ;;  %907 = vst.msk [vmem:[#allocation2 + $0x60] sm:$0x1] %vm902_vm2, %v9478_v3  ;;  %v7371_v19 = vsel %vm1072_vm3, 1.0, %v9478_v3  ;;  %v7372_v20 = vsel %vm1073_vm4, 1.0, %v9478_v3 }
  0x67   : > { %908 = vst.msk [vmem:[#allocation2 + $0x78] sm:$0x1] %vm902_vm2, %v9478_v3  ;;  %909 = vst.msk [vmem:[#allocation2 + $0x90] sm:$0x1] %vm902_vm2, %v9478_v3  ;;  %8194 = vmatpush3.bf16.msra.mxu1 %v9876_v5  ;;  %v10056_v21 = vmul.f32 0.5, %v977_v17  ;;  %v10058_v22 = vmul.f32 0.5, %v978_v18 }
  0x68   : > { %910 = vst.msk [vmem:[#allocation2 + $0xa8] sm:$0x1] %vm902_vm2, %v9478_v3  ;;  %911 = vst.msk [vmem:[#allocation2 + $0xc0] sm:$0x1] %vm902_vm2, %v9478_v3  ;;  %8482 = vmatpush3.bf16.msra.mxu0 %v9403_v6  ;;  %8195 = vmatprep.subr.bf16.mxu1 %v9404_v7  ;;  %v10066_v23 = vld [vmem:[%s11912_s2 + $0xa0] sm:$0xff]   ;;  %v980_v25 = vld [vmem:[%s10036_s17 + $0x28] sm:$0xff] }
  0x69   : > { %912 = vst.msk [vmem:[#allocation2 + $0xd8] sm:$0x1] %vm902_vm2, %v9478_v3  ;;  %913 = vst.msk [vmem:[#allocation2 + $0xf0] sm:$0x1] %vm902_vm2, %v9478_v3  ;;  %v1630_v14 = vld [vmem:[#allocation2 + $0x9] sm:$0xff]  ;;  %8483 = vmatprep.subr.bf16.mxu0 %v9405_v10  ;;  %v979_v24 = vld [vmem:[%s10036_s17 + $0x20] sm:$0xff] }
  0x6a   : > { %914 = vst.msk [vmem:[#allocation2 + $0x108] sm:$0x1] %vm902_vm2, %v9478_v3  ;;  %915 = vst.msk [vmem:[#allocation2 + $0x120] sm:$0x1] %vm902_vm2, %v9478_v3  ;;  %v1693_v16 = vpack.c.bf16 %v1630_v14, %v1629_v11  ;;  %vm1074_vm5 = vcmp.ge.f32.partialorder %v10056_v21, 1.0  ;;  %vm1075_vm6 = vcmp.ge.f32.partialorder %v10058_v22, 1.0 }
  0x6b   : > { %916 = vst.msk [vmem:[#allocation2 + $0x138] sm:$0x1] %vm902_vm2, %v9478_v3  ;;  %917 = vst.msk [vmem:[#allocation2 + $0x150] sm:$0x1] %vm902_vm2, %v9478_v3  ;;  %v10072_v26 = vmul.f32 0.5, %v979_v24  ;;  %v10074_v27 = vmul.f32 0.5, %v980_v25  ;;  %8196 = vmatpush3.bf16.msra.mxu1 %v9404_v7 }
  0x6c   : > { %918 = vst.msk [vmem:[#allocation2 + $0x168] sm:$0x1] %vm902_vm2, %v9478_v3  ;;  %919 = vst.msk [vmem:[#allocation2 + $0x180] sm:$0x1] %vm902_vm2, %v9478_v3  ;;  %8197 = vmatprep.mubr.msk.bf16.mxu1 %vm887_vm0, %v1693_v16  ;;  %v10077_v28 = vsel %vm1074_vm5, 1.0, %v9478_v3  ;;  %v10080_v29 = vsel %vm1075_vm6, 1.0, %v9478_v3  ;;  %8484 = vmatpush3.bf16.msra.mxu0 %v9405_v10 }
  0x6d   : > { %922 = vst.msk [vmem:[#allocation2 + $0x1c8] sm:$0x1] %vm902_vm2, %v9478_v3  ;;  %923 = vst.msk [vmem:[#allocation2 + $0x1e0] sm:$0x1] %vm902_vm2, %v9478_v3  ;;  %v981_v30 = vld [vmem:[%s10036_s17 + $0x30] sm:$0xff]  ;;  %v1168_v31 = vsub.f32 1.0, %v7371_v19  ;;  %8261 = vmatprep.subr.bf16.mxu1 %v10048_v15  ;;  %8549 = vmatprep.subr.bf16.mxu0 %v10066_v23 }
  0x6e   : > { %924 = vst.msk [vmem:[#allocation2 + $0x1f8] sm:$0x1] %vm902_vm2, %v9478_v3  ;;  %925 = vst.msk [vmem:[#allocation2 + $0x210] sm:$0x1] %vm902_vm2, %v9478_v3  ;;  %vm1076_vm7 = vcmp.ge.f32.partialorder %v10072_v26, 1.0  ;;  %vm1077_vm8 = vcmp.ge.f32.partialorder %v10074_v27, 1.0 }
  0x6f   : > { %926 = vst.msk [vmem:[#allocation2 + $0x228] sm:$0x1] %vm902_vm2, %v9478_v3  ;;  %927 = vst.msk [vmem:[#allocation2 + $0x240] sm:$0x1] %vm902_vm2, %v9478_v3  ;;  %v982_v32 = vld [vmem:[%s10036_s17 + $0x38] sm:$0xff]  ;;  %v983_v33 = vld [vmem:[%s10036_s17 + $0x40] sm:$0xff]  ;;  %v10112_v44 = vmul.f32 %v1168_v31, %v1008_v12 }
  0x70   : > { %928 = vst.msk [vmem:[#allocation2 + $0x258] sm:$0x1] %vm902_vm2, %v9478_v3  ;;  %929 = vst.msk [vmem:[#allocation2 + $0x270] sm:$0x1] %vm902_vm2, %v9478_v3  ;;  %v984_v34 = vld [vmem:[%s10036_s17 + $0x48] sm:$0xff]  ;;  %v10095_v35 = vsel %vm1076_vm7, 1.0, %v9478_v3 }
  0x71   : > { %930 = vst.msk [vmem:[#allocation2 + $0x288] sm:$0x1] %vm902_vm2, %v9478_v3  ;;  %931 = vst.msk [vmem:[#allocation2 + $0x2a0] sm:$0x1] %vm902_vm2, %v9478_v3  ;;  %v10098_v36 = vsel %vm1077_vm8, 1.0, %v9478_v3  ;;  %v1169_v37 = vsub.f32 1.0, %v7372_v20 }
  0x72   : > { %932 = vst.msk [vmem:[#allocation2 + $0x2b8] sm:$0x1] %vm902_vm2, %v9478_v3  ;;  %933 = vst.msk [vmem:[#allocation2 + $0x2d0] sm:$0x1] %vm902_vm2, %v9478_v3  ;;  %v10104_v38 = vmul.f32 0.5, %v981_v30  ;;  %v10106_v39 = vmul.f32 0.5, %v982_v32 }
  0x73   : > { %934 = vst.msk [vmem:[#allocation2 + $0x2e8] sm:$0x1] %vm902_vm2, %v9478_v3  ;;  %935 = vst.msk [vmem:[#allocation2 + $0x300] sm:$0x1] %vm902_vm2, %v9478_v3  ;;  %v10108_v42 = vmul.f32 0.5, %v983_v33  ;;  %v10110_v43 = vmul.f32 0.5, %v984_v34  ;;  %v10133_v52 = vmul.f32 %v1169_v37, %v10043_v13 }
  0x74   : > { %936 = vst.msk [vmem:[#allocation2 + $0x318] sm:$0x1] %vm902_vm2, %v9478_v3  ;;  %937 = vst.msk [vmem:[#allocation2 + $0x330] sm:$0x1] %vm902_vm2, %v9478_v3  ;;  %v10115_v45 = vld [vmem:[%s10036_s17 + $0x100] sm:$0xff]  ;;  %vm1078_vm9 = vcmp.ge.f32.partialorder %v10104_v38, 1.0 }
  0x75   : > { %940 = vst.msk [vmem:[#allocation2 + $0x29] sm:$0x1] %vm902_vm2, %v9478_v3  ;;  %941 = vst.msk [vmem:[#allocation2 + $0x41] sm:$0x1] %vm902_vm2, %v9478_v3  ;;  %v9409_v47 = vld [vmem:[%s11912_s2 + $0x8] sm:$0xff]   ;;  %vm1079_vm10 = vcmp.ge.f32.partialorder %v10106_v39, 1.0  ;;  %v1298_v5 = vsub.f32 %v10115_v45, %v10112_v44 }
  0x76   : > { %942 = vst.msk [vmem:[#allocation2 + $0x59] sm:$0x1] %vm902_vm2, %v9478_v3  ;;  %943 = vst.msk [vmem:[#allocation2 + $0x71] sm:$0x1] %vm902_vm2, %v9478_v3  ;;  %v10122_v48 = vld [vmem:[%s10036_s17 + $0x108] sm:$0xff]  ;;  %v10126_v49 = vsel %vm1078_vm9, 1.0, %v9478_v3 }
  0x77   : > { %944 = vst.msk [vmem:[#allocation2 + $0x89] sm:$0x1] %vm902_vm2, %v9478_v3  ;;  %945 = vst.msk [vmem:[#allocation2 + $0xa1] sm:$0x1] %vm902_vm2, %v9478_v3  ;;  %vm1080_vm11 = vcmp.ge.f32.partialorder %v10108_v42, 1.0  ;;  %vm1081_vm12 = vcmp.ge.f32.partialorder %v10110_v43, 1.0  ;;  %v1299_v9 = vsub.f32 %v10122_v48, %v10133_v52 }
  0x78   : > { %946 = vst.msk [vmem:[#allocation2 + $0xb9] sm:$0x1] %vm902_vm2, %v9478_v3  ;;  %947 = vst.msk [vmem:[#allocation2 + $0xd1] sm:$0x1] %vm902_vm2, %v9478_v3  ;;  %v985_v50 = vld [vmem:[%s10036_s17 + $0x50] sm:$0xff]  ;;  %v986_v51 = vld [vmem:[%s10036_s17 + $0x58] sm:$0xff] }
  0x79   : > { %948 = vst.msk [vmem:[#allocation2 + $0xe9] sm:$0x1] %vm902_vm2, %v9478_v3  ;;  %949 = vst.msk [vmem:[#allocation2 + $0x101] sm:$0x1] %vm902_vm2, %v9478_v3  ;;  %v10138_v55 = vsel %vm1079_vm10, 1.0, %v9478_v3  ;;  %v987_v56 = vld [vmem:[%s10036_s17 + $0x60] sm:$0xff] }
  0x7a   : > { %950 = vst.msk [vmem:[#allocation2 + $0x119] sm:$0x1] %vm902_vm2, %v9478_v3  ;;  %951 = vst.msk [vmem:[#allocation2 + $0x131] sm:$0x1] %vm902_vm2, %v9478_v3  ;;  %v10147_v58 = vsel %vm1080_vm11, 1.0, %v9478_v3  ;;  %v10150_v59 = vsel %vm1081_vm12, 1.0, %v9478_v3 }
  0x7b   : > { %952 = vst.msk [vmem:[#allocation2 + $0x149] sm:$0x1] %vm902_vm2, %v9478_v3  ;;  %953 = vst.msk [vmem:[#allocation2 + $0x161] sm:$0x1] %vm902_vm2, %v9478_v3  ;;  %v9408_v60 = vld [vmem:[%s11912_s2 + $0xa8] sm:$0xff]   ;;  %v1170_v62 = vsub.f32 1.0, %v10077_v28 }
  0x7c   : > { %954 = vst.msk [vmem:[#allocation2 + $0x179] sm:$0x1] %vm902_vm2, %v9478_v3  ;;  %955 = vst.msk [vmem:[#allocation2 + $0x191] sm:$0x1] %vm902_vm2, %v9478_v3  ;;  %v988_v61 = vld [vmem:[%s10036_s17 + $0x68] sm:$0xff]  ;;  %v1171_v63 = vsub.f32 1.0, %v10080_v29 }
  0x7d   : > { %958 = vst.msk [vmem:[#allocation2 + $0x1d9] sm:$0x1] %vm902_vm2, %v9478_v3  ;;  %959 = vst.msk [vmem:[#allocation2 + $0x1f1] sm:$0x1] %vm902_vm2, %v9478_v3  ;;  %v10162_v2 = vmul.f32 0.5, %v985_v50  ;;  %v989_v4 = vld [vmem:[%s10036_s17 + $0x70] sm:$0xff]  ;;  %v10216_v31 = vmul.f32 %v1170_v62, %v10056_v21 }
  0x7e   : > { %960 = vst.msk [vmem:[#allocation2 + $0x209] sm:$0x1] %vm902_vm2, %v9478_v3  ;;  %961 = vst.msk [vmem:[#allocation2 + $0x221] sm:$0x1] %vm902_vm2, %v9478_v3  ;;  %v10169_v7 = vmul.f32 0.5, %v986_v51  ;;  %v10171_v8 = vmul.f32 0.5, %v987_v56 }
  0x7f   : > { %962 = vst.msk [vmem:[#allocation2 + $0x239] sm:$0x1] %vm902_vm2, %v9478_v3  ;;  %963 = vst.msk [vmem:[#allocation2 + $0x251] sm:$0x1] %vm902_vm2, %v9478_v3  ;;  %v1172_v10 = vsub.f32 1.0, %v10095_v35  ;;  %vm1082_vm13 = vcmp.ge.f32.partialorder %v10162_v2, 1.0 }
  0x80   : > { %964 = vst.msk [vmem:[#allocation2 + $0x269] sm:$0x1] %vm902_vm2, %v9478_v3  ;;  %965 = vst.msk [vmem:[#allocation2 + $0x281] sm:$0x1] %vm902_vm2, %v9478_v3  ;;  %v10178_v11 = vmul.f32 0.5, %v988_v61  ;;  %v990_v12 = vld [vmem:[%s10036_s17 + $0x78] sm:$0xff] }
  0x81   : > { %966 = vst.msk [vmem:[#allocation2 + $0x299] sm:$0x1] %vm902_vm2, %v9478_v3  ;;  %967 = vst.msk [vmem:[#allocation2 + $0x2b1] sm:$0x1] %vm902_vm2, %v9478_v3  ;;  %vm1083_vm14 = vcmp.ge.f32.partialorder %v10169_v7, 1.0  ;;  %v10184_v13 = vsel %vm1082_vm13, 1.0, %v9478_v3 }
  0x82   : > { %968 = vst.msk [vmem:[#allocation2 + $0x2c9] sm:$0x1] %vm902_vm2, %v9478_v3  ;;  %969 = vst.msk [vmem:[#allocation2 + $0x2e1] sm:$0x1] %vm902_vm2, %v9478_v3  ;;  %vm1084_vm15 = vcmp.ge.f32.partialorder %v10171_v8, 1.0  ;;  %v10187_v14 = vmul.f32 0.5, %v989_v4 }
  0x83   : > { %970 = vst.msk [vmem:[#allocation2 + $0x2f9] sm:$0x1] %vm902_vm2, %v9478_v3  ;;  %971 = vst.msk [vmem:[#allocation2 + $0x311] sm:$0x1] %vm902_vm2, %v9478_v3  ;;  %v9410_v16 = vld [vmem:[%s11912_s2 + $0xb0] sm:$0xff]   ;;  %v10194_v17 = vsel %vm1083_vm14, 1.0, %v9478_v3 }
  0x84   : > { %972 = vst.msk [vmem:[#allocation2 + $0x329] sm:$0x1] %vm902_vm2, %v9478_v3  ;;  %973 = vst.msk [vmem:[#allocation2 + $0x341] sm:$0x1] %vm902_vm2, %v9478_v3  ;;  %vm1085_vm1 = vcmp.ge.f32.partialorder %v10178_v11, 1.0  ;;  %v10200_v18 = vsel %vm1084_vm15, 1.0, %v9478_v3 }
  0x85   : > { %920 = vst.msk [vmem:[#allocation2 + $0x198] sm:$0x1] %vm902_vm2, %v9478_v3  ;;  %921 = vst.msk [vmem:[#allocation2 + $0x1b0] sm:$0x1] %vm902_vm2, %v9478_v3  ;;  %v10207_v24 = vsel %vm1085_vm1, 1.0, %v9478_v3  ;;  %v10211_v25 = vmul.f32 0.5, %v990_v12 }
  0x86   : > { %938 = vst.msk [vmem:[#allocation2 + $0x348] sm:$0x1] %vm902_vm2, %v9478_v3  ;;  %956 = vst.msk [vmem:[#allocation2 + $0x1a9] sm:$0x1] %vm902_vm2, %v9478_v3  ;;  %v994_v30 = vld [vmem:[%s10036_s17 + $0x98] sm:$0xff]  ;;  %v995_v34 = vld [vmem:[%s10036_s17 + $0xa0] sm:$0xff] }
  0x87   : > { %957 = vst.msk [vmem:[#allocation2 + $0x1c1] sm:$0x1] %vm902_vm2, %v9478_v3  ;;  %974 = vst.msk [vmem:[#allocation2 + $0x359] sm:$0x1] %vm902_vm2, %v9478_v3  ;;  %vm1086_vm2 = vcmp.ge.f32.partialorder %v10187_v14, 1.0  ;;  %vm1087_vm3 = vcmp.ge.f32.partialorder %v10211_v25, 1.0 }
  0x88   : > { %1233 = vst.msk [vmem:[#allocation2 + $0x19] sm:$0xff] %vm887_vm0, %v7371_v19  ;;  %1234 = vst.msk [vmem:[#allocation2 + $0x21] sm:$0xff] %vm887_vm0, %v7372_v20  ;;  %v992_v19 = vld [vmem:[%s10036_s17 + $0x88] sm:$0xff]  ;;  %v1173_v20 = vsub.f32 1.0, %v10098_v36  ;;  %v9411_v21 = vld [vmem:[%s11912_s2 + $0xb8] sm:$0xff]   ;;  %v1174_v45 = vsub.f32 1.0, %v10126_v49 }
  0x89   : > { %1235 = vst.msk [vmem:[#allocation2 + $0x31] sm:$0xff] %vm887_vm0, %v10077_v28  ;;  %1236 = vst.msk [vmem:[#allocation2 + $0x39] sm:$0xff] %vm887_vm0, %v10080_v29  ;;  %v993_v28 = vld [vmem:[%s10036_s17 + $0x90] sm:$0xff]  ;;  %v10234_v48 = vsel %vm1087_vm3, 1.0, %v9478_v3  ;;  %v1175_v50 = vsub.f32 1.0, %v10138_v55  ;;  %v1176_v51 = vsub.f32 1.0, %v10147_v58 }
  0x8a   : > { %1237 = vst.msk [vmem:[#allocation2 + $0x49] sm:$0xff] %vm887_vm0, %v10095_v35  ;;  %1238 = vst.msk [vmem:[#allocation2 + $0x51] sm:$0xff] %vm887_vm0, %v10098_v36  ;;  %v1330_v35 = vmul.f32 0.5, %v1298_v5  ;;  %v1331_v36 = vmul.f32 0.5, %v1299_v9  ;;  %v10254_v56 = vmul.f32 0.5, %v994_v30  ;;  %v1177_v61 = vsub.f32 1.0, %v10150_v59 }
  0x8b   : > { %1239 = vst.msk [vmem:[#allocation2 + $0x61] sm:$0xff] %vm887_vm0, %v10126_v49  ;;  %1240 = vst.msk [vmem:[#allocation2 + $0x69] sm:$0xff] %vm887_vm0, %v10138_v55  ;;  %v10244_v49 = vmul.f32 0.5, %v992_v19  ;;  %v10252_v55 = vmul.f32 0.5, %v993_v28  ;;  %v997_v9 = vld [vmem:[%s10036_s17 + $0xb0] sm:$0xff]  ;;  %v998_v12 = vld [vmem:[%s10036_s17 + $0xb8] sm:$0xff] }
  0x8c   : > { %1241 = vst.msk [vmem:[#allocation2 + $0x79] sm:$0xff] %vm887_vm0, %v10147_v58  ;;  %1242 = vst.msk [vmem:[#allocation2 + $0x81] sm:$0xff] %vm887_vm0, %v10150_v59  ;;  %v10261_v58 = vmul.f32 %v1171_v63, %v10058_v22  ;;  %vm1091_vm7 = vcmp.ge.f32.partialorder %v10254_v56, 1.0  ;;  %v10281_v59 = vadd.f32 %v1330_v35, %v10112_v44  ;;  %v10334_v30 = vmul.f32 0.5, %v997_v9  ;;  %v1005_v9 = vld [vmem:[%s10036_s17 + $0xf0] sm:$0xff]  ;;  %s7864_s14 = sshll.u32 (%p9548_p6), %s9468_s20, 8 }
  0x8d   : > { %1243 = vst.msk [vmem:[#allocation2 + $0x91] sm:$0xff] %vm887_vm0, %v10184_v13  ;;  %1244 = vst.msk [vmem:[#allocation2 + $0x99] sm:$0xff] %vm887_vm0, %v10194_v17  ;;  %vm1089_vm5 = vcmp.ge.f32.partialorder %v10244_v49, 1.0  ;;  %vm1090_vm6 = vcmp.ge.f32.partialorder %v10252_v55, 1.0  ;;  %v1179_v35 = vsub.f32 1.0, %v10194_v17  ;;  %s11768_s8 = scalar_lea.vmem (%p9548_p6), %s11915_s5, %s7864_s14 }
  0x8e   : > { %1245 = vst.msk [vmem:[#allocation2 + $0xa9] sm:$0xff] %vm887_vm0, %v10200_v18  ;;  %1246 = vst.msk [vmem:[#allocation2 + $0xb1] sm:$0xff] %vm887_vm0, %v10207_v24  ;;  %v10274_v63 = vsel %vm1089_vm5, 1.0, %v9478_v3  ;;  %vm1094_vm10 = vcmp.ge.f32.partialorder %v10334_v30, 1.0  ;;  %vm1394_vm12 = vcmp.ge.f32.partialorder %v10281_v59, 1.0 }
  0x8f   : > { %v3708_v40 = vld [vmem:[#allocation2 + $0x19] sm:$0xff]  ;;  %v3709_v41 = vld [vmem:[#allocation2 + $0x21] sm:$0xff]  ;;  %1248 = vst.msk [vmem:[#allocation2 + $0xc9] sm:$0xff] %vm887_vm0, %v10234_v48  ;;  %1250 = vst.msk [vmem:[#allocation2 + $0xe1] sm:$0xff] %vm887_vm0, %v10274_v63 }
  0x90   : > { %v3772_v46 = vpack.c.bf16 %v3709_v41, %v3708_v40  ;;  %v3710_v53 = vld [vmem:[#allocation2 + $0x31] sm:$0xff]  ;;  %v3711_v54 = vld [vmem:[#allocation2 + $0x39] sm:$0xff] }
  0x91   : > { %v3773_v57 = vpack.c.bf16 %v3711_v54, %v3710_v53  ;;  %v3712_v0 = vld [vmem:[#allocation2 + $0x49] sm:$0xff]  ;;  %v3713_v1 = vld [vmem:[#allocation2 + $0x51] sm:$0xff] }
  0x92   : > { %8485 = vmatprep.mubr.msk.bf16.mxu0 %vm887_vm0, %v3772_v46  ;;  %8198 = vmatmul.mubr.msk.bf16.vlgmr.msra.gmra.mrb[0].mxu1 %vm887_vm0, %v3772_v46  ;;  %v3774_v6 = vpack.c.bf16 %v3713_v1, %v3712_v0  ;;  %v3715_v32 = vld [vmem:[#allocation2 + $0x69] sm:$0xff]  ;;  %v10284_v1 = vmul.f32 %v1173_v20, %v10074_v27  ;;  %v10297_v27 = vsel %vm1091_vm7, 1.0, %v9478_v3 }
  0x93   : > { %8262 = vmatpush3.bf16.msra.mxu1 %v10048_v15  ;;  %8486 = vmatmul.mubr.msk.bf16.vlgmr.msra.gmra.mrb[0].mxu0 %vm887_vm0, %v3773_v57  ;;  %v991_v15 = vld [vmem:[%s10036_s17 + $0x80] sm:$0xff]  ;;  %v996_v53 = vld [vmem:[%s10036_s17 + $0xa8] sm:$0xff]  ;;  %v9412_v0 = vld [vmem:[%s11912_s2 + $0x10] sm:$0xff]   ;;  %1252 = vst.msk [vmem:[#allocation2 + $0xf9] sm:$0xff] %vm887_vm0, %v10297_v27 }
  0x94   : > { %8263 = vmatprep.subr.bf16.mxu1 %v9409_v47  ;;  %8201 = vmatprep.mubr.msk.bf16.mxu1 %vm887_vm0, %v3773_v57  ;;  %v10222_v33 = vmul.f32 0.5, %v991_v15  ;;  %v3716_v40 = vld [vmem:[#allocation2 + $0x79] sm:$0xff]  ;;  %v3717_v41 = vld [vmem:[#allocation2 + $0x81] sm:$0xff]  ;;  %v10256_v57 = vmul.f32 0.5, %v995_v34  ;;  %v3718_v62 = vld [vmem:[#allocation2 + $0x91] sm:$0xff]  ;;  %v1178_v34 = vsub.f32 1.0, %v10184_v13 }
  0x95   : > { %8550 = vmatpush3.bf16.msra.mxu0 %v10066_v23  ;;  %8489 = vmatprep.mubr.msk.bf16.mxu0 %vm887_vm0, %v3774_v6  ;;  %v3714_v23 = vld [vmem:[#allocation2 + $0x61] sm:$0xff]  ;;  %v3776_v46 = vpack.c.bf16 %v3717_v41, %v3716_v40  ;;  %v3719_v29 = vld [vmem:[#allocation2 + $0x99] sm:$0xff]  ;;  %v3720_v22 = vld [vmem:[#allocation2 + $0xa9] sm:$0xff] }
  0x96   : > { %8551 = vmatprep.subr.bf16.mxu0 %v9408_v60  ;;  %v3775_v37 = vpack.c.bf16 %v3715_v32, %v3714_v23  ;;  %vm1088_vm4 = vcmp.ge.f32.partialorder %v10222_v33, 1.0  ;;  %v3777_v4 = vpack.c.bf16 %v3719_v29, %v3718_v62  ;;  %v3721_v5 = vld [vmem:[#allocation2 + $0xb1] sm:$0xff]  ;;  %vm1092_vm8 = vcmp.ge.f32.partialorder %v10256_v57, 1.0  ;;  %v999_v15 = vld [vmem:[%s10036_s17 + $0xc0] sm:$0xff]  ;;  %v1000_v20 = vld [vmem:[%s10036_s17 + $0xc8] sm:$0xff] }
  0x97   : > { %8264 = vmatpush3.bf16.msra.mxu1 %v9409_v47  ;;  %v10231_v47 = vsel %vm1086_vm2, 1.0, %v9478_v3  ;;  %v10250_v54 = vsel %vm1088_vm4, 1.0, %v9478_v3  ;;  %v3778_v44 = vpack.c.bf16 %v3721_v5, %v3720_v22  ;;  %v10315_v19 = vsel %vm1092_vm8, 1.0, %v9478_v3  ;;  %v10321_v23 = vld [vmem:[%s11912_s2 + $0xc0] sm:$0xff]   ;;  %v1001_v32 = vld [vmem:[%s10036_s17 + $0xd0] sm:$0xff] }
  0x98   : > { %1247 = vst.msk [vmem:[#allocation2 + $0xc1] sm:$0xff] %vm887_vm0, %v10231_v47  ;;  %1249 = vst.msk [vmem:[#allocation2 + $0xd9] sm:$0xff] %vm887_vm0, %v10250_v54  ;;  %8265 = vmatprep.subr.bf16.mxu1 %v9412_v0  ;;  %v3723_v13 = vld [vmem:[#allocation2 + $0xc9] sm:$0xff]  ;;  %v10349_v17 = vmul.f32 0.5, %v999_v15  ;;  %v10351_v40 = vmul.f32 0.5, %v1000_v20  ;;  %v10385_v29 = vmul.f32 %v1179_v35, %v10169_v7 }
  0x99   : > { %8552 = vmatpush3.bf16.msra.mxu0 %v9408_v60  ;;  %v10264_v60 = vmul.f32 %v1172_v10, %v10072_v26  ;;  %v10278_v26 = vmul.f32 0.5, %v996_v53  ;;  %v10293_v10 = vadd.f32 %v1331_v36, %v10133_v52  ;;  %v10308_v52 = vmul.f32 %v1175_v50, %v10106_v39  ;;  %1253 = vst.msk [vmem:[#allocation2 + $0x109] sm:$0xff] %vm887_vm0, %v10315_v19  ;;  %v3725_v50 = vld [vmem:[#allocation2 + $0xe1] sm:$0xff] }
  0x9a   : > { %8202 = vmatmul.mubr.msk.bf16.gmra.mrb[4].mxu1 %vm887_vm0, %v3774_v6  ;;  %8553 = vmatprep.subr.bf16.mxu0 %v9410_v16  ;;  %v10289_v6 = vsel %vm1090_vm6, 1.0, %v9478_v3  ;;  %v10327_v39 = vmul.f32 %v1177_v61, %v10110_v43  ;;  %v10343_v43 = vmul.f32 0.5, %v998_v12  ;;  %v1181_v36 = vsub.f32 1.0, %v10207_v24  ;;  %v1002_v24 = vld [vmem:[%s10036_s17 + $0xd8] sm:$0xff] }
  0x9b   : > { %8490 = vmatmul.mubr.msk.bf16.gmra.mrb[4].mxu0 %vm887_vm0, %v3775_v37  ;;  %8205 = vmatprep.mubr.msk.bf16.mxu1 %vm887_vm0, %v3775_v37  ;;  %1251 = vst.msk [vmem:[#allocation2 + $0xf1] sm:$0xff] %vm887_vm0, %v10289_v6  ;;  %vm1093_vm9 = vcmp.ge.f32.partialorder %v10278_v26, 1.0  ;;  %vm1096_vm13 = vcmp.ge.f32.partialorder %v10349_v17, 1.0  ;;  %vm1097_vm14 = vcmp.ge.f32.partialorder %v10351_v40, 1.0  ;;  %vm1395_vm15 = vcmp.ge.f32.partialorder %v10293_v10, 1.0  ;;  %v3727_v35 = vld [vmem:[#allocation2 + $0xf9] sm:$0xff] }
  0x9c   : > { %8493 = vmatprep.mubr.msk.bf16.mxu0 %vm887_vm0, %v3776_v46  ;;  %8266 = vmatpush3.bf16.msra.mxu1 %v9412_v0  ;;  %v10330_v28 = vsel %vm1093_vm9, 1.0, %v9478_v3  ;;  %vm1095_vm11 = vcmp.ge.f32.partialorder %v10343_v43, 1.0  ;;  %v1184_v61 = vsub.f32 1.0, %v10250_v54  ;;  %v10379_v62 = vsel %vm1097_vm14, 1.0, %v9478_v3 }
  0x9d   : > { %8554 = vmatpush3.bf16.msra.mxu0 %v9410_v16  ;;  %v10305_v16 = vmul.f32 %v1174_v45, %v10104_v38  ;;  %v10324_v38 = vmul.f32 %v1176_v51, %v10108_v42  ;;  %v1180_v42 = vsub.f32 1.0, %v10200_v18  ;;  %1254 = vst.msk [vmem:[#allocation2 + $0x111] sm:$0xff] %vm887_vm0, %v10330_v28  ;;  %v1182_v18 = vsub.f32 1.0, %v10231_v47  ;;  %v1003_v47 = vld [vmem:[%s10036_s17 + $0xe0] sm:$0xff]  ;;  %1258 = vst.msk [vmem:[#allocation2 + $0x141] sm:$0xff] %vm887_vm0, %v10379_v62 }
  0x9e   : > { %8555 = vmatprep.subr.bf16.mxu0 %v9411_v21  ;;  %v10359_v45 = vmul.f32 0.5, %v1001_v32  ;;  %v10364_v51 = vsel %vm1095_vm11, 1.0, %v9478_v3  ;;  %v10382_v0 = vmul.f32 %v1178_v34, %v10162_v2  ;;  %v10392_v22 = vmul.f32 0.5, %v1002_v24 }
  0x9f   : > { %v3722_v37 = vld [vmem:[#allocation2 + $0xc1] sm:$0xff]  ;;  %v3724_v41 = vld [vmem:[#allocation2 + $0xd9] sm:$0xff]  ;;  %1256 = vst.msk [vmem:[#allocation2 + $0x129] sm:$0xff] %vm887_vm0, %v10364_v51  ;;  %v10396_v5 = vmul.f32 %v1180_v42, %v10171_v8  ;;  %v10399_v2 = vmul.f32 %v1181_v36, %v10178_v11  ;;  %v10403_v7 = vmul.f32 0.5, %v1003_v47  ;;  %v10408_v12 = vmul.f32 %v1182_v18, %v10187_v14 }
  0xa0   : > { %v3779_v53 = vpack.c.bf16 %v3723_v13, %v3722_v37  ;;  %v3780_v54 = vpack.c.bf16 %v3725_v50, %v3724_v41  ;;  %vm1098_vm1 = vcmp.ge.f32.partialorder %v10359_v45, 1.0  ;;  %vm1099_vm2 = vcmp.ge.f32.partialorder %v10392_v22, 1.0  ;;  %v3728_v37 = vld [vmem:[#allocation2 + $0x109] sm:$0xff]  ;;  %v7407_v50 = vld [vmem:[%s10036_s17 + $0x120] sm:$0xff] }
  0xa1   : > { %8556 = vmatpush3.bf16.msra.mxu0 %v9411_v21  ;;  %v10356_v21 = vsel %vm1094_vm10, 1.0, %v9478_v3  ;;  %v10415_v8 = vsel %vm1098_vm1, 1.0, %v9478_v3  ;;  %v1185_v11 = vsub.f32 1.0, %v10274_v63  ;;  %v10420_v20 = vmul.f32 %v1184_v61, %v10222_v33 }
  0xa2   : > { %8206 = vmatmul.mubr.msk.bf16.gmra.mrb[8].mxu1 %vm887_vm0, %v3776_v46  ;;  %8621 = vmatprep.subr.bf16.mxu0 %v10321_v23  ;;  %v1183_v46 = vsub.f32 1.0, %v10234_v48  ;;  %1255 = vst.msk [vmem:[#allocation2 + $0x121] sm:$0xff] %vm887_vm0, %v10356_v21  ;;  %v10376_v48 = vsel %vm1096_vm13, 1.0, %v9478_v3  ;;  %v10423_v32 = vsel %vm1099_vm2, 1.0, %v9478_v3  ;;  %1259 = vst.msk [vmem:[#allocation2 + $0x151] sm:$0xff] %vm887_vm0, %v10415_v8  ;;  %v3726_v34 = vld [vmem:[#allocation2 + $0xf1] sm:$0xff] }
  0xa3   : > { %8209 = vmatprep.mubr.msk.bf16.mxu1 %vm887_vm0, %v3777_v4  ;;  %8494 = vmatmul.mubr.msk.bf16.gmra.mrb[8].mxu0 %vm887_vm0, %v3777_v4  ;;  %1257 = vst.msk [vmem:[#allocation2 + $0x139] sm:$0xff] %vm887_vm0, %v10376_v48  ;;  %v1004_v4 = vld [vmem:[%s10036_s17 + $0xe8] sm:$0xff]  ;;  %1260 = vst.msk [vmem:[#allocation2 + $0x159] sm:$0xff] %vm887_vm0, %v10423_v32  ;;  %vm1100_vm3 = vcmp.ge.f32.partialorder %v10403_v7, 1.0  ;;  %v10434_v33 = vmul.f32 0.5, %v1005_v9  ;;  %v1187_v42 = vsub.f32 1.0, %v10297_v27  ;;  %v3781_v27 = vpack.c.bf16 %v3727_v35, %v3726_v34 }
  0xa4   : > { %8497 = vmatprep.mubr.msk.bf16.mxu0 %vm887_vm0, %v3778_v44  ;;  %v10411_v15 = vmul.f32 %v1183_v46, %v10211_v25  ;;  %v10427_v14 = vmul.f32 0.5, %v1004_v4  ;;  %v1186_v25 = vsub.f32 1.0, %v10289_v6  ;;  %v1188_v36 = vsub.f32 1.0, %v10315_v19  ;;  %v3729_v6 = vld [vmem:[#allocation2 + $0x111] sm:$0xff]  ;;  %v7408_v4 = vld [vmem:[%s10036_s17 + $0x128] sm:$0xff] }
  0xa5   : > { %v10442_v13 = vsel %vm1100_vm3, 1.0, %v9478_v3  ;;  %v1189_v18 = vsub.f32 1.0, %v10330_v28  ;;  %v1190_v41 = vsub.f32 1.0, %v10356_v21  ;;  %vm1102_vm5 = vcmp.ge.f32.partialorder %v10434_v33, 1.0  ;;  %v7405_v21 = vld [vmem:[%s10036_s17 + $0x110] sm:$0xff]  ;;  %v7406_v46 = vld [vmem:[%s10036_s17 + $0x118] sm:$0xff] }
  0xa6   : > { %vm1101_vm4 = vcmp.ge.f32.partialorder %v10427_v14, 1.0  ;;  %1261 = vst.msk [vmem:[#allocation2 + $0x169] sm:$0xff] %vm887_vm0, %v10442_v13  ;;  %v1191_v19 = vsub.f32 1.0, %v10364_v51  ;;  %v10457_v28 = vsel %vm1102_vm5, 1.0, %v9478_v3  ;;  %v10463_v47 = vmul.f32 %v1185_v11, %v10244_v49  ;;  %v7409_v9 = vld [vmem:[%s10036_s17 + $0x130] sm:$0xff] }
  0xa7   : > { %v10447_v24 = vsel %vm1101_vm4, 1.0, %v9478_v3  ;;  %v1192_v51 = vsub.f32 1.0, %v10376_v48  ;;  %1263 = vst.msk [vmem:[#allocation2 + $0x181] sm:$0xff] %vm887_vm0, %v10457_v28  ;;  %v10478_v34 = vmul.f32 %v1187_v42, %v10254_v56  ;;  %v10482_v49 = vmul.f32 %v1188_v36, %v10256_v57  ;;  %v3733_v36 = vld [vmem:[#allocation2 + $0x141] sm:$0xff] }
  0xa8   : > { %1262 = vst.msk [vmem:[#allocation2 + $0x171] sm:$0xff] %vm887_vm0, %v10447_v24  ;;  %v7435_v48 = vsel %vm1394_vm12, 1.0, %v9478_v3  ;;  %v10494_v56 = vmul.f32 %v1189_v18, %v10278_v26  ;;  %v10497_v11 = vmul.f32 %v1190_v41, %v10334_v30  ;;  %v7436_v35 = vsel %vm1395_vm15, 1.0, %v9478_v3 }
  0xa9   : > { %v3730_v57 = vld [vmem:[#allocation2 + $0x121] sm:$0xff]  ;;  %1491 = vst.msk [vmem:[#allocation2 + $0x1c9] sm:$0xff] %vm887_vm0, %v7435_v48  ;;  %v1300_v59 = vsub.f32 %v7405_v21, %v10216_v31  ;;  %v10506_v42 = vmul.f32 %v1191_v19, %v10343_v43  ;;  %v1193_v26 = vsub.f32 1.0, %v10379_v62  ;;  %1492 = vst.msk [vmem:[#allocation2 + $0x1d1] sm:$0xff] %vm887_vm0, %v7436_v35  ;;  %v1301_v10 = vsub.f32 %v7406_v46, %v10261_v58 }
  0xaa   : > { %8210 = vmatmul.mubr.msk.bf16.gmra.mrb[12].mxu1 %vm887_vm0, %v3778_v44  ;;  %v1006_v44 = vld [vmem:[%s10036_s17 + $0xf8] sm:$0xff]  ;;  %v1194_v18 = vsub.f32 1.0, %v10415_v8  ;;  %v1303_v41 = vsub.f32 %v7408_v4, %v10284_v1  ;;  %v7411_v62 = vld [vmem:[%s10036_s17 + $0x140] sm:$0xff]  ;;  %v1304_v21 = vsub.f32 %v7409_v9, %v10305_v16  ;;  %v7412_v48 = vld [vmem:[%s10036_s17 + $0x148] sm:$0xff] }
  0xab   : > { %8213 = vmatprep.mubr.msk.bf16.mxu1 %vm887_vm0, %v3779_v53  ;;  %8498 = vmatmul.mubr.msk.bf16.gmra.mrb[12].mxu0 %vm887_vm0, %v3779_v53  ;;  %v10436_v63 = vmul.f32 0.5, %v1006_v44  ;;  %v3782_v53 = vpack.c.bf16 %v3729_v6, %v3728_v37  ;;  %v10475_v44 = vmul.f32 %v1186_v25, %v10252_v55  ;;  %v9414_v55 = vld [vmem:[%s11912_s2 + $0x18] sm:$0xff]   ;;  %v3731_v25 = vld [vmem:[#allocation2 + $0x129] sm:$0xff]  ;;  %v1302_v37 = vsub.f32 %v7407_v50, %v10264_v60 }
  0xac   : > { %8501 = vmatprep.mubr.msk.bf16.mxu0 %vm887_vm0, %v3780_v54  ;;  %v3732_v30 = vld [vmem:[#allocation2 + $0x139] sm:$0xff]  ;;  %v10514_v6 = vmul.f32 %v1192_v51, %v10349_v17  ;;  %v1332_v43 = vmul.f32 0.5, %v1300_v59  ;;  %8267 = vmatprep.subr.bf16.mxu1 %v9414_v55  ;;  %v3783_v50 = vpack.c.bf16 %v3731_v25, %v3730_v57  ;;  %v1335_v51 = vmul.f32 0.5, %v1303_v41 }
  0xad   : > { %vm1103_vm6 = vcmp.ge.f32.partialorder %v10436_v63, 1.0  ;;  %v1334_v19 = vmul.f32 0.5, %v1302_v37  ;;  %8268 = vmatpush3.bf16.msra.mxu1 %v9414_v55  ;;  %v3784_v35 = vpack.c.bf16 %v3733_v36, %v3732_v30  ;;  %v1336_v59 = vmul.f32 0.5, %v1304_v21  ;;  %v7414_v25 = vld [vmem:[%s10036_s17 + $0x158] sm:$0xff]  ;;  %v3736_v21 = vld [vmem:[#allocation2 + $0x169] sm:$0xff] }
  0xae   : > { %v10468_v61 = vsel %vm1103_vm6, 1.0, %v9478_v3  ;;  %v1364_v17 = vadd.f32 %v1332_v43, %v10216_v31  ;;  %v1367_v9 = vadd.f32 %v1335_v51, %v10284_v1  ;;  %v1307_v55 = vsub.f32 %v7412_v48, %v10327_v39  ;;  %v3735_v30 = vld [vmem:[#allocation2 + $0x159] sm:$0xff] }
  0xaf   : > { %1264 = vst.msk [vmem:[#allocation2 + $0x189] sm:$0xff] %vm887_vm0, %v10468_v61  ;;  %v1366_v4 = vadd.f32 %v1334_v19, %v10264_v60  ;;  %v10531_v31 = vmul.f32 %v1193_v26, %v10351_v40  ;;  %v7413_v60 = vld [vmem:[%s10036_s17 + $0x150] sm:$0xff]  ;;  %v1195_v40 = vsub.f32 1.0, %v10423_v32  ;;  %v7416_v19 = vld [vmem:[%s10036_s17 + $0x168] sm:$0xff] }
  0xb0   : > { %vm1396_vm7 = vcmp.ge.f32.partialorder %v1364_v17, 1.0  ;;  %vm1399_vm10 = vcmp.ge.f32.partialorder %v1367_v9, 1.0  ;;  %v3734_v26 = vld [vmem:[#allocation2 + $0x151] sm:$0xff]  ;;  %v1339_v41 = vmul.f32 0.5, %v1307_v55 }
  0xb1   : > { %vm1398_vm9 = vcmp.ge.f32.partialorder %v1366_v4, 1.0  ;;  %v7440_v36 = vsel %vm1399_vm10, 1.0, %v9478_v3  ;;  %v10562_v4 = vld [vmem:[#allocation2 + $0x1b9] sm:$0xff]  ;;  %v7417_v9 = vld [vmem:[%s10036_s17 + $0x170] sm:$0xff] }
  0xb2   : > { %8214 = vmatmul.mubr.msk.bf16.gmra.mrb[16].mxu1 %vm887_vm0, %v3780_v54  ;;  %v7410_v54 = vld [vmem:[%s10036_s17 + $0x138] sm:$0xff]  ;;  %v7439_v1 = vsel %vm1398_vm9, 1.0, %v9478_v3  ;;  %1496 = vst.msk [vmem:[#allocation2 + $0x201] sm:$0xff] %vm887_vm0, %v7440_v36  ;;  %v1371_v51 = vadd.f32 %v1339_v41, %v10327_v39  ;;  %v7420_v36 = vld [vmem:[%s10036_s17 + $0x188] sm:$0xff]  ;;  %v7421_v32 = vld [vmem:[%s10036_s17 + $0x190] sm:$0xff] }
  0xb3   : > { %8217 = vmatprep.mubr.msk.bf16.mxu1 %vm887_vm0, %v3781_v27  ;;  %8502 = vmatmul.mubr.msk.bf16.gmra.mrb[16].mxu0 %vm887_vm0, %v3781_v27  ;;  %v1333_v27 = vmul.f32 0.5, %v1301_v10  ;;  %v1305_v46 = vsub.f32 %v7410_v54, %v10308_v52  ;;  %v1306_v10 = vsub.f32 %v7411_v62, %v10324_v38  ;;  %1495 = vst.msk [vmem:[#allocation2 + $0x1f9] sm:$0xff] %vm887_vm0, %v7439_v1 }
  0xb4   : > { %8505 = vmatprep.mubr.msk.bf16.mxu0 %vm887_vm0, %v3782_v53  ;;  %v1308_v62 = vsub.f32 %v7413_v60, %v10382_v0  ;;  %vm1403_vm14 = vcmp.ge.f32.partialorder %v1371_v51, 1.0 }
  0xb5   : > { %v1365_v8 = vadd.f32 %v1333_v27, %v10261_v58  ;;  %v1337_v54 = vmul.f32 0.5, %v1305_v46  ;;  %v7437_v58 = vsel %vm1396_vm7, 1.0, %v9478_v3  ;;  %v1338_v43 = vmul.f32 0.5, %v1306_v10  ;;  %v7415_v27 = vld [vmem:[%s10036_s17 + $0x160] sm:$0xff]  ;;  %v3737_v46 = vld [vmem:[#allocation2 + $0x171] sm:$0xff] }
  0xb6   : > { %1493 = vst.msk [vmem:[#allocation2 + $0x1e1] sm:$0xff] %vm887_vm0, %v7437_v58  ;;  %v1311_v10 = vsub.f32 %v7416_v19, %v10399_v2  ;;  %v3786_v55 = vpack.c.bf16 %v3737_v46, %v3736_v21  ;;  %v7444_v60 = vsel %vm1403_vm14, 1.0, %v9478_v3  ;;  %v3738_v19 = vld [vmem:[#allocation2 + $0x181] sm:$0xff]  ;;  %v3739_v21 = vld [vmem:[#allocation2 + $0x189] sm:$0xff] }
  0xb7   : > { %vm1397_vm8 = vcmp.ge.f32.partialorder %v1365_v8, 1.0  ;;  %v1369_v37 = vadd.f32 %v1337_v54, %v10308_v52  ;;  %v1370_v48 = vadd.f32 %v1338_v43, %v10324_v38  ;;  %v1340_v8 = vmul.f32 0.5, %v1308_v62  ;;  %v7418_v54 = vld [vmem:[%s10036_s17 + $0x178] sm:$0xff]  ;;  %1500 = vst.msk [vmem:[#allocation2 + $0x231] sm:$0xff] %vm887_vm0, %v7444_v60  ;;  %v4287_v43 = vld [vmem:[#allocation2 + $0x22] sm:$0xff] }
  0xb8   : > { %v7438_v57 = vsel %vm1397_vm8, 1.0, %v9478_v3  ;;  %v1310_v38 = vsub.f32 %v7415_v27, %v10396_v5  ;;  %v10598_v27 = vmul.f32 %v1195_v40, %v10392_v22  ;;  %v1315_v22 = vsub.f32 %v7420_v36, %v10463_v47  ;;  %v7422_v40 = vld [vmem:[%s10036_s17 + $0x198] sm:$0xff] }
  0xb9   : > { %1494 = vst.msk [vmem:[#allocation2 + $0x1e9] sm:$0xff] %vm887_vm0, %v7438_v57  ;;  %vm1401_vm12 = vcmp.ge.f32.partialorder %v1369_v37, 1.0  ;;  %vm1402_vm13 = vcmp.ge.f32.partialorder %v1370_v48, 1.0  ;;  %v1372_v58 = vadd.f32 %v1340_v8, %v10382_v0  ;;  %v1312_v0 = vsub.f32 %v7417_v9, %v10408_v12  ;;  %v4288_v36 = vld [vmem:[#allocation2 + $0x32] sm:$0xff] }
  0xba   : > { %8218 = vmatmul.mubr.msk.bf16.gmra.mrb[20].mxu1 %vm887_vm0, %v3782_v53  ;;  %v1368_v53 = vadd.f32 %v1336_v59, %v10305_v16  ;;  %v10548_v16 = vmul.f32 %v1194_v18, %v10359_v45  ;;  %v1309_v45 = vsub.f32 %v7414_v25, %v10385_v29  ;;  %v3785_v18 = vpack.c.bf16 %v3735_v30, %v3734_v26  ;;  %v10583_v26 = vld [vmem:[#allocation2 + $0x1a] sm:$0xff] }
  0xbb   : > { %8221 = vmatprep.mubr.msk.bf16.mxu1 %vm887_vm0, %v3783_v50  ;;  %8506 = vmatmul.mubr.msk.bf16.gmra.mrb[20].mxu0 %vm887_vm0, %v3783_v50  ;;  %v10557_v50 = vld [vmem:[#allocation2 + $0x1b1] sm:$0xff]  ;;  %v7442_v17 = vsel %vm1401_vm12, 1.0, %v9478_v3  ;;  %v7443_v39 = vsel %vm1402_vm13, 1.0, %v9478_v3  ;;  %v1342_v1 = vmul.f32 0.5, %v1310_v38  ;;  %vm1404_vm15 = vcmp.ge.f32.partialorder %v1372_v58, 1.0 }
  0xbc   : > { %8509 = vmatprep.mubr.msk.bf16.mxu0 %vm887_vm0, %v3784_v35  ;;  %vm1400_vm11 = vcmp.ge.f32.partialorder %v1368_v53, 1.0  ;;  %1498 = vst.msk [vmem:[#allocation2 + $0x219] sm:$0xff] %vm887_vm0, %v7442_v17  ;;  %v1341_v59 = vmul.f32 0.5, %v1309_v45  ;;  %1499 = vst.msk [vmem:[#allocation2 + $0x229] sm:$0xff] %vm887_vm0, %v7443_v39  ;;  %v1343_v53 = vmul.f32 0.5, %v1311_v10  ;;  %v1709_v25 = vpack.c.bf16 %v10562_v4, %v10557_v50  ;;  %v7423_v10 = vld [vmem:[%s10036_s17 + $0x1a0] sm:$0xff] }
  0xbd   : > { %v7441_v52 = vsel %vm1400_vm11, 1.0, %v9478_v3  ;;  %v1313_v30 = vsub.f32 %v7418_v54, %v10411_v15  ;;  %v1196_v37 = vsub.f32 1.0, %v10442_v13  ;;  %v7445_v41 = vsel %vm1404_vm15, 1.0, %v9478_v3  ;;  %v1663_v54 = vld [vmem:[#allocation2 + $0x1c9] sm:$0xff]  ;;  %v1664_v39 = vld [vmem:[#allocation2 + $0x1d1] sm:$0xff]  ;;  %v1665_v60 = vld [vmem:[#allocation2 + $0x1e1] sm:$0xff] }
  0xbe   : > { %1497 = vst.msk [vmem:[#allocation2 + $0x211] sm:$0xff] %vm887_vm0, %v7441_v52  ;;  %v1373_v57 = vadd.f32 %v1341_v59, %v10385_v29  ;;  %v7419_v29 = vld [vmem:[%s10036_s17 + $0x180] sm:$0xff]  ;;  %v1374_v62 = vadd.f32 %v1342_v1, %v10396_v5  ;;  %1501 = vst.msk [vmem:[#allocation2 + $0x241] sm:$0xff] %vm887_vm0, %v7445_v41  ;;  %v1375_v46 = vadd.f32 %v1343_v53, %v10399_v2  ;;  %v1344_v52 = vmul.f32 0.5, %v1312_v0  ;;  %v7425_v0 = vld [vmem:[%s10036_s17 + $0x1b0] sm:$0xff] }
  0xbf   : > { %v1345_v5 = vmul.f32 0.5, %v1313_v30  ;;  %v1314_v48 = vsub.f32 %v7419_v29, %v10420_v20  ;;  %v4350_v45 = vpack.c.bf16 %v4287_v43, %v10583_v26  ;;  %v3787_v50 = vpack.c.bf16 %v3739_v21, %v3738_v19  ;;  %v7426_v30 = vld [vmem:[%s10036_s17 + $0x1b8] sm:$0xff] }
  0xc0   : > { %vm1405_vm1 = vcmp.ge.f32.partialorder %v1373_v57, 1.0  ;;  %vm1406_vm2 = vcmp.ge.f32.partialorder %v1374_v62, 1.0  ;;  %vm1407_vm3 = vcmp.ge.f32.partialorder %v1375_v46, 1.0  ;;  %v1376_v2 = vadd.f32 %v1344_v52, %v10408_v12  ;;  %v7424_v12 = vld [vmem:[%s10036_s17 + $0x1a8] sm:$0xff]  ;;  %v4291_v19 = vld [vmem:[#allocation2 + $0x52] sm:$0xff] }
  0xc1   : > { %v7446_v13 = vsel %vm1405_vm1, 1.0, %v9478_v3  ;;  %v7448_v17 = vsel %vm1407_vm3, 1.0, %v9478_v3  ;;  %v1377_v51 = vadd.f32 %v1345_v5, %v10411_v15  ;;  %v1346_v8 = vmul.f32 0.5, %v1314_v48  ;;  %v1666_v57 = vld [vmem:[#allocation2 + $0x1e9] sm:$0xff] }
  0xc2   : > { %8222 = vmatmul.mubr.msk.bf16.gmra.mrb[24].mxu1 %vm887_vm0, %v3784_v35  ;;  %v10579_v35 = vld [vmem:[%s11912_s2 + $0x40] sm:$0xff]   ;;  %1502 = vst.msk [vmem:[#allocation2 + $0x249] sm:$0xff] %vm887_vm0, %v7446_v13  ;;  %1504 = vst.msk [vmem:[#allocation2 + $0x261] sm:$0xff] %vm887_vm0, %v7448_v17  ;;  %vm1408_vm4 = vcmp.ge.f32.partialorder %v1376_v2, 1.0  ;;  %v1347_v4 = vmul.f32 0.5, %v1315_v22  ;;  %v1316_v59 = vsub.f32 %v7421_v32, %v10475_v44  ;;  %v1317_v38 = vsub.f32 %v7422_v40, %v10478_v34  ;;  %v4290_v62 = vld [vmem:[#allocation2 + $0x4a] sm:$0xff] }
  0xc3   : > { %8225 = vmatprep.mubr.msk.bf16.mxu1 %vm887_vm0, %v3785_v18  ;;  %8510 = vmatmul.mubr.msk.bf16.gmra.mrb[24].mxu0 %vm887_vm0, %v3785_v18  ;;  %v7447_v18 = vsel %vm1406_vm2, 1.0, %v9478_v3  ;;  %v1197_v9 = vsub.f32 1.0, %v10447_v24  ;;  %vm1409_vm5 = vcmp.ge.f32.partialorder %v1377_v51, 1.0  ;;  %v7449_v15 = vsel %vm1408_vm4, 1.0, %v9478_v3  ;;  %v7427_v22 = vld [vmem:[%s10036_s17 + $0x1c0] sm:$0xff]  ;;  %v10651_v40 = vld [vmem:[%s11912_s2 + $0xc8] sm:$0xff]  }
  0xc4   : > { %8333 = vmatprep.subr.bf16.mxu1 %v10579_v35  ;;  %8513 = vmatprep.mubr.msk.bf16.mxu0 %vm887_vm0, %v3786_v55  ;;  %1503 = vst.msk [vmem:[#allocation2 + $0x259] sm:$0xff] %vm887_vm0, %v7447_v18  ;;  %v10626_v58 = vmul.f32 %v1196_v37, %v10403_v7  ;;  %v7450_v1 = vsel %vm1409_vm5, 1.0, %v9478_v3  ;;  %1505 = vst.msk [vmem:[#allocation2 + $0x271] sm:$0xff] %vm887_vm0, %v7449_v15  ;;  %v1379_v53 = vadd.f32 %v1347_v4, %v10463_v47  ;;  %v4289_v37 = vld [vmem:[#allocation2 + $0x3a] sm:$0xff] }
  0xc5   : > { %1506 = vst.msk [vmem:[#allocation2 + $0x279] sm:$0xff] %vm887_vm0, %v7450_v1  ;;  %v1349_v26 = vmul.f32 0.5, %v1317_v38  ;;  %v1319_v7 = vsub.f32 %v7424_v12, %v10494_v56  ;;  %v1710_v29 = vpack.c.bf16 %v1664_v39, %v1663_v54  ;;  %v1711_v41 = vpack.c.bf16 %v1666_v57, %v1665_v60  ;;  %v1667_v2 = vld [vmem:[#allocation2 + $0x1f9] sm:$0xff]  ;;  %v7429_v38 = vld [vmem:[%s10036_s17 + $0x1d0] sm:$0xff]  ;;  %v4292_v60 = vld [vmem:[#allocation2 + $0x62] sm:$0xff] }
  0xc6   : > { %vm1411_vm7 = vcmp.ge.f32.partialorder %v1379_v53, 1.0  ;;  %v1320_v5 = vsub.f32 %v7425_v0, %v10497_v11  ;;  %v1321_v48 = vsub.f32 %v7426_v30, %v10506_v42  ;;  %v4351_v32 = vpack.c.bf16 %v4289_v37, %v4288_v36  ;;  %v1669_v54 = vld [vmem:[#allocation2 + $0x211] sm:$0xff]  ;;  %v4295_v0 = vld [vmem:[#allocation2 + $0x82] sm:$0xff] }
  0xc7   : > { %v7452_v21 = vsel %vm1411_vm7, 1.0, %v9478_v3  ;;  %v1381_v13 = vadd.f32 %v1349_v26, %v10478_v34  ;;  %v1351_v52 = vmul.f32 0.5, %v1319_v7  ;;  %v4352_v18 = vpack.c.bf16 %v4291_v19, %v4290_v62  ;;  %v4293_v57 = vld [vmem:[#allocation2 + $0x6a] sm:$0xff]  ;;  %v4294_v7 = vld [vmem:[#allocation2 + $0x7a] sm:$0xff] }
  0xc8   : > { %1508 = vst.msk [vmem:[#allocation2 + $0x291] sm:$0xff] %vm887_vm0, %v7452_v21  ;;  %v1353_v4 = vmul.f32 0.5, %v1321_v48  ;;  %v10668_v12 = vmul.f32 %v1197_v9, %v10427_v14  ;;  %v1324_v9 = vsub.f32 %v7429_v38, %v10548_v16  ;;  %v7432_v26 = vld [vmem:[%s10036_s17 + $0x1e8] sm:$0xff]  ;;  %v9417_v30 = vld [vmem:[%s11912_s2 + $0xd0] sm:$0xff]   ;;  %v4354_v62 = vpack.c.bf16 %v4295_v0, %v4294_v7  ;;  %v9419_v48 = vld [vmem:[%s11912_s2 + $0xd8] sm:$0xff]  }
  0xc9   : > { %vm1413_vm9 = vcmp.ge.f32.partialorder %v1381_v13, 1.0  ;;  %v1383_v51 = vadd.f32 %v1351_v52, %v10494_v56  ;;  %v1670_v56 = vld [vmem:[#allocation2 + $0x219] sm:$0xff]  ;;  %v1672_v13 = vld [vmem:[#allocation2 + $0x231] sm:$0xff] }
  0xca   : > { %8226 = vmatmul.mubr.msk.bf16.gmra.mrb[28].mxu1 %vm887_vm0, %v3786_v55  ;;  %v1378_v55 = vadd.f32 %v1346_v8, %v10420_v20  ;;  %v1318_v20 = vsub.f32 %v7423_v10, %v10482_v49  ;;  %v7454_v17 = vsel %vm1413_vm9, 1.0, %v9478_v3  ;;  %v1352_v8 = vmul.f32 0.5, %v1320_v5  ;;  %v7430_v10 = vld [vmem:[%s10036_s17 + $0x1d8] sm:$0xff] }
  0xcb   : > { %8229 = vmatprep.mubr.msk.bf16.mxu1 %vm887_vm0, %v1709_v25  ;;  %v1348_v25 = vmul.f32 0.5, %v1316_v59  ;;  %8514 = vmatmul.mubr.msk.bf16.gmra.mrb[28].mxu0 %vm887_vm0, %v3787_v50  ;;  %v1668_v50 = vld [vmem:[#allocation2 + $0x201] sm:$0xff]  ;;  %1510 = vst.msk [vmem:[#allocation2 + $0x2a9] sm:$0xff] %vm887_vm0, %v7454_v17  ;;  %vm1415_vm11 = vcmp.ge.f32.partialorder %v1383_v51, 1.0  ;;  %v1385_v14 = vadd.f32 %v1353_v4, %v10506_v42  ;;  %v1325_v53 = vsub.f32 %v7430_v10, %v10598_v27  ;;  %v1675_v38 = vld [vmem:[#allocation2 + $0x259] sm:$0xff] }
  0xcc   : > { %vm1410_vm6 = vcmp.ge.f32.partialorder %v1378_v55, 1.0  ;;  %8557 = vmatprep.mubr.msk.bf16.mxu0 %vm887_vm0, %v4350_v45  ;;  %v1350_v46 = vmul.f32 0.5, %v1318_v20  ;;  %v1384_v15 = vadd.f32 %v1352_v8, %v10497_v11  ;;  %v1712_v55 = vpack.c.bf16 %v1668_v50, %v1667_v2  ;;  %v4298_v2 = vld [vmem:[#allocation2 + $0xaa] sm:$0xff]  ;;  %v4299_v50 = vld [vmem:[#allocation2 + $0xb2] sm:$0xff] }
  0xcd   : > { %v7451_v47 = vsel %vm1410_vm6, 1.0, %v9478_v3  ;;  %v1380_v43 = vadd.f32 %v1348_v25, %v10475_v44  ;;  %v7428_v44 = vld [vmem:[%s10036_s17 + $0x1c8] sm:$0xff]  ;;  %v7456_v1 = vsel %vm1415_vm11, 1.0, %v9478_v3  ;;  %v7431_v25 = vld [vmem:[%s10036_s17 + $0x1e0] sm:$0xff]  ;;  %v1713_v20 = vpack.c.bf16 %v1670_v56, %v1669_v54  ;;  %v7433_v54 = vld [vmem:[%s10036_s17 + $0x1f0] sm:$0xff] }
  0xce   : > { %1507 = vst.msk [vmem:[#allocation2 + $0x289] sm:$0xff] %vm887_vm0, %v7451_v47  ;;  %v1382_v45 = vadd.f32 %v1350_v46, %v10482_v49  ;;  %v1322_v49 = vsub.f32 %v7427_v22, %v10514_v6  ;;  %v1323_v59 = vsub.f32 %v7428_v44, %v10531_v31  ;;  %1512 = vst.msk [vmem:[#allocation2 + $0x2c1] sm:$0xff] %vm887_vm0, %v7456_v1  ;;  %vm1416_vm12 = vcmp.ge.f32.partialorder %v1384_v15, 1.0  ;;  %v1673_v22 = vld [vmem:[#allocation2 + $0x241] sm:$0xff]  ;;  %v1674_v44 = vld [vmem:[#allocation2 + $0x249] sm:$0xff] }
  0xcf   : > { %vm1412_vm8 = vcmp.ge.f32.partialorder %v1380_v43, 1.0  ;;  %vm1417_vm13 = vcmp.ge.f32.partialorder %v1385_v14, 1.0  ;;  %v1356_v47 = vmul.f32 0.5, %v1324_v9  ;;  %v1357_v43 = vmul.f32 0.5, %v1325_v53  ;;  %v10729_v56 = vld [vmem:[%s11912_s2 + $0xe0] sm:$0xff]  }
  0xd0   : > { %v7453_v34 = vsel %vm1412_vm8, 1.0, %v9478_v3  ;;  %vm1414_vm10 = vcmp.ge.f32.partialorder %v1382_v45, 1.0  ;;  %v1354_v24 = vmul.f32 0.5, %v1322_v49  ;;  %v1355_v11 = vmul.f32 0.5, %v1323_v59  ;;  %v1678_v15 = vld [vmem:[#allocation2 + $0x279] sm:$0xff] }
  0xd1   : > { %1509 = vst.msk [vmem:[#allocation2 + $0x2a1] sm:$0xff] %vm887_vm0, %v7453_v34  ;;  %v7455_v39 = vsel %vm1414_vm10, 1.0, %v9478_v3  ;;  %v7458_v36 = vsel %vm1417_vm13, 1.0, %v9478_v3  ;;  %v1388_v21 = vadd.f32 %v1356_v47, %v10548_v16  ;;  %v1389_v52 = vadd.f32 %v1357_v43, %v10598_v27  ;;  %v4302_v14 = vld [vmem:[#allocation2 + $0xda] sm:$0xff]  ;;  %v4306_v43 = vld [vmem:[#allocation2 + $0x10a] sm:$0xff] }
  0xd2   : > { %8230 = vmatmul.mubr.msk.bf16.gmra.mrb[32].mxu1 %vm887_vm0, %v1710_v29  ;;  %1511 = vst.msk [vmem:[#allocation2 + $0x2b9] sm:$0xff] %vm887_vm0, %v7455_v39  ;;  %v1386_v42 = vadd.f32 %v1354_v24, %v10514_v6  ;;  %v4353_v29 = vpack.c.bf16 %v4293_v57, %v4292_v60  ;;  %v1387_v37 = vadd.f32 %v1355_v11, %v10531_v31  ;;  %1514 = vst.msk [vmem:[#allocation2 + $0x2d9] sm:$0xff] %vm887_vm0, %v7458_v36  ;;  %v1671_v31 = vld [vmem:[#allocation2 + $0x229] sm:$0xff]  ;;  %v1677_v39 = vld [vmem:[#allocation2 + $0x271] sm:$0xff] }
  0xd3   : > { %8233 = vmatprep.mubr.msk.bf16.mxu1 %vm887_vm0, %v1711_v41  ;;  %8558 = vmatmul.mubr.msk.bf16.vlgmr.msra.gmra.mrb[0].mxu0 %vm887_vm0, %v4351_v32  ;;  %v1326_v41 = vsub.f32 %v7431_v25, %v10626_v58  ;;  %v1327_v6 = vsub.f32 %v7432_v26, %v10668_v12  ;;  %vm1420_vm1 = vcmp.ge.f32.partialorder %v1388_v21, 1.0  ;;  %v4296_v32 = vld [vmem:[#allocation2 + $0x92] sm:$0xff]  ;;  %vm1421_vm2 = vcmp.ge.f32.partialorder %v1389_v52, 1.0  ;;  %v4300_v60 = vld [vmem:[#allocation2 + $0xc2] sm:$0xff]  ;;  %v4305_v36 = vld [vmem:[#allocation2 + $0xfa] sm:$0xff] }
  0xd4   : > { %8622 = vmatpush3.bf16.msra.mxu0 %v10321_v23  ;;  %8561 = vmatprep.mubr.msk.bf16.mxu0 %vm887_vm0, %v4352_v18  ;;  %v7457_v23 = vsel %vm1416_vm12, 1.0, %v9478_v3  ;;  %vm1418_vm14 = vcmp.ge.f32.partialorder %v1386_v42, 1.0  ;;  %vm1419_vm15 = vcmp.ge.f32.partialorder %v1387_v37, 1.0  ;;  %v1198_v34 = vsub.f32 1.0, %v10457_v28  ;;  %v4297_v18 = vld [vmem:[#allocation2 + $0x9a] sm:$0xff]  ;;  %v4303_v24 = vld [vmem:[#allocation2 + $0xe2] sm:$0xff] }
  0xd5   : > { %8623 = vmatprep.subr.bf16.mxu0 %v10651_v40  ;;  %1513 = vst.msk [vmem:[#allocation2 + $0x2d1] sm:$0xff] %vm887_vm0, %v7457_v23  ;;  %v7459_v19 = vsel %vm1418_vm14, 1.0, %v9478_v3  ;;  %v7460_v46 = vsel %vm1419_vm15, 1.0, %v9478_v3  ;;  %v1358_v5 = vmul.f32 0.5, %v1326_v41  ;;  %v1359_v16 = vmul.f32 0.5, %v1327_v6  ;;  %v1679_v25 = vld [vmem:[#allocation2 + $0x289] sm:$0xff] }
  0xd6   : > { %1515 = vst.msk [vmem:[#allocation2 + $0x2e9] sm:$0xff] %vm887_vm0, %v7459_v19  ;;  %1516 = vst.msk [vmem:[#allocation2 + $0x2f1] sm:$0xff] %vm887_vm0, %v7460_v46  ;;  %v1714_v45 = vpack.c.bf16 %v1672_v13, %v1671_v31  ;;  %v7462_v17 = vsel %vm1421_vm2, 1.0, %v9478_v3  ;;  %v1199_v8 = vsub.f32 1.0, %v10468_v61  ;;  %v1715_v4 = vpack.c.bf16 %v1674_v44, %v1673_v22  ;;  %v1680_v26 = vld [vmem:[#allocation2 + $0x291] sm:$0xff]  ;;  %v1684_v13 = vld [vmem:[#allocation2 + $0x2c1] sm:$0xff] }
  0xd7   : > { %v1390_v27 = vadd.f32 %v1358_v5, %v10626_v58  ;;  %v1391_v51 = vadd.f32 %v1359_v16, %v10668_v12  ;;  %1518 = vst.msk [vmem:[#allocation2 + $0x309] sm:$0xff] %vm887_vm0, %v7462_v17  ;;  %v4355_v58 = vpack.c.bf16 %v4297_v18, %v4296_v32  ;;  %v1230_v59 = vmul.f32 %v1198_v34, %v10434_v33  ;;  %v1676_v12 = vld [vmem:[#allocation2 + $0x261] sm:$0xff]  ;;  %v7434_v33 = vld [vmem:[%s10036_s17 + $0x1f8] sm:$0xff] }
  0xd8   : > { %8624 = vmatpush3.bf16.msra.mxu0 %v10651_v40  ;;  %v7461_v40 = vsel %vm1420_vm1, 1.0, %v9478_v3  ;;  %v4356_v61 = vpack.c.bf16 %v4299_v50, %v4298_v2  ;;  %v1231_v10 = vmul.f32 %v1199_v8, %v10436_v63  ;;  %v4301_v63 = vld [vmem:[#allocation2 + $0xca] sm:$0xff]  ;;  %v1717_v1 = vpack.c.bf16 %v1678_v15, %v1677_v39  ;;  %v1681_v0 = vld [vmem:[#allocation2 + $0x2a1] sm:$0xff]  ;;  %v4307_v41 = vld [vmem:[#allocation2 + $0x112] sm:$0xff] }
  0xd9   : > { %8625 = vmatprep.subr.bf16.mxu0 %v9417_v30  ;;  %1517 = vst.msk [vmem:[#allocation2 + $0x301] sm:$0xff] %vm887_vm0, %v7461_v40  ;;  %vm1422_vm3 = vcmp.ge.f32.partialorder %v1390_v27, 1.0  ;;  %vm1423_vm4 = vcmp.ge.f32.partialorder %v1391_v51, 1.0  ;;  %v1328_v57 = vsub.f32 %v7433_v54, %v1230_v59  ;;  %v4357_v53 = vpack.c.bf16 %v4301_v63, %v4300_v60  ;;  %v1683_v21 = vld [vmem:[#allocation2 + $0x2b9] sm:$0xff]  ;;  %v4308_v5 = vld [vmem:[#allocation2 + $0x122] sm:$0xff]  ;;  %v4314_v8 = vld [vmem:[#allocation2 + $0x16a] sm:$0xff] }
  0xda   : > { %8234 = vmatmul.mubr.msk.bf16.gmra.mrb[36].mxu1 %vm887_vm0, %v1712_v55  ;;  %v7463_v28 = vsel %vm1422_vm3, 1.0, %v9478_v3  ;;  %v7464_v49 = vsel %vm1423_vm4, 1.0, %v9478_v3  ;;  %v1716_v55 = vpack.c.bf16 %v1676_v12, %v1675_v38  ;;  %v1329_v11 = vsub.f32 %v7434_v33, %v1231_v10  ;;  %v1686_v52 = vld [vmem:[#allocation2 + $0x2d9] sm:$0xff]  ;;  %v4311_v16 = vld [vmem:[#allocation2 + $0x142] sm:$0xff]  ;;  %v4317_v54 = vld [vmem:[#allocation2 + $0x18a] sm:$0xff] }
  0xdb   : > { %8237 = vmatprep.mubr.msk.bf16.mxu1 %vm887_vm0, %v1713_v20  ;;  %8562 = vmatmul.mubr.msk.bf16.gmra.mrb[4].mxu0 %vm887_vm0, %v4353_v29  ;;  %1519 = vst.msk [vmem:[#allocation2 + $0x319] sm:$0xff] %vm887_vm0, %v7463_v28  ;;  %1520 = vst.msk [vmem:[#allocation2 + $0x321] sm:$0xff] %vm887_vm0, %v7464_v49  ;;  %v1360_v9 = vmul.f32 0.5, %v1328_v57  ;;  %v4358_v7 = vpack.c.bf16 %v4303_v24, %v4302_v14  ;;  %v4304_v29 = vld [vmem:[#allocation2 + $0xf2] sm:$0xff]  ;;  %v1718_v47 = vpack.c.bf16 %v1680_v26, %v1679_v25  ;;  %v4310_v44 = vld [vmem:[#allocation2 + $0x13a] sm:$0xff] }
  0xdc   : > { %8565 = vmatprep.mubr.msk.bf16.mxu0 %vm887_vm0, %v4354_v62  ;;  %8626 = vmatpush3.bf16.msra.mxu0 %v9417_v30  ;;  %v1361_v20 = vmul.f32 0.5, %v1329_v11  ;;  %v1682_v30 = vld [vmem:[#allocation2 + $0x2a9] sm:$0xff]  ;;  %v4359_v19 = vpack.c.bf16 %v4305_v36, %v4304_v29  ;;  %v4360_v31 = vpack.c.bf16 %v4307_v41, %v4306_v43  ;;  %v1685_v46 = vld [vmem:[#allocation2 + $0x2d1] sm:$0xff]  ;;  %v10748_v40 = vpack.c.bf16 %v4311_v16, %v4310_v44  ;;  %v4313_v17 = vld [vmem:[#allocation2 + $0x15a] sm:$0xff] }
  0xdd   : > { %8627 = vmatprep.subr.bf16.mxu0 %v9419_v48  ;;  %v1392_v23 = vadd.f32 %v1360_v9, %v1230_v59  ;;  %v1719_v62 = vpack.c.bf16 %v1682_v30, %v1681_v0  ;;  %v1721_v22 = vpack.c.bf16 %v1686_v52, %v1685_v46  ;;  %v1687_v27 = vld [vmem:[#allocation2 + $0x2e9] sm:$0xff]  ;;  %v1688_v34 = vld [vmem:[#allocation2 + $0x2f1] sm:$0xff]  ;;  %v1528_v57 = vld [vmem:[#allocation2 + $0x20] sm:$0xff] }
  0xde   : > { %v1393_v42 = vadd.f32 %v1361_v20, %v1231_v10  ;;  %v1690_v18 = vld [vmem:[#allocation2 + $0x309] sm:$0xff]  ;;  %v1722_v2 = vpack.c.bf16 %v1688_v34, %v1687_v27  ;;  %v4312_v50 = vld [vmem:[#allocation2 + $0x152] sm:$0xff]  ;;  %v4322_v25 = vld [vmem:[#allocation2 + $0x1fa] sm:$0xff] }
  0xdf   : > { %vm1424_vm5 = vcmp.ge.f32.partialorder %v1392_v23, 1.0  ;;  %v10754_v28 = vpack.c.bf16 %v4313_v17, %v4312_v50  ;;  %v1526_v38 = vld [vmem:[#allocation2 + $0x8] sm:$0xff]  ;;  %v4319_v33 = vld [vmem:[#allocation2 + $0x1d2] sm:$0xff]  ;;  %v1533_v30 = vld [vmem:[#allocation2 + $0x60] sm:$0xff] }
  0xe0   : > { %8628 = vmatpush3.bf16.msra.mxu0 %v9419_v48  ;;  %vm1425_vm6 = vcmp.ge.f32.partialorder %v1393_v42, 1.0  ;;  %v7465_v37 = vsel %vm1424_vm5, 1.0, %v9478_v3  ;;  %v4309_v48 = vld [vmem:[#allocation2 + $0x12a] sm:$0xff]  ;;  %v4316_v12 = vld [vmem:[#allocation2 + $0x182] sm:$0xff]  ;;  %v1527_v63 = vld [vmem:[#allocation2 + $0x18] sm:$0xff] }
  0xe1   : > { %8693 = vmatprep.subr.bf16.mxu0 %v10729_v56  ;;  %v7466_v6 = vsel %vm1425_vm6, 1.0, %v9478_v3  ;;  %1521 = vst.msk [vmem:[#allocation2 + $0x331] sm:$0xff] %vm887_vm0, %v7465_v37  ;;  %v1720_v3 = vpack.c.bf16 %v1684_v13, %v1683_v21  ;;  %v4361_v32 = vpack.c.bf16 %v4309_v48, %v4308_v5  ;;  %v4318_v15 = vld [vmem:[#allocation2 + $0x1ca] sm:$0xff]  ;;  %v1530_v14 = vld [vmem:[#allocation2 + $0x38] sm:$0xff]  ;;  %v1590_v24 = vpack.c.bf16 %v1528_v57, %v1527_v63  ;;  %v4320_v11 = vld [vmem:[#allocation2 + $0x1e2] sm:$0xff] }
  0xe2   : > { %8238 = vmatmul.mubr.msk.bf16.gmra.mrb[40].mxu1 %vm887_vm0, %v1714_v45  ;;  %1522 = vst.msk [vmem:[#allocation2 + $0x339] sm:$0xff] %vm887_vm0, %v7466_v6  ;;  %v1689_v45 = vld [vmem:[#allocation2 + $0x301] sm:$0xff]  ;;  %v1691_v49 = vld [vmem:[#allocation2 + $0x319] sm:$0xff]  ;;  %v10765_v60 = vpack.c.bf16 %v4319_v33, %v4318_v15  ;;  %v4321_v9 = vld [vmem:[#allocation2 + $0x1ea] sm:$0xff] }
  0xe3   : > { %8241 = vmatprep.mubr.msk.bf16.mxu1 %vm887_vm0, %v1715_v4  ;;  %8566 = vmatmul.mubr.msk.bf16.gmra.mrb[8].mxu0 %vm887_vm0, %v4355_v58  ;;  %v1723_v51 = vpack.c.bf16 %v1690_v18, %v1689_v45  ;;  %v4315_v4 = vld [vmem:[#allocation2 + $0x172] sm:$0xff]  ;;  %v1692_v59 = vld [vmem:[#allocation2 + $0x321] sm:$0xff]  ;;  %v4326_v41 = vld [vmem:[#allocation2 + $0x22a] sm:$0xff] }
  0xe4   : > { %8569 = vmatprep.mubr.msk.bf16.mxu0 %vm887_vm0, %v4356_v61  ;;  %v10757_v58 = vpack.c.bf16 %v4315_v4, %v4314_v8  ;;  %v1525_v61 = vld [vmem:[#allocation2] sm:$0xff]  ;;  %v1724_v10 = vpack.c.bf16 %v1692_v59, %v1691_v49  ;;  %v9418_v20 = vld [vmem:[%s11912_s2 + $0x48] sm:$0xff]   ;;  %v1532_v42 = vld [vmem:[#allocation2 + $0x50] sm:$0xff] }
  0xe5   : > { %v1589_v39 = vpack.c.bf16 %v1526_v38, %v1525_v61  ;;  %v4323_v26 = vld [vmem:[#allocation2 + $0x202] sm:$0xff]  ;;  %v9420_v36 = vld [vmem:[%s11912_s2 + $0x50] sm:$0xff]   ;;  %v1538_v52 = vld [vmem:[#allocation2 + $0x98] sm:$0xff] }
  0xe6   : > { %v10779_v0 = vpack.c.bf16 %v4323_v26, %v4322_v25  ;;  %v1531_v23 = vld [vmem:[#allocation2 + $0x48] sm:$0xff]  ;;  %v4327_v6 = vld [vmem:[#allocation2 + $0x232] sm:$0xff]  ;;  %v1536_v13 = vld [vmem:[#allocation2 + $0x80] sm:$0xff] }
  0xe7   : > { %v1534_v29 = vld [vmem:[#allocation2 + $0x68] sm:$0xff]  ;;  %v10791_v37 = vpack.c.bf16 %v1532_v42, %v1531_v23  ;;  %v10802_v21 = vpack.c.bf16 %v4327_v6, %v4326_v41  ;;  %v1537_v46 = vld [vmem:[#allocation2 + $0x90] sm:$0xff]  ;;  %v4330_v16 = vld [vmem:[#allocation2 + $0x25a] sm:$0xff] }
  0xe8   : > { %v10793_v43 = vpack.c.bf16 %v1534_v29, %v1533_v30  ;;  %v4328_v48 = vld [vmem:[#allocation2 + $0x242] sm:$0xff]  ;;  %v10817_v44 = vpack.c.bf16 %v1538_v52, %v1537_v46  ;;  %v1540_v18 = vld [vmem:[#allocation2 + $0xb0] sm:$0xff]  ;;  %v4333_v8 = vld [vmem:[#allocation2 + $0x27a] sm:$0xff] }
  0xe9   : > { %v1539_v45 = vld [vmem:[#allocation2 + $0xa8] sm:$0xff]  ;;  %v4335_v59 = vld [vmem:[#allocation2 + $0x292] sm:$0xff]  ;;  %v4338_v57 = vld [vmem:[#allocation2 + $0x2ba] sm:$0xff] }
  0xea   : > { %8242 = vmatmul.mubr.msk.bf16.gmra.mrb[44].mxu1 %vm887_vm0, %v1716_v55  ;;  %v4365_v55 = vpack.c.bf16 %v4317_v54, %v4316_v12  ;;  %v1542_v50 = vld [vmem:[#allocation2 + $0xc8] sm:$0xff]  ;;  %v10832_v17 = vpack.c.bf16 %v1540_v18, %v1539_v45  ;;  %v1544_v12 = vld [vmem:[#allocation2 + $0xe0] sm:$0xff]  ;;  %v1545_v54 = vld [vmem:[#allocation2 + $0xf0] sm:$0xff] }
  0xeb   : > { %8245 = vmatprep.mubr.msk.bf16.mxu1 %vm887_vm0, %v1717_v1  ;;  %8570 = vmatmul.mubr.msk.bf16.gmra.mrb[12].mxu0 %vm887_vm0, %v4357_v53  ;;  %v1529_v1 = vld [vmem:[#allocation2 + $0x30] sm:$0xff]  ;;  %v4336_v33 = vld [vmem:[#allocation2 + $0x2a2] sm:$0xff]  ;;  %v4341_v42 = vld [vmem:[#allocation2 + $0x2da] sm:$0xff] }
  0xec   : > { %8573 = vmatprep.mubr.msk.bf16.mxu0 %vm887_vm0, %v4358_v7  ;;  %v10771_v53 = vpack.c.bf16 %v1530_v14, %v1529_v1  ;;  %v10776_v7 = vpack.c.bf16 %v4321_v9, %v4320_v11  ;;  %v4334_v49 = vld [vmem:[#allocation2 + $0x28a] sm:$0xff]  ;;  %v4339_v1 = vld [vmem:[#allocation2 + $0x2c2] sm:$0xff]  ;;  %v4340_v23 = vld [vmem:[#allocation2 + $0x2d2] sm:$0xff] }
  0xed   : > { %v10840_v38 = vpack.c.bf16 %v4335_v59, %v4334_v49  ;;  %v1547_v11 = vld [vmem:[#allocation2 + $0x108] sm:$0xff]  ;;  %v1548_v9 = vld [vmem:[#allocation2 + $0x110] sm:$0xff]  ;;  %v1549_v25 = vld [vmem:[#allocation2 + $0x120] sm:$0xff] }
  0xee   : > { %v1550_v26 = vld [vmem:[#allocation2 + $0x128] sm:$0xff]  ;;  %v1551_v41 = vld [vmem:[#allocation2 + $0x138] sm:$0xff]  ;;  %v1552_v6 = vld [vmem:[#allocation2 + $0x140] sm:$0xff] }
  0xef   : > { %v10866_v30 = vpack.c.bf16 %v1550_v26, %v1549_v25  ;;  %v4342_v29 = vld [vmem:[#allocation2 + $0x2ea] sm:$0xff]  ;;  %v4344_v46 = vld [vmem:[#allocation2 + $0x302] sm:$0xff]  ;;  %v4348_v49 = vld [vmem:[#allocation2 + $0x332] sm:$0xff] }
  0xf0   : > { %v4345_v52 = vld [vmem:[#allocation2 + $0x30a] sm:$0xff]  ;;  %v4349_v59 = vld [vmem:[#allocation2 + $0x33a] sm:$0xff] }
  0xf1   : > { %v1555_v18 = vld [vmem:[#allocation2 + $0x168] sm:$0xff]  ;;  %v1565_v26 = vld [vmem:[#allocation2 + $0x210] sm:$0xff] }
  0xf2   : > { %8246 = vmatmul.mubr.msk.bf16.gmra.mrb[48].mxu1 %vm887_vm0, %v1718_v47  ;;  %v4325_v47 = vld [vmem:[#allocation2 + $0x21a] sm:$0xff]  ;;  %v9423_v25 = vld [vmem:[%s11912_s2 + $0xe8] sm:$0xff]  }
  0xf3   : > { %8249 = vmatprep.mubr.msk.bf16.mxu1 %vm887_vm0, %v1719_v62  ;;  %8574 = vmatmul.mubr.msk.bf16.gmra.mrb[16].mxu0 %vm887_vm0, %v4359_v19  ;;  %v9422_v62 = vld [vmem:[%s11912_s2 + $0x58] sm:$0xff]  }
  0xf4   : > { %8577 = vmatprep.mubr.msk.bf16.mxu0 %vm887_vm0, %v4360_v31  ;;  %v1535_v31 = vld [vmem:[#allocation2 + $0x78] sm:$0xff] }
  0xf5   : > { %v10815_v5 = vpack.c.bf16 %v1536_v13, %v1535_v31  ;;  %v1554_v31 = vld [vmem:[#allocation2 + $0x158] sm:$0xff]  ;;  %v10880_v13 = vpack.c.bf16 %v1552_v6, %v1551_v41  ;;  %v1570_v41 = vld [vmem:[#allocation2 + $0x248] sm:$0xff] }
  0xfa   : > { %8250 = vmatmul.mubr.msk.bf16.gmra.mrb[52].mxu1 %vm887_vm0, %v1720_v3  ;;  %v10809_v3 = vld [vmem:[%s11912_s2 + $0x60] sm:$0xff]  }
  0xfb   : > { %8253 = vmatprep.mubr.msk.bf16.mxu1 %vm887_vm0, %v1721_v22  ;;  %8578 = vmatmul.mubr.msk.bf16.gmra.mrb[20].mxu0 %vm887_vm0, %v4361_v32  ;;  %v4329_v22 = vld [vmem:[#allocation2 + $0x24a] sm:$0xff]  ;;  %v4331_v32 = vld [vmem:[#allocation2 + $0x262] sm:$0xff] }
  0xfc   : > { %8581 = vmatprep.mubr.msk.bf16.mxu0 %vm887_vm0, %v10748_v40  ;;  %v10820_v27 = vpack.c.bf16 %v4329_v22, %v4328_v48  ;;  %v10824_v34 = vpack.c.bf16 %v4331_v32, %v4330_v16  ;;  %v4346_v22 = vld [vmem:[#allocation2 + $0x31a] sm:$0xff]  ;;  %v4347_v16 = vld [vmem:[#allocation2 + $0x322] sm:$0xff]  ;;  %v10884_v32 = vpack.c.bf16 %v4345_v52, %v4344_v46  ;;  %v1573_v46 = vld [vmem:[#allocation2 + $0x270] sm:$0xff] }
  0xfd   : > { %v10888_v45 = vpack.c.bf16 %v4347_v16, %v4346_v22  ;;  %v1574_v52 = vld [vmem:[#allocation2 + $0x278] sm:$0xff] }
  0xfe   : > { %v10955_v16 = vpack.c.bf16 %v1574_v52, %v1573_v46  ;;  %v9426_v52 = vld [vmem:[%s11912_s2 + $0x68] sm:$0xff]  }
 0x102   : > { %8254 = vmatmul.mubr.msk.bf16.gmra.mrb[56].mxu1 %vm887_vm0, %v1722_v2  ;;  %v1541_v2 = vld [vmem:[#allocation2 + $0xc0] sm:$0xff] }
 0x103   : > { %8257 = vmatprep.mubr.msk.bf16.mxu1 %vm887_vm0, %v1723_v51  ;;  %8582 = vmatmul.mubr.msk.bf16.gmra.mrb[24].mxu0 %vm887_vm0, %v10754_v28  ;;  %v4332_v51 = vld [vmem:[#allocation2 + $0x272] sm:$0xff]  ;;  %v10834_v4 = vpack.c.bf16 %v1542_v50, %v1541_v2 }
 0x104   : > { %8585 = vmatprep.mubr.msk.bf16.mxu0 %vm887_vm0, %v10757_v58  ;;  %v10836_v61 = vpack.c.bf16 %v4333_v8, %v4332_v51  ;;  %v1556_v2 = vld [vmem:[#allocation2 + $0x170] sm:$0xff]  ;;  %v1558_v51 = vld [vmem:[#allocation2 + $0x1b8] sm:$0xff] }
 0x105   : > { %v1557_v50 = vld [vmem:[#allocation2 + $0x1b0] sm:$0xff]  ;;  %v10896_v8 = vpack.c.bf16 %v1556_v2, %v1555_v18  ;;  %v1575_v18 = vld [vmem:[#allocation2 + $0x288] sm:$0xff] }
 0x106   : > { %v1576_v2 = vld [vmem:[#allocation2 + $0x290] sm:$0xff] }
 0x10a   : > { %8258 = vmatmul.mubr.msk.bf16.gmra.mrb[60].mxu1 %vm887_vm0, %v1724_v10  ;;  %v1543_v10 = vld [vmem:[#allocation2 + $0xd8] sm:$0xff] }
 0x10b   : > { %8269 = vmatprep.mubr.msk.bf16.mxu1 %vm887_vm0, %v1589_v39  ;;  %8586 = vmatmul.mubr.msk.bf16.gmra.mrb[28].mxu0 %vm887_vm0, %v4365_v55  ;;  %v1546_v39 = vld [vmem:[#allocation2 + $0xf8] sm:$0xff]  ;;  %v10848_v15 = vpack.c.bf16 %v1544_v12, %v1543_v10  ;;  %v4337_v55 = vld [vmem:[#allocation2 + $0x2aa] sm:$0xff]  ;;  %v1605_v10 = vpack.c.bf16 %v1558_v51, %v1557_v50  ;;  %v4381_v12 = vpack.c.bf16 %v4349_v59, %v4348_v49  ;;  %v1577_v50 = vld [vmem:[#allocation2 + $0x2a0] sm:$0xff] }
 0x10c   : > { %8589 = vmatprep.mubr.msk.bf16.mxu0 %vm887_vm0, %v10765_v60  ;;  %v10850_v63 = vpack.c.bf16 %v1546_v39, %v1545_v54  ;;  %v10852_v14 = vpack.c.bf16 %v4337_v55, %v4336_v33  ;;  %v1559_v54 = vld [vmem:[#allocation2 + $0x1c8] sm:$0xff]  ;;  %v1560_v39 = vld [vmem:[#allocation2 + $0x1d0] sm:$0xff]  ;;  %v1561_v33 = vld [vmem:[#allocation2 + $0x1e0] sm:$0xff] }
 0x10d   : > { %v1562_v55 = vld [vmem:[#allocation2 + $0x1e8] sm:$0xff]  ;;  %v1579_v49 = vld [vmem:[#allocation2 + $0x2b8] sm:$0xff]  ;;  %v1580_v59 = vld [vmem:[#allocation2 + $0x2c0] sm:$0xff] }
 0x10e   : > { %v1578_v51 = vld [vmem:[#allocation2 + $0x2a8] sm:$0xff] }
 0x112   : > { %8270 = vmatmul.mubr.msk.bf16.vlgmr.msra.gmra.mrb[0].mxu1 %vm887_vm0, %v1590_v24  ;;  %v10856_v24 = vpack.c.bf16 %v4339_v1, %v4338_v57  ;;  %v1606_v57 = vpack.c.bf16 %v1560_v39, %v1559_v54  ;;  %v10904_v1 = vpack.c.bf16 %v1562_v55, %v1561_v33  ;;  %v1583_v54 = vld [vmem:[#allocation2 + $0x2e8] sm:$0xff]  ;;  %v1584_v39 = vld [vmem:[#allocation2 + $0x2f0] sm:$0xff]  ;;  %v1585_v33 = vld [vmem:[#allocation2 + $0x300] sm:$0xff] }
 0x113   : > { %8334 = vmatpush3.bf16.msra.mxu1 %v10579_v35  ;;  %8273 = vmatprep.mubr.msk.bf16.mxu1 %vm887_vm0, %v10771_v53  ;;  %v4324_v35 = vld [vmem:[#allocation2 + $0x212] sm:$0xff]  ;;  %v1586_v55 = vld [vmem:[#allocation2 + $0x308] sm:$0xff] }
 0x114   : > { %8335 = vmatprep.subr.bf16.mxu1 %v9418_v20  ;;  %8590 = vmatmul.mubr.msk.bf16.gmra.mrb[32].mxu0 %vm887_vm0, %v10776_v7  ;;  %v10798_v19 = vpack.c.bf16 %v4325_v47, %v4324_v35  ;;  %v10868_v35 = vpack.c.bf16 %v4341_v42, %v4340_v23  ;;  %v1566_v23 = vld [vmem:[#allocation2 + $0x218] sm:$0xff] }
 0x115   : > { %8593 = vmatprep.mubr.msk.bf16.mxu0 %vm887_vm0, %v10779_v0  ;;  %v10919_v42 = vpack.c.bf16 %v1566_v23, %v1565_v26  ;;  %v1588_v26 = vld [vmem:[#allocation2 + $0x320] sm:$0xff]  ;;  %v2553_v23 = vld [vmem:[#allocation2 + $0xa] sm:$0xff] }
 0x117   : > { %8336 = vmatpush3.bf16.msra.mxu1 %v9418_v20  ;;  %v10864_v20 = vpack.c.bf16 %v1548_v9, %v1547_v11  ;;  %v1563_v11 = vld [vmem:[#allocation2 + $0x1f8] sm:$0xff]  ;;  %v1564_v9 = vld [vmem:[#allocation2 + $0x200] sm:$0xff] }
 0x118   : > { %8337 = vmatprep.subr.bf16.mxu1 %v9420_v36 }
 0x11a   : > { %8274 = vmatmul.mubr.msk.bf16.gmra.mrb[4].mxu1 %vm887_vm0, %v10791_v37 }
 0x11b   : > { %8277 = vmatprep.mubr.msk.bf16.mxu1 %vm887_vm0, %v10793_v43  ;;  %8338 = vmatpush3.bf16.msra.mxu1 %v9420_v36  ;;  %v4343_v36 = vld [vmem:[#allocation2 + $0x2f2] sm:$0xff] }
 0x11c   : > { %8339 = vmatprep.subr.bf16.mxu1 %v9422_v62  ;;  %8594 = vmatmul.mubr.msk.bf16.gmra.mrb[36].mxu0 %vm887_vm0, %v10798_v19  ;;  %v10872_v47 = vpack.c.bf16 %v4343_v36, %v4342_v29  ;;  %v9425_v29 = vld [vmem:[%s11912_s2 + $0xf0] sm:$0xff]   ;;  %v1569_v36 = vld [vmem:[#allocation2 + $0x240] sm:$0xff] }
 0x11d   : > { %8597 = vmatprep.mubr.msk.bf16.mxu0 %vm887_vm0, %v10802_v21 }
 0x11f   : > { %8340 = vmatpush3.bf16.msra.mxu1 %v9422_v62  ;;  %v1553_v62 = vld [vmem:[#allocation2 + $0x150] sm:$0xff] }
 0x120   : > { %8405 = vmatprep.subr.bf16.mxu1 %v10809_v3  ;;  %v10882_v48 = vpack.c.bf16 %v1554_v31, %v1553_v62  ;;  %v10937_v62 = vpack.c.bf16 %v1570_v41, %v1569_v36  ;;  %v10942_v31 = vld [vmem:[%s11912_s2 + $0x100] sm:$0xff]  }
 0x121   : > { %v2554_v36 = vld [vmem:[#allocation2 + $0x1a] sm:$0xff]  ;;  %v2555_v41 = vld [vmem:[#allocation2 + $0x22] sm:$0xff] }
 0x122   : > { %8278 = vmatmul.mubr.msk.bf16.gmra.mrb[8].mxu1 %vm887_vm0, %v10815_v5 }
 0x123   : > { %8281 = vmatprep.mubr.msk.bf16.mxu1 %vm887_vm0, %v10817_v44 }
 0x124   : > { %8598 = vmatmul.mubr.msk.bf16.gmra.mrb[40].mxu0 %vm887_vm0, %v10820_v27 }
 0x125   : > { %8601 = vmatprep.mubr.msk.bf16.mxu0 %vm887_vm0, %v10824_v34 }
 0x12a   : > { %8282 = vmatmul.mubr.msk.bf16.gmra.mrb[12].mxu1 %vm887_vm0, %v10832_v17 }
 0x12b   : > { %8285 = vmatprep.mubr.msk.bf16.mxu1 %vm887_vm0, %v10834_v4 }
 0x12c   : > { %8602 = vmatmul.mubr.msk.bf16.gmra.mrb[44].mxu0 %vm887_vm0, %v10836_v61 }
 0x12d   : > { %8605 = vmatprep.mubr.msk.bf16.mxu0 %vm887_vm0, %v10840_v38 }
 0x132   : > { %8286 = vmatmul.mubr.msk.bf16.gmra.mrb[16].mxu1 %vm887_vm0, %v10848_v15 }
 0x133   : > { %8289 = vmatprep.mubr.msk.bf16.mxu1 %vm887_vm0, %v10850_v63 }
 0x134   : > { %8606 = vmatmul.mubr.msk.bf16.gmra.mrb[48].mxu0 %vm887_vm0, %v10852_v14 }
 0x135   : > { %8609 = vmatprep.mubr.msk.bf16.mxu0 %vm887_vm0, %v10856_v24 }
 0x13a   : > { %8290 = vmatmul.mubr.msk.bf16.gmra.mrb[20].mxu1 %vm887_vm0, %v10864_v20 }
 0x13b   : > { %8293 = vmatprep.mubr.msk.bf16.mxu1 %vm887_vm0, %v10866_v30 }
 0x13c   : > { %8610 = vmatmul.mubr.msk.bf16.gmra.mrb[52].mxu0 %vm887_vm0, %v10868_v35 }
 0x13d   : > { %8613 = vmatprep.mubr.msk.bf16.mxu0 %vm887_vm0, %v10872_v47 }
 0x142   : > { %8294 = vmatmul.mubr.msk.bf16.gmra.mrb[24].mxu1 %vm887_vm0, %v10880_v13 }
 0x143   : > { %8297 = vmatprep.mubr.msk.bf16.mxu1 %vm887_vm0, %v10882_v48 }
 0x144   : > { %8614 = vmatmul.mubr.msk.bf16.gmra.mrb[56].mxu0 %vm887_vm0, %v10884_v32 }
 0x145   : > { %8617 = vmatprep.mubr.msk.bf16.mxu0 %vm887_vm0, %v10888_v45 }
 0x14a   : > { %8298 = vmatmul.mubr.msk.bf16.gmra.mrb[28].mxu1 %vm887_vm0, %v10896_v8 }
 0x14b   : > { %8301 = vmatprep.mubr.msk.bf16.mxu1 %vm887_vm0, %v1605_v10  ;;  %v1581_v10 = vld [vmem:[#allocation2 + $0x2d0] sm:$0xff] }
 0x14c   : > { %8618 = vmatmul.mubr.msk.bf16.gmra.mrb[60].mxu0 %vm887_vm0, %v4381_v12  ;;  %v1582_v12 = vld [vmem:[#allocation2 + $0x2d8] sm:$0xff] }
 0x14d   : > { %8629 = vmatprep.mubr.msk.bf16.mxu0 %vm887_vm0, %v10771_v53  ;;  %v10917_v53 = vpack.c.bf16 %v1564_v9, %v1563_v11  ;;  %v4894_v11 = vld [vmem:[#allocation2 + $0x188] sm:$0xff] }
 0x152   : > { %8302 = vmatmul.mubr.msk.bf16.gmra.mrb[32].mxu1 %vm887_vm0, %v1606_v57  ;;  %v4893_v57 = vld [vmem:[#allocation2 + $0x180] sm:$0xff] }
 0x153   : > { %8305 = vmatprep.mubr.msk.bf16.mxu1 %vm887_vm0, %v10904_v1  ;;  %v10995_v9 = vpack.c.bf16 %v4894_v11, %v4893_v57  ;;  %v2569_v57 = vld [vmem:[#allocation2 + $0xca] sm:$0xff] }
 0x154   : > { %8630 = vmatmul.mubr.msk.bf16.vlgmr.msra.gmra.mrb[0].mxu0 %vm887_vm0, %v10791_v37  ;;  %v1568_v37 = vld [vmem:[#allocation2 + $0x230] sm:$0xff] }
 0x155   : > { %8694 = vmatpush3.bf16.msra.mxu0 %v10729_v56  ;;  %8633 = vmatprep.mubr.msk.bf16.mxu0 %vm887_vm0, %v10793_v43  ;;  %v1567_v56 = vld [vmem:[#allocation2 + $0x228] sm:$0xff]  ;;  %v9427_v43 = vld [vmem:[%s11912_s2 + $0xf8] sm:$0xff]  }
 0x156   : > { %8695 = vmatprep.subr.bf16.mxu0 %v9423_v25  ;;  %v10935_v6 = vpack.c.bf16 %v1568_v37, %v1567_v56  ;;  %v4896_v56 = vld [vmem:[#allocation2 + $0x1a0] sm:$0xff] }
 0x159   : > { %8696 = vmatpush3.bf16.msra.mxu0 %v9423_v25  ;;  %v1587_v25 = vld [vmem:[#allocation2 + $0x318] sm:$0xff] }
 0x15a   : > { %8306 = vmatmul.mubr.msk.bf16.gmra.mrb[36].mxu1 %vm887_vm0, %v10917_v53  ;;  %8697 = vmatprep.subr.bf16.mxu0 %v9425_v29 }
 0x15b   : > { %8309 = vmatprep.mubr.msk.bf16.mxu1 %vm887_vm0, %v10919_v42 }
 0x15c   : > { %8634 = vmatmul.mubr.msk.bf16.gmra.mrb[4].mxu0 %vm887_vm0, %v10815_v5  ;;  %v1571_v5 = vld [vmem:[#allocation2 + $0x258] sm:$0xff] }
 0x15d   : > { %8637 = vmatprep.mubr.msk.bf16.mxu0 %vm887_vm0, %v10817_v44  ;;  %8698 = vmatpush3.bf16.msra.mxu0 %v9425_v29  ;;  %v1572_v44 = vld [vmem:[#allocation2 + $0x260] sm:$0xff]  ;;  %v4895_v29 = vld [vmem:[#allocation2 + $0x198] sm:$0xff] }
 0x15e   : > { %8699 = vmatprep.subr.bf16.mxu0 %v9427_v43  ;;  %v10953_v22 = vpack.c.bf16 %v1572_v44, %v1571_v5  ;;  %v2556_v5 = vld [vmem:[#allocation2 + $0x32] sm:$0xff]  ;;  %v2557_v44 = vld [vmem:[#allocation2 + $0x3a] sm:$0xff] }
 0x15f   : > { %v11011_v46 = vpack.c.bf16 %v2557_v44, %v2556_v5  ;;  %v2584_v5 = vld [vmem:[#allocation2 + $0x1b2] sm:$0xff]  ;;  %v2585_v44 = vld [vmem:[#allocation2 + $0x1ba] sm:$0xff] }
 0x161   : > { %8700 = vmatpush3.bf16.msra.mxu0 %v9427_v43  ;;  %v4944_v43 = vpack.c.bf16 %v4896_v56, %v4895_v29  ;;  %v2573_v29 = vld [vmem:[#allocation2 + $0xfa] sm:$0xff]  ;;  %v2574_v56 = vld [vmem:[#allocation2 + $0x10a] sm:$0xff] }
 0x162   : > { %8310 = vmatmul.mubr.msk.bf16.gmra.mrb[40].mxu1 %vm887_vm0, %v10935_v6  ;;  %8765 = vmatprep.subr.bf16.mxu0 %v10942_v31 }
 0x163   : > { %8313 = vmatprep.mubr.msk.bf16.mxu1 %vm887_vm0, %v10937_v62 }
 0x164   : > { %8638 = vmatmul.mubr.msk.bf16.gmra.mrb[8].mxu0 %vm887_vm0, %v10832_v17  ;;  %v10965_v17 = vpack.c.bf16 %v1576_v2, %v1575_v18  ;;  %v2558_v18 = vld [vmem:[#allocation2 + $0x4a] sm:$0xff]  ;;  %v2559_v2 = vld [vmem:[#allocation2 + $0x52] sm:$0xff] }
 0x165   : > { %8641 = vmatprep.mubr.msk.bf16.mxu0 %vm887_vm0, %v10834_v4  ;;  %v10967_v4 = vpack.c.bf16 %v1578_v51, %v1577_v50  ;;  %v2560_v50 = vld [vmem:[#allocation2 + $0x62] sm:$0xff]  ;;  %v2561_v51 = vld [vmem:[#allocation2 + $0x6a] sm:$0xff] }
 0x16a   : > { %8314 = vmatmul.mubr.msk.bf16.gmra.mrb[44].mxu1 %vm887_vm0, %v10953_v22 }
 0x16b   : > { %8317 = vmatprep.mubr.msk.bf16.mxu1 %vm887_vm0, %v10955_v16 }
 0x16c   : > { %8642 = vmatmul.mubr.msk.bf16.gmra.mrb[12].mxu0 %vm887_vm0, %v10848_v15  ;;  %v10977_v15 = vpack.c.bf16 %v1580_v59, %v1579_v49  ;;  %v11027_v49 = vpack.c.bf16 %v2559_v2, %v2558_v18  ;;  %v9430_v59 = vld [vmem:[%s11912_s2 + $0x78] sm:$0xff]  }
 0x16d   : > { %8645 = vmatprep.mubr.msk.bf16.mxu0 %vm887_vm0, %v10850_v63  ;;  %v10979_v63 = vpack.c.bf16 %v1582_v12, %v1581_v10  ;;  %v2563_v10 = vld [vmem:[#allocation2 + $0x82] sm:$0xff]  ;;  %v2565_v12 = vld [vmem:[#allocation2 + $0x9a] sm:$0xff] }
 0x16e   : > { %v5444_v18 = vld [vmem:[#allocation2 + $0x39] sm:$0xff] }
 0x172   : > { %8318 = vmatmul.mubr.msk.bf16.gmra.mrb[48].mxu1 %vm887_vm0, %v10965_v17 }
 0x173   : > { %8321 = vmatprep.mubr.msk.bf16.mxu1 %vm887_vm0, %v10967_v4 }
 0x174   : > { %8646 = vmatmul.mubr.msk.bf16.gmra.mrb[16].mxu0 %vm887_vm0, %v10864_v20  ;;  %v10989_v20 = vpack.c.bf16 %v1584_v39, %v1583_v54 }
 0x175   : > { %8649 = vmatprep.mubr.msk.bf16.mxu0 %vm887_vm0, %v10866_v30  ;;  %v10991_v30 = vpack.c.bf16 %v1586_v55, %v1585_v33  ;;  %v11049_v33 = vld [vmem:[%s11912_s2 + $0x80] sm:$0xff]  }
 0x176   : > { %v2568_v55 = vld [vmem:[#allocation2 + $0xc2] sm:$0xff] }
 0x17a   : > { %8322 = vmatmul.mubr.msk.bf16.gmra.mrb[52].mxu1 %vm887_vm0, %v10977_v15 }
 0x17b   : > { %8325 = vmatprep.mubr.msk.bf16.mxu1 %vm887_vm0, %v10979_v63 }
 0x17c   : > { %8650 = vmatmul.mubr.msk.bf16.gmra.mrb[20].mxu0 %vm887_vm0, %v10880_v13  ;;  %v2552_v13 = vld [vmem:[#allocation2 + $0x2] sm:$0xff] }
 0x17d   : > { %8653 = vmatprep.mubr.msk.bf16.mxu0 %vm887_vm0, %v10882_v48  ;;  %v11003_v48 = vpack.c.bf16 %v1588_v26, %v1587_v25  ;;  %v2616_v37 = vpack.c.bf16 %v2553_v23, %v2552_v13  ;;  %v11062_v25 = vpack.c.bf16 %v2569_v57, %v2568_v55  ;;  %v2570_v26 = vld [vmem:[#allocation2 + $0xda] sm:$0xff]  ;;  %v2571_v13 = vld [vmem:[#allocation2 + $0xe2] sm:$0xff]  ;;  %v2572_v23 = vld [vmem:[#allocation2 + $0xf2] sm:$0xff] }
 0x17e   : > { %v5454_v55 = vld [vmem:[#allocation2 + $0xb1] sm:$0xff]  ;;  %v5455_v57 = vld [vmem:[#allocation2 + $0xc1] sm:$0xff] }
 0x182   : > { %8326 = vmatmul.mubr.msk.bf16.gmra.mrb[56].mxu1 %vm887_vm0, %v10989_v20 }
 0x183   : > { %8329 = vmatprep.mubr.msk.bf16.mxu1 %vm887_vm0, %v10991_v30 }
 0x184   : > { %8654 = vmatmul.mubr.msk.bf16.gmra.mrb[24].mxu0 %vm887_vm0, %v10896_v8  ;;  %v2617_v8 = vpack.c.bf16 %v2555_v41, %v2554_v36  ;;  %v2577_v36 = vld [vmem:[#allocation2 + $0x12a] sm:$0xff]  ;;  %v4926_v41 = vld [vmem:[#allocation2 + $0x338] sm:$0xff] }
 0x185   : > { %8657 = vmatprep.mubr.msk.bf16.mxu0 %vm887_vm0, %v10995_v9 }
 0x18a   : > { %8330 = vmatmul.mubr.msk.bf16.gmra.mrb[60].mxu1 %vm887_vm0, %v11003_v48 }
 0x18b   : > { %8341 = vmatprep.mubr.msk.bf16.mxu1 %vm887_vm0, %v2616_v37  ;;  %v2575_v37 = vld [vmem:[#allocation2 + $0x112] sm:$0xff] }
 0x18c   : > { %8658 = vmatmul.mubr.msk.bf16.gmra.mrb[28].mxu0 %vm887_vm0, %v4944_v43  ;;  %v2576_v43 = vld [vmem:[#allocation2 + $0x122] sm:$0xff] }
 0x18d   : > { %8661 = vmatprep.mubr.msk.bf16.mxu0 %vm887_vm0, %v10904_v1  ;;  %v9428_v1 = vld [vmem:[%s11912_s2 + $0x70] sm:$0xff]  }
 0x192   : > { %8342 = vmatmul.mubr.msk.bf16.vlgmr.msra.gmra.mrb[0].mxu1 %vm887_vm0, %v2617_v8  ;;  %v2632_v8 = vpack.c.bf16 %v2585_v44, %v2584_v5  ;;  %v5467_v44 = vld [vmem:[#allocation2 + $0x151] sm:$0xff] }
 0x193   : > { %8406 = vmatpush3.bf16.msra.mxu1 %v10809_v3  ;;  %8345 = vmatprep.mubr.msk.bf16.mxu1 %vm887_vm0, %v11011_v46  ;;  %v11029_v3 = vpack.c.bf16 %v2561_v51, %v2560_v50  ;;  %v5447_v50 = vld [vmem:[#allocation2 + $0x61] sm:$0xff]  ;;  %v5448_v51 = vld [vmem:[#allocation2 + $0x69] sm:$0xff] }
 0x194   : > { %8407 = vmatprep.subr.bf16.mxu1 %v9426_v52  ;;  %8662 = vmatmul.mubr.msk.bf16.gmra.mrb[32].mxu0 %vm887_vm0, %v10917_v53  ;;  %v2562_v53 = vld [vmem:[#allocation2 + $0x7a] sm:$0xff] }
 0x195   : > { %8665 = vmatprep.mubr.msk.bf16.mxu0 %vm887_vm0, %v10919_v42  ;;  %v2564_v42 = vld [vmem:[#allocation2 + $0x92] sm:$0xff]  ;;  %v11042_v54 = vpack.c.bf16 %v2563_v10, %v2562_v53  ;;  %v5450_v10 = vld [vmem:[#allocation2 + $0x81] sm:$0xff] }
 0x196   : > { %v11044_v39 = vpack.c.bf16 %v2565_v12, %v2564_v42  ;;  %v5449_v53 = vld [vmem:[#allocation2 + $0x79] sm:$0xff]  ;;  %v5451_v42 = vld [vmem:[#allocation2 + $0x91] sm:$0xff] }
 0x197   : > { %8408 = vmatpush3.bf16.msra.mxu1 %v9426_v52  ;;  %v5443_v52 = vld [vmem:[#allocation2 + $0x31] sm:$0xff]  ;;  %v5452_v12 = vld [vmem:[#allocation2 + $0x99] sm:$0xff] }
 0x198   : > { %8409 = vmatprep.subr.bf16.mxu1 %v9428_v1 }
 0x19a   : > { %8346 = vmatmul.mubr.msk.bf16.gmra.mrb[4].mxu1 %vm887_vm0, %v11027_v49 }
 0x19b   : > { %8349 = vmatprep.mubr.msk.bf16.mxu1 %vm887_vm0, %v11029_v3  ;;  %8410 = vmatpush3.bf16.msra.mxu1 %v9428_v1 }
 0x19c   : > { %8411 = vmatprep.subr.bf16.mxu1 %v9430_v59  ;;  %8666 = vmatmul.mubr.msk.bf16.gmra.mrb[36].mxu0 %vm887_vm0, %v10935_v6  ;;  %v2566_v6 = vld [vmem:[#allocation2 + $0xaa] sm:$0xff] }
 0x19d   : > { %8669 = vmatprep.mubr.msk.bf16.mxu0 %vm887_vm0, %v10937_v62  ;;  %v2567_v62 = vld [vmem:[#allocation2 + $0xb2] sm:$0xff] }
 0x19e   : > { %v11060_v11 = vpack.c.bf16 %v2567_v62, %v2566_v6  ;;  %v5511_v6 = vpack.c.bf16 %v5452_v12, %v5451_v42  ;;  %v5453_v62 = vld [vmem:[#allocation2 + $0xa9] sm:$0xff]  ;;  %v5477_v12 = vld [vmem:[#allocation2 + $0x1f9] sm:$0xff] }
 0x19f   : > { %8412 = vmatpush3.bf16.msra.mxu1 %v9430_v59  ;;  %v5509_v59 = vpack.c.bf16 %v5448_v51, %v5447_v50  ;;  %v5475_v51 = vld [vmem:[#allocation2 + $0x1e1] sm:$0xff] }
 0x1a0   : > { %8837 = vmatprep.subr.bf16.mxu1 %v11049_v33 }
 0x1a2   : > { %8350 = vmatmul.mubr.msk.bf16.gmra.mrb[8].mxu1 %vm887_vm0, %v11042_v54 }
 0x1a3   : > { %8353 = vmatprep.mubr.msk.bf16.mxu1 %vm887_vm0, %v11044_v39 }
 0x1a4   : > { %8670 = vmatmul.mubr.msk.bf16.gmra.mrb[40].mxu0 %vm887_vm0, %v10953_v22  ;;  %v11072_v22 = vpack.c.bf16 %v2571_v13, %v2570_v26  ;;  %v5456_v26 = vld [vmem:[#allocation2 + $0xc9] sm:$0xff]  ;;  %v5457_v13 = vld [vmem:[#allocation2 + $0xd9] sm:$0xff] }
 0x1a5   : > { %8673 = vmatprep.mubr.msk.bf16.mxu0 %vm887_vm0, %v10955_v16  ;;  %v11074_v16 = vpack.c.bf16 %v2573_v29, %v2572_v23  ;;  %v5458_v23 = vld [vmem:[#allocation2 + $0xe1] sm:$0xff]  ;;  %v5459_v29 = vld [vmem:[#allocation2 + $0xf1] sm:$0xff] }
 0x1aa   : > { %8354 = vmatmul.mubr.msk.bf16.gmra.mrb[12].mxu1 %vm887_vm0, %v11060_v11 }
 0x1ab   : > { %8357 = vmatprep.mubr.msk.bf16.mxu1 %vm887_vm0, %v11062_v25 }
 0x1ac   : > { %8674 = vmatmul.mubr.msk.bf16.gmra.mrb[44].mxu0 %vm887_vm0, %v10965_v17  ;;  %v11084_v17 = vpack.c.bf16 %v2575_v37, %v2574_v56  ;;  %v5460_v56 = vld [vmem:[#allocation2 + $0xf9] sm:$0xff]  ;;  %v5514_v37 = vpack.c.bf16 %v5458_v23, %v5457_v13  ;;  %v5481_v23 = vld [vmem:[#allocation2 + $0x229] sm:$0xff] }
 0x1ad   : > { %8677 = vmatprep.mubr.msk.bf16.mxu0 %vm887_vm0, %v10967_v4  ;;  %v11086_v4 = vpack.c.bf16 %v2577_v36, %v2576_v43  ;;  %v5515_v43 = vpack.c.bf16 %v5460_v56, %v5459_v29  ;;  %v5463_v36 = vld [vmem:[#allocation2 + $0x121] sm:$0xff] }
 0x1ae   : > { %v5483_v56 = vld [vmem:[#allocation2 + $0x241] sm:$0xff] }
 0x1b2   : > { %8358 = vmatmul.mubr.msk.bf16.gmra.mrb[16].mxu1 %vm887_vm0, %v11072_v22 }
 0x1b3   : > { %8361 = vmatprep.mubr.msk.bf16.mxu1 %vm887_vm0, %v11074_v16 }
 0x1b4   : > { %8678 = vmatmul.mubr.msk.bf16.gmra.mrb[48].mxu0 %vm887_vm0, %v10977_v15  ;;  %v4925_v15 = vld [vmem:[#allocation2 + $0x330] sm:$0xff] }
 0x1b5   : > { %8681 = vmatprep.mubr.msk.bf16.mxu0 %vm887_vm0, %v10979_v63  ;;  %v11098_v63 = vpack.c.bf16 %v4926_v41, %v4925_v15  ;;  %v5464_v15 = vld [vmem:[#allocation2 + $0x129] sm:$0xff] }
 0x1b6   : > { %v5517_v5 = vpack.c.bf16 %v5464_v15, %v5463_v36  ;;  %v3140_v36 = vld [vmem:[#allocation2 + $0x90] sm:$0xff]  ;;  %v3141_v15 = vld [vmem:[#allocation2 + $0x98] sm:$0xff] }
 0x1ba   : > { %8362 = vmatmul.mubr.msk.bf16.gmra.mrb[20].mxu1 %vm887_vm0, %v11084_v17 }
 0x1bb   : > { %8365 = vmatprep.mubr.msk.bf16.mxu1 %vm887_vm0, %v11086_v4 }
 0x1bc   : > { %8682 = vmatmul.mubr.msk.bf16.gmra.mrb[52].mxu0 %vm887_vm0, %v10989_v20  ;;  %v4927_v20 = vld [vmem:[#allocation2 + $0x348] sm:$0xff] }
 0x1bd   : > { %8685 = vmatprep.mubr.msk.bf16.mxu0 %vm887_vm0, %v10991_v30  ;;  %v4928_v30 = vld [vmem:[#allocation2 + $0x350] sm:$0xff] }
 0x1be   : > { %v4960_v2 = vpack.c.bf16 %v4928_v30, %v4927_v20  ;;  %v5468_v20 = vld [vmem:[#allocation2 + $0x159] sm:$0xff] }
 0x1c2   : > { %8366 = vmatmul.mubr.msk.bf16.gmra.mrb[24].mxu1 %vm887_vm0, %v10748_v40  ;;  %v5507_v40 = vpack.c.bf16 %v5444_v18, %v5443_v52  ;;  %v5471_v52 = vld [vmem:[#allocation2 + $0x181] sm:$0xff]  ;;  %v5472_v18 = vld [vmem:[#allocation2 + $0x189] sm:$0xff] }
 0x1c3   : > { %8369 = vmatprep.mubr.msk.bf16.mxu1 %vm887_vm0, %v10754_v28  ;;  %v5445_v28 = vld [vmem:[#allocation2 + $0x49] sm:$0xff] }
 0x1c4   : > { %8686 = vmatmul.mubr.msk.bf16.gmra.mrb[56].mxu0 %vm887_vm0, %v11003_v48  ;;  %v5446_v48 = vld [vmem:[#allocation2 + $0x51] sm:$0xff] }
 0x1c5   : > { %8689 = vmatprep.mubr.msk.bf16.mxu0 %vm887_vm0, %v11098_v63  ;;  %v5508_v1 = vpack.c.bf16 %v5446_v48, %v5445_v28  ;;  %v3131_v28 = vld [vmem:[#allocation2 + $0x20] sm:$0xff] }
 0x1c6   : > { %v5474_v48 = vld [vmem:[#allocation2 + $0x1a1] sm:$0xff] }
 0x1ca   : > { %8370 = vmatmul.mubr.msk.bf16.gmra.mrb[28].mxu1 %vm887_vm0, %v10757_v58  ;;  %v9431_v58 = vld [vmem:[%s11912_s2 + $0x108] sm:$0xff]  }
 0x1cb   : > { %8373 = vmatprep.mubr.msk.bf16.mxu1 %vm887_vm0, %v2632_v8  ;;  %v5519_v8 = vpack.c.bf16 %v5468_v20, %v5467_v44  ;;  %v5485_v44 = vld [vmem:[#allocation2 + $0x259] sm:$0xff]  ;;  %v5486_v20 = vld [vmem:[#allocation2 + $0x261] sm:$0xff] }
 0x1cc   : > { %8690 = vmatmul.mubr.msk.bf16.gmra.mrb[60].mxu0 %vm887_vm0, %v4960_v2 }
 0x1cd   : > { %8701 = vmatprep.mubr.msk.bf16.mxu0 %vm887_vm0, %v5507_v40  ;;  %v5521_v40 = vpack.c.bf16 %v5472_v18, %v5471_v52  ;;  %v3144_v18 = vld [vmem:[#allocation2 + $0xc0] sm:$0xff] }
 0x1d2   : > { %8374 = vmatmul.mubr.msk.bf16.gmra.mrb[32].mxu1 %vm887_vm0, %v10765_v60  ;;  %v9432_v60 = vld [vmem:[%s11912_s2 + $0x110] sm:$0xff]  }
 0x1d3   : > { %8377 = vmatprep.mubr.msk.bf16.mxu1 %vm887_vm0, %v10776_v7  ;;  %v5510_v7 = vpack.c.bf16 %v5450_v10, %v5449_v53  ;;  %v3134_v53 = vld [vmem:[#allocation2 + $0x48] sm:$0xff]  ;;  %v3135_v10 = vld [vmem:[#allocation2 + $0x50] sm:$0xff] }
 0x1d4   : > { %8702 = vmatmul.mubr.msk.bf16.vlgmr.msra.gmra.mrb[0].mxu0 %vm887_vm0, %v5508_v1  ;;  %v5476_v1 = vld [vmem:[#allocation2 + $0x1e9] sm:$0xff] }
 0x1d5   : > { %8766 = vmatpush3.bf16.msra.mxu0 %v10942_v31  ;;  %8705 = vmatprep.mubr.msk.bf16.mxu0 %vm887_vm0, %v5509_v59  ;;  %v9433_v31 = vld [vmem:[%s11912_s2 + $0x118] sm:$0xff]  }
 0x1d6   : > { %8767 = vmatprep.subr.bf16.mxu0 %v9431_v58 }
 0x1d9   : > { %8768 = vmatpush3.bf16.msra.mxu0 %v9431_v58  ;;  %v3133_v58 = vld [vmem:[#allocation2 + $0x38] sm:$0xff] }
 0x1da   : > { %8378 = vmatmul.mubr.msk.bf16.gmra.mrb[36].mxu1 %vm887_vm0, %v10779_v0  ;;  %8769 = vmatprep.subr.bf16.mxu0 %v9432_v60  ;;  %v5512_v0 = vpack.c.bf16 %v5454_v55, %v5453_v62  ;;  %v3136_v55 = vld [vmem:[#allocation2 + $0x60] sm:$0xff] }
 0x1db   : > { %8381 = vmatprep.mubr.msk.bf16.mxu1 %vm887_vm0, %v10798_v19  ;;  %v5513_v19 = vpack.c.bf16 %v5456_v26, %v5455_v57  ;;  %v3137_v57 = vld [vmem:[#allocation2 + $0x68] sm:$0xff]  ;;  %v3138_v26 = vld [vmem:[#allocation2 + $0x78] sm:$0xff] }
 0x1dc   : > { %8706 = vmatmul.mubr.msk.bf16.gmra.mrb[4].mxu0 %vm887_vm0, %v5510_v7  ;;  %v3196_v7 = vpack.c.bf16 %v3135_v10, %v3134_v53  ;;  %v3197_v13 = vpack.c.bf16 %v3137_v57, %v3136_v55  ;;  %v3149_v53 = vld [vmem:[#allocation2 + $0xf8] sm:$0xff]  ;;  %v3150_v10 = vld [vmem:[#allocation2 + $0x108] sm:$0xff] }
 0x1dd   : > { %8709 = vmatprep.mubr.msk.bf16.mxu0 %vm887_vm0, %v5511_v6  ;;  %8770 = vmatpush3.bf16.msra.mxu0 %v9432_v60  ;;  %v5478_v60 = vld [vmem:[#allocation2 + $0x201] sm:$0xff]  ;;  %v5479_v6 = vld [vmem:[#allocation2 + $0x211] sm:$0xff]  ;;  %v5496_v55 = vld [vmem:[#allocation2 + $0x2d9] sm:$0xff] }
 0x1de   : > { %8771 = vmatprep.subr.bf16.mxu0 %v9433_v31 }
 0x1e1   : > { %8772 = vmatpush3.bf16.msra.mxu0 %v9433_v31  ;;  %v5480_v31 = vld [vmem:[#allocation2 + $0x219] sm:$0xff] }
 0x1e2   : > { %8382 = vmatmul.mubr.msk.bf16.gmra.mrb[40].mxu1 %vm887_vm0, %v10802_v21  ;;  %v5461_v21 = vld [vmem:[#allocation2 + $0x109] sm:$0xff]  ;;  %v11174_v62 = vpack.c.bf16 %v5480_v31, %v5479_v6  ;;  %v5495_v31 = vld [vmem:[#allocation2 + $0x2d1] sm:$0xff] }
 0x1e3   : > { %8385 = vmatprep.mubr.msk.bf16.mxu1 %vm887_vm0, %v10820_v27  ;;  %v5462_v27 = vld [vmem:[#allocation2 + $0x111] sm:$0xff] }
 0x1e4   : > { %8710 = vmatmul.mubr.msk.bf16.gmra.mrb[8].mxu0 %vm887_vm0, %v5512_v0  ;;  %v5516_v41 = vpack.c.bf16 %v5462_v27, %v5461_v21  ;;  %v3139_v0 = vld [vmem:[#allocation2 + $0x80] sm:$0xff] }
 0x1e5   : > { %8713 = vmatprep.mubr.msk.bf16.mxu0 %vm887_vm0, %v5513_v19  ;;  %v9435_v19 = vld [vmem:[%s11912_s2 + $0x88] sm:$0xff]   ;;  %v3198_v29 = vpack.c.bf16 %v3139_v0, %v3138_v26  ;;  %v11224_v26 = vpack.c.bf16 %v5496_v55, %v5495_v31  ;;  %v3152_v0 = vld [vmem:[#allocation2 + $0x120] sm:$0xff]  ;;  %v3171_v31 = vld [vmem:[#allocation2 + $0x230] sm:$0xff] }
 0x1ea   : > { %8386 = vmatmul.mubr.msk.bf16.gmra.mrb[44].mxu1 %vm887_vm0, %v10824_v34  ;;  %v5465_v34 = vld [vmem:[#allocation2 + $0x139] sm:$0xff] }
 0x1eb   : > { %8389 = vmatprep.mubr.msk.bf16.mxu1 %vm887_vm0, %v10836_v61  ;;  %v5466_v61 = vld [vmem:[#allocation2 + $0x141] sm:$0xff] }
 0x1ec   : > { %8714 = vmatmul.mubr.msk.bf16.gmra.mrb[12].mxu0 %vm887_vm0, %v5514_v37  ;;  %v5518_v30 = vpack.c.bf16 %v5466_v61, %v5465_v34  ;;  %v5484_v37 = vld [vmem:[#allocation2 + $0x249] sm:$0xff]  ;;  %v9437_v34 = vld [vmem:[%s11912_s2 + $0x98] sm:$0xff]   ;;  %v3199_v61 = vpack.c.bf16 %v3141_v15, %v3140_v36 }
 0x1ed   : > { %8717 = vmatprep.mubr.msk.bf16.mxu0 %vm887_vm0, %v5515_v43  ;;  %v9436_v43 = vld [vmem:[%s11912_s2 + $0x90] sm:$0xff]   ;;  %v11191_v27 = vpack.c.bf16 %v5484_v37, %v5483_v56 }
 0x1ee   : > { %v5498_v56 = vld [vmem:[#allocation2 + $0x2f1] sm:$0xff]  ;;  %v5500_v36 = vld [vmem:[#allocation2 + $0x309] sm:$0xff] }
 0x1f2   : > { %8390 = vmatmul.mubr.msk.bf16.gmra.mrb[48].mxu1 %vm887_vm0, %v10840_v38  ;;  %v5469_v38 = vld [vmem:[#allocation2 + $0x169] sm:$0xff] }
 0x1f3   : > { %8393 = vmatprep.mubr.msk.bf16.mxu1 %vm887_vm0, %v10852_v14  ;;  %v5470_v14 = vld [vmem:[#allocation2 + $0x171] sm:$0xff] }
 0x1f4   : > { %8718 = vmatmul.mubr.msk.bf16.gmra.mrb[16].mxu0 %vm887_vm0, %v5516_v41  ;;  %v5520_v2 = vpack.c.bf16 %v5470_v14, %v5469_v38  ;;  %v3142_v41 = vld [vmem:[#allocation2 + $0xa8] sm:$0xff]  ;;  %v5488_v38 = vld [vmem:[#allocation2 + $0x279] sm:$0xff]  ;;  %v11201_v14 = vpack.c.bf16 %v5486_v20, %v5485_v44  ;;  %v3159_v44 = vld [vmem:[#allocation2 + $0x170] sm:$0xff] }
 0x1f5   : > { %8721 = vmatprep.mubr.msk.bf16.mxu0 %vm887_vm0, %v5517_v5  ;;  %v3143_v5 = vld [vmem:[#allocation2 + $0xb0] sm:$0xff] }
 0x1fa   : > { %8394 = vmatmul.mubr.msk.bf16.gmra.mrb[52].mxu1 %vm887_vm0, %v10856_v24  ;;  %v3130_v24 = vld [vmem:[#allocation2 + $0x18] sm:$0xff] }
 0x1fb   : > { %8397 = vmatprep.mubr.msk.bf16.mxu1 %vm887_vm0, %v10868_v35  ;;  %v5473_v35 = vld [vmem:[#allocation2 + $0x199] sm:$0xff]  ;;  %v3194_v50 = vpack.c.bf16 %v3131_v28, %v3130_v24 }
 0x1fc   : > { %8722 = vmatmul.mubr.msk.bf16.gmra.mrb[20].mxu0 %vm887_vm0, %v5518_v30  ;;  %v5522_v59 = vpack.c.bf16 %v5474_v48, %v5473_v35  ;;  %v3200_v30 = vpack.c.bf16 %v3143_v5, %v3142_v41  ;;  %v3147_v24 = vld [vmem:[#allocation2 + $0xe0] sm:$0xff]  ;;  %v5489_v35 = vld [vmem:[#allocation2 + $0x289] sm:$0xff]  ;;  %v5490_v48 = vld [vmem:[#allocation2 + $0x291] sm:$0xff] }
 0x1fd   : > { %8725 = vmatprep.mubr.msk.bf16.mxu0 %vm887_vm0, %v5519_v8  ;;  %v5487_v8 = vld [vmem:[#allocation2 + $0x271] sm:$0xff] }
 0x1fe   : > { %v11204_v52 = vpack.c.bf16 %v5488_v38, %v5487_v8  ;;  %v3156_v5 = vld [vmem:[#allocation2 + $0x150] sm:$0xff]  ;;  %v5502_v8 = vld [vmem:[#allocation2 + $0x321] sm:$0xff] }
 0x202   : > { %8398 = vmatmul.mubr.msk.bf16.gmra.mrb[56].mxu1 %vm887_vm0, %v10872_v47  ;;  %v11165_v47 = vpack.c.bf16 %v5476_v1, %v5475_v51  ;;  %v5491_v51 = vld [vmem:[#allocation2 + $0x2a1] sm:$0xff]  ;;  %v5492_v1 = vld [vmem:[#allocation2 + $0x2a9] sm:$0xff] }
 0x203   : > { %8401 = vmatprep.mubr.msk.bf16.mxu1 %vm887_vm0, %v10884_v32  ;;  %v3132_v32 = vld [vmem:[#allocation2 + $0x30] sm:$0xff] }
 0x204   : > { %8726 = vmatmul.mubr.msk.bf16.gmra.mrb[24].mxu0 %vm887_vm0, %v5520_v2  ;;  %v3195_v42 = vpack.c.bf16 %v3133_v58, %v3132_v32  ;;  %v3145_v2 = vld [vmem:[#allocation2 + $0xc8] sm:$0xff]  ;;  %v11214_v32 = vpack.c.bf16 %v5492_v1, %v5491_v51  ;;  %v3148_v58 = vld [vmem:[#allocation2 + $0xf0] sm:$0xff] }
 0x205   : > { %8729 = vmatprep.mubr.msk.bf16.mxu0 %vm887_vm0, %v5521_v40  ;;  %v3146_v40 = vld [vmem:[#allocation2 + $0xd8] sm:$0xff]  ;;  %v3201_v28 = vpack.c.bf16 %v3145_v2, %v3144_v18 }
 0x206   : > { %v5503_v18 = vld [vmem:[#allocation2 + $0x331] sm:$0xff]  ;;  %v5504_v2 = vld [vmem:[#allocation2 + $0x339] sm:$0xff] }
 0x20a   : > { %8402 = vmatmul.mubr.msk.bf16.gmra.mrb[60].mxu1 %vm887_vm0, %v10888_v45  ;;  %v11171_v45 = vpack.c.bf16 %v5478_v60, %v5477_v12  ;;  %v3203_v12 = vpack.c.bf16 %v3149_v53, %v3148_v58  ;;  %v5493_v60 = vld [vmem:[#allocation2 + $0x2b9] sm:$0xff]  ;;  %v3165_v53 = vld [vmem:[#allocation2 + $0x1e8] sm:$0xff] }
 0x20b   : > { %8413 = vmatprep.mubr.msk.bf16.mxu1 %vm887_vm0, %v3194_v50  ;;  %v3202_v50 = vpack.c.bf16 %v3147_v24, %v3146_v40  ;;  %v11244_v24 = vpack.c.bf16 %v5504_v2, %v5503_v18  ;;  %v3164_v58 = vld [vmem:[#allocation2 + $0x1e0] sm:$0xff]  ;;  %v6045_v18 = vld [vmem:[#allocation2 + $0x152] sm:$0xff] }
 0x20c   : > { %8730 = vmatmul.mubr.msk.bf16.gmra.mrb[28].mxu0 %vm887_vm0, %v5522_v59  ;;  %v11211_v59 = vpack.c.bf16 %v5490_v48, %v5489_v35  ;;  %v3163_v35 = vld [vmem:[#allocation2 + $0x1d0] sm:$0xff]  ;;  %v6046_v2 = vld [vmem:[#allocation2 + $0x15a] sm:$0xff] }
 0x20d   : > { %8733 = vmatprep.mubr.msk.bf16.mxu0 %vm887_vm0, %v11165_v47  ;;  %v5505_v48 = vld [vmem:[#allocation2 + $0x349] sm:$0xff] }
 0x212   : > { %8414 = vmatmul.mubr.msk.bf16.vlgmr.msra.gmra.mrb[0].mxu1 %vm887_vm0, %v3195_v42  ;;  %v3151_v42 = vld [vmem:[#allocation2 + $0x110] sm:$0xff] }
 0x213   : > { %8841 = vmatpush3.bf16.msra.mxu1 %v11049_v33  ;;  %8417 = vmatprep.mubr.msk.bf16.mxu1 %vm887_vm0, %v3196_v7  ;;  %v5482_v33 = vld [vmem:[#allocation2 + $0x231] sm:$0xff]  ;;  %v5494_v7 = vld [vmem:[#allocation2 + $0x2c1] sm:$0xff]  ;;  %v3204_v6 = vpack.c.bf16 %v3151_v42, %v3150_v10 }
 0x214   : > { %8838 = vmatprep.subr.bf16.mxu1 %v9435_v19  ;;  %8734 = vmatmul.mubr.msk.bf16.gmra.mrb[32].mxu0 %vm887_vm0, %v11171_v45  ;;  %v11188_v21 = vpack.c.bf16 %v5482_v33, %v5481_v23  ;;  %v11221_v57 = vpack.c.bf16 %v5494_v7, %v5493_v60  ;;  %v3155_v23 = vld [vmem:[#allocation2 + $0x140] sm:$0xff]  ;;  %v3166_v10 = vld [vmem:[#allocation2 + $0x1f8] sm:$0xff]  ;;  %v3168_v7 = vld [vmem:[#allocation2 + $0x210] sm:$0xff] }
 0x215   : > { %8737 = vmatprep.mubr.msk.bf16.mxu0 %vm887_vm0, %v11174_v62  ;;  %v3167_v42 = vld [vmem:[#allocation2 + $0x200] sm:$0xff] }
 0x216   : > { %v3212_v60 = vpack.c.bf16 %v3167_v42, %v3166_v10  ;;  %v6049_v10 = vld [vmem:[#allocation2 + $0x182] sm:$0xff]  ;;  %v6050_v42 = vld [vmem:[#allocation2 + $0x18a] sm:$0xff] }
 0x217   : > { %8842 = vmatpush3.bf16.msra.mxu1 %v9435_v19  ;;  %v3153_v19 = vld [vmem:[#allocation2 + $0x128] sm:$0xff] }
 0x218   : > { %8839 = vmatprep.subr.bf16.mxu1 %v9436_v43  ;;  %v3205_v33 = vpack.c.bf16 %v3153_v19, %v3152_v0  ;;  %v3173_v19 = vld [vmem:[#allocation2 + $0x248] sm:$0xff] }
 0x21a   : > { %8418 = vmatmul.mubr.msk.bf16.gmra.mrb[4].mxu1 %vm887_vm0, %v3197_v13  ;;  %v3154_v13 = vld [vmem:[#allocation2 + $0x138] sm:$0xff] }
 0x21b   : > { %8421 = vmatprep.mubr.msk.bf16.mxu1 %vm887_vm0, %v3198_v29  ;;  %8843 = vmatpush3.bf16.msra.mxu1 %v9436_v43  ;;  %v5497_v29 = vld [vmem:[#allocation2 + $0x2e9] sm:$0xff]  ;;  %v3206_v37 = vpack.c.bf16 %v3155_v23, %v3154_v13  ;;  %v5499_v43 = vld [vmem:[#allocation2 + $0x301] sm:$0xff]  ;;  %v3174_v13 = vld [vmem:[#allocation2 + $0x258] sm:$0xff] }
 0x21c   : > { %8840 = vmatprep.subr.bf16.mxu1 %v9437_v34  ;;  %8738 = vmatmul.mubr.msk.bf16.gmra.mrb[36].mxu0 %vm887_vm0, %v11188_v21  ;;  %v11231_v15 = vpack.c.bf16 %v5498_v56, %v5497_v29  ;;  %v11234_v41 = vpack.c.bf16 %v5500_v36, %v5499_v43  ;;  %v3175_v23 = vld [vmem:[#allocation2 + $0x260] sm:$0xff]  ;;  %v3177_v29 = vld [vmem:[#allocation2 + $0x278] sm:$0xff]  ;;  %v3178_v56 = vld [vmem:[#allocation2 + $0x288] sm:$0xff] }
 0x21d   : > { %8741 = vmatprep.mubr.msk.bf16.mxu0 %vm887_vm0, %v11191_v27  ;;  %v3181_v36 = vld [vmem:[#allocation2 + $0x2a8] sm:$0xff] }
 0x21f   : > { %8844 = vmatpush3.bf16.msra.mxu1 %v9437_v34  ;;  %v3157_v34 = vld [vmem:[#allocation2 + $0x158] sm:$0xff] }
 0x220   : > { %v3207_v20 = vpack.c.bf16 %v3157_v34, %v3156_v5  ;;  %v3182_v5 = vld [vmem:[#allocation2 + $0x2b8] sm:$0xff]  ;;  %v3183_v34 = vld [vmem:[#allocation2 + $0x2c0] sm:$0xff] }
 0x222   : > { %8422 = vmatmul.mubr.msk.bf16.gmra.mrb[8].mxu1 %vm887_vm0, %v3199_v61  ;;  %v3158_v61 = vld [vmem:[#allocation2 + $0x168] sm:$0xff] }
 0x223   : > { %8425 = vmatprep.mubr.msk.bf16.mxu1 %vm887_vm0, %v3200_v30  ;;  %v5501_v30 = vld [vmem:[#allocation2 + $0x319] sm:$0xff]  ;;  %v3208_v38 = vpack.c.bf16 %v3159_v44, %v3158_v61  ;;  %v3220_v61 = vpack.c.bf16 %v3183_v34, %v3182_v5 }
 0x224   : > { %8742 = vmatmul.mubr.msk.bf16.gmra.mrb[40].mxu0 %vm887_vm0, %v11201_v14  ;;  %v11241_v40 = vpack.c.bf16 %v5502_v8, %v5501_v30  ;;  %v3185_v44 = vld [vmem:[#allocation2 + $0x2d8] sm:$0xff]  ;;  %v3187_v30 = vld [vmem:[#allocation2 + $0x2f0] sm:$0xff] }
 0x225   : > { %8745 = vmatprep.mubr.msk.bf16.mxu0 %vm887_vm0, %v11204_v52  ;;  %v6043_v8 = vld [vmem:[#allocation2 + $0x13a] sm:$0xff]  ;;  %v6065_v5 = vld [vmem:[#allocation2 + $0x272] sm:$0xff] }
 0x226   : > { %v6066_v34 = vld [vmem:[#allocation2 + $0x27a] sm:$0xff] }
 0x22a   : > { %8426 = vmatmul.mubr.msk.bf16.gmra.mrb[12].mxu1 %vm887_vm0, %v3201_v28  ;;  %v3162_v28 = vld [vmem:[#allocation2 + $0x1c8] sm:$0xff] }
 0x22b   : > { %8429 = vmatprep.mubr.msk.bf16.mxu1 %vm887_vm0, %v3202_v50  ;;  %v5506_v50 = vld [vmem:[#allocation2 + $0x351] sm:$0xff]  ;;  %v3210_v51 = vpack.c.bf16 %v3163_v35, %v3162_v28  ;;  %v6097_v35 = vpack.c.bf16 %v6046_v2, %v6045_v18  ;;  %v6077_v18 = vld [vmem:[#allocation2 + $0x302] sm:$0xff] }
 0x22c   : > { %8746 = vmatmul.mubr.msk.bf16.gmra.mrb[44].mxu0 %vm887_vm0, %v11211_v59  ;;  %v5538_v1 = vpack.c.bf16 %v5506_v50, %v5505_v48  ;;  %v3188_v48 = vld [vmem:[#allocation2 + $0x300] sm:$0xff]  ;;  %v3189_v50 = vld [vmem:[#allocation2 + $0x308] sm:$0xff] }
 0x22d   : > { %8749 = vmatprep.mubr.msk.bf16.mxu0 %vm887_vm0, %v11214_v32  ;;  %v6078_v2 = vld [vmem:[#allocation2 + $0x30a] sm:$0xff] }
 0x232   : > { %8430 = vmatmul.mubr.msk.bf16.gmra.mrb[16].mxu1 %vm887_vm0, %v3203_v12  ;;  %v3211_v12 = vpack.c.bf16 %v3165_v53, %v3164_v58  ;;  %v6048_v58 = vld [vmem:[#allocation2 + $0x172] sm:$0xff] }
 0x233   : > { %8433 = vmatprep.mubr.msk.bf16.mxu1 %vm887_vm0, %v3204_v6  ;;  %v3169_v6 = vld [vmem:[#allocation2 + $0x218] sm:$0xff] }
 0x234   : > { %8750 = vmatmul.mubr.msk.bf16.gmra.mrb[48].mxu0 %vm887_vm0, %v11221_v57  ;;  %v3213_v55 = vpack.c.bf16 %v3169_v6, %v3168_v7  ;;  %v3740_v7 = vld [vmem:[#allocation2 + $0x1c9] sm:$0xff]  ;;  %v3741_v6 = vld [vmem:[#allocation2 + $0x1d1] sm:$0xff] }
 0x235   : > { %8753 = vmatprep.mubr.msk.bf16.mxu0 %vm887_vm0, %v11224_v26 }
 0x23a   : > { %8434 = vmatmul.mubr.msk.bf16.gmra.mrb[20].mxu1 %vm887_vm0, %v3205_v33  ;;  %v3216_v33 = vpack.c.bf16 %v3175_v23, %v3174_v13  ;;  %v6055_v23 = vld [vmem:[#allocation2 + $0x1fa] sm:$0xff] }
 0x23b   : > { %8437 = vmatprep.mubr.msk.bf16.mxu1 %vm887_vm0, %v3206_v37  ;;  %v3179_v37 = vld [vmem:[#allocation2 + $0x290] sm:$0xff] }
 0x23c   : > { %8754 = vmatmul.mubr.msk.bf16.gmra.mrb[52].mxu0 %vm887_vm0, %v11231_v15  ;;  %v3218_v43 = vpack.c.bf16 %v3179_v37, %v3178_v56  ;;  %v6060_v37 = vld [vmem:[#allocation2 + $0x232] sm:$0xff] }
 0x23d   : > { %8757 = vmatprep.mubr.msk.bf16.mxu0 %vm887_vm0, %v11234_v41 }
 0x242   : > { %8438 = vmatmul.mubr.msk.bf16.gmra.mrb[24].mxu1 %vm887_vm0, %v3207_v20  ;;  %v3186_v20 = vld [vmem:[#allocation2 + $0x2e8] sm:$0xff] }
 0x243   : > { %8441 = vmatprep.mubr.msk.bf16.mxu1 %vm887_vm0, %v3208_v38  ;;  %v6044_v38 = vld [vmem:[#allocation2 + $0x142] sm:$0xff] }
 0x244   : > { %8758 = vmatmul.mubr.msk.bf16.gmra.mrb[56].mxu0 %vm887_vm0, %v11241_v40  ;;  %v6096_v28 = vpack.c.bf16 %v6044_v38, %v6043_v8  ;;  %v6074_v8 = vld [vmem:[#allocation2 + $0x2da] sm:$0xff] }
 0x245   : > { %8761 = vmatprep.mubr.msk.bf16.mxu0 %vm887_vm0, %v11244_v24 }
 0x24a   : > { %8442 = vmatmul.mubr.msk.bf16.gmra.mrb[28].mxu1 %vm887_vm0, %v10995_v9  ;;  %v3170_v9 = vld [vmem:[#allocation2 + $0x228] sm:$0xff] }
 0x24b   : > { %8445 = vmatprep.mubr.msk.bf16.mxu1 %vm887_vm0, %v3210_v51  ;;  %v3214_v0 = vpack.c.bf16 %v3171_v31, %v3170_v9  ;;  %v3190_v51 = vld [vmem:[#allocation2 + $0x318] sm:$0xff]  ;;  %v6052_v31 = vld [vmem:[#allocation2 + $0x1a2] sm:$0xff] }
 0x24c   : > { %8762 = vmatmul.mubr.msk.bf16.gmra.mrb[60].mxu0 %vm887_vm0, %v5538_v1  ;;  %v3191_v1 = vld [vmem:[#allocation2 + $0x320] sm:$0xff] }
 0x24d   : > { %8773 = vmatprep.mubr.msk.bf16.mxu0 %vm887_vm0, %v11011_v46  ;;  %v3172_v46 = vld [vmem:[#allocation2 + $0x240] sm:$0xff]  ;;  %v3224_v53 = vpack.c.bf16 %v3191_v1, %v3190_v51 }
 0x24e   : > { %v6051_v9 = vld [vmem:[#allocation2 + $0x19a] sm:$0xff] }
 0x252   : > { %8446 = vmatmul.mubr.msk.bf16.gmra.mrb[32].mxu1 %vm887_vm0, %v3211_v12 }
 0x253   : > { %8449 = vmatprep.mubr.msk.bf16.mxu1 %vm887_vm0, %v3212_v60  ;;  %v6099_v60 = vpack.c.bf16 %v6050_v42, %v6049_v10 }
 0x254   : > { %8774 = vmatmul.mubr.msk.bf16.vlgmr.msra.gmra.mrb[0].mxu0 %vm887_vm0, %v11027_v49  ;;  %v3215_v49 = vpack.c.bf16 %v3173_v19, %v3172_v46  ;;  %v6054_v46 = vld [vmem:[#allocation2 + $0x1ea] sm:$0xff]  ;;  %v6100_v19 = vpack.c.bf16 %v6052_v31, %v6051_v9 }
 0x255   : > { %8777 = vmatprep.mubr.msk.bf16.mxu0 %vm887_vm0, %v11029_v3  ;;  %v3176_v3 = vld [vmem:[#allocation2 + $0x270] sm:$0xff] }
 0x25a   : > { %8450 = vmatmul.mubr.msk.bf16.gmra.mrb[36].mxu1 %vm887_vm0, %v3213_v55  ;;  %v3788_v55 = vpack.c.bf16 %v3741_v6, %v3740_v7 }
 0x25b   : > { %8453 = vmatprep.mubr.msk.bf16.mxu1 %vm887_vm0, %v3214_v0  ;;  %v6053_v0 = vld [vmem:[#allocation2 + $0x1e2] sm:$0xff] }
 0x25c   : > { %8778 = vmatmul.mubr.msk.bf16.gmra.mrb[4].mxu0 %vm887_vm0, %v11042_v54  ;;  %v3217_v54 = vpack.c.bf16 %v3177_v29, %v3176_v3  ;;  %v6101_v13 = vpack.c.bf16 %v6054_v46, %v6053_v0  ;;  %v6058_v3 = vld [vmem:[#allocation2 + $0x21a] sm:$0xff] }
 0x25d   : > { %8781 = vmatprep.mubr.msk.bf16.mxu0 %vm887_vm0, %v11044_v39  ;;  %v3180_v39 = vld [vmem:[#allocation2 + $0x2a0] sm:$0xff] }
 0x262   : > { %8454 = vmatmul.mubr.msk.bf16.gmra.mrb[40].mxu1 %vm887_vm0, %v3215_v49  ;;  %v6056_v49 = vld [vmem:[#allocation2 + $0x202] sm:$0xff] }
 0x263   : > { %8457 = vmatprep.mubr.msk.bf16.mxu1 %vm887_vm0, %v3216_v33  ;;  %v6057_v33 = vld [vmem:[#allocation2 + $0x212] sm:$0xff]  ;;  %v6102_v29 = vpack.c.bf16 %v6056_v49, %v6055_v23 }
 0x264   : > { %8782 = vmatmul.mubr.msk.bf16.gmra.mrb[8].mxu0 %vm887_vm0, %v11060_v11  ;;  %v3219_v11 = vpack.c.bf16 %v3181_v36, %v3180_v39  ;;  %v6103_v56 = vpack.c.bf16 %v6058_v3, %v6057_v33 }
 0x265   : > { %8785 = vmatprep.mubr.msk.bf16.mxu0 %vm887_vm0, %v11062_v25  ;;  %v3184_v25 = vld [vmem:[#allocation2 + $0x2d0] sm:$0xff] }
 0x26a   : > { %8458 = vmatmul.mubr.msk.bf16.gmra.mrb[44].mxu1 %vm887_vm0, %v3217_v54  ;;  %v6061_v54 = vld [vmem:[#allocation2 + $0x242] sm:$0xff] }
 0x26b   : > { %8461 = vmatprep.mubr.msk.bf16.mxu1 %vm887_vm0, %v3218_v43  ;;  %v6062_v43 = vld [vmem:[#allocation2 + $0x24a] sm:$0xff] }
 0x26c   : > { %8786 = vmatmul.mubr.msk.bf16.gmra.mrb[12].mxu0 %vm887_vm0, %v11072_v22  ;;  %v3221_v22 = vpack.c.bf16 %v3185_v44, %v3184_v25  ;;  %v6105_v36 = vpack.c.bf16 %v6062_v43, %v6061_v54  ;;  %v6069_v25 = vld [vmem:[#allocation2 + $0x2a2] sm:$0xff]  ;;  %v6070_v44 = vld [vmem:[#allocation2 + $0x2aa] sm:$0xff] }
 0x26d   : > { %8789 = vmatprep.mubr.msk.bf16.mxu0 %vm887_vm0, %v11074_v16  ;;  %v3222_v16 = vpack.c.bf16 %v3187_v30, %v3186_v20  ;;  %v6109_v30 = vpack.c.bf16 %v6070_v44, %v6069_v25 }
 0x272   : > { %8462 = vmatmul.mubr.msk.bf16.gmra.mrb[48].mxu1 %vm887_vm0, %v3219_v11 }
 0x273   : > { %8465 = vmatprep.mubr.msk.bf16.mxu1 %vm887_vm0, %v3220_v61  ;;  %v6107_v61 = vpack.c.bf16 %v6066_v34, %v6065_v5 }
 0x274   : > { %8790 = vmatmul.mubr.msk.bf16.gmra.mrb[16].mxu0 %vm887_vm0, %v11084_v17  ;;  %v3223_v17 = vpack.c.bf16 %v3189_v50, %v3188_v48  ;;  %v6081_v48 = vld [vmem:[#allocation2 + $0x332] sm:$0xff]  ;;  %v6082_v50 = vld [vmem:[#allocation2 + $0x33a] sm:$0xff] }
 0x275   : > { %8793 = vmatprep.mubr.msk.bf16.mxu0 %vm887_vm0, %v11086_v4  ;;  %v6047_v4 = vld [vmem:[#allocation2 + $0x16a] sm:$0xff]  ;;  %v6115_v1 = vpack.c.bf16 %v6082_v50, %v6081_v48 }
 0x276   : > { %v6098_v12 = vpack.c.bf16 %v6048_v58, %v6047_v4 }
 0x27a   : > { %8466 = vmatmul.mubr.msk.bf16.gmra.mrb[52].mxu1 %vm887_vm0, %v3221_v22  ;;  %v6073_v22 = vld [vmem:[#allocation2 + $0x2d2] sm:$0xff] }
 0x27b   : > { %8469 = vmatprep.mubr.msk.bf16.mxu1 %vm887_vm0, %v3222_v16  ;;  %v6111_v16 = vpack.c.bf16 %v6074_v8, %v6073_v22  ;;  %v6739_v8 = vld [vmem:[%s11409_s27] sm:$0xff] }
 0x27c   : > { %8794 = vmatmul.mubr.msk.bf16.gmra.mrb[20].mxu0 %vm887_vm0, %v6096_v28 }
 0x27d   : > { %8797 = vmatprep.mubr.msk.bf16.mxu0 %vm887_vm0, %v6097_v35  ;;  %v6113_v35 = vpack.c.bf16 %v6078_v2, %v6077_v18 }
 0x282   : > { %8470 = vmatmul.mubr.msk.bf16.gmra.mrb[56].mxu1 %vm887_vm0, %v3223_v17 }
 0x283   : > { %8473 = vmatprep.mubr.msk.bf16.mxu1 %vm887_vm0, %v3224_v53 }
 0x284   : > { %8798 = vmatmul.mubr.msk.bf16.gmra.mrb[24].mxu0 %vm887_vm0, %v6098_v12 }
 0x285   : > { %8801 = vmatprep.mubr.msk.bf16.mxu0 %vm887_vm0, %v6099_v60 }
 0x28a   : > { %8474 = vmatmul.mubr.msk.bf16.gmra.mrb[60].mxu1 %vm887_vm0, %v11098_v63  ;;  %v6059_v63 = vld [vmem:[#allocation2 + $0x22a] sm:$0xff] }
 0x28b   : > { %8517 = vmatprep.mubr.msk.bf16.mxu1 %vm887_vm0, %v3788_v55  ;;  %v6104_v39 = vpack.c.bf16 %v6060_v37, %v6059_v63 }
 0x28c   : > { %8802 = vmatmul.mubr.msk.bf16.gmra.mrb[28].mxu0 %vm887_vm0, %v6100_v19 }
 0x28d   : > { %8805 = vmatprep.mubr.msk.bf16.mxu0 %vm887_vm0, %v6101_v13 }
 0x292   : > { %8518 = vmatmul.mubr.msk.bf16.vlgmr.msra.gmra.mrb[32].mxu1 %vm887_vm0, %v11165_v47  ;;  %v6063_v47 = vld [vmem:[#allocation2 + $0x25a] sm:$0xff] }
 0x293   : > { %8521 = vmatprep.mubr.msk.bf16.mxu1 %vm887_vm0, %v11171_v45  ;;  %v6064_v45 = vld [vmem:[#allocation2 + $0x262] sm:$0xff] }
 0x294   : > { %8806 = vmatmul.mubr.msk.bf16.gmra.mrb[32].mxu0 %vm887_vm0, %v6102_v29  ;;  %v6106_v11 = vpack.c.bf16 %v6064_v45, %v6063_v47  ;;  %v11400_v45 = vld [vmem:[%s11913_s3] ss:$0 sm:$0xff] }
 0x295   : > { %8809 = vmatprep.mubr.msk.bf16.mxu0 %vm887_vm0, %v6103_v56 }
 0x29a   : > { %8522 = vmatmul.mubr.msk.bf16.gmra.mrb[36].mxu1 %vm887_vm0, %v11174_v62  ;;  %v6067_v62 = vld [vmem:[#allocation2 + $0x28a] sm:$0xff] }
 0x29b   : > { %8525 = vmatprep.mubr.msk.bf16.mxu1 %vm887_vm0, %v11188_v21  ;;  %v6068_v21 = vld [vmem:[#allocation2 + $0x292] sm:$0xff] }
 0x29c   : > { %8810 = vmatmul.mubr.msk.bf16.gmra.mrb[36].mxu0 %vm887_vm0, %v6104_v39  ;;  %v6108_v20 = vpack.c.bf16 %v6068_v21, %v6067_v62 }
 0x29d   : > { %8813 = vmatprep.mubr.msk.bf16.mxu0 %vm887_vm0, %v6105_v36 }
 0x2a2   : > { %8526 = vmatmul.mubr.msk.bf16.gmra.mrb[40].mxu1 %vm887_vm0, %v11191_v27  ;;  %v6071_v27 = vld [vmem:[#allocation2 + $0x2ba] sm:$0xff] }
 0x2a3   : > { %8529 = vmatprep.mubr.msk.bf16.mxu1 %vm887_vm0, %v11201_v14  ;;  %v6072_v14 = vld [vmem:[#allocation2 + $0x2c2] sm:$0xff] }
 0x2a4   : > { %8814 = vmatmul.mubr.msk.bf16.gmra.mrb[40].mxu0 %vm887_vm0, %v6106_v11  ;;  %v6110_v38 = vpack.c.bf16 %v6072_v14, %v6071_v27 }
 0x2a5   : > { %8817 = vmatprep.mubr.msk.bf16.mxu0 %vm887_vm0, %v6107_v61  ;;  %v11405_v61 = vld [vmem:[%s11914_s4] ss:$0 sm:$0xff] }
 0x2aa   : > { %8530 = vmatmul.mubr.msk.bf16.gmra.mrb[44].mxu1 %vm887_vm0, %v11204_v52  ;;  %v6075_v52 = vld [vmem:[#allocation2 + $0x2ea] sm:$0xff] }
 0x2ab   : > { %8533 = vmatprep.mubr.msk.bf16.mxu1 %vm887_vm0, %v11211_v59  ;;  %v6076_v59 = vld [vmem:[#allocation2 + $0x2f2] sm:$0xff] }
 0x2ac   : > { %8818 = vmatmul.mubr.msk.bf16.gmra.mrb[44].mxu0 %vm887_vm0, %v6108_v20  ;;  %v6112_v28 = vpack.c.bf16 %v6076_v59, %v6075_v52  ;;  %v6742_v52 = vld [vmem:[%s11409_s27 + $0x18] sm:$0xff] }
 0x2ad   : > { %8821 = vmatprep.mubr.msk.bf16.mxu0 %vm887_vm0, %v6109_v30  ;;  %v6741_v30 = vld [vmem:[%s11409_s27 + $0x10] sm:$0xff] }
 0x2b2   : > { %8534 = vmatmul.mubr.msk.bf16.gmra.mrb[48].mxu1 %vm887_vm0, %v11214_v32  ;;  %v6079_v32 = vld [vmem:[#allocation2 + $0x31a] sm:$0xff] }
 0x2b3   : > { %8537 = vmatprep.mubr.msk.bf16.mxu1 %vm887_vm0, %v11221_v57  ;;  %v6080_v57 = vld [vmem:[#allocation2 + $0x322] sm:$0xff] }
 0x2b4   : > { %8822 = vmatmul.mubr.msk.bf16.gmra.mrb[48].mxu0 %vm887_vm0, %v6110_v38  ;;  %v6114_v51 = vpack.c.bf16 %v6080_v57, %v6079_v32 }
 0x2b5   : > { %8825 = vmatprep.mubr.msk.bf16.mxu0 %vm887_vm0, %v6111_v16 }
 0x2ba   : > { %8538 = vmatmul.mubr.msk.bf16.gmra.mrb[52].mxu1 %vm887_vm0, %v11224_v26  ;;  %v6083_v26 = vld [vmem:[#allocation2 + $0x34a] sm:$0xff] }
 0x2bb   : > { %8541 = vmatprep.mubr.msk.bf16.mxu1 %vm887_vm0, %v11231_v15  ;;  %v6084_v15 = vld [vmem:[#allocation2 + $0x352] sm:$0xff] }
 0x2bc   : > { %8826 = vmatmul.mubr.msk.bf16.gmra.mrb[52].mxu0 %vm887_vm0, %v6112_v28  ;;  %v6116_v17 = vpack.c.bf16 %v6084_v15, %v6083_v26  ;;  %v6740_v28 = vld [vmem:[%s11409_s27 + $0x8] sm:$0xff] }
 0x2bd   : > { %8829 = vmatprep.mubr.msk.bf16.mxu0 %vm887_vm0, %v6113_v35 }
 0x2c2   : > { %8542 = vmatmul.mubr.msk.bf16.gmra.mrb[56].mxu1 %vm887_vm0, %v11234_v41 }
 0x2c3   : > { %8545 = vmatprep.mubr.msk.bf16.mxu1 %vm887_vm0, %v11241_v40 }
 0x2c4   : > { %8830 = vmatmul.mubr.msk.bf16.gmra.mrb[56].mxu0 %vm887_vm0, %v6114_v51 }
 0x2c5   : > { %8833 = vmatprep.mubr.msk.bf16.mxu0 %vm887_vm0, %v6115_v1 }
 0x2ca   : > { %8546 = vmatmul.mubr.msk.bf16.gmra.mrb[60].mxu1 %vm887_vm0, %v11244_v24 }
 0x2cc   : > { %8834 = vmatmul.mubr.msk.bf16.gmra.mrb[60].mxu0 %vm887_vm0, %v6116_v17 }
 0x2e5   : > { %v8415_v4 = vpop.f32.mrb[0].mxu1 }
 0x2e6   : > { %v3389_v58 = vpop.f32.mrb[1].mxu1 }
 0x2e7   : > { %v8416_v53 = vpop.f32.mrb[2].mxu1 }
 0x2e8   : > { %v3392_v41 = vpop.f32.mrb[3].mxu1 }
 0x2ed   : > { %v8419_v10 = vpop.f32.mrb[4].mxu1 }
 0x2ee   : > { %v3405_v42 = vpop.f32.mrb[5].mxu1 }
 0x2ef   : > { %v11345_v12 = vpop.f32.mrb[6].mxu1 }
 0x2f0   : > { %v11347_v40 = vpop.f32.mrb[7].mxu1 }
 0x2f5   : > { %v11349_v60 = vpop.f32.mrb[8].mxu1 }
 0x2f6   : > { %v11351_v7 = vpop.f32.mrb[9].mxu1 }
 0x2f7   : > { %v11353_v6 = vpop.f32.mrb[10].mxu1 }
 0x2f8   : > { %v11355_v9 = vpop.f32.mrb[11].mxu1 }
 0x2fd   : > { %v11357_v24 = vpop.f32.mrb[12].mxu1 }
 0x2fe   : > { %v11359_v31 = vpop.f32.mrb[13].mxu1 }
 0x2ff   : > { %v11361_v55 = vpop.f32.mrb[14].mxu1 }
 0x300   : > { %v11363_v0 = vpop.f32.mrb[15].mxu1 }
 0x305   : > { %v11365_v46 = vpop.f32.mrb[16].mxu1 }
 0x306   : > { %v11367_v19 = vpop.f32.mrb[17].mxu1 }
 0x307   : > { %v11369_v13 = vpop.f32.mrb[18].mxu1 }
 0x308   : > { %v11371_v23 = vpop.f32.mrb[19].mxu1 }
 0x30d   : > { %v11373_v49 = vpop.f32.mrb[20].mxu1 }
 0x30e   : > { %v11375_v33 = vpop.f32.mrb[21].mxu1 }
 0x30f   : > { %v11377_v3 = vpop.f32.mrb[22].mxu1 }
 0x310   : > { %v11379_v29 = vpop.f32.mrb[23].mxu1 }
 0x315   : > { %v11381_v56 = vpop.f32.mrb[24].mxu1 }
 0x316   : > { %v11383_v63 = vpop.f32.mrb[25].mxu1 }
 0x317   : > { %v11385_v37 = vpop.f32.mrb[26].mxu1 }
 0x318   : > { %v11387_v54 = vpop.f32.mrb[27].mxu1 }
 0x31d   : > { %v11389_v43 = vpop.f32.mrb[28].mxu1 }
 0x31e   : > { %v11391_v39 = vpop.f32.mrb[29].mxu1 }
 0x31f   : > { %v11393_v36 = vpop.f32.mrb[30].mxu1 }
 0x320   : > { %v11395_v47 = vpop.f32.mrb[31].mxu1 }
 0x327   : > { %v8775_v5 = vpop.f32.mrb[0].mxu0 }
 0x328   : > { %v8845_v34 = vadd.f32 %v8775_v5, %v8415_v4  ;;  %v6280_v11 = vpop.f32.mrb[1].mxu0 }
 0x329   : > { %v8846_v62 = vadd.f32 %v6280_v11, %v3389_v58  ;;  %v8776_v21 = vpop.f32.mrb[2].mxu0 }
 0x32a   : > { %v6607_v25 = vmul.f32 %v8845_v34, %v11400_v45  ;;  %v8847_v44 = vadd.f32 %v8776_v21, %v8416_v53  ;;  %v6283_v20 = vpop.f32.mrb[3].mxu0  ;;  %v6745_v53 = vld [vmem:[%s11409_s27 + $0x30] sm:$0xff] }
 0x32b   : > { %v6605_v27 = vmul.f32 %v8846_v62, %v11400_v45  ;;  %v8848_v14 = vadd.f32 %v6283_v20, %v3392_v41  ;;  %v6746_v62 = vld [vmem:[%s11409_s27 + $0x38] sm:$0xff] }
 0x32c   : > { %v6677_v22 = vadd.f32 %v11405_v61, %v6607_v25  ;;  %v6608_v38 = vmul.f32 %v8847_v44, %v11400_v45  ;;  %v6744_v44 = vld [vmem:[%s11409_s27 + $0x28] sm:$0xff] }
 0x32d   : > { %v6675_v16 = vadd.f32 %v11405_v61, %v6605_v27  ;;  %v6606_v59 = vmul.f32 %v8848_v14, %v11400_v45 }
 0x32e   : > { %v6805_v18 = vadd.f32 %v6741_v30, %v6677_v22  ;;  %v6678_v2 = vadd.f32 %v11405_v61, %v6608_v38 }
 0x32f   : > { %v6803_v35 = vadd.f32 %v6739_v8, %v6675_v16  ;;  %v6676_v32 = vadd.f32 %v11405_v61, %v6606_v59  ;;  %v8779_v57 = vpop.f32.mrb[4].mxu0 }
 0x330   : > { %6869 = vst.msk [vmem:[%s11423_s30 + $0x10] sm:$0xff] %vm887_vm0, %v6805_v18  ;;  %v6806_v48 = vadd.f32 %v6742_v52, %v6678_v2  ;;  %v8849_v50 = vadd.f32 %v8779_v57, %v8419_v10  ;;  %v6296_v51 = vpop.f32.mrb[5].mxu0 }
 0x331   : > { %6867 = vst.msk [vmem:[%s11423_s30] sm:$0xff] %vm887_vm0, %v6803_v35  ;;  %v6804_v1 = vadd.f32 %v6740_v28, %v6676_v32  ;;  %v8850_v26 = vadd.f32 %v6296_v51, %v3405_v42  ;;  %v8780_v15 = vpop.f32.mrb[6].mxu0  ;;  %v6743_v42 = vld [vmem:[%s11409_s27 + $0x20] sm:$0xff] }
 0x332   : > { %6870 = vst.msk [vmem:[%s11423_s30 + $0x18] sm:$0xff] %vm887_vm0, %v6806_v48  ;;  %v6611_v17 = vmul.f32 %v8849_v50, %v11400_v45  ;;  %v8851_v4 = vadd.f32 %v8780_v15, %v11345_v12  ;;  %v6299_v58 = vpop.f32.mrb[7].mxu0  ;;  %v6750_v48 = vld [vmem:[%s11409_s27 + $0x58] sm:$0xff] }
 0x333   : > { %6868 = vst.msk [vmem:[%s11423_s30 + $0x8] sm:$0xff] %vm887_vm0, %v6804_v1  ;;  %v6609_v41 = vmul.f32 %v8850_v26, %v11400_v45  ;;  %v8852_v10 = vadd.f32 %v6299_v58, %v11347_v40  ;;  %v6748_v1 = vld [vmem:[%s11409_s27 + $0x48] sm:$0xff] }
 0x334   : > { %v6681_v5 = vadd.f32 %v11405_v61, %v6611_v17  ;;  %v6612_v34 = vmul.f32 %v8851_v4, %v11400_v45 }
 0x335   : > { %v6679_v11 = vadd.f32 %v11405_v61, %v6609_v41  ;;  %v6610_v12 = vmul.f32 %v8852_v10, %v11400_v45 }
 0x336   : > { %v6809_v21 = vadd.f32 %v6745_v53, %v6681_v5  ;;  %v6682_v25 = vadd.f32 %v11405_v61, %v6612_v34 }
 0x337   : > { %v6807_v20 = vadd.f32 %v6743_v42, %v6679_v11  ;;  %v6680_v40 = vadd.f32 %v11405_v61, %v6610_v12  ;;  %v8783_v30 = vpop.f32.mrb[8].mxu0 }
 0x338   : > { %6873 = vst.msk [vmem:[%s11423_s30 + $0x30] sm:$0xff] %vm887_vm0, %v6809_v21  ;;  %v6810_v27 = vadd.f32 %v6746_v62, %v6682_v25  ;;  %v8853_v14 = vadd.f32 %v8783_v30, %v11349_v60  ;;  %v6312_v22 = vpop.f32.mrb[9].mxu0  ;;  %v6749_v60 = vld [vmem:[%s11409_s27 + $0x50] sm:$0xff]  ;;  %v6752_v30 = vld [vmem:[%s11409_s27 + $0x68] sm:$0xff] }
 0x339   : > { %6871 = vst.msk [vmem:[%s11423_s30 + $0x20] sm:$0xff] %vm887_vm0, %v6807_v20  ;;  %v6808_v8 = vadd.f32 %v6744_v44, %v6680_v40  ;;  %v8854_v38 = vadd.f32 %v6312_v22, %v11351_v7  ;;  %v8784_v16 = vpop.f32.mrb[10].mxu0  ;;  %v6747_v7 = vld [vmem:[%s11409_s27 + $0x40] sm:$0xff]  ;;  %v6754_v44 = vld [vmem:[%s11409_s27 + $0x78] sm:$0xff] }
 0x33a   : > { %6874 = vst.msk [vmem:[%s11423_s30 + $0x38] sm:$0xff] %vm887_vm0, %v6810_v27  ;;  %v6615_v52 = vmul.f32 %v8853_v14, %v11400_v45  ;;  %v8855_v59 = vadd.f32 %v8784_v16, %v11353_v6  ;;  %v6315_v18 = vpop.f32.mrb[11].mxu0 }
 0x33b   : > { %6872 = vst.msk [vmem:[%s11423_s30 + $0x28] sm:$0xff] %vm887_vm0, %v6808_v8  ;;  %v6613_v2 = vmul.f32 %v8854_v38, %v11400_v45  ;;  %v8856_v28 = vadd.f32 %v6315_v18, %v11355_v9 }
 0x33c   : > { %v6685_v35 = vadd.f32 %v11405_v61, %v6615_v52  ;;  %v6616_v32 = vmul.f32 %v8855_v59, %v11400_v45 }
 0x33d   : > { %v6683_v57 = vadd.f32 %v11405_v61, %v6613_v2  ;;  %v6614_v6 = vmul.f32 %v8856_v28, %v11400_v45 }
 0x33e   : > { %v6813_v50 = vadd.f32 %v6749_v60, %v6685_v35  ;;  %v6686_v51 = vadd.f32 %v11405_v61, %v6616_v32 }
 0x33f   : > { %v6811_v26 = vadd.f32 %v6747_v7, %v6683_v57  ;;  %v6684_v9 = vadd.f32 %v11405_v61, %v6614_v6  ;;  %v8787_v15 = vpop.f32.mrb[12].mxu0 }
 0x340   : > { %6877 = vst.msk [vmem:[%s11423_s30 + $0x50] sm:$0xff] %vm887_vm0, %v6813_v50  ;;  %v6814_v17 = vadd.f32 %v6750_v48, %v6686_v51  ;;  %v8857_v4 = vadd.f32 %v8787_v15, %v11357_v24  ;;  %v6328_v58 = vpop.f32.mrb[13].mxu0  ;;  %v6753_v24 = vld [vmem:[%s11409_s27 + $0x70] sm:$0xff]  ;;  %v6758_v48 = vld [vmem:[%s11409_s27 + $0x98] sm:$0xff]  ;;  %v6756_v51 = vld [vmem:[%s11409_s27 + $0x88] sm:$0xff] }
 0x341   : > { %6875 = vst.msk [vmem:[%s11423_s30 + $0x40] sm:$0xff] %vm887_vm0, %v6811_v26  ;;  %v6812_v53 = vadd.f32 %v6748_v1, %v6684_v9  ;;  %v8858_v41 = vadd.f32 %v6328_v58, %v11359_v31  ;;  %v8788_v10 = vpop.f32.mrb[14].mxu0  ;;  %v6751_v31 = vld [vmem:[%s11409_s27 + $0x60] sm:$0xff] }
 0x342   : > { %6878 = vst.msk [vmem:[%s11423_s30 + $0x58] sm:$0xff] %vm887_vm0, %v6814_v17  ;;  %v6619_v5 = vmul.f32 %v8857_v4, %v11400_v45  ;;  %v8859_v42 = vadd.f32 %v8788_v10, %v11361_v55  ;;  %v6331_v34 = vpop.f32.mrb[15].mxu0 }
 0x343   : > { %6876 = vst.msk [vmem:[%s11423_s30 + $0x48] sm:$0xff] %vm887_vm0, %v6812_v53  ;;  %v6617_v11 = vmul.f32 %v8858_v41, %v11400_v45  ;;  %v8860_v62 = vadd.f32 %v6331_v34, %v11363_v0 }
 0x344   : > { %v6689_v12 = vadd.f32 %v11405_v61, %v6619_v5  ;;  %v6620_v21 = vmul.f32 %v8859_v42, %v11400_v45 }
 0x345   : > { %v6687_v25 = vadd.f32 %v11405_v61, %v6617_v11  ;;  %v6618_v55 = vmul.f32 %v8860_v62, %v11400_v45 }
 0x346   : > { %v6817_v20 = vadd.f32 %v6753_v24, %v6689_v12  ;;  %v6690_v40 = vadd.f32 %v11405_v61, %v6620_v21  ;;  %v6762_v12 = vld [vmem:[%s11409_s27 + $0xb8] sm:$0xff] }
 0x347   : > { %v6815_v27 = vadd.f32 %v6751_v31, %v6687_v25  ;;  %v6688_v0 = vadd.f32 %v11405_v61, %v6618_v55  ;;  %v8791_v14 = vpop.f32.mrb[16].mxu0  ;;  %v6760_v25 = vld [vmem:[%s11409_s27 + $0xa8] sm:$0xff] }
 0x348   : > { %6881 = vst.msk [vmem:[%s11423_s30 + $0x70] sm:$0xff] %vm887_vm0, %v6817_v20  ;;  %v6818_v22 = vadd.f32 %v6754_v44, %v6690_v40  ;;  %v8861_v8 = vadd.f32 %v8791_v14, %v11365_v46  ;;  %v6344_v38 = vpop.f32.mrb[17].mxu0  ;;  %v6757_v46 = vld [vmem:[%s11409_s27 + $0x90] sm:$0xff] }
 0x349   : > { %6879 = vst.msk [vmem:[%s11423_s30 + $0x60] sm:$0xff] %vm887_vm0, %v6815_v27  ;;  %v6816_v16 = vadd.f32 %v6752_v30, %v6688_v0  ;;  %v8862_v52 = vadd.f32 %v6344_v38, %v11367_v19  ;;  %v8792_v59 = vpop.f32.mrb[18].mxu0  ;;  %v6755_v19 = vld [vmem:[%s11409_s27 + $0x80] sm:$0xff] }
 0x34a   : > { %6882 = vst.msk [vmem:[%s11423_s30 + $0x78] sm:$0xff] %vm887_vm0, %v6818_v22  ;;  %v6623_v18 = vmul.f32 %v8861_v8, %v11400_v45  ;;  %v8863_v60 = vadd.f32 %v8792_v59, %v11369_v13  ;;  %v6347_v2 = vpop.f32.mrb[19].mxu0 }
 0x34b   : > { %6880 = vst.msk [vmem:[%s11423_s30 + $0x68] sm:$0xff] %vm887_vm0, %v6816_v16  ;;  %v6621_v28 = vmul.f32 %v8862_v52, %v11400_v45  ;;  %v8864_v35 = vadd.f32 %v6347_v2, %v11371_v23  ;;  %v6766_v2 = vld [vmem:[%s11409_s27 + $0xd8] sm:$0xff] }
 0x34c   : > { %v6693_v7 = vadd.f32 %v11405_v61, %v6623_v18  ;;  %v6624_v32 = vmul.f32 %v8863_v60, %v11400_v45 }
 0x34d   : > { %v6691_v57 = vadd.f32 %v11405_v61, %v6621_v28  ;;  %v6622_v13 = vmul.f32 %v8864_v35, %v11400_v45  ;;  %v6764_v35 = vld [vmem:[%s11409_s27 + $0xc8] sm:$0xff] }
 0x34e   : > { %v6821_v6 = vadd.f32 %v6757_v46, %v6693_v7  ;;  %v6694_v50 = vadd.f32 %v11405_v61, %v6624_v32 }
 0x34f   : > { %v6819_v1 = vadd.f32 %v6755_v19, %v6691_v57  ;;  %v6692_v23 = vadd.f32 %v11405_v61, %v6622_v13  ;;  %v8795_v26 = vpop.f32.mrb[20].mxu0 }
 0x350   : > { %6885 = vst.msk [vmem:[%s11423_s30 + $0x90] sm:$0xff] %vm887_vm0, %v6821_v6  ;;  %v6822_v9 = vadd.f32 %v6758_v48, %v6694_v50  ;;  %v8865_v15 = vadd.f32 %v8795_v26, %v11373_v49  ;;  %v6360_v17 = vpop.f32.mrb[21].mxu0  ;;  %v6761_v49 = vld [vmem:[%s11409_s27 + $0xb0] sm:$0xff] }
 0x351   : > { %6883 = vst.msk [vmem:[%s11423_s30 + $0x80] sm:$0xff] %vm887_vm0, %v6819_v1  ;;  %v6820_v4 = vadd.f32 %v6756_v51, %v6692_v23  ;;  %v8866_v58 = vadd.f32 %v6360_v17, %v11375_v33  ;;  %v8796_v53 = vpop.f32.mrb[22].mxu0  ;;  %v6759_v33 = vld [vmem:[%s11409_s27 + $0xa0] sm:$0xff]  ;;  %v6769_v26 = vld [vmem:[%s11409_s27 + $0xf0] sm:$0xff] }
 0x352   : > { %6886 = vst.msk [vmem:[%s11423_s30 + $0x98] sm:$0xff] %vm887_vm0, %v6822_v9  ;;  %v6627_v41 = vmul.f32 %v8865_v15, %v11400_v45  ;;  %v8867_v10 = vadd.f32 %v8796_v53, %v11377_v3  ;;  %v6363_v5 = vpop.f32.mrb[23].mxu0 }
 0x353   : > { %6884 = vst.msk [vmem:[%s11423_s30 + $0x88] sm:$0xff] %vm887_vm0, %v6820_v4  ;;  %v6625_v42 = vmul.f32 %v8866_v58, %v11400_v45  ;;  %v8868_v34 = vadd.f32 %v6363_v5, %v11379_v29 }
 0x354   : > { %v6697_v24 = vadd.f32 %v11405_v61, %v6627_v41  ;;  %v6628_v11 = vmul.f32 %v8867_v10, %v11400_v45 }
 0x355   : > { %v6695_v62 = vadd.f32 %v11405_v61, %v6625_v42  ;;  %v6626_v3 = vmul.f32 %v8868_v34, %v11400_v45 }
 0x356   : > { %v6825_v31 = vadd.f32 %v6761_v49, %v6697_v24  ;;  %v6698_v21 = vadd.f32 %v11405_v61, %v6628_v11  ;;  %v6768_v49 = vld [vmem:[%s11409_s27 + $0xe8] sm:$0xff] }
 0x357   : > { %v6823_v44 = vadd.f32 %v6759_v33, %v6695_v62  ;;  %v6696_v29 = vadd.f32 %v11405_v61, %v6626_v3  ;;  %v8799_v55 = vpop.f32.mrb[24].mxu0 }
 0x358   : > { %6889 = vst.msk [vmem:[%s11423_s30 + $0xb0] sm:$0xff] %vm887_vm0, %v6825_v31  ;;  %v6826_v20 = vadd.f32 %v6762_v12, %v6698_v21  ;;  %v8869_v40 = vadd.f32 %v8799_v55, %v11381_v56  ;;  %v6376_v30 = vpop.f32.mrb[25].mxu0  ;;  %v6765_v56 = vld [vmem:[%s11409_s27 + $0xd0] sm:$0xff] }
 0x359   : > { %6887 = vst.msk [vmem:[%s11423_s30 + $0xa0] sm:$0xff] %vm887_vm0, %v6823_v44  ;;  %v6824_v27 = vadd.f32 %v6760_v25, %v6696_v29  ;;  %v8870_v0 = vadd.f32 %v6376_v30, %v11383_v63  ;;  %v8800_v14 = vpop.f32.mrb[26].mxu0  ;;  %v6763_v63 = vld [vmem:[%s11409_s27 + $0xc0] sm:$0xff]  ;;  %v6773_v55 = vld [vmem:[%s11409_s27 + $0x110] sm:$0xff] }
 0x35a   : > { %6890 = vst.msk [vmem:[%s11423_s30 + $0xb8] sm:$0xff] %vm887_vm0, %v6826_v20  ;;  %v6631_v22 = vmul.f32 %v8869_v40, %v11400_v45  ;;  %v8871_v8 = vadd.f32 %v8800_v14, %v11385_v37  ;;  %v6379_v38 = vpop.f32.mrb[27].mxu0 }
 0x35b   : > { %6888 = vst.msk [vmem:[%s11423_s30 + $0xa8] sm:$0xff] %vm887_vm0, %v6824_v27  ;;  %v6629_v16 = vmul.f32 %v8870_v0, %v11400_v45  ;;  %v8872_v52 = vadd.f32 %v6379_v38, %v11387_v54  ;;  %v6771_v27 = vld [vmem:[%s11409_s27 + $0x100] sm:$0xff] }
 0x35c   : > { %v6701_v59 = vadd.f32 %v11405_v61, %v6631_v22  ;;  %v6632_v18 = vmul.f32 %v8871_v8, %v11400_v45  ;;  %v6774_v8 = vld [vmem:[%s11409_s27 + $0x118] sm:$0xff] }
 0x35d   : > { %v6699_v60 = vadd.f32 %v11405_v61, %v6629_v16  ;;  %v6630_v37 = vmul.f32 %v8872_v52, %v11400_v45 }
 0x35e   : > { %v6829_v46 = vadd.f32 %v6765_v56, %v6701_v59  ;;  %v6702_v28 = vadd.f32 %v11405_v61, %v6632_v18  ;;  %v6772_v59 = vld [vmem:[%s11409_s27 + $0x108] sm:$0xff] }
 0x35f   : > { %v6827_v7 = vadd.f32 %v6763_v63, %v6699_v60  ;;  %v6700_v54 = vadd.f32 %v11405_v61, %v6630_v37  ;;  %v8803_v19 = vpop.f32.mrb[28].mxu0 }
 0x360   : > { %6893 = vst.msk [vmem:[%s11423_s30 + $0xd0] sm:$0xff] %vm887_vm0, %v6829_v46  ;;  %v6830_v32 = vadd.f32 %v6766_v2, %v6702_v28  ;;  %v8873_v57 = vadd.f32 %v8803_v19, %v11389_v43  ;;  %v6392_v48 = vpop.f32.mrb[29].mxu0 }
 0x361   : > { %6891 = vst.msk [vmem:[%s11423_s30 + $0xc0] sm:$0xff] %vm887_vm0, %v6827_v7  ;;  %v6828_v13 = vadd.f32 %v6764_v35, %v6700_v54  ;;  %v8874_v6 = vadd.f32 %v6392_v48, %v11391_v39  ;;  %v8804_v50 = vpop.f32.mrb[30].mxu0  ;;  %v6767_v39 = vld [vmem:[%s11409_s27 + $0xe0] sm:$0xff] }
 0x362   : > { %6894 = vst.msk [vmem:[%s11423_s30 + $0xd8] sm:$0xff] %vm887_vm0, %v6830_v32  ;;  %v6635_v51 = vmul.f32 %v8873_v57, %v11400_v45  ;;  %v8875_v1 = vadd.f32 %v8804_v50, %v11393_v36  ;;  %v6395_v23 = vpop.f32.mrb[31].mxu0  ;;  %v6770_v36 = vld [vmem:[%s11409_s27 + $0xf8] sm:$0xff] }
 0x363   : > { %6892 = vst.msk [vmem:[%s11423_s30 + $0xc8] sm:$0xff] %vm887_vm0, %v6828_v13  ;;  %v6633_v43 = vmul.f32 %v8874_v6, %v11400_v45  ;;  %v8876_v9 = vadd.f32 %v6395_v23, %v11395_v47  ;;  %v6777_v13 = vld [vmem:[%s11409_s27 + $0x130] sm:$0xff] }
 0x364   : > { %v6705_v15 = vadd.f32 %v11405_v61, %v6635_v51  ;;  %v6636_v17 = vmul.f32 %v8875_v1, %v11400_v45  ;;  %v6775_v1 = vld [vmem:[%s11409_s27 + $0x120] sm:$0xff] }
 0x365   : > { %v8519_v4 = vpop.f32.mrb[32].mxu1  ;;  %v6703_v58 = vadd.f32 %v11405_v61, %v6633_v43  ;;  %v6634_v53 = vmul.f32 %v8876_v9, %v11400_v45  ;;  %v6778_v9 = vld [vmem:[%s11409_s27 + $0x138] sm:$0xff] }
 0x366   : > { %v4095_v41 = vpop.f32.mrb[33].mxu1  ;;  %v6833_v10 = vadd.f32 %v6769_v26, %v6705_v15  ;;  %v6706_v5 = vadd.f32 %v11405_v61, %v6636_v17 }
 0x367   : > { %v8520_v47 = vpop.f32.mrb[34].mxu1  ;;  %v6831_v42 = vadd.f32 %v6767_v39, %v6703_v58  ;;  %v6704_v34 = vadd.f32 %v11405_v61, %v6634_v53  ;;  %v8807_v24 = vpop.f32.mrb[32].mxu0  ;;  %v6776_v58 = vld [vmem:[%s11409_s27 + $0x128] sm:$0xff] }
 0x368   : > { %v4098_v33 = vpop.f32.mrb[35].mxu1  ;;  %6897 = vst.msk [vmem:[%s11423_s30 + $0xf0] sm:$0xff] %vm887_vm0, %v6833_v10  ;;  %v6834_v11 = vadd.f32 %v6770_v36, %v6706_v5  ;;  %v8877_v62 = vadd.f32 %v8807_v24, %v8519_v4  ;;  %v6408_v12 = vpop.f32.mrb[33].mxu0 }
 0x369   : > { %6895 = vst.msk [vmem:[%s11423_s30 + $0xe0] sm:$0xff] %vm887_vm0, %v6831_v42  ;;  %v6832_v3 = vadd.f32 %v6768_v49, %v6704_v34  ;;  %v8878_v31 = vadd.f32 %v6408_v12, %v4095_v41  ;;  %v8808_v21 = vpop.f32.mrb[34].mxu0 }
 0x36a   : > { %6898 = vst.msk [vmem:[%s11423_s30 + $0xf8] sm:$0xff] %vm887_vm0, %v6834_v11  ;;  %v6639_v25 = vmul.f32 %v8877_v62, %v11400_v45  ;;  %v8879_v44 = vadd.f32 %v8808_v21, %v8520_v47  ;;  %v6411_v29 = vpop.f32.mrb[35].mxu0 }
 0x36b   : > { %6896 = vst.msk [vmem:[%s11423_s30 + $0xe8] sm:$0xff] %vm887_vm0, %v6832_v3  ;;  %v6637_v20 = vmul.f32 %v8878_v31, %v11400_v45  ;;  %v8880_v40 = vadd.f32 %v6411_v29, %v4098_v33  ;;  %v6781_v3 = vld [vmem:[%s11409_s27 + $0x150] sm:$0xff] }
 0x36c   : > { %v6709_v30 = vadd.f32 %v11405_v61, %v6639_v25  ;;  %v6640_v0 = vmul.f32 %v8879_v44, %v11400_v45  ;;  %v6779_v44 = vld [vmem:[%s11409_s27 + $0x140] sm:$0xff] }
 0x36d   : > { %v8523_v14 = vpop.f32.mrb[36].mxu1  ;;  %v6707_v22 = vadd.f32 %v11405_v61, %v6637_v20  ;;  %v6638_v38 = vmul.f32 %v8880_v40, %v11400_v45  ;;  %v6782_v40 = vld [vmem:[%s11409_s27 + $0x158] sm:$0xff] }
 0x36e   : > { %v4111_v56 = vpop.f32.mrb[37].mxu1  ;;  %v6837_v16 = vadd.f32 %v6773_v55, %v6709_v30  ;;  %v6710_v52 = vadd.f32 %v11405_v61, %v6640_v0 }
 0x36f   : > { %v8524_v63 = vpop.f32.mrb[38].mxu1  ;;  %v6835_v18 = vadd.f32 %v6771_v27, %v6707_v22  ;;  %v6708_v60 = vadd.f32 %v11405_v61, %v6638_v38  ;;  %v8811_v2 = vpop.f32.mrb[36].mxu0  ;;  %v6780_v22 = vld [vmem:[%s11409_s27 + $0x148] sm:$0xff] }
 0x370   : > { %v4114_v37 = vpop.f32.mrb[39].mxu1  ;;  %6901 = vst.msk [vmem:[%s11423_s30 + $0x110] sm:$0xff] %vm887_vm0, %v6837_v16  ;;  %v6838_v46 = vadd.f32 %v6774_v8, %v6710_v52  ;;  %v8881_v28 = vadd.f32 %v8811_v2, %v8523_v14  ;;  %v6424_v35 = vpop.f32.mrb[37].mxu0 }
 0x371   : > { %6899 = vst.msk [vmem:[%s11423_s30 + $0x100] sm:$0xff] %vm887_vm0, %v6835_v18  ;;  %v6836_v7 = vadd.f32 %v6772_v59, %v6708_v60  ;;  %v8882_v54 = vadd.f32 %v6424_v35, %v4111_v56  ;;  %v8812_v19 = vpop.f32.mrb[38].mxu0 }
 0x372   : > { %6902 = vst.msk [vmem:[%s11423_s30 + $0x118] sm:$0xff] %vm887_vm0, %v6838_v46  ;;  %v6643_v32 = vmul.f32 %v8881_v28, %v11400_v45  ;;  %v8883_v57 = vadd.f32 %v8812_v19, %v8524_v63  ;;  %v6427_v48 = vpop.f32.mrb[39].mxu0 }
 0x373   : > { %6900 = vst.msk [vmem:[%s11423_s30 + $0x108] sm:$0xff] %vm887_vm0, %v6836_v7  ;;  %v6641_v6 = vmul.f32 %v8882_v54, %v11400_v45  ;;  %v8884_v50 = vadd.f32 %v6427_v48, %v4114_v37  ;;  %v6785_v7 = vld [vmem:[%s11409_s27 + $0x170] sm:$0xff] }
 0x374   : > { %v6713_v51 = vadd.f32 %v11405_v61, %v6643_v32  ;;  %v6644_v23 = vmul.f32 %v8883_v57, %v11400_v45  ;;  %v6783_v57 = vld [vmem:[%s11409_s27 + $0x160] sm:$0xff] }
 0x375   : > { %v8527_v26 = vpop.f32.mrb[40].mxu1  ;;  %v6711_v43 = vadd.f32 %v11405_v61, %v6641_v6  ;;  %v6642_v15 = vmul.f32 %v8884_v50, %v11400_v45  ;;  %v6786_v50 = vld [vmem:[%s11409_s27 + $0x178] sm:$0xff] }
 0x376   : > { %v4127_v39 = vpop.f32.mrb[41].mxu1  ;;  %v6841_v17 = vadd.f32 %v6777_v13, %v6713_v51  ;;  %v6714_v4 = vadd.f32 %v11405_v61, %v6644_v23 }
 0x377   : > { %v8528_v36 = vpop.f32.mrb[42].mxu1  ;;  %v6839_v53 = vadd.f32 %v6775_v1, %v6711_v43  ;;  %v6712_v41 = vadd.f32 %v11405_v61, %v6642_v15  ;;  %v8815_v10 = vpop.f32.mrb[40].mxu0  ;;  %v6784_v43 = vld [vmem:[%s11409_s27 + $0x168] sm:$0xff] }
 0x378   : > { %v4130_v5 = vpop.f32.mrb[43].mxu1  ;;  %6905 = vst.msk [vmem:[%s11423_s30 + $0x130] sm:$0xff] %vm887_vm0, %v6841_v17  ;;  %v6842_v49 = vadd.f32 %v6778_v9, %v6714_v4  ;;  %v8885_v47 = vadd.f32 %v8815_v10, %v8527_v26  ;;  %v6440_v42 = vpop.f32.mrb[41].mxu0 }
 0x379   : > { %6903 = vst.msk [vmem:[%s11423_s30 + $0x120] sm:$0xff] %vm887_vm0, %v6839_v53  ;;  %v6840_v34 = vadd.f32 %v6776_v58, %v6712_v41  ;;  %v8886_v24 = vadd.f32 %v6440_v42, %v4127_v39  ;;  %v8816_v33 = vpop.f32.mrb[42].mxu0 }
 0x37a   : > { %6906 = vst.msk [vmem:[%s11423_s30 + $0x138] sm:$0xff] %vm887_vm0, %v6842_v49  ;;  %v6647_v11 = vmul.f32 %v8885_v47, %v11400_v45  ;;  %v8887_v62 = vadd.f32 %v8816_v33, %v8528_v36  ;;  %v6443_v12 = vpop.f32.mrb[43].mxu0 }
 0x37b   : > { %6904 = vst.msk [vmem:[%s11423_s30 + $0x128] sm:$0xff] %vm887_vm0, %v6840_v34  ;;  %v6645_v31 = vmul.f32 %v8886_v24, %v11400_v45  ;;  %v8888_v21 = vadd.f32 %v6443_v12, %v4130_v5  ;;  %v6789_v34 = vld [vmem:[%s11409_s27 + $0x190] sm:$0xff] }
 0x37c   : > { %v6717_v25 = vadd.f32 %v11405_v61, %v6647_v11  ;;  %v6648_v29 = vmul.f32 %v8887_v62, %v11400_v45  ;;  %v6787_v62 = vld [vmem:[%s11409_s27 + $0x180] sm:$0xff] }
 0x37d   : > { %v8531_v55 = vpop.f32.mrb[44].mxu1  ;;  %v6715_v20 = vadd.f32 %v11405_v61, %v6645_v31  ;;  %v6646_v30 = vmul.f32 %v8888_v21, %v11400_v45  ;;  %v6790_v21 = vld [vmem:[%s11409_s27 + $0x198] sm:$0xff] }
 0x37e   : > { %v4143_v27 = vpop.f32.mrb[45].mxu1  ;;  %v6845_v0 = vadd.f32 %v6781_v3, %v6717_v25  ;;  %v6718_v14 = vadd.f32 %v11405_v61, %v6648_v29 }
 0x37f   : > { %v8532_v8 = vpop.f32.mrb[46].mxu1  ;;  %v6843_v38 = vadd.f32 %v6779_v44, %v6715_v20  ;;  %v6716_v56 = vadd.f32 %v11405_v61, %v6646_v30  ;;  %v8819_v16 = vpop.f32.mrb[44].mxu0  ;;  %v6788_v20 = vld [vmem:[%s11409_s27 + $0x188] sm:$0xff] }
 0x380   : > { %v4146_v52 = vpop.f32.mrb[47].mxu1  ;;  %6909 = vst.msk [vmem:[%s11423_s30 + $0x150] sm:$0xff] %vm887_vm0, %v6845_v0  ;;  %v6846_v59 = vadd.f32 %v6782_v40, %v6718_v14  ;;  %v8889_v63 = vadd.f32 %v8819_v16, %v8531_v55  ;;  %v6456_v18 = vpop.f32.mrb[45].mxu0 }
 0x381   : > { %6907 = vst.msk [vmem:[%s11423_s30 + $0x140] sm:$0xff] %vm887_vm0, %v6843_v38  ;;  %v6844_v60 = vadd.f32 %v6780_v22, %v6716_v56  ;;  %v8890_v2 = vadd.f32 %v6456_v18, %v4143_v27  ;;  %v8820_v37 = vpop.f32.mrb[46].mxu0 }
 0x382   : > { %6910 = vst.msk [vmem:[%s11423_s30 + $0x158] sm:$0xff] %vm887_vm0, %v6846_v59  ;;  %v6651_v46 = vmul.f32 %v8889_v63, %v11400_v45  ;;  %v8891_v28 = vadd.f32 %v8820_v37, %v8532_v8  ;;  %v6459_v35 = vpop.f32.mrb[47].mxu0 }
 0x383   : > { %6908 = vst.msk [vmem:[%s11423_s30 + $0x148] sm:$0xff] %vm887_vm0, %v6844_v60  ;;  %v6649_v54 = vmul.f32 %v8890_v2, %v11400_v45  ;;  %v8892_v19 = vadd.f32 %v6459_v35, %v4146_v52  ;;  %v6793_v60 = vld [vmem:[%s11409_s27 + $0x1b0] sm:$0xff] }
 0x384   : > { %v6721_v32 = vadd.f32 %v11405_v61, %v6651_v46  ;;  %v6652_v48 = vmul.f32 %v8891_v28, %v11400_v45  ;;  %v6791_v28 = vld [vmem:[%s11409_s27 + $0x1a0] sm:$0xff] }
 0x385   : > { %v8535_v13 = vpop.f32.mrb[48].mxu1  ;;  %v6719_v6 = vadd.f32 %v11405_v61, %v6649_v54  ;;  %v6650_v51 = vmul.f32 %v8892_v19, %v11400_v45  ;;  %v6794_v19 = vld [vmem:[%s11409_s27 + $0x1b8] sm:$0xff] }
 0x386   : > { %v4159_v1 = vpop.f32.mrb[49].mxu1  ;;  %v6849_v23 = vadd.f32 %v6785_v7, %v6721_v32  ;;  %v6722_v26 = vadd.f32 %v11405_v61, %v6652_v48 }
 0x387   : > { %v8536_v9 = vpop.f32.mrb[50].mxu1  ;;  %v6847_v15 = vadd.f32 %v6783_v57, %v6719_v6  ;;  %v6720_v39 = vadd.f32 %v11405_v61, %v6650_v51  ;;  %v8823_v17 = vpop.f32.mrb[48].mxu0  ;;  %v6792_v6 = vld [vmem:[%s11409_s27 + $0x1a8] sm:$0xff] }
 0x388   : > { %v4162_v4 = vpop.f32.mrb[51].mxu1  ;;  %6913 = vst.msk [vmem:[%s11423_s30 + $0x170] sm:$0xff] %vm887_vm0, %v6849_v23  ;;  %v6850_v58 = vadd.f32 %v6786_v50, %v6722_v26  ;;  %v8893_v36 = vadd.f32 %v8823_v17, %v8535_v13  ;;  %v6472_v53 = vpop.f32.mrb[49].mxu0 }
 0x389   : > { %6911 = vst.msk [vmem:[%s11423_s30 + $0x160] sm:$0xff] %vm887_vm0, %v6847_v15  ;;  %v6848_v41 = vadd.f32 %v6784_v43, %v6720_v39  ;;  %v8894_v10 = vadd.f32 %v6472_v53, %v4159_v1  ;;  %v8824_v5 = vpop.f32.mrb[50].mxu0 }
 0x38a   : > { %6914 = vst.msk [vmem:[%s11423_s30 + $0x178] sm:$0xff] %vm887_vm0, %v6850_v58  ;;  %v6655_v49 = vmul.f32 %v8893_v36, %v11400_v45  ;;  %v8895_v47 = vadd.f32 %v8824_v5, %v8536_v9  ;;  %v6475_v42 = vpop.f32.mrb[51].mxu0 }
 0x38b   : > { %6912 = vst.msk [vmem:[%s11423_s30 + $0x168] sm:$0xff] %vm887_vm0, %v6848_v41  ;;  %v6653_v24 = vmul.f32 %v8894_v10, %v11400_v45  ;;  %v8896_v33 = vadd.f32 %v6475_v42, %v4162_v4  ;;  %v6797_v41 = vld [vmem:[%s11409_s27 + $0x1d0] sm:$0xff] }
 0x38c   : > { %v6725_v11 = vadd.f32 %v11405_v61, %v6655_v49  ;;  %v6656_v12 = vmul.f32 %v8895_v47, %v11400_v45  ;;  %v6795_v47 = vld [vmem:[%s11409_s27 + $0x1c0] sm:$0xff] }
 0x38d   : > { %v8539_v3 = vpop.f32.mrb[52].mxu1  ;;  %v6723_v31 = vadd.f32 %v11405_v61, %v6653_v24  ;;  %v6654_v25 = vmul.f32 %v8896_v33, %v11400_v45  ;;  %v6798_v33 = vld [vmem:[%s11409_s27 + $0x1d8] sm:$0xff] }
 0x38e   : > { %v4175_v44 = vpop.f32.mrb[53].mxu1  ;;  %v6853_v29 = vadd.f32 %v6789_v34, %v6725_v11  ;;  %v6726_v55 = vadd.f32 %v11405_v61, %v6656_v12 }
 0x38f   : > { %v8540_v40 = vpop.f32.mrb[54].mxu1  ;;  %v6851_v30 = vadd.f32 %v6787_v62, %v6723_v31  ;;  %v6724_v27 = vadd.f32 %v11405_v61, %v6654_v25  ;;  %v8827_v0 = vpop.f32.mrb[52].mxu0  ;;  %v6796_v31 = vld [vmem:[%s11409_s27 + $0x1c8] sm:$0xff] }
 0x390   : > { %v4178_v14 = vpop.f32.mrb[55].mxu1  ;;  %6917 = vst.msk [vmem:[%s11423_s30 + $0x190] sm:$0xff] %vm887_vm0, %v6853_v29  ;;  %v6854_v22 = vadd.f32 %v6790_v21, %v6726_v55  ;;  %v8897_v8 = vadd.f32 %v8827_v0, %v8539_v3  ;;  %v6488_v38 = vpop.f32.mrb[53].mxu0 }
 0x391   : > { %6915 = vst.msk [vmem:[%s11423_s30 + $0x180] sm:$0xff] %vm887_vm0, %v6851_v30  ;;  %v6852_v56 = vadd.f32 %v6788_v20, %v6724_v27  ;;  %v8898_v16 = vadd.f32 %v6488_v38, %v4175_v44  ;;  %v8828_v52 = vpop.f32.mrb[54].mxu0 }
 0x392   : > { %6918 = vst.msk [vmem:[%s11423_s30 + $0x198] sm:$0xff] %vm887_vm0, %v6854_v22  ;;  %v6659_v59 = vmul.f32 %v8897_v8, %v11400_v45  ;;  %v8899_v63 = vadd.f32 %v8828_v52, %v8540_v40  ;;  %v6491_v18 = vpop.f32.mrb[55].mxu0 }
 0x393   : > { %6916 = vst.msk [vmem:[%s11423_s30 + $0x188] sm:$0xff] %vm887_vm0, %v6852_v56  ;;  %v6657_v2 = vmul.f32 %v8898_v16, %v11400_v45  ;;  %v8900_v37 = vadd.f32 %v6491_v18, %v4178_v14  ;;  %v6801_v56 = vld [vmem:[%s11409_s27 + $0x1f0] sm:$0xff] }
 0x394   : > { %v6729_v46 = vadd.f32 %v11405_v61, %v6659_v59  ;;  %v6660_v35 = vmul.f32 %v8899_v63, %v11400_v45  ;;  %v6799_v63 = vld [vmem:[%s11409_s27 + $0x1e0] sm:$0xff] }
 0x395   : > { %v8543_v7 = vpop.f32.mrb[56].mxu1  ;;  %v6727_v54 = vadd.f32 %v11405_v61, %v6657_v2  ;;  %v6658_v32 = vmul.f32 %v8900_v37, %v11400_v45  ;;  %v6802_v2 = vld [vmem:[%s11409_s27 + $0x1f8] sm:$0xff] }
 0x396   : > { %v4191_v57 = vpop.f32.mrb[57].mxu1  ;;  %v6857_v48 = vadd.f32 %v6793_v60, %v6729_v46  ;;  %v6730_v13 = vadd.f32 %v11405_v61, %v6660_v35  ;;  %v6800_v35 = vld [vmem:[%s11409_s27 + $0x1e8] sm:$0xff] }
 0x397   : > { %v8544_v50 = vpop.f32.mrb[58].mxu1  ;;  %v6855_v51 = vadd.f32 %v6791_v28, %v6727_v54  ;;  %v6728_v1 = vadd.f32 %v11405_v61, %v6658_v32  ;;  %v8831_v23 = vpop.f32.mrb[56].mxu0 }
 0x398   : > { %v4194_v26 = vpop.f32.mrb[59].mxu1  ;;  %6921 = vst.msk [vmem:[%s11423_s30 + $0x1b0] sm:$0xff] %vm887_vm0, %v6857_v48  ;;  %v6858_v43 = vadd.f32 %v6794_v19, %v6730_v13  ;;  %v8901_v9 = vadd.f32 %v8831_v23, %v8543_v7  ;;  %v6504_v15 = vpop.f32.mrb[57].mxu0  ;;  %v7101_v48 = vld [vmem:[%s11423_s30 + $0x18] sm:$0xff] (%p9548_p6)  ;;  %v7103_v13 = vld [vmem:[%s11423_s30 + $0x20] sm:$0xff] (%p9548_p6)  ;;  %v7113_v23 = vld [vmem:[%s11423_s30 + $0x48] sm:$0xff] (%p9548_p6) }
 0x399   : > { %6919 = vst.msk [vmem:[%s11423_s30 + $0x1a0] sm:$0xff] %vm887_vm0, %v6855_v51  ;;  %v6856_v39 = vadd.f32 %v6792_v6, %v6728_v1  ;;  %v8902_v17 = vadd.f32 %v6504_v15, %v4191_v57  ;;  %v8832_v4 = vpop.f32.mrb[58].mxu0  ;;  %v7099_v57 = vld [vmem:[%s11423_s30 + $0x10] sm:$0xff] (%p9548_p6)  ;;  %v7105_v6 = vld [vmem:[%s11423_s30 + $0x28] sm:$0xff] (%p9548_p6)  ;;  %7102 = vst [vmem:[%s11768_s8 + $0x18] sm:$0xff] (%p9548_p6), %v7101_v48 }
 0x39a   : > { %6922 = vst.msk [vmem:[%s11423_s30 + $0x1b8] sm:$0xff] %vm887_vm0, %v6858_v43  ;;  %v6663_v58 = vmul.f32 %v8901_v9, %v11400_v45  ;;  %v8903_v36 = vadd.f32 %v8832_v4, %v8544_v50  ;;  %v6507_v53 = vpop.f32.mrb[59].mxu0  ;;  %7100 = vst [vmem:[%s11768_s8 + $0x10] sm:$0xff] (%p9548_p6), %v7099_v57  ;;  %v7107_v50 = vld [vmem:[%s11423_s30 + $0x30] sm:$0xff] (%p9548_p6)  ;;  %v7109_v51 = vld [vmem:[%s11423_s30 + $0x38] sm:$0xff] (%p9548_p6) }
 0x39b   : > { %6920 = vst.msk [vmem:[%s11423_s30 + $0x1a8] sm:$0xff] %vm887_vm0, %v6856_v39  ;;  %v6661_v10 = vmul.f32 %v8902_v17, %v11400_v45  ;;  %v8904_v5 = vadd.f32 %v6507_v53, %v4194_v26  ;;  %7104 = vst [vmem:[%s11768_s8 + $0x20] sm:$0xff] (%p9548_p6), %v7103_v13  ;;  %v7111_v1 = vld [vmem:[%s11423_s30 + $0x40] sm:$0xff] (%p9548_p6)  ;;  %v7115_v26 = vld [vmem:[%s11423_s30 + $0x50] sm:$0xff] (%p9548_p6) }
 0x39c   : > { %v6733_v49 = vadd.f32 %v11405_v61, %v6663_v58  ;;  %v6664_v42 = vmul.f32 %v8903_v36, %v11400_v45  ;;  %7106 = vst [vmem:[%s11768_s8 + $0x28] sm:$0xff] (%p9548_p6), %v7105_v6  ;;  %7108 = vst [vmem:[%s11768_s8 + $0x30] sm:$0xff] (%p9548_p6), %v7107_v50  ;;  %v7117_v43 = vld [vmem:[%s11423_s30 + $0x58] sm:$0xff] (%p9548_p6)  ;;  %v7119_v9 = vld [vmem:[%s11423_s30 + $0x60] sm:$0xff] (%p9548_p6) }
 0x39d   : > { %v8547_v34 = vpop.f32.mrb[60].mxu1  ;;  %v6731_v24 = vadd.f32 %v11405_v61, %v6661_v10  ;;  %v6662_v11 = vmul.f32 %v8904_v5, %v11400_v45  ;;  %7110 = vst [vmem:[%s11768_s8 + $0x38] sm:$0xff] (%p9548_p6), %v7109_v51  ;;  %7112 = vst [vmem:[%s11768_s8 + $0x40] sm:$0xff] (%p9548_p6), %v7111_v1  ;;  %v7121_v15 = vld [vmem:[%s11423_s30 + $0x68] sm:$0xff] (%p9548_p6)  ;;  %v7123_v39 = vld [vmem:[%s11423_s30 + $0x70] sm:$0xff] (%p9548_p6) }
 0x39e   : > { %v4207_v62 = vpop.f32.mrb[61].mxu1  ;;  %v6861_v12 = vadd.f32 %v6797_v41, %v6733_v49  ;;  %v6734_v3 = vadd.f32 %v11405_v61, %v6664_v42  ;;  %7114 = vst [vmem:[%s11768_s8 + $0x48] sm:$0xff] (%p9548_p6), %v7113_v23  ;;  %7116 = vst [vmem:[%s11768_s8 + $0x50] sm:$0xff] (%p9548_p6), %v7115_v26  ;;  %v7125_v17 = vld [vmem:[%s11423_s30 + $0x78] sm:$0xff] (%p9548_p6)  ;;  %v7127_v4 = vld [vmem:[%s11423_s30 + $0x80] sm:$0xff] (%p9548_p6) }
 0x39f   : > { %v8548_v21 = vpop.f32.mrb[62].mxu1  ;;  %v6859_v25 = vadd.f32 %v6795_v47, %v6731_v24  ;;  %v6732_v44 = vadd.f32 %v11405_v61, %v6662_v11  ;;  %v8835_v29 = vpop.f32.mrb[60].mxu0  ;;  %7118 = vst [vmem:[%s11768_s8 + $0x58] sm:$0xff] (%p9548_p6), %v7117_v43  ;;  %7120 = vst [vmem:[%s11768_s8 + $0x60] sm:$0xff] (%p9548_p6), %v7119_v9  ;;  %v7129_v58 = vld [vmem:[%s11423_s30 + $0x88] sm:$0xff] (%p9548_p6)  ;;  %v7131_v36 = vld [vmem:[%s11423_s30 + $0x90] sm:$0xff] (%p9548_p6) }
 0x3a0   : > { %v4210_v55 = vpop.f32.mrb[63].mxu1  ;;  %6925 = vst.msk [vmem:[%s11423_s30 + $0x1d0] sm:$0xff] %vm887_vm0, %v6861_v12  ;;  %v6862_v20 = vadd.f32 %v6798_v33, %v6734_v3  ;;  %v8905_v40 = vadd.f32 %v8835_v29, %v8547_v34  ;;  %v6520_v30 = vpop.f32.mrb[61].mxu0  ;;  %7122 = vst [vmem:[%s11768_s8 + $0x68] sm:$0xff] (%p9548_p6), %v7121_v15  ;;  %v7133_v53 = vld [vmem:[%s11423_s30 + $0x98] sm:$0xff] (%p9548_p6)  ;;  %v7135_v41 = vld [vmem:[%s11423_s30 + $0xa0] sm:$0xff] (%p9548_p6) }
 0x3a1   : > { %6923 = vst.msk [vmem:[%s11423_s30 + $0x1c0] sm:$0xff] %vm887_vm0, %v6859_v25  ;;  %v6860_v27 = vadd.f32 %v6796_v31, %v6732_v44  ;;  %v8906_v0 = vadd.f32 %v6520_v30, %v4207_v62  ;;  %v8836_v14 = vpop.f32.mrb[62].mxu0  ;;  %7124 = vst [vmem:[%s11768_s8 + $0x70] sm:$0xff] (%p9548_p6), %v7123_v39  ;;  %v7137_v10 = vld [vmem:[%s11423_s30 + $0xa8] sm:$0xff] (%p9548_p6)  ;;  %v7139_v5 = vld [vmem:[%s11423_s30 + $0xb0] sm:$0xff] (%p9548_p6) }
 0x3a2   : > { %6926 = vst.msk [vmem:[%s11423_s30 + $0x1d8] sm:$0xff] %vm887_vm0, %v6862_v20  ;;  %v6667_v22 = vmul.f32 %v8905_v40, %v11400_v45  ;;  %v8907_v8 = vadd.f32 %v8836_v14, %v8548_v21  ;;  %v6523_v38 = vpop.f32.mrb[63].mxu0  ;;  %7126 = vst [vmem:[%s11768_s8 + $0x78] sm:$0xff] (%p9548_p6), %v7125_v17  ;;  %v7141_v49 = vld [vmem:[%s11423_s30 + $0xb8] sm:$0xff] (%p9548_p6)  ;;  %v7143_v47 = vld [vmem:[%s11423_s30 + $0xc0] sm:$0xff] (%p9548_p6) }
 0x3a3   : > { %6924 = vst.msk [vmem:[%s11423_s30 + $0x1c8] sm:$0xff] %vm887_vm0, %v6860_v27  ;;  %v6665_v16 = vmul.f32 %v8906_v0, %v11400_v45  ;;  %v8908_v52 = vadd.f32 %v6523_v38, %v4210_v55  ;;  %7128 = vst [vmem:[%s11768_s8 + $0x80] sm:$0xff] (%p9548_p6), %v7127_v4  ;;  %v7145_v42 = vld [vmem:[%s11423_s30 + $0xc8] sm:$0xff] (%p9548_p6)  ;;  %v7147_v34 = vld [vmem:[%s11423_s30 + $0xd0] sm:$0xff] (%p9548_p6) }
 0x3a4   : > { %v6737_v59 = vadd.f32 %v11405_v61, %v6667_v22  ;;  %v6668_v18 = vmul.f32 %v8907_v8, %v11400_v45  ;;  %7130 = vst [vmem:[%s11768_s8 + $0x88] sm:$0xff] (%p9548_p6), %v7129_v58  ;;  %7132 = vst [vmem:[%s11768_s8 + $0x90] sm:$0xff] (%p9548_p6), %v7131_v36  ;;  %v7149_v24 = vld [vmem:[%s11423_s30 + $0xd8] sm:$0xff] (%p9548_p6)  ;;  %v7151_v33 = vld [vmem:[%s11423_s30 + $0xe0] sm:$0xff] (%p9548_p6) }
 0x3a5   : > { %v6735_v60 = vadd.f32 %v11405_v61, %v6665_v16  ;;  %v6666_v37 = vmul.f32 %v8908_v52, %v11400_v45  ;;  %6937 = sbr.rel (!%p9548_p6) target bundleno = 959 (0x3bf), region = 120  ;;  %v7095_v45 = vld [vmem:[%s11423_s30] sm:$0xff] (%p9548_p6)  ;;  %7134 = vst [vmem:[%s11768_s8 + $0x98] sm:$0xff] (%p9548_p6), %v7133_v53  ;;  %7136 = vst [vmem:[%s11768_s8 + $0xa0] sm:$0xff] (%p9548_p6), %v7135_v41  ;;  %v7153_v11 = vld [vmem:[%s11423_s30 + $0xe8] sm:$0xff] (%p9548_p6) }
 0x3a6   : > { %v6865_v46 = vadd.f32 %v6801_v56, %v6737_v59  ;;  %v6738_v28 = vadd.f32 %v11405_v61, %v6668_v18  ;;  %7096 = vst [vmem:[%s11768_s8] sm:$0xff] (%p9548_p6), %v7095_v45  ;;  %7138 = vst [vmem:[%s11768_s8 + $0xa8] sm:$0xff] (%p9548_p6), %v7137_v10  ;;  %v7155_v62 = vld [vmem:[%s11423_s30 + $0xf0] sm:$0xff] (%p9548_p6)  ;;  %v7157_v12 = vld [vmem:[%s11423_s30 + $0xf8] sm:$0xff] (%p9548_p6) }
 0x3a7   : > { %v6863_v7 = vadd.f32 %v6799_v63, %v6735_v60  ;;  %v6736_v54 = vadd.f32 %v11405_v61, %v6666_v37  ;;  %v7097_v61 = vld [vmem:[%s11423_s30 + $0x8] sm:$0xff] (%p9548_p6)  ;;  %7140 = vst [vmem:[%s11768_s8 + $0xb0] sm:$0xff] (%p9548_p6), %v7139_v5  ;;  %7142 = vst [vmem:[%s11768_s8 + $0xb8] sm:$0xff] (%p9548_p6), %v7141_v49  ;;  %v7159_v3 = vld [vmem:[%s11423_s30 + $0x100] sm:$0xff] (%p9548_p6) }
 0x3a8   : > { %6929 = vst.msk [vmem:[%s11423_s30 + $0x1f0] sm:$0xff] %vm887_vm0, %v6865_v46  ;;  %v6866_v19 = vadd.f32 %v6802_v2, %v6738_v28  ;;  %7098 = vst [vmem:[%s11768_s8 + $0x8] sm:$0xff] (%p9548_p6), %v7097_v61  ;;  %v7161_v31 = vld [vmem:[%s11423_s30 + $0x108] sm:$0xff] (%p9548_p6)  ;;  %v7163_v21 = vld [vmem:[%s11423_s30 + $0x110] sm:$0xff] (%p9548_p6) }
 0x3a9   : > { %6927 = vst.msk [vmem:[%s11423_s30 + $0x1e0] sm:$0xff] %vm887_vm0, %v6863_v7  ;;  %v6864_v32 = vadd.f32 %v6800_v35, %v6736_v54  ;;  %7144 = vst [vmem:[%s11768_s8 + $0xc0] sm:$0xff] (%p9548_p6), %v7143_v47  ;;  %v7165_v25 = vld [vmem:[%s11423_s30 + $0x118] sm:$0xff] (%p9548_p6)  ;;  %v7167_v44 = vld [vmem:[%s11423_s30 + $0x120] sm:$0xff] (%p9548_p6) }
 0x3aa   : > { %6930 = vst.msk [vmem:[%s11423_s30 + $0x1f8] sm:$0xff] %vm887_vm0, %v6866_v19  ;;  %7146 = vst [vmem:[%s11768_s8 + $0xc8] sm:$0xff] (%p9548_p6), %v7145_v42  ;;  %v7169_v29 = vld [vmem:[%s11423_s30 + $0x128] sm:$0xff] (%p9548_p6)  ;;  %v7171_v55 = vld [vmem:[%s11423_s30 + $0x130] sm:$0xff] (%p9548_p6) }
 0x3ab   : > { %6928 = vst.msk [vmem:[%s11423_s30 + $0x1e8] sm:$0xff] %vm887_vm0, %v6864_v32  ;;  %7148 = vst [vmem:[%s11768_s8 + $0xd0] sm:$0xff] (%p9548_p6), %v7147_v34  ;;  %v7173_v20 = vld [vmem:[%s11423_s30 + $0x138] sm:$0xff] (%p9548_p6)  ;;  %v7175_v40 = vld [vmem:[%s11423_s30 + $0x140] sm:$0xff] (%p9548_p6) }
 0x3ac   : > { %7150 = vst [vmem:[%s11768_s8 + $0xd8] sm:$0xff] %v7149_v24  ;;  %7152 = vst [vmem:[%s11768_s8 + $0xe0] sm:$0xff] %v7151_v33  ;;  %v7177_v30 = vld [vmem:[%s11423_s30 + $0x148] sm:$0xff]  ;;  %v7179_v27 = vld [vmem:[%s11423_s30 + $0x150] sm:$0xff] }
 0x3ad   : > { %7154 = vst [vmem:[%s11768_s8 + $0xe8] sm:$0xff] %v7153_v11  ;;  %7156 = vst [vmem:[%s11768_s8 + $0xf0] sm:$0xff] %v7155_v62  ;;  %v7181_v0 = vld [vmem:[%s11423_s30 + $0x158] sm:$0xff]  ;;  %v7183_v14 = vld [vmem:[%s11423_s30 + $0x160] sm:$0xff] }
 0x3ae   : > { %7158 = vst [vmem:[%s11768_s8 + $0xf8] sm:$0xff] %v7157_v12  ;;  %7160 = vst [vmem:[%s11768_s8 + $0x200] sm:$0xff] %v7159_v3  ;;  %v7185_v22 = vld [vmem:[%s11423_s30 + $0x168] sm:$0xff]  ;;  %v7187_v8 = vld [vmem:[%s11423_s30 + $0x170] sm:$0xff] }
 0x3af   : > { %7162 = vst [vmem:[%s11768_s8 + $0x208] sm:$0xff] %v7161_v31  ;;  %7164 = vst [vmem:[%s11768_s8 + $0x210] sm:$0xff] %v7163_v21  ;;  %v7189_v38 = vld [vmem:[%s11423_s30 + $0x178] sm:$0xff]  ;;  %v7191_v56 = vld [vmem:[%s11423_s30 + $0x180] sm:$0xff] }
 0x3b0   : > { %7166 = vst [vmem:[%s11768_s8 + $0x218] sm:$0xff] %v7165_v25  ;;  %7168 = vst [vmem:[%s11768_s8 + $0x220] sm:$0xff] %v7167_v44  ;;  %v7193_v16 = vld [vmem:[%s11423_s30 + $0x188] sm:$0xff]  ;;  %v7195_v52 = vld [vmem:[%s11423_s30 + $0x190] sm:$0xff] }
 0x3b1   : > { %7170 = vst [vmem:[%s11768_s8 + $0x228] sm:$0xff] %v7169_v29  ;;  %7172 = vst [vmem:[%s11768_s8 + $0x230] sm:$0xff] %v7171_v55  ;;  %v7197_v59 = vld [vmem:[%s11423_s30 + $0x198] sm:$0xff]  ;;  %v7199_v63 = vld [vmem:[%s11423_s30 + $0x1a0] sm:$0xff] }
 0x3b2   : > { %7174 = vst [vmem:[%s11768_s8 + $0x238] sm:$0xff] %v7173_v20  ;;  %7176 = vst [vmem:[%s11768_s8 + $0x240] sm:$0xff] %v7175_v40  ;;  %v7201_v18 = vld [vmem:[%s11423_s30 + $0x1a8] sm:$0xff]  ;;  %v7203_v60 = vld [vmem:[%s11423_s30 + $0x1b0] sm:$0xff] }
 0x3b3   : > { %7178 = vst [vmem:[%s11768_s8 + $0x248] sm:$0xff] %v7177_v30  ;;  %7180 = vst [vmem:[%s11768_s8 + $0x250] sm:$0xff] %v7179_v27  ;;  %v7205_v2 = vld [vmem:[%s11423_s30 + $0x1b8] sm:$0xff]  ;;  %v7207_v37 = vld [vmem:[%s11423_s30 + $0x1c0] sm:$0xff] }
 0x3b4   : > { %7182 = vst [vmem:[%s11768_s8 + $0x258] sm:$0xff] %v7181_v0  ;;  %7184 = vst [vmem:[%s11768_s8 + $0x260] sm:$0xff] %v7183_v14  ;;  %v7209_v46 = vld [vmem:[%s11423_s30 + $0x1c8] sm:$0xff]  ;;  %v7211_v28 = vld [vmem:[%s11423_s30 + $0x1d0] sm:$0xff] }
 0x3b5   : > { %7186 = vst [vmem:[%s11768_s8 + $0x268] sm:$0xff] %v7185_v22  ;;  %7188 = vst [vmem:[%s11768_s8 + $0x270] sm:$0xff] %v7187_v8  ;;  %v7213_v35 = vld [vmem:[%s11423_s30 + $0x1d8] sm:$0xff]  ;;  %v7215_v7 = vld [vmem:[%s11423_s30 + $0x1e0] sm:$0xff] }
 0x3b6   : > { %7190 = vst [vmem:[%s11768_s8 + $0x278] sm:$0xff] %v7189_v38  ;;  %7192 = vst [vmem:[%s11768_s8 + $0x280] sm:$0xff] %v7191_v56  ;;  %v7217_v54 = vld [vmem:[%s11423_s30 + $0x1e8] sm:$0xff]  ;;  %v7219_v19 = vld [vmem:[%s11423_s30 + $0x1f0] sm:$0xff] }
 0x3b7   : > { %7194 = vst [vmem:[%s11768_s8 + $0x288] sm:$0xff] %v7193_v16  ;;  %7196 = vst [vmem:[%s11768_s8 + $0x290] sm:$0xff] %v7195_v52  ;;  %v7221_v32 = vld [vmem:[%s11423_s30 + $0x1f8] sm:$0xff] }
 0x3b8   : > { %7198 = vst [vmem:[%s11768_s8 + $0x298] sm:$0xff] %v7197_v59  ;;  %7200 = vst [vmem:[%s11768_s8 + $0x2a0] sm:$0xff] %v7199_v63 }
 0x3b9   : > { %7202 = vst [vmem:[%s11768_s8 + $0x2a8] sm:$0xff] %v7201_v18  ;;  %7204 = vst [vmem:[%s11768_s8 + $0x2b0] sm:$0xff] %v7203_v60 }
 0x3ba   : > { %7206 = vst [vmem:[%s11768_s8 + $0x2b8] sm:$0xff] %v7205_v2  ;;  %7208 = vst [vmem:[%s11768_s8 + $0x2c0] sm:$0xff] %v7207_v37 }
 0x3bb   : > { %7210 = vst [vmem:[%s11768_s8 + $0x2c8] sm:$0xff] %v7209_v46  ;;  %7212 = vst [vmem:[%s11768_s8 + $0x2d0] sm:$0xff] %v7211_v28 }
 0x3bc   : > { %7214 = vst [vmem:[%s11768_s8 + $0x2d8] sm:$0xff] %v7213_v35  ;;  %7216 = vst [vmem:[%s11768_s8 + $0x2e0] sm:$0xff] %v7215_v7 }
 0x3bd   : > { %7218 = vst [vmem:[%s11768_s8 + $0x2e8] sm:$0xff] %v7217_v54  ;;  %7220 = vst [vmem:[%s11768_s8 + $0x2f0] sm:$0xff] %v7219_v19 }
 0x3be   : > { %7222 = vst [vmem:[%s11768_s8 + $0x2f8] sm:$0xff] %v7221_v32 }
 0x3bf PF: > { %s15_s22 = sadd.s32 1, %s9476_s22   ;;  %s11918_s18 = smov %s9464_s19 }
 0x3c0   : > { %p12_p11 = scmp.ge.s32.totalorder %s15_s22, 4   ;;  %s11919_s19 = smov %s9553_s29 }
 0x3c1   : > { %s11920_s20 = smov %s9472_s21  ;;  %s11921_s21 = smov %s11923_s23 }
 0x3c2   :  { %14 = sbr.rel (!%p12_p11) target bundleno = 3 (0x3), region = 219 }

</bundles_post_ra>
